<compile_context>
chip_gen: v7x
topology: tpu7x:2x2x1
jax: 0.10.0
libtpu: 0.0.40
codegen_flags: <defaults>
</compile_context>

<pallas_src>
import functools

import numpy as np
import jax
import jax.numpy as jnp
from jax.experimental import pallas as pl
from jax.experimental.pallas import tpu as pltpu

HALO = 128  # width (lanes) of the neighbour blocks used for the 1-column halo


def _round_up(x, m):
    return (x + m - 1) // m * m


# --------------------------------------------------------------------------- #
# one-time parameter packing (hoisted out of the forward pass)
# --------------------------------------------------------------------------- #
def pack_upsample_params(w_eff, bias, up):
    """Pack weight-normed ConvTranspose1d params once at model init.

    w_eff : (C_in, C_out, 2*up) effective weight (g * v / ||v||)
    bias  : (C_out,)
    Returns (w_packed bf16 (R, K), cfg) with R = C_out_p * up (C_out padded to
    a multiple of 8, rows ordered channel-major / phase-minor: r = o*up + p)
    and K = 3*C_in + 1.  Row o*up + p produces output channel o at output time
    m*up + p from the RHS column [z[m]; z[m+1]; z[m-1]; 1] (bias folded into
    the last K column).
    """
    w = np.asarray(w_eff, np.float32)
    b = np.asarray(bias, np.float32)
    c_in, c_out, k = w.shape
    assert k == 2 * up, "only the ConvTranspose1d (non-'repeat'/'pn>=3') config"
    pad = up // 2 + up % 2
    c_out_p = _round_up(c_out, 8)
    k_len = 3 * c_in + 1

    wcat = np.zeros((c_out_p, up, k_len), np.float32)
    for p in range(up):
        k0 = p + pad                                    # tap hitting x[m]
        wcat[:c_out, p, 0:c_in] = w[:, :, k0].T
        if k0 >= up:                                    # tap hitting x[m+1]
            wcat[:c_out, p, c_in:2 * c_in] = w[:, :, k0 - up].T
        else:                                           # tap hitting x[m-1]
            wcat[:c_out, p, 2 * c_in:3 * c_in] = w[:, :, k0 + up].T
    wcat[:c_out, :, 3 * c_in] = b[:, None]              # folded bias column

    w_packed = jnp.asarray(wcat.reshape(c_out_p * up, k_len), jnp.bfloat16)
    cfg = dict(up=up, c_in=c_in, c_out=c_out, c_out_p=c_out_p, k_len=k_len)
    return w_packed, cfg


def choose_tiling(B, T, c_in, c_out_p, up, k_len, out_bytes=4, max_tile=8192):
    """Pick (tile_t, vmem_limit_bytes) against this chip's VMEM capacity.

    The vmem limit is capped at 56 MiB so it is always safe on v7x (64 MiB per
    TensorCore) regardless of whether get_tpu_info reports per-TC or per-chip
    capacity, while still letting v5e/v6e (128 MiB) use large time tiles.
    """
    try:
        cap = int(pltpu.get_tpu_info().vmem_capacity_bytes)
    except Exception:
        cap = 64 * 1024 * 1024
    vmem_limit = int(min(max(cap // 2, 32 * 1024 * 1024), 56 * 1024 * 1024))
    budget = int(vmem_limit * 0.7)                      # working-set target
    rows = c_out_p * up
    # double-buffered halos + weights (fixed) ; in/out blocks + RHS scratch
    fixed = 2 * (2 * c_in * HALO * 4) + 2 * rows * k_len * 2
    per_lane = 2 * c_in * 4 + 2 * rows * out_bytes + k_len * 2
    tile = (budget - fixed) // per_lane
    tile = min(int(tile), max_tile, _round_up(T, 128))
    tile = max(128, (tile // 128) * 128)
    # megacore occupancy: prefer at least 4 grid steps total so both v7x
    # TensorCores are fed even for small B (costs ~0.35us/extra step).
    min_steps = -(-4 // max(B, 1))                      # ceil(4 / B)
    if min_steps > 1:
        tile = max(128, min(tile, _round_up(-(-T // min_steps), 128)))
    return tile, vmem_limit


# --------------------------------------------------------------------------- #
# kernel
# --------------------------------------------------------------------------- #
def upsample_kernel(x_ref, hp_ref, hn_ref, w_ref, o_ref, x3_ref, *,
                    c_in, up, c_out_p, nct_out):
    # x_ref  : (C_in, tT)    f32  current time tile of the input
    # hp_ref : (C_in, 128)   f32  the 128 columns just BEFORE this tile
    # hn_ref : (C_in, 128)   f32  the 128 columns just AFTER this tile
    # w_ref  : (R, K)        bf16 packed weights (R = C_out_p*up, K = 3*C_in+1)
    # o_ref  : NCT (C_out_p, tT*up) or phase-major (R, tT)
    # x3_ref : (K, tT)       bf16 scratch RHS [z; z_next; z_prev; 1]
    t = pl.program_id(1)
    n_t = pl.num_programs(1)
    t_t = x_ref.shape[1]

    x = x_ref[...]
    z = x + jnp.sin(x)                                  # inputs + sin(inputs)
    lane = jax.lax.broadcasted_iota(jnp.int32, z.shape, 1)

    # z_next[:, m] = z[:, m+1]; last column comes from the next tile's halo
    # (exactly zero at the global right edge).
    xn = hn_ref[:, 0:1]
    zn_col = jnp.where(t == n_t - 1, 0.0, xn + jnp.sin(xn))
    z_next = jnp.where(lane == t_t - 1, zn_col, pltpu.roll(z, t_t - 1, axis=1))

    # z_prev[:, m] = z[:, m-1]; first column comes from the previous tile's
    # halo (exactly zero at the global left edge).
    xp = hp_ref[:, HALO - 1:HALO]
    zp_col = jnp.where(t == 0, 0.0, xp + jnp.sin(xp))
    z_prev = jnp.where(lane == 0, zp_col, pltpu.roll(z, 1, axis=1))

    # Assemble the exact-K bf16 RHS in VMEM scratch (no concatenates, no pad
    # rows to zero); last row is the constant 1.0 that carries the bias.
    x3_ref[0:c_in, :] = z.astype(x3_ref.dtype)
    x3_ref[c_in:2 * c_in, :] = z_next.astype(x3_ref.dtype)
    x3_ref[2 * c_in:3 * c_in, :] = z_prev.astype(x3_ref.dtype)
    x3_ref[3 * c_in:3 * c_in + 1, :] = jnp.ones((1, t_t), x3_ref.dtype)

    # One MXU matmul: bf16 operands, f32 accumulation, bias folded in.
    y = jnp.dot(w_ref[...], x3_ref[...], preferred_element_type=jnp.float32)

    if nct_out:
        # Interleave the `up` phases into the lane axis so the output block is
        # already in PyTorch NCT order: row o*up+p, col m  ->  (o, m*up+p).
        y = y.reshape(c_out_p, up, t_t)
        y = jnp.swapaxes(y, 1, 2)                       # (c_out_p, t_t, up)
        o_ref[...] = y.reshape(c_out_p, t_t * up).astype(o_ref.dtype)
    else:
        o_ref[...] = y.astype(o_ref.dtype)              # phase-major fallback


# --------------------------------------------------------------------------- #
# forward
# --------------------------------------------------------------------------- #
@functools.partial(
    jax.jit,
    static_argnames=("up", "c_in", "c_out", "c_out_p", "k_len", "tile_t",
                     "vmem_limit_bytes", "nct_out", "out_dtype"))
def _forward_impl(x, w_packed, *, up, c_in, c_out, c_out_p, k_len, tile_t,
                  vmem_limit_bytes, nct_out, out_dtype):
    B, xc, T = x.shape
    assert xc == c_in
    rows = c_out_p * up

    t_pad = _round_up(max(T, tile_t), tile_t)
    if t_pad != T:
        # zero-padding is exact: z(0) = 0 + sin(0) = 0 contributes nothing
        x = jnp.pad(x, ((0, 0), (0, 0), (0, t_pad - T)))
    n_t = t_pad // tile_t
    s = tile_t // HALO                    # tile size measured in halo blocks
    n_halo = t_pad // HALO

    in_specs = [
        # current time tile
        pl.BlockSpec((None, c_in, tile_t), lambda b, t: (b, 0, t)),
        # 128 columns just before the tile (clamped at the left edge; its
        # contribution is masked to zero in-kernel when t == 0)
        pl.BlockSpec((None, c_in, HALO),
                     lambda b, t: (b, 0, jnp.maximum(t * s - 1, 0))),
        # 128 columns just after the tile (clamped at the right edge;
        # masked to zero in-kernel when t == n_t - 1)
        pl.BlockSpec((None, c_in, HALO),
                     lambda b, t: (b, 0, jnp.minimum((t + 1) * s,
                                                     n_halo - 1))),
        # packed weights + folded bias (constant block index -> no re-DMA)
        pl.BlockSpec((rows, k_len), lambda b, t: (0, 0)),
    ]
    if nct_out:
        out_shape = jax.ShapeDtypeStruct((B, c_out_p, t_pad * up), out_dtype)
        out_specs = pl.BlockSpec((None, c_out_p, tile_t * up),
                                 lambda b, t: (b, 0, t))
    else:
        out_shape = jax.ShapeDtypeStruct((B, rows, t_pad), out_dtype)
        out_specs = pl.BlockSpec((None, rows, tile_t), lambda b, t: (b, 0, t))

    kern = functools.partial(upsample_kernel, c_in=c_in, up=up,
                             c_out_p=c_out_p, nct_out=nct_out)

    y = pl.pallas_call(
        kern,
        out_shape=out_shape,
        grid=(B, n_t),
        in_specs=in_specs,
        out_specs=out_specs,
        scratch_shapes=[pltpu.VMEM((k_len, tile_t), jnp.bfloat16)],
        compiler_params=pltpu.CompilerParams(
            dimension_semantics=("parallel", "parallel"),
            vmem_limit_bytes=vmem_limit_bytes),
    )(x, x, x, w_packed)

    if nct_out:
        # Kernel already produced PyTorch NCT order; this slice is a no-op
        # when C_out is a multiple of 8 and T a multiple of tile_t.
        return y[:, :c_out, :T * up]

    # Fallback: phase-major (B, C_out_p*up, T) -> NCT via XLA (extra HBM pass).
    y = y[:, :c_out * up, :T].reshape(B, c_out, up, T)
    return y.transpose(0, 1, 3, 2).reshape(B, c_out, T * up)


def upsample_net_forward(x, w_packed, cfg, *, tile_t, vmem_limit_bytes,
                         out_dtype=jnp.float32):
    """x: (B, C_in, T) f32 -> (B, C_out, T*up) (PyTorch NCT layout)."""
    kw = dict(up=cfg["up"], c_in=cfg["c_in"], c_out=cfg["c_out"],
              c_out_p=cfg["c_out_p"], k_len=cfg["k_len"], tile_t=tile_t,
              vmem_limit_bytes=vmem_limit_bytes, out_dtype=out_dtype)
    try:
        # Preferred path: NCT written directly from the kernel (no post-pass).
        return jax.block_until_ready(_forward_impl(x, w_packed, nct_out=True,
                                                   **kw))
    except Exception:
        # If this Mosaic version rejects the in-kernel phase interleave, fall
        # back to the phase-major kernel + XLA fixup (always supported).
        return _forward_impl(x, w_packed, nct_out=False, **kw)


# --------------------------------------------------------------------------- #
# reference + test
# --------------------------------------------------------------------------- #
def numpy_reference(x, w, bias, up):
    """PyTorch-semantics ConvTranspose1d(2*up, stride=up, pad=up//2+up%2,
    output_padding=up%2) applied to x + sin(x). Vectorized over time."""
    pad = up // 2 + up % 2
    B, c_in, T = x.shape
    c_out, K = w.shape[1], w.shape[2]
    z = (x + np.sin(x)).astype(np.float64)
    L = T * up
    y = np.zeros((B, c_out, L), np.float64)
    y += bias[None, :, None].astype(np.float64)
    t_idx = np.arange(T)
    for k in range(K):
        j = t_idx * up - pad + k
        valid = (j >= 0) & (j < L)
        contrib = np.einsum('bct,co->bot', z[:, :, valid],
                            w[:, :, k].astype(np.float64))
        y[:, :, j[valid]] += contrib
    return y.astype(np.float32)


if __name__ == "__main__":
    def run_case(B, C_IN, C_OUT, UP, T):
        key = jax.random.PRNGKey(0)
        k_x, k_v, k_g, k_b = jax.random.split(key, 4)
        inputs = jax.random.normal(k_x, (B, C_IN, T), dtype=jnp.float32)

        # weight_norm(ConvTranspose1d) params: v (C_in,C_out,2*up), g (C_in,1,1)
        v = 0.1 * jax.random.normal(k_v, (C_IN, C_OUT, 2 * UP),
                                    dtype=jnp.float32)
        g = 1.0 + 0.1 * jax.random.normal(k_g, (C_IN, 1, 1), dtype=jnp.float32)
        bias = 0.1 * jax.random.normal(k_b, (C_OUT,), dtype=jnp.float32)

        # effective weight = g * v / ||v|| (norm over all dims except dim 0)
        v_np = np.asarray(v)
        g_np = np.asarray(g)
        norm = np.sqrt((v_np ** 2).sum(axis=(1, 2), keepdims=True))
        w_eff = (g_np * v_np / norm).astype(np.float32)
        bias_np = np.asarray(bias, np.float32)

        # Pack once at "model init" (hoisted out of the forward pass).
        w_packed, cfg = pack_upsample_params(w_eff, bias_np, UP)
        tile_t, vmem_limit = choose_tiling(B, T, cfg["c_in"], cfg["c_out_p"],
                                           UP, cfg["k_len"])

        out = upsample_net_forward(inputs, w_packed, cfg, tile_t=tile_t,
                                   vmem_limit_bytes=vmem_limit)
        out = jax.block_until_ready(out)

        ref = numpy_reference(np.asarray(inputs), w_eff, bias_np, UP)
        # bf16 matmul operands (f32 accumulation) -> relaxed tolerance.
        np.testing.assert_allclose(np.asarray(out), ref, rtol=2e-2, atol=5e-2)

    # even upsample factor, B=2, two 128-lane time tiles (exercises halos)
    run_case(2, 32, 16, 4, 256)
    # odd upsample factor, B=1, T not a tile multiple (exercises padding,
    # channel padding and the megacore-occupancy tile choice)
    run_case(1, 16, 8, 5, 200)

    # TODO(synk): the dead skip_conv branch (computed-then-discarded when
    # no_skip=True) and the disabled use_smooth/use_drop paths are not
    # replicated; 'repeat' / 'pn index>=3' configs are not supported.
    print("KERNEL_OK")
</pallas_src>

<mosaic_0001>
module attributes {stable_mosaic.version = 11 : i64} {
  func.func @upsample_kernel(%arg0: i32, %arg1: i32, %arg2: memref<1x32x128xf32, #tpu.memory_space<vmem>>, %arg3: memref<1x32x128xf32, #tpu.memory_space<vmem>>, %arg4: memref<1x32x128xf32, #tpu.memory_space<vmem>>, %arg5: memref<64x97xbf16, #tpu.memory_space<vmem>>, %arg6: memref<1x16x512xf32, #tpu.memory_space<vmem>>, %arg7: memref<97x128xbf16, #tpu.memory_space<vmem>>) attributes {dimension_semantics = [#tpu.dimension_semantics<parallel>, #tpu.dimension_semantics<parallel>], iteration_bounds = array<i64: 2, 2>, scalar_prefetch = 0 : i64, scratch_operands = 1 : i64, tpu.core_type = #tpu.core_type<tc>, window_params = [{transform_indices = @transform_0, window_bounds = array<i64: 1, 32, 128>}, {transform_indices = @transform_1, window_bounds = array<i64: 1, 32, 128>}, {transform_indices = @transform_2, window_bounds = array<i64: 1, 32, 128>}, {pipeline_mode = #tpu.pipeline_mode<synchronous>, transform_indices = @transform_3, window_bounds = array<i64: 64, 97>}, {transform_indices = @transform_4, window_bounds = array<i64: 1, 16, 512>}]} {
    %c0 = arith.constant 0 : index
    %c0_0 = arith.constant 0 : index
    %c0_1 = arith.constant 0 : index
    %0 = vector.load %arg2[%c0, %c0_0, %c0_1] : memref<1x32x128xf32, #tpu.memory_space<vmem>>, vector<1x32x128xf32>
    %1 = vector.shape_cast %0 : vector<1x32x128xf32> to vector<32x128xf32>
    %2 = math.sin %1 : vector<32x128xf32>
    %3 = arith.addf %1, %2 : vector<32x128xf32>
    %4 = tpu.iota {dimensions = array<i32: 1>} : vector<32x128xi32>
    %c0_2 = arith.constant 0 : index
    %c0_3 = arith.constant 0 : index
    %c0_4 = arith.constant 0 : index
    %5 = vector.load %arg4[%c0_2, %c0_3, %c0_4] : memref<1x32x128xf32, #tpu.memory_space<vmem>>, vector<1x32x1xf32>
    %6 = vector.shape_cast %5 : vector<1x32x1xf32> to vector<32x1xf32>
    %c1_i32 = arith.constant 1 : i32
    %7 = arith.cmpi eq, %arg1, %c1_i32 : i32
    %8 = math.sin %6 : vector<32x1xf32>
    %9 = arith.addf %6, %8 : vector<32x1xf32>
    %cst = arith.constant 0.000000e+00 : f32
    %10 = vector.broadcast %cst : f32 to vector<32x1xf32>
    %11 = arith.select %7, %10, %9 : vector<32x1xf32>
    %c127_i32 = arith.constant 127 : i32
    %12 = vector.broadcast %c127_i32 : i32 to vector<32x128xi32>
    %13 = arith.cmpi eq, %4, %12 : vector<32x128xi32>
    %c127_i32_5 = arith.constant 127 : i32
    %14 = tpu.dynamic_rotate %3 by %c127_i32_5 dim 1 : vector<32x128xf32>, i32 -> vector<32x128xf32>
    %15 = vector.shape_cast %11 : vector<32x1xf32> to vector<32x1xf32>
    %16 = vector.broadcast %15 : vector<32x1xf32> to vector<32x128xf32>
    %17 = arith.select %13, %16, %14 : vector<32x128xi1>, vector<32x128xf32>
    %c0_6 = arith.constant 0 : index
    %c0_7 = arith.constant 0 : index
    %c127 = arith.constant 127 : index
    %18 = vector.load %arg3[%c0_6, %c0_7, %c127] : memref<1x32x128xf32, #tpu.memory_space<vmem>>, vector<1x32x1xf32>
    %19 = vector.shape_cast %18 : vector<1x32x1xf32> to vector<32x1xf32>
    %c0_i32 = arith.constant 0 : i32
    %20 = arith.cmpi eq, %arg1, %c0_i32 : i32
    %21 = math.sin %19 : vector<32x1xf32>
    %22 = arith.addf %19, %21 : vector<32x1xf32>
    %cst_8 = arith.constant 0.000000e+00 : f32
    %23 = vector.broadcast %cst_8 : f32 to vector<32x1xf32>
    %24 = arith.select %20, %23, %22 : vector<32x1xf32>
    %c0_i32_9 = arith.constant 0 : i32
    %25 = vector.broadcast %c0_i32_9 : i32 to vector<32x128xi32>
    %26 = arith.cmpi eq, %4, %25 : vector<32x128xi32>
    %c1_i32_10 = arith.constant 1 : i32
    %27 = tpu.dynamic_rotate %3 by %c1_i32_10 dim 1 : vector<32x128xf32>, i32 -> vector<32x128xf32>
    %28 = vector.shape_cast %24 : vector<32x1xf32> to vector<32x1xf32>
    %29 = vector.broadcast %28 : vector<32x1xf32> to vector<32x128xf32>
    %30 = arith.select %26, %29, %27 : vector<32x128xi1>, vector<32x128xf32>
    %31 = arith.truncf %3 : vector<32x128xf32> to vector<32x128xbf16>
    %c0_11 = arith.constant 0 : index
    %c0_12 = arith.constant 0 : index
    %32 = vector.load %arg7[%c0_11, %c0_12] : memref<97x128xbf16, #tpu.memory_space<vmem>>, vector<32x128xbf16>
    tpu.vector_store %arg7[%c0_11, %c0_12], %31 {strides = array<i32>} : memref<97x128xbf16, #tpu.memory_space<vmem>>, vector<32x128xbf16>,
    %33 = arith.truncf %17 : vector<32x128xf32> to vector<32x128xbf16>
    %c32 = arith.constant 32 : index
    %c0_13 = arith.constant 0 : index
    %34 = vector.load %arg7[%c32, %c0_13] : memref<97x128xbf16, #tpu.memory_space<vmem>>, vector<32x128xbf16>
    tpu.vector_store %arg7[%c32, %c0_13], %33 {strides = array<i32>} : memref<97x128xbf16, #tpu.memory_space<vmem>>, vector<32x128xbf16>,
    %35 = arith.truncf %30 : vector<32x128xf32> to vector<32x128xbf16>
    %c64 = arith.constant 64 : index
    %c0_14 = arith.constant 0 : index
    %36 = vector.load %arg7[%c64, %c0_14] : memref<97x128xbf16, #tpu.memory_space<vmem>>, vector<32x128xbf16>
    tpu.vector_store %arg7[%c64, %c0_14], %35 {strides = array<i32>} : memref<97x128xbf16, #tpu.memory_space<vmem>>, vector<32x128xbf16>,
    %cst_15 = arith.constant 1.000000e+00 : bf16
    %37 = vector.broadcast %cst_15 : bf16 to vector<1x128xbf16>
    %c96 = arith.constant 96 : index
    %c0_16 = arith.constant 0 : index
    %38 = vector.load %arg7[%c96, %c0_16] : memref<97x128xbf16, #tpu.memory_space<vmem>>, vector<1x128xbf16>
    tpu.vector_store %arg7[%c96, %c0_16], %37 {strides = array<i32>} : memref<97x128xbf16, #tpu.memory_space<vmem>>, vector<1x128xbf16>,
    %c0_17 = arith.constant 0 : index
    %c0_18 = arith.constant 0 : index
    %39 = vector.load %arg5[%c0_17, %c0_18] : memref<64x97xbf16, #tpu.memory_space<vmem>>, vector<64x97xbf16>
    %c0_19 = arith.constant 0 : index
    %c0_20 = arith.constant 0 : index
    %40 = vector.load %arg7[%c0_19, %c0_20] : memref<97x128xbf16, #tpu.memory_space<vmem>>, vector<97x128xbf16>
    %cst_21 = arith.constant dense<0.000000e+00> : vector<64x128xf32>
    %41 = tpu.matmul %39, %40, %cst_21 {dimension_numbers = #tpu.dot_dimension_numbers<[1], [0], [0], [1], [0, 0, 1, 1], [], []>} : vector<64x97xbf16>, vector<97x128xbf16>, vector<64x128xf32> -> vector<64x128xf32>
    %42 = vector.shape_cast %41 : vector<64x128xf32> to vector<16x4x128xf32>
    %43 = tpu.transpose %42, [0, 2, 1] : vector<16x4x128xf32> -> vector<16x128x4xf32>
    %44 = vector.shape_cast %43 : vector<16x128x4xf32> to vector<16x512xf32>
    %c0_22 = arith.constant 0 : index
    %c0_23 = arith.constant 0 : index
    %c0_24 = arith.constant 0 : index
    %45 = vector.load %arg6[%c0_22, %c0_23, %c0_24] : memref<1x16x512xf32, #tpu.memory_space<vmem>>, vector<1x16x512xf32>
    %46 = vector.shape_cast %45 : vector<1x16x512xf32> to vector<16x512xf32>
    %47 = vector.shape_cast %44 : vector<16x512xf32> to vector<1x16x512xf32>
    tpu.vector_store %arg6[%c0_22, %c0_23, %c0_24], %47 {strides = array<i32>} : memref<1x16x512xf32, #tpu.memory_space<vmem>>, vector<1x16x512xf32>,
    return
  }
  func.func @transform_0(%arg0: i32, %arg1: i32) -> (i32, i32, i32) {
    %c0_i32 = arith.constant 0 : i32
    %c0_i32_0 = arith.constant 0 : i32
    return %arg0, %c0_i32, %arg1 : i32, i32, i32
  }
  func.func @transform_1(%arg0: i32, %arg1: i32) -> (i32, i32, i32) {
    %c1_i32 = arith.constant 1 : i32
    %0 = arith.muli %arg1, %c1_i32 : i32
    %c1_i32_0 = arith.constant 1 : i32
    %1 = arith.subi %0, %c1_i32_0 : i32
    %c0_i32 = arith.constant 0 : i32
    %2 = arith.maxsi %1, %c0_i32 : i32
    %c0_i32_1 = arith.constant 0 : i32
    %c0_i32_2 = arith.constant 0 : i32
    return %arg0, %c0_i32_1, %2 : i32, i32, i32
  }
  func.func @transform_2(%arg0: i32, %arg1: i32) -> (i32, i32, i32) {
    %c1_i32 = arith.constant 1 : i32
    %0 = arith.addi %arg1, %c1_i32 : i32
    %c1_i32_0 = arith.constant 1 : i32
    %1 = arith.muli %0, %c1_i32_0 : i32
    %c1_i32_1 = arith.constant 1 : i32
    %2 = arith.minsi %1, %c1_i32_1 : i32
    %c0_i32 = arith.constant 0 : i32
    %c0_i32_2 = arith.constant 0 : i32
    return %arg0, %c0_i32, %2 : i32, i32, i32
  }
  func.func @transform_3(%arg0: i32, %arg1: i32) -> (i32, i32) {
    %c0_i32 = arith.constant 0 : i32
    %c0_i32_0 = arith.constant 0 : i32
    %c0_i32_1 = arith.constant 0 : i32
    return %c0_i32, %c0_i32_0 : i32, i32
  }
  func.func @transform_4(%arg0: i32, %arg1: i32) -> (i32, i32, i32) {
    %c0_i32 = arith.constant 0 : i32
    %c0_i32_0 = arith.constant 0 : i32
    return %arg0, %c0_i32, %arg1 : i32, i32, i32
  }
}

module attributes {stable_mosaic.version = 11 : i64} {
  func.func @upsample_kernel(%arg0: i32, %arg1: i32, %arg2: memref<1x32x128xf32, #tpu.memory_space<vmem>>, %arg3: memref<1x32x128xf32, #tpu.memory_space<vmem>>, %arg4: memref<1x32x128xf32, #tpu.memory_space<vmem>>, %arg5: memref<64x97xbf16, #tpu.memory_space<vmem>>, %arg6: memref<1x64x128xf32, #tpu.memory_space<vmem>>, %arg7: memref<97x128xbf16, #tpu.memory_space<vmem>>) attributes {dimension_semantics = [#tpu.dimension_semantics<parallel>, #tpu.dimension_semantics<parallel>], iteration_bounds = array<i64: 2, 2>, scalar_prefetch = 0 : i64, scratch_operands = 1 : i64, tpu.core_type = #tpu.core_type<tc>, window_params = [{transform_indices = @transform_0, window_bounds = array<i64: 1, 32, 128>}, {transform_indices = @transform_1, window_bounds = array<i64: 1, 32, 128>}, {transform_indices = @transform_2, window_bounds = array<i64: 1, 32, 128>}, {pipeline_mode = #tpu.pipeline_mode<synchronous>, transform_indices = @transform_3, window_bounds = array<i64: 64, 97>}, {transform_indices = @transform_4, window_bounds = array<i64: 1, 64, 128>}]} {
    %c0 = arith.constant 0 : index
    %c0_0 = arith.constant 0 : index
    %c0_1 = arith.constant 0 : index
    %0 = vector.load %arg2[%c0, %c0_0, %c0_1] : memref<1x32x128xf32, #tpu.memory_space<vmem>>, vector<1x32x128xf32>
    %1 = vector.shape_cast %0 : vector<1x32x128xf32> to vector<32x128xf32>
    %2 = math.sin %1 : vector<32x128xf32>
    %3 = arith.addf %1, %2 : vector<32x128xf32>
    %4 = tpu.iota {dimensions = array<i32: 1>} : vector<32x128xi32>
    %c0_2 = arith.constant 0 : index
    %c0_3 = arith.constant 0 : index
    %c0_4 = arith.constant 0 : index
    %5 = vector.load %arg4[%c0_2, %c0_3, %c0_4] : memref<1x32x128xf32, #tpu.memory_space<vmem>>, vector<1x32x1xf32>
    %6 = vector.shape_cast %5 : vector<1x32x1xf32> to vector<32x1xf32>
    %c1_i32 = arith.constant 1 : i32
    %7 = arith.cmpi eq, %arg1, %c1_i32 : i32
    %8 = math.sin %6 : vector<32x1xf32>
    %9 = arith.addf %6, %8 : vector<32x1xf32>
    %cst = arith.constant 0.000000e+00 : f32
    %10 = vector.broadcast %cst : f32 to vector<32x1xf32>
    %11 = arith.select %7, %10, %9 : vector<32x1xf32>
    %c127_i32 = arith.constant 127 : i32
    %12 = vector.broadcast %c127_i32 : i32 to vector<32x128xi32>
    %13 = arith.cmpi eq, %4, %12 : vector<32x128xi32>
    %c127_i32_5 = arith.constant 127 : i32
    %14 = tpu.dynamic_rotate %3 by %c127_i32_5 dim 1 : vector<32x128xf32>, i32 -> vector<32x128xf32>
    %15 = vector.shape_cast %11 : vector<32x1xf32> to vector<32x1xf32>
    %16 = vector.broadcast %15 : vector<32x1xf32> to vector<32x128xf32>
    %17 = arith.select %13, %16, %14 : vector<32x128xi1>, vector<32x128xf32>
    %c0_6 = arith.constant 0 : index
    %c0_7 = arith.constant 0 : index
    %c127 = arith.constant 127 : index
    %18 = vector.load %arg3[%c0_6, %c0_7, %c127] : memref<1x32x128xf32, #tpu.memory_space<vmem>>, vector<1x32x1xf32>
    %19 = vector.shape_cast %18 : vector<1x32x1xf32> to vector<32x1xf32>
    %c0_i32 = arith.constant 0 : i32
    %20 = arith.cmpi eq, %arg1, %c0_i32 : i32
    %21 = math.sin %19 : vector<32x1xf32>
    %22 = arith.addf %19, %21 : vector<32x1xf32>
    %cst_8 = arith.constant 0.000000e+00 : f32
    %23 = vector.broadcast %cst_8 : f32 to vector<32x1xf32>
    %24 = arith.select %20, %23, %22 : vector<32x1xf32>
    %c0_i32_9 = arith.constant 0 : i32
    %25 = vector.broadcast %c0_i32_9 : i32 to vector<32x128xi32>
    %26 = arith.cmpi eq, %4, %25 : vector<32x128xi32>
    %c1_i32_10 = arith.constant 1 : i32
    %27 = tpu.dynamic_rotate %3 by %c1_i32_10 dim 1 : vector<32x128xf32>, i32 -> vector<32x128xf32>
    %28 = vector.shape_cast %24 : vector<32x1xf32> to vector<32x1xf32>
    %29 = vector.broadcast %28 : vector<32x1xf32> to vector<32x128xf32>
    %30 = arith.select %26, %29, %27 : vector<32x128xi1>, vector<32x128xf32>
    %31 = arith.truncf %3 : vector<32x128xf32> to vector<32x128xbf16>
    %c0_11 = arith.constant 0 : index
    %c0_12 = arith.constant 0 : index
    %32 = vector.load %arg7[%c0_11, %c0_12] : memref<97x128xbf16, #tpu.memory_space<vmem>>, vector<32x128xbf16>
    tpu.vector_store %arg7[%c0_11, %c0_12], %31 {strides = array<i32>} : memref<97x128xbf16, #tpu.memory_space<vmem>>, vector<32x128xbf16>,
    %33 = arith.truncf %17 : vector<32x128xf32> to vector<32x128xbf16>
    %c32 = arith.constant 32 : index
    %c0_13 = arith.constant 0 : index
    %34 = vector.load %arg7[%c32, %c0_13] : memref<97x128xbf16, #tpu.memory_space<vmem>>, vector<32x128xbf16>
    tpu.vector_store %arg7[%c32, %c0_13], %33 {strides = array<i32>} : memref<97x128xbf16, #tpu.memory_space<vmem>>, vector<32x128xbf16>,
    %35 = arith.truncf %30 : vector<32x128xf32> to vector<32x128xbf16>
    %c64 = arith.constant 64 : index
    %c0_14 = arith.constant 0 : index
    %36 = vector.load %arg7[%c64, %c0_14] : memref<97x128xbf16, #tpu.memory_space<vmem>>, vector<32x128xbf16>
    tpu.vector_store %arg7[%c64, %c0_14], %35 {strides = array<i32>} : memref<97x128xbf16, #tpu.memory_space<vmem>>, vector<32x128xbf16>,
    %cst_15 = arith.constant 1.000000e+00 : bf16
    %37 = vector.broadcast %cst_15 : bf16 to vector<1x128xbf16>
    %c96 = arith.constant 96 : index
    %c0_16 = arith.constant 0 : index
    %38 = vector.load %arg7[%c96, %c0_16] : memref<97x128xbf16, #tpu.memory_space<vmem>>, vector<1x128xbf16>
    tpu.vector_store %arg7[%c96, %c0_16], %37 {strides = array<i32>} : memref<97x128xbf16, #tpu.memory_space<vmem>>, vector<1x128xbf16>,
    %c0_17 = arith.constant 0 : index
    %c0_18 = arith.constant 0 : index
    %39 = vector.load %arg5[%c0_17, %c0_18] : memref<64x97xbf16, #tpu.memory_space<vmem>>, vector<64x97xbf16>
    %c0_19 = arith.constant 0 : index
    %c0_20 = arith.constant 0 : index
    %40 = vector.load %arg7[%c0_19, %c0_20] : memref<97x128xbf16, #tpu.memory_space<vmem>>, vector<97x128xbf16>
    %cst_21 = arith.constant dense<0.000000e+00> : vector<64x128xf32>
    %41 = tpu.matmul %39, %40, %cst_21 {dimension_numbers = #tpu.dot_dimension_numbers<[1], [0], [0], [1], [0, 0, 1, 1], [], []>} : vector<64x97xbf16>, vector<97x128xbf16>, vector<64x128xf32> -> vector<64x128xf32>
    %c0_22 = arith.constant 0 : index
    %c0_23 = arith.constant 0 : index
    %c0_24 = arith.constant 0 : index
    %42 = vector.load %arg6[%c0_22, %c0_23, %c0_24] : memref<1x64x128xf32, #tpu.memory_space<vmem>>, vector<1x64x128xf32>
    %43 = vector.shape_cast %42 : vector<1x64x128xf32> to vector<64x128xf32>
    %44 = vector.shape_cast %41 : vector<64x128xf32> to vector<1x64x128xf32>
    tpu.vector_store %arg6[%c0_22, %c0_23, %c0_24], %44 {strides = array<i32>} : memref<1x64x128xf32, #tpu.memory_space<vmem>>, vector<1x64x128xf32>,
    return
  }
  func.func @transform_0(%arg0: i32, %arg1: i32) -> (i32, i32, i32) {
    %c0_i32 = arith.constant 0 : i32
    %c0_i32_0 = arith.constant 0 : i32
    return %arg0, %c0_i32, %arg1 : i32, i32, i32
  }
  func.func @transform_1(%arg0: i32, %arg1: i32) -> (i32, i32, i32) {
    %c1_i32 = arith.constant 1 : i32
    %0 = arith.muli %arg1, %c1_i32 : i32
    %c1_i32_0 = arith.constant 1 : i32
    %1 = arith.subi %0, %c1_i32_0 : i32
    %c0_i32 = arith.constant 0 : i32
    %2 = arith.maxsi %1, %c0_i32 : i32
    %c0_i32_1 = arith.constant 0 : i32
    %c0_i32_2 = arith.constant 0 : i32
    return %arg0, %c0_i32_1, %2 : i32, i32, i32
  }
  func.func @transform_2(%arg0: i32, %arg1: i32) -> (i32, i32, i32) {
    %c1_i32 = arith.constant 1 : i32
    %0 = arith.addi %arg1, %c1_i32 : i32
    %c1_i32_0 = arith.constant 1 : i32
    %1 = arith.muli %0, %c1_i32_0 : i32
    %c1_i32_1 = arith.constant 1 : i32
    %2 = arith.minsi %1, %c1_i32_1 : i32
    %c0_i32 = arith.constant 0 : i32
    %c0_i32_2 = arith.constant 0 : i32
    return %arg0, %c0_i32, %2 : i32, i32, i32
  }
  func.func @transform_3(%arg0: i32, %arg1: i32) -> (i32, i32) {
    %c0_i32 = arith.constant 0 : i32
    %c0_i32_0 = arith.constant 0 : i32
    %c0_i32_1 = arith.constant 0 : i32
    return %c0_i32, %c0_i32_0 : i32, i32
  }
  func.func @transform_4(%arg0: i32, %arg1: i32) -> (i32, i32, i32) {
    %c0_i32 = arith.constant 0 : i32
    %c0_i32_0 = arith.constant 0 : i32
    return %arg0, %c0_i32, %arg1 : i32, i32, i32
  }
}

</mosaic_0001>

<bundles_post_ra>
// kernel: _forward_impl.1
= control target key start
LH: loop header
LB: loop body
LE: loop exit
PB: predicated region body
PF: predicated region fallthrough
CT: control target
= control target key end

     0   :  { %s14847_s0 = inlined_call_operand.hbm [shape: f32[2,32,256], index: 0, kind: input, shape index: {}, may-alias: {0,1,2}]   ;;  %s14848_s1 = inlined_call_operand.hbm [shape: f32[2,32,256], index: 1, kind: input, shape index: {}, may-alias: {0,1,2}]   ;;  %s14849_s2 = inlined_call_operand.hbm [shape: f32[2,32,256], index: 2, kind: input, shape index: {}, may-alias: {0,1,2}]   ;;  %s14850_s3 = inlined_call_operand.hbm [shape: bf16[64,97], index: 3, kind: input, shape index: {}]   ;;  %s14851_s4 = inlined_call_operand.hbm [shape: f32[2,16,1024], index: 4, kind: output, shape index: {}]  }
   0x1   :  { %15417 = sst [smem:[#allocation248_spill]] %s14847_s0 }
   0x2   :  { %15418 = sst [smem:[#allocation249_spill]] %s14848_s1 }
   0x3   :  { %15419 = sst [smem:[#allocation250_spill]] %s14849_s2 }
   0x4   :  { %15420 = sst [smem:[#allocation251_spill]] %s14850_s3 }
   0x5   :  { %15421 = sst [smem:[#allocation252_spill]] %s14851_s4 }
   0x6   :  { %9 = vsyncpa [#allocation4], 0 }
   0x7   :  { %11 = vsyncpa [#allocation4 + $0x1], 0 }
   0x8   :  { %12 = vsyncpa [#allocation7], 0 }
   0x9   :  { %14 = vsyncpa [#allocation7 + $0x1], 0 }
   0xa   :  { %15 = vsyncpa [#allocation10], 0 }
   0xb   :  { %16 = vsyncpa [#allocation5], 0 }
   0xc   :  { %18 = vsyncpa [#allocation5 + $0x1], 0  ;;  %s9182_s15 = smov 0   ;;  %s9184_s16 = smov 0  }
   0xd   :  { %s9186_s17 = smov 0   ;;  %s9188_s18 = smov 0  }
   0xe   :  { %s9190_s19 = smov 0   ;;  %s9192_s20 = smov 0  }
   0xf   :  { %s9194_s21 = smov 0   ;;  %s9196_s22 = smov 0  }
  0x10   :  { %s9198_s23 = smov 0   ;;  %s9200_s24 = smov 0  }
  0x11   :  { %s9202_s25 = smov 0   ;;  %s9204_s26 = smov 0  }
  0x12   :  { %s9206_s27 = smov 0   ;;  %s9208_s28 = smov 0  }
  0x13 LB: > { %15422 = sst [smem:[#allocation17_spill]] %s9052_s16  ;;  %s33_s29 = sadd.s32 1, %s9092_s26  ;;  %s9100_s28 = sphi %s9208_s28, %s24_s28   ;;  %s9096_s27 = sphi %s9206_s27, %s16619_s27   ;;  %s9092_s26 = sphi %s9204_s26, %s16618_s26   ;;  %s9088_s25 = sphi %s9202_s25, %s16617_s25   ;;  %s9084_s24 = sphi %s9200_s24, %s16616_s24   ;;  %s9080_s23 = sphi %s9198_s23, %s16615_s23   ;;  %s9076_s22 = sphi %s9196_s22, %s16614_s22   ;;  %s9072_s21 = sphi %s9194_s21, %s16613_s21   ;;  %s9068_s20 = sphi %s9192_s20, %s16612_s20   ;;  %s9064_s19 = sphi %s9190_s19, %s16611_s19   ;;  %s9060_s18 = sphi %s9188_s18, %s16610_s18   ;;  %s9056_s17 = sphi %s9186_s17, %s16621_s17   ;;  %s9052_s16 = sphi %s9184_s16, %s16608_s16   ;;  %s9048_s15 = sphi %s9182_s15, %s16607_s15  }
  0x14   : > { %15423 = sst [smem:[#allocation18_spill]] %s9056_s17  ;;  %s36_s30 = sadd.s32 1, %s9096_s27 }
  0x15   : > { %15424 = sst [smem:[#allocation19_spill]] %s9064_s19  ;;  %p34_p0 = scmp.ge.s32.totalorder %s33_s29, 2 }
  0x16   : > { %15425 = sst [smem:[#allocation20_spill]] %s9068_s20  ;;  %p14859_p1 = scmp.eq.s32.totalorder %s9100_s28, 0 }
  0x17   : > { %15426 = sst [smem:[#allocation21_spill]] %s9072_s21  ;;  %s79_s5 = sadd.s32 1, %s9068_s20 }
  0x18   : > { %15427 = sst [smem:[#allocation22_spill]] %s9076_s22  ;;  %s16623_s29 = smov (%p34_p0, %s33_s29), 0 }
  0x19   : > { %15428 = sst [smem:[#allocation23_spill]] %s9080_s23  ;;  %s16625_s30 = smov (!%p34_p0, %s36_s30), %s9096_s27 }
  0x1a   : > { %15429 = sst [smem:[#allocation24_spill]] %s9084_s24  ;;  %s41_s6 = ssub.s32 %s9092_s26, %s16623_s29 }
  0x1b   : > { %15430 = sst [smem:[#allocation25_spill]] %s9088_s25  ;;  %p38_p2 = scmp.ge.s32.totalorder %s16625_s30, 2 }
  0x1c   : > { %15431 = sst [smem:[#allocation26_spill]] %s9092_s26  ;;  %p86_p3 = scmp.ne.s32.totalorder %s9068_s20, %s9064_s19 }
  0x1d   : > { %15432 = sst [smem:[#allocation27_spill]] %s9096_s27  ;;  %s16627_s30 = smov (%p38_p2, %s16625_s30), 0 }
  0x1e   : > { %15433 = sst [smem:[#allocation28_spill]] %s9100_s28  ;;  %s9267_s7 = ssub.s32 %s9096_s27, %s16627_s30 }
  0x1f   : > { %15434 = sst [smem:[#allocation29_spill]] %s16623_s29  ;;  %p92_p4 = scmp.ne.s32.totalorder %s9064_s19, %s9060_s18 }
  0x20   : > { %15435 = sst [smem:[#allocation30_spill]] %s16627_s30  ;;  %s9272_s8 = sor.u32 %s41_s6, %s9267_s7 }
  0x21   : > { %p9276_p5 = por %p86_p3, %p14859_p1  ;;  %p14858_p7 = scmp.lt.s32.totalorder %s9100_s28, 4 }
  0x22   : > { %p14857_p8 = scmp.eq.s32.totalorder %s9267_s7, 0  ;;  %s234_s11 = sand.u32 1, %s9100_s28  }
  0x23   : > { %s236_s12 = sand.u32 1, %s9068_s20   ;;  %s14856_s30 = sshll.u32 %s9096_s27, 10 }
  0x24   : > { %s9289_s13 = scalar_select %p14857_p8, %s9068_s20, %s79_s5  }
  0x25   : > { %s8283_s14 = sshll.u32 %s236_s12, 5  ;;  %s15438_s1 = sld [smem:[#allocation249_spill]] }
  0x26   : > { %15437 = sst [smem:[#allocation31_spill]] %s9289_s13  ;;  %s238_s6 = scalar_lea.vmem [#allocation6], %s8283_s14 }
  0x27   : > { %s249_s29 = sshll.u32 %s238_s6, 4  ;;  %p9305_p9 = pnand %p14858_p7, %p9276_p5  ;;  %s9299_s29 = int_to_ptr.vmem [resolvable:$true] %s249_s29 }
  0x28   : > { %s9309_s12 = scalar_lea.sflag [#allocation7], %s234_s11 }
  0x29   : > { %p8822_p11 = pneg %p9305_p9 }
  0x2b   : > { %s9297_s24 = scalar_lea.hbm %s15438_s1, %s14856_s30  ;;  %s8825_s9 = scalar_lea.hbm %s15438_s1, 2048 }
  0x2c   : > { %s8820_s14 = scalar_lea.hbm %s9297_s24, 512  ;;  %p8826_p0 = scmp.lt.u32.totalorder %s9297_s24, %s15438_s1 }
  0x2d   : > { %p8821_p10 = scmp.ne.s32.totalorder %s9297_s24, %s8820_s14  ;;  %p8827_p2 = scmp.lt.u32.totalorder %s8825_s9, %s8820_s14 }
  0x2e   : > { %p8829_p5 = scmp.lt.u32.totalorder %s8820_s14, %s9297_s24 }
  0x2f   : > { %p8823_p12 = pnand %p8822_p11, %p8821_p10  ;;  %p8828_p3 = por %p8827_p2, %p8826_p0 }
  0x31   : > { %p8824_p13 = pneg %p8823_p12  ;;  %p8830_p8 = por %p8829_p5, %p8828_p3 }
  0x33   : > { %p8831_p7 = pnand %p8830_p8, %p8824_p13 }
  0x35   : > { %8834 = shalt.err (!%p8831_p7)
}
  0x36   : > { %s8835_s11 = scalar_lea.vmem %s9299_s29, 512  ;;  %s9102_s4 = smov [#allocation6]  }
  0x37   : > { %p8836_p10 = scmp.ne.s32.totalorder %s9299_s29, %s8835_s11  ;;  %s8840_s25 = sshll.u32 %s9102_s4, 4  ;;  %s8841_s25 = int_to_ptr.vmem [resolvable:$false] %s8840_s25 }
  0x38   : > { %s8842_s30 = scalar_lea.vmem %s8841_s25, 1024  ;;  %p8843_p6 = scmp.lt.s32.totalorder %s9299_s29, %s8841_s25 }
  0x39   : > { %p8838_p12 = pnand %p8836_p10, %p8822_p11  ;;  %p8844_p0 = scmp.lt.s32.totalorder %s8842_s30, %s8835_s11 }
  0x3b   : > { %p8839_p1 = pneg %p8838_p12  ;;  %p8845_p2 = por %p8844_p0, %p8843_p6 }
  0x3d   : > { %p8846_p3 = pnand %p8845_p2, %p8839_p1 }
  0x3f   : > { %8849 = shalt.err (!%p8846_p3)
}
  0x40   : > { %s14860_s14 = smov 256   ;;  %s14862_s9 = smov 128  }
  0x41   : > { %s14864_s6 = smov 8   ;;  %s9341_s11 = sadd.s32 4294967295, %s9100_s28  }
  0x42   : > { %8541 = dma.hbm_to_vmem [thread:$0]  (!%p9305_p9), %s9297_s24, 512, %s9299_s29, %s9309_s12, %s14860_s14, %s14862_s9, %s14864_s6  }
  0x43   : > { %p126_p1 = scmp.ne.s32.totalorder %s9052_s16, %s9048_s15  ;;  %p14866_p6 = scmp.eq.s32.totalorder %s9341_s11, 0 }
  0x44   : > { %p8277_p8 = scmp.ge.s32.totalorder %s9100_s28, 1  ;;  %p186_p11 = scmp.lt.s32.totalorder %s9100_s28, 5 }
  0x45   : > { %p9354_p13 = por %p92_p4, %p14866_p6  ;;  %p9360_p9 = por %p126_p1, %p14866_p6 }
  0x46   : > { %p9364_p5 = pnand %p8277_p8, %p186_p11  ;;  %s9106_s15 = smov [#allocation9]  }
  0x47   : > { %s15440_s5 = scalar_select %p9354_p13, 1, 0 }
  0x48   : > { %s15441_s24 = scalar_select %p9360_p9, 1, 0 }
  0x49   : > { %s15442_s29 = scalar_select %p9364_p5, 1, 0 }
  0x4a   : > { %p8531_p10 = pneg %p9364_p5  ;;  %s198_s4 = sshll.u32 %s9106_s15, 4  ;;  %s199_s4 = int_to_ptr.vmem [resolvable:$true] %s198_s4 }
  0x4b   : > { %s15444_s3 = sld [smem:[#allocation251_spill]] }
  0x4c   : > { %p9372_p4 = pnand %p8531_p10, %p14866_p6 }
  0x4e   : > { %p8852_p0 = pneg %p9372_p4 }
  0x51   : > { %s8850_s14 = scalar_lea.hbm %s15444_s3, 512 }
  0x52   : > { %p8851_p12 = scmp.ne.s32.totalorder %s15444_s3, %s8850_s14  ;;  %p8857_p1 = scmp.lt.u32.totalorder %s8850_s14, %s15444_s3 }
  0x54   : > { %p8853_p2 = pnand %p8852_p0, %p8851_p12 }
  0x56   : > { %p8854_p3 = pneg %p8853_p2 }
  0x58   : > { %p8859_p8 = pnand %p8857_p1, %p8854_p3 }
  0x5a   : > { %8862 = shalt.err (!%p8859_p8)
}
  0x5b   : > { %s8863_s1 = scalar_lea.vmem %s199_s4, 512  ;;  %p8871_p6 = scmp.lt.s32.totalorder %s199_s4, %s199_s4 }
  0x5c   : > { %p8864_p11 = scmp.ne.s32.totalorder %s199_s4, %s8863_s1  ;;  %p8872_p9 = scmp.lt.s32.totalorder %s8863_s1, %s8863_s1 }
  0x5e   : > { %p8866_p10 = pnand %p8864_p11, %p8852_p0  ;;  %p8873_p13 = por %p8872_p9, %p8871_p6 }
  0x60   : > { %p8867_p7 = pneg %p8866_p10 }
  0x62   : > { %p8874_p5 = pnand %p8873_p13, %p8867_p7 }
  0x64   : > { %8877 = shalt.err (!%p8874_p5)
}
  0x65   : > { %s9107_s9 = smov 64   ;;  %s9108_s1 = smov 4  }
  0x66   : > { %8534 = dma.hbm_to_vmem [thread:$0]  (!%p9372_p4), %s15444_s3, 512, %s199_s4, [#allocation10], %s9107_s9, %s9107_s9, %s9108_s1  }
  0x67   : > { %s8274_s6 = sadd.s32 4294967294, %s9100_s28   ;;  %s45_s25 = sadd.s32 1, %s9080_s23 }
  0x68   : > { %p15445_p6 = scmp.eq.s32.totalorder %s9272_s8, 0  ;;  %p52_p7 = scmp.ne.s32.totalorder %s9080_s23, %s9076_s22 }
  0x69   : > { %p58_p13 = scmp.ne.s32.totalorder %s9076_s22, %s9072_s21  ;;  %p179_p9 = scmp.eq.s32.totalorder %s8274_s6, 3 }
  0x6a   : > { %s9397_s30 = scalar_select %p15445_p6, %s9080_s23, %s45_s25  }
  0x6b   : > { %s212_s15 = sand.u32 1, %s9080_s23   ;;  %p15447_p5 = scmp.eq.s32.totalorder %s9100_s28, 0 }
  0x6c   : > { %15446 = sst [smem:[#allocation32_spill]] %s9397_s30  ;;  %p15448_p0 = scmp.eq.s32.totalorder %s9341_s11, 0 }
  0x6d   : > { %p54_p12 = por %p15447_p5, %p52_p7  ;;  %p15450_p3 = scmp.eq.s32.totalorder %s9341_s11, 3 }
  0x6e   : > { %p9408_p2 = por %p15448_p0, %p58_p13  ;;  %p9418_p4 = por %p179_p9, %p58_p13 }
  0x6f   : > { %p9414_p1 = por %p15450_p3, %p52_p7  ;;  %s8280_s18 = sshll.u32 %s212_s15, 5 }
  0x70   : > { %s15453_s8 = scalar_select %p9418_p4, 1, 0 }
  0x71   : > { %s15451_s4 = scalar_select %p9414_p1, 1, 0 }
  0x72   : > { %15454 = sst [smem:[#allocation34_spill]] %s15453_s8  ;;  %s15455_s9 = sshll.u32 %s9096_s27, 3 }
  0x73   : > { %15452 = sst [smem:[#allocation33_spill]] %s15451_s4  ;;  %s221_s1 = sadd.s32 %s9092_s26, %s15455_s9 }
  0x74   : > { %s8282_s10 = sshll.u32 %s221_s1, 7  ;;  %s216_s14 = scalar_lea.vmem [#allocation3], %s8280_s18 }
  0x75   : > { %s224_s6 = sshll.u32 %s216_s14, 4  ;;  %s15456_s0 = sld [smem:[#allocation248_spill]]  ;;  %s9430_s6 = int_to_ptr.vmem [resolvable:$true] %s224_s6 }
  0x76   : > { %p15457_p8 = scmp.lt.s32.totalorder %s9100_s28, 4  ;;  %s9438_s18 = scalar_lea.sflag [#allocation4], %s212_s15 }
  0x78   : > { %p9434_p11 = pnand %p15457_p8, %p54_p12 }
  0x7a   : > { %p8880_p6 = pneg %p9434_p11 }
  0x7b   : > { %s9428_s30 = scalar_lea.hbm %s15456_s0, %s8282_s10  ;;  %s8883_s10 = scalar_lea.hbm %s15456_s0, 2048 }
  0x7c   : > { %s8878_s9 = scalar_lea.hbm %s9428_s30, 512  ;;  %p8884_p9 = scmp.lt.u32.totalorder %s9428_s30, %s15456_s0 }
  0x7d   : > { %p8879_p10 = scmp.ne.s32.totalorder %s9428_s30, %s8878_s9  ;;  %p8885_p5 = scmp.lt.u32.totalorder %s8883_s10, %s8878_s9 }
  0x7e   : > { %p8887_p0 = scmp.lt.u32.totalorder %s8878_s9, %s9428_s30 }
  0x7f   : > { %p8881_p7 = pnand %p8880_p6, %p8879_p10  ;;  %p8886_p12 = por %p8885_p5, %p8884_p9 }
  0x81   : > { %p8882_p13 = pneg %p8881_p7  ;;  %p8888_p3 = por %p8887_p0, %p8886_p12 }
  0x83   : > { %p8889_p8 = pnand %p8888_p3, %p8882_p13 }
  0x85   : > { %8892 = shalt.err (!%p8889_p8)
}
  0x86   : > { %s8893_s15 = scalar_lea.vmem %s9430_s6, 512  ;;  %s9109_s3 = smov [#allocation3]  }
  0x87   : > { %p8894_p10 = scmp.ne.s32.totalorder %s9430_s6, %s8893_s15  ;;  %s8898_s1 = sshll.u32 %s9109_s3, 4  ;;  %s8899_s1 = int_to_ptr.vmem [resolvable:$false] %s8898_s1 }
  0x88   : > { %s8900_s14 = scalar_lea.vmem %s8899_s1, 1024  ;;  %p8901_p1 = scmp.lt.s32.totalorder %s9430_s6, %s8899_s1 }
  0x89   : > { %p8896_p7 = pnand %p8894_p10, %p8880_p6  ;;  %p8902_p9 = scmp.lt.s32.totalorder %s8900_s14, %s8893_s15 }
  0x8b   : > { %p8897_p4 = pneg %p8896_p7  ;;  %p8903_p5 = por %p8902_p9, %p8901_p1 }
  0x8d   : > { %p8904_p12 = pnand %p8903_p5, %p8897_p4 }
  0x8f   : > { %8907 = shalt.err (!%p8904_p12)
}
  0x90   : > { %s15459_s9 = smov 8   ;;  %s15460_s10 = smov 128  }
  0x91   : > { %s15461_s25 = smov 256   ;;  %s113_s15 = sadd.s32 1, %s9056_s17 }
  0x92   : > { %8538 = dma.hbm_to_vmem [thread:$0]  (!%p9434_p11), %s9428_s30, 512, %s9430_s6, %s9438_s18, %s15461_s25, %s15460_s10, %s15459_s9  }
  0x93   : > { %p120_p1 = scmp.ne.s32.totalorder %s9056_s17, %s9052_s16  ;;  %s261_s3 = sand.u32 1, %s9056_s17  }
  0x94   : > { %p15462_p4 = scmp.eq.s32.totalorder %s9100_s28, 0  ;;  %s8287_s23 = sshll.u32 %s261_s3, 5 }
  0x95   : > { %s15463_s1 = sshll.u32 %s9096_s27, 10  ;;  %s15464_s2 = sld [smem:[#allocation250_spill]] }
  0x96   : > { %p122_p6 = por %p120_p1, %p15462_p4  ;;  %s9044_s14 = sadd.s32 128, %s15463_s1 }
  0x97   : > { %s263_s8 = scalar_lea.vmem [#allocation8], %s8287_s23  ;;  %p15465_p11 = scmp.eq.s32.totalorder %s9267_s7, 0 }
  0x98   : > { %s274_s21 = sshll.u32 %s263_s8, 4  ;;  %p15467_p13 = scmp.lt.s32.totalorder %s9100_s28, 4  ;;  %s9487_s21 = int_to_ptr.vmem [resolvable:$true] %s274_s21 }
  0x99   : > { %s9485_s30 = scalar_select %p15465_p11, %s9056_s17, %s113_s15  }
  0x9a   : > { %p9491_p0 = pnand %p15467_p13, %p122_p6 }
  0x9b   : > { %s9480_s20 = scalar_lea.hbm %s15464_s2, %s9044_s14  ;;  %15466 = sst [smem:[#allocation35_spill]] %s9485_s30 }
  0x9c   : > { %s8908_s0 = scalar_lea.hbm %s9480_s20, 512  ;;  %p8910_p8 = pneg %p9491_p0 }
  0x9d   : > { %p8909_p3 = scmp.ne.s32.totalorder %s9480_s20, %s8908_s0  ;;  %s8913_s8 = scalar_lea.hbm %s15464_s2, 2048 }
  0x9e   : > { %p8914_p9 = scmp.lt.u32.totalorder %s9480_s20, %s15464_s2  ;;  %p8915_p5 = scmp.lt.u32.totalorder %s8913_s8, %s8908_s0 }
  0x9f   : > { %p8911_p10 = pnand %p8910_p8, %p8909_p3  ;;  %p8917_p1 = scmp.lt.u32.totalorder %s8908_s0, %s9480_s20 }
  0xa0   : > { %p8916_p12 = por %p8915_p5, %p8914_p9 }
  0xa1   : > { %p8912_p7 = pneg %p8911_p10 }
  0xa2   : > { %p8918_p4 = por %p8917_p1, %p8916_p12 }
  0xa4   : > { %p8919_p6 = pnand %p8918_p4, %p8912_p7 }
  0xa6   : > { %8922 = shalt.err (!%p8919_p6)
}
  0xa7   : > { %s8923_s3 = scalar_lea.vmem %s9487_s21, 512  ;;  %s9110_s23 = smov [#allocation8]  }
  0xa8   : > { %p8924_p11 = scmp.ne.s32.totalorder %s9487_s21, %s8923_s3  ;;  %s8928_s1 = sshll.u32 %s9110_s23, 4  ;;  %s8929_s1 = int_to_ptr.vmem [resolvable:$false] %s8928_s1 }
  0xa9   : > { %s8930_s14 = scalar_lea.vmem %s8929_s1, 1024  ;;  %p8931_p10 = scmp.lt.s32.totalorder %s9487_s21, %s8929_s1 }
  0xaa   : > { %p8926_p13 = pnand %p8924_p11, %p8910_p8  ;;  %p8932_p9 = scmp.lt.s32.totalorder %s8930_s14, %s8923_s3 }
  0xac   : > { %p8927_p3 = pneg %p8926_p13  ;;  %p8933_p5 = por %p8932_p9, %p8931_p10 }
  0xae   : > { %p8934_p12 = pnand %p8933_p5, %p8927_p3 }
  0xb0   : > { %8937 = shalt.err (!%p8934_p12)
}
  0xb1   : > { %8544 = dma.hbm_to_vmem [thread:$0]  (!%p9491_p0), %s9480_s20, 512, %s9487_s21, %s9309_s12, %s15461_s25, %s15460_s10, %s15459_s9  }
  0xb2   : > { %p15469_p8 = scmp.ne.s32.totalorder %s15442_s29, 0 }
  0xb4   : > { %286 = sbr.rel (%p15469_p8) target bundleno = 2137 (0x859), region = 36 }
  0xbb   : > { %s9527_s0 = sand.u32 1, %s9076_s22  }
  0xbc   : > { %15470 = sst [smem:[#allocation36_spill]] %s9527_s0  ;;  %s8291_s26 = sshll.u32 %s9527_s0, 5 }
  0xbd   : > { %s289_s7 = scalar_lea.sflag [#allocation4], %s9527_s0  ;;  %s9531_s8 = scalar_lea.vmem [#allocation3], %s8291_s26 }
  0xbe   : > { %9023 = dma.done.wait (%p9408_p2), %s289_s7, 512  }
  0xbf   : > { %9025 = vsyncadd (%p9408_p2), %s289_s7, 4294966784  ;;  %s297_s20 = sand.u32 1, %s9341_s11   ;;  %s299_s21 = sand.u32 1, %s9064_s19  }
  0xc0   : > { %s8292_s12 = sshll.u32 %s299_s21, 5  ;;  %s298_s29 = scalar_lea.sflag [#allocation7], %s297_s20 }
  0xc1   : > { %s9539_s9 = scalar_lea.vmem [#allocation6], %s8292_s12  ;;  %p15471_p0 = scmp.ne.s32.totalorder %s15440_s5, 0 }
  0xc3   : > { %9027 = dma.done.wait (%p15471_p0), %s298_s29, 512  }
  0xc4   : > { %9029 = vsyncadd (%p15471_p0), %s298_s29, 4294966784  ;;  %s308_s10 = sand.u32 1, %s9052_s16   ;;  %p15472_p2 = scmp.ne.s32.totalorder %s15441_s24, 0 }
  0xc5   : > { %s8293_s25 = sshll.u32 %s308_s10, 5 }
  0xc6   : > { %s9546_s13 = scalar_lea.vmem [#allocation8], %s8293_s25 }
  0xc7   : > { %9031 = dma.done.wait (%p15472_p2), %s298_s29, 512  }
  0xc8   : > { %9033 = vsyncadd (%p15472_p2), %s298_s29, 4294966784  ;;  %p15473_p7 = scmp.eq.s32.totalorder %s9341_s11, 0 }
  0xca   : > { %9035 = dma.done.wait (%p15473_p7), [#allocation10], 512   ;;  %p15474_p1 = pmov %p15473_p7 }
  0xcb   : > { %v9557_v0 = vld [vmem:[%s9531_s8 + $0x10] sm:$0xff]  ;;  %v9560_v1 = vld [vmem:[%s9531_s8 + $0x18] sm:$0xff]  ;;  %v9565_v4 = vld [vmem:[%s9531_s8] sm:$0xff]  ;;  %v9111_v31 = vmov 683565275   ;;  %s9118_s11 = smov 1  }
  0xcc   : > { %9037 = vsyncadd (%p15474_p1), [#allocation10], 4294966784  ;;  %v570_v2 = vand.u32 2147483647, %v9557_v0  ;;  %v573_v3 = vand.u32 2139095040, %v9557_v0  ;;  %v677_v6 = vand.u32 2139095040, %v9560_v1 }
  0xcd   : > { %v674_v5 = vand.u32 2147483647, %v9560_v1  ;;  %v365_v11 = vand.u32 2139095040, %v9565_v4  ;;  %v362_v14 = vand.u32 2147483647, %v9565_v4  ;;  %vm572_vm12 = vcmp.lt.s32.totalorder %v9557_v0, 0 }
  0xce   : > { %v574_v7 = vshrl.u32 %v573_v3, 23  ;;  %v577_v8 = vand.u32 8388607, %v570_v2  ;;  %v678_v9 = vshrl.u32 %v677_v6, 23  ;;  %v9112_v33 = vmov 2475754826  }
  0xcf   : > { %v681_v10 = vand.u32 8388607, %v674_v5  ;;  %v366_v15 = vshrl.u32 %v365_v11, 23  ;;  %v9577_v22 = vand.u32 8388607, %v362_v14  ;;  %s9119_s5 = smov 127  }
  0xd0   : > { %v8304_v12 = vadd.s32 4294967169, %v574_v7  ;;  %v8308_v13 = vadd.s32 4294967169, %v678_v9  ;;  %v578_v17 = vor.u32 8388608, %v577_v8  ;;  %v9113_v35 = vmov 2131351028   ;;  %s15487_s24 = sld [smem:[#allocation24_spill]] }
  0xd1   : > { %v682_v18 = vor.u32 8388608, %v681_v10  ;;  %v8296_v20 = vadd.s32 4294967169, %v366_v15  ;;  %v9114_v37 = vmov 2102212464   ;;  %v9115_v39 = vmov 920167782  }
  0xd2   : > { %v580_v16 = vadd.s32 1, %v8304_v12  ;;  %v684_v19 = vadd.s32 1, %v8308_v13  ;;  %v9579_v26 = vshll.u32 %v578_v17, 8  ;;  %v9116_v47 = vmov 1326507024   ;;  %s15389_s15 = smov 4  }
  0xd3   : > { %v9581_v28 = vshll.u32 %v682_v18, 8  ;;  %v9583_v29 = vadd.s32 1, %v8296_v20  ;;  %vm9671_vm14 = vcmp.le.f32.partialorder %v570_v2, 0.7853982  ;;  %s15387_s3 = smov 8   ;;  %s15383_s23 = smov 12  }
  0xd4   : > { %vm581_vm0 = vcmp.gt.s32.totalorder %v580_v16, 0  ;;  %vm685_vm1 = vcmp.gt.s32.totalorder %v684_v19, 0  ;;  %s15385_s1 = smov 16   ;;  %s15381_s14 = smov 20  }
  0xd5   : > { %v582_v21 = vsel %vm581_vm0, %v580_v16, 0  ;;  %v686_v25 = vsel %vm685_vm1, %v684_v19, 0  ;;  %vm373_vm6 = vcmp.gt.s32.totalorder %v9583_v29, 0  ;;  %s15379_s26 = smov 24   ;;  %s15375_s7 = smov 28  }
  0xd6   : > { %v583_v23 = vshrl.u32 %v582_v21, 5  ;;  %v584_v24 = vand.u32 31, %v582_v21  ;;  %v688_v27 = vand.u32 31, %v686_v25  ;;  %v9590_v41 = vshrl.u32 %v686_v25, 5  ;;  %p788_p4 = scmp.eq.s32.totalorder %s15487_s24, 1  ;;  %p1253_p6 = scmp.eq.s32.totalorder %s15487_s24, 0 }
  0xd7   : > { %s15365_s20 = smov 36   ;;  %s15359_s21 = smov 40  }
  0xd8   : > { %v585_v30 = vsub.s32 32, %v584_v24  ;;  %v587_v32 = vshll.u32 %v9111_v31, %v584_v24  ;;  %v590_v34 = vshll.u32 %v9112_v33, %v584_v24  ;;  %v593_v36 = vshll.u32 %v9113_v35, %v584_v24  ;;  %s10123_s6 = scalar_select %p788_p4, 1, 0 }
  0xd9   : > { %v596_v38 = vshll.u32 %v9114_v37, %v584_v24  ;;  %v599_v40 = vshll.u32 %v9115_v39, %v584_v24  ;;  %vm602_vm2 = vcmp.lt.s32.totalorder %v583_v23, 1  ;;  %vm603_vm3 = vcmp.lt.s32.totalorder %v583_v23, 2  ;;  %s10508_s18 = scalar_select %p1253_p6, 1, 0 }
  0xda   : > { %v586_v42 = vshrl.u32 %v9111_v31, %v585_v30  ;;  %v588_v43 = vshrl.u32 %v9112_v33, %v585_v30  ;;  %v591_v44 = vshrl.u32 %v9113_v35, %v585_v30  ;;  %v594_v45 = vshrl.u32 %v9114_v37, %v585_v30  ;;  %s15354_s12 = smov 44   ;;  %s15352_s29 = smov 48  }
  0xdb   : > { %v597_v46 = vshrl.u32 %v9115_v39, %v585_v30  ;;  %v600_v48 = vshrl.u32 %v9116_v47, %v585_v30  ;;  %vm605_vm4 = vcmp.lt.s32.totalorder %v583_v23, 4  ;;  %v689_v52 = vsub.s32 32, %v688_v27  ;;  %s15348_s10 = smov 56   ;;  %s15339_s25 = smov 60  }
  0xdc   : > { %v589_v49 = vor.u32 %v588_v43, %v587_v32  ;;  %v592_v50 = vor.u32 %v591_v44, %v590_v34  ;;  %v595_v51 = vor.u32 %v594_v45, %v593_v36  ;;  %vm604_vm5 = vcmp.lt.s32.totalorder %v583_v23, 3  ;;  %s16235_s2 = smov 52   ;;  %s16239_s27 = smov 56  }
  0xdd   : > { %v598_v53 = vor.u32 %v597_v46, %v596_v38  ;;  %v601_v54 = vor.u32 %v600_v48, %v599_v40  ;;  %v691_v55 = vshll.u32 %v9111_v31, %v688_v27  ;;  %v694_v63 = vshll.u32 %v9112_v33, %v688_v27  ;;  %s16242_s22 = smov 60   ;;  %s16247_s19 = smov 64  }
  0xde   : > { %v606_v56 = vsel %vm602_vm2, %v586_v42, %v589_v49  ;;  %v607_v57 = vsel %vm605_vm4, %v595_v51, 2102212464  ;;  %v610_v58 = vsel %vm602_vm2, %v589_v49, %v592_v50  ;;  %v614_v59 = vsel %vm602_vm2, %v592_v50, %v595_v51  ;;  %s16250_s30 = smov 68   ;;  %s16333_s17 = smov 112  }
  0xdf   : > { %v608_v60 = vsel %vm604_vm5, %v592_v50, %v607_v57  ;;  %v611_v61 = vsel %vm605_vm4, %v598_v53, 920167782  ;;  %v615_v62 = vsel %vm605_vm4, %v601_v54, 1326507024  ;;  %v690_v7 = vshrl.u32 %v9111_v31, %v689_v52  ;;  %s16340_s16 = smov 120   ;;  %s16354_s28 = smov 124  }
  0xe0   : > { %v612_v3 = vsel %vm604_vm5, %v595_v51, %v611_v61  ;;  %v616_v6 = vsel %vm604_vm5, %v598_v53, %v615_v62  ;;  %v692_v8 = vshrl.u32 %v9112_v33, %v689_v52  ;;  %v609_v9 = vsel %vm603_vm3, %v606_v56, %v608_v60  ;;  %s16360_s4 = smov 4   ;;  %s16366_s24 = smov 12  }
  0xe1   : > { %v613_v10 = vsel %vm603_vm3, %v610_v58, %v612_v3  ;;  %v617_v11 = vsel %vm603_vm3, %v614_v59, %v616_v6  ;;  %v695_v12 = vshrl.u32 %v9113_v35, %v689_v52  ;;  %v697_v20 = vshll.u32 %v9113_v35, %v688_v27  ;;  %v9649_v59 = vld [vmem:[%s9531_s8 + $0x8] sm:$0xff] }
  0xe2   : > { %v9611_v13 = vmul.u32.u64.low %v9579_v26, %v617_v11  ;;  %v9612_v15 = vmul.u32.u64.high %v9579_v26, %v617_v11, %v9611_v13  ;;  %v9615_v16 = vmul.u32.u64.low %v9579_v26, %v613_v10  ;;  %v9616_v17 = vmul.u32.u64.high %v9579_v26, %v613_v10, %v9615_v16 }
  0xe3   : > { %v693_v18 = vor.u32 %v692_v8, %v691_v55  ;;  %v696_v19 = vor.u32 %v695_v12, %v694_v63  ;;  %v698_v21 = vshrl.u32 %v9114_v37, %v689_v52  ;;  %v700_v23 = vshll.u32 %v9114_v37, %v688_v27 }
  0xe4   : > { %v701_v24 = vshrl.u32 %v9115_v39, %v689_v52  ;;  %v703_v25 = vshll.u32 %v9115_v39, %v688_v27  ;;  %v704_v30 = vshrl.u32 %v9116_v47, %v689_v52  ;;  %v625_v32 = vmul.u32 %v9579_v26, %v609_v9 }
  0xe5   : > { %v699_v34 = vor.u32 %v698_v21, %v697_v20  ;;  %vm706_vm7 = vcmp.lt.s32.totalorder %v9590_v41, 1  ;;  %vm707_vm8 = vcmp.lt.s32.totalorder %v9590_v41, 2  ;;  %vm627_vm9 = vc.u32 %v9612_v15, %v9615_v16 }
  0xe6   : > { %v628_v36 = vadd.s32 1, %v9616_v17  ;;  %v702_v38 = vor.u32 %v701_v24, %v700_v23  ;;  %vm708_vm10 = vcmp.lt.s32.totalorder %v9590_v41, 3  ;;  %v705_v40 = vor.u32 %v704_v30, %v703_v25 }
  0xe7   : > { %vm709_vm11 = vcmp.lt.s32.totalorder %v9590_v41, 4  ;;  %v710_v27 = vsel %vm706_vm7, %v690_v7, %v693_v18  ;;  %v714_v42 = vsel %vm706_vm7, %v693_v18, %v696_v19  ;;  %v718_v45 = vsel %vm706_vm7, %v696_v19, %v699_v34 }
  0xe8   : > { %v629_v26 = vsel %vm627_vm9, %v628_v36, %v9616_v17  ;;  %v711_v43 = vsel %vm709_vm11, %v699_v34, 2102212464  ;;  %v715_v44 = vsel %vm709_vm11, %v702_v38, 920167782  ;;  %v719_v50 = vsel %vm709_vm11, %v705_v40, 1326507024 }
  0xe9   : > { %v630_v46 = vadd.s32 %v629_v26, %v625_v32  ;;  %v712_v48 = vsel %vm708_vm10, %v696_v19, %v711_v43  ;;  %v716_v49 = vsel %vm708_vm10, %v699_v34, %v715_v44  ;;  %v720_v53 = vsel %vm708_vm10, %v702_v38, %v719_v50 }
  0xea   : > { %v713_v51 = vsel %vm707_vm8, %v710_v27, %v712_v48  ;;  %v717_v52 = vsel %vm707_vm8, %v714_v42, %v716_v49  ;;  %v374_v54 = vsel %vm373_vm6, %v9583_v29, 0  ;;  %v721_v56 = vsel %vm707_vm8, %v718_v45, %v720_v53 }
  0xeb   : > { %v631_v55 = vadd.s32 536870912, %v630_v46  ;;  %v9644_v57 = vmul.u32.u64.low %v9581_v28, %v717_v52  ;;  %v9645_v58 = vmul.u32.u64.high %v9581_v28, %v717_v52, %v9644_v57  ;;  %v370_v62 = vor.u32 8388608, %v9577_v22 }
  0xec   : > { %v9652_v60 = vmul.u32.u64.low %v9581_v28, %v721_v56  ;;  %v9653_v61 = vmul.u32.u64.high %v9581_v28, %v721_v56, %v9652_v60  ;;  %v466_v63 = vand.u32 2147483647, %v9649_v59  ;;  %v376_v3 = vand.u32 31, %v374_v54 }
  0xed   : > { %v632_v29 = vshrl.u32 %v631_v55, 30  ;;  %v729_v41 = vmul.u32 %v9581_v28, %v713_v51  ;;  %v732_v7 = vadd.s32 1, %v9645_v58  ;;  %v9662_v9 = vshll.u32 %v370_v62, 8 }
  0xee   : > { %v377_v8 = vsub.s32 32, %v376_v3  ;;  %vm731_vm13 = vc.u32 %v9653_v61, %v9644_v57  ;;  %v469_v10 = vand.u32 2139095040, %v9649_v59  ;;  %v9667_v22 = vand.u32 8388607, %v466_v63 }
  0xef   : > { %v633_v6 = vshll.u32 %v632_v29, 30  ;;  %v656_v12 = vsub.s32 4, %v632_v29  ;;  %v733_v13 = vsel %vm731_vm13, %v732_v7, %v9645_v58  ;;  %v375_v17 = vshrl.u32 %v374_v54, 5 }
  0xf0   : > { %v734_v18 = vadd.s32 %v733_v13, %v729_v41  ;;  %v379_v19 = vshll.u32 %v9111_v31, %v376_v3  ;;  %v380_v20 = vshrl.u32 %v9112_v33, %v377_v8  ;;  %v382_v21 = vshll.u32 %v9112_v33, %v376_v3 }
  0xf1   : > { %v9675_v11 = vsub.s32 %v630_v46, %v633_v6  ;;  %v383_v2 = vshrl.u32 %v9113_v35, %v377_v8  ;;  %v385_v24 = vshll.u32 %v9113_v35, %v376_v3  ;;  %v386_v25 = vshrl.u32 %v9114_v37, %v377_v8 }
  0xf2   : > { %v626_v30 = vadd.s32 %v9615_v16, %v9612_v15  ;;  %v735_v32 = vadd.s32 536870912, %v734_v18  ;;  %v388_v34 = vshll.u32 %v9114_v37, %v376_v3  ;;  %v470_v36 = vshrl.u32 %v469_v10, 23 }
  0xf3   : > { %v636_v23 = vsub.s32 0, %v9675_v11  ;;  %v657_v40 = vsel %vm572_vm12, %v656_v12, %v632_v29  ;;  %v389_v27 = vshrl.u32 %v9115_v39, %v377_v8  ;;  %vm397_vm15 = vcmp.lt.s32.totalorder %v375_v17, 4 }
  0xf4   : > { %v9692_v42 = vshrl.u32 %v735_v32, 30  ;;  %v378_v26 = vshrl.u32 %v9111_v31, %v377_v8  ;;  %v391_v43 = vshll.u32 %v9115_v39, %v376_v3  ;;  %v392_v15 = vshrl.u32 %v9116_v47, %v377_v8 }
  0xf5   : > { %v8305_v38 = vmin.u32 %v636_v23, %v9675_v11  ;;  %v381_v44 = vor.u32 %v380_v20, %v379_v19  ;;  %v384_v45 = vor.u32 %v383_v2, %v382_v21  ;;  %v387_v46 = vor.u32 %v386_v25, %v385_v24 }
  0xf6   : > { %v737_v48 = vshll.u32 %v9692_v42, 30  ;;  %v390_v49 = vor.u32 %v389_v27, %v388_v34  ;;  %vm394_vm0 = vcmp.lt.s32.totalorder %v375_v17, 1  ;;  %vm396_vm1 = vcmp.lt.s32.totalorder %v375_v17, 3 }
  0xf7   : > { %v638_v16 = vclz %v8305_v38  ;;  %v393_v51 = vor.u32 %v392_v15, %v391_v43  ;;  %v399_v52 = vsel %vm397_vm15, %v387_v46, 2102212464  ;;  %v8300_v53 = vadd.s32 4294967169, %v470_v36 }
  0xf8   : > { %v659_v54 = vsel %vm9671_vm14, 0, %v657_v40  ;;  %v9701_v55 = vsub.s32 %v734_v18, %v737_v48  ;;  %vm395_vm2 = vcmp.lt.s32.totalorder %v375_v17, 2  ;;  %v403_v56 = vsel %vm397_vm15, %v390_v49, 920167782 }
  0xf9   : > { %v8306_v50 = vadd.s32 4294967294, %v638_v16  ;;  %v398_v58 = vsel %vm394_vm0, %v378_v26, %v381_v44  ;;  %v402_v60 = vsel %vm394_vm0, %v381_v44, %v384_v45  ;;  %v404_v62 = vsel %vm396_vm1, %v387_v46, %v403_v56 }
  0xfa   : > { %v740_v3 = vsub.s32 0, %v9701_v55  ;;  %v400_v41 = vsel %vm396_vm1, %v384_v45, %v399_v52  ;;  %v406_v6 = vsel %vm394_vm0, %v384_v45, %v387_v46  ;;  %v407_v12 = vsel %vm397_vm15, %v393_v51, 1326507024 }
  0xfb   : > { %vm8307_vm3 = vcmp.lt.s32.totalorder %v8306_v50, 0  ;;  %vm676_vm4 = vcmp.lt.s32.totalorder %v9560_v1, 0  ;;  %v405_v18 = vsel %vm395_vm2, %v402_v60, %v404_v62  ;;  %v408_v19 = vsel %vm396_vm1, %v390_v49, %v407_v12 }
  0xfc   : > { %v641_v29 = vsel %vm8307_vm3, 0, %v8306_v50  ;;  %v8309_v13 = vmin.u32 %v740_v3, %v9701_v55  ;;  %v409_v23 = vsel %vm395_vm2, %v406_v6, %v408_v19  ;;  %v476_v2 = vadd.s32 1, %v8300_v53 }
  0xfd   : > { %v642_v7 = vsub.s32 32, %v641_v29  ;;  %v643_v8 = vshll.u32 %v9675_v11, %v641_v29  ;;  %v646_v10 = vsub.s32 4294967266, %v641_v29  ;;  %v663_v24 = vadd.s32 3, %v659_v54 }
  0xfe   : > { %v742_v25 = vclz %v8309_v13  ;;  %v401_v11 = vsel %vm395_vm2, %v398_v58, %v400_v41  ;;  %v474_v32 = vor.u32 8388608, %v9667_v22  ;;  %vm477_vm5 = vcmp.gt.s32.totalorder %v476_v2, 0 }
  0xff   : > { %v644_v20 = vshrl.u32 %v626_v30, %v642_v7  ;;  %v647_v21 = vadd.s32 127, %v646_v10  ;;  %v9720_v38 = vmul.u32.u64.low %v9662_v9, %v409_v23  ;;  %v9721_v40 = vmul.u32.u64.high %v9662_v9, %v409_v23, %v9720_v38 }
 0x100   : > { %v8310_v27 = vadd.s32 4294967294, %v742_v25  ;;  %v9724_v26 = vmul.u32.u64.low %v9662_v9, %v405_v18  ;;  %v9725_v30 = vmul.u32.u64.high %v9662_v9, %v405_v18, %v9724_v26  ;;  %v760_v17 = vsub.s32 4, %v9692_v42 }
 0x101   : > { %v645_v34 = vor.u32 %v644_v20, %v643_v8  ;;  %v648_v36 = vshll.u32 %v647_v21, 23  ;;  %v478_v16 = vsel %vm477_vm5, %v476_v2, 0  ;;  %v9729_v44 = vand.u32 3, %v663_v24 }
 0x102   : > { %v730_v45 = vadd.s32 %v9644_v57, %v9653_v61  ;;  %vm8311_vm6 = vcmp.lt.s32.totalorder %v8310_v27, 0  ;;  %v480_v46 = vand.u32 31, %v478_v16  ;;  %v417_v50 = vmul.u32 %v9662_v9, %v401_v11 }
 0x103   : > { %v649_v43 = vor.u32 4788187, %v648_v36  ;;  %v652_v15 = vcvt.s32.f32 %v645_v34  ;;  %v745_v49 = vsel %vm8311_vm6, 0, %v8310_v27  ;;  %vm419_vm7 = vc.u32 %v9721_v40, %v9724_v26 }
 0x104   : > { %vm9738_vm8 = vcmp.le.f32.partialorder %v674_v5, 0.7853982  ;;  %v746_v52 = vsub.s32 32, %v745_v49  ;;  %v747_v53 = vshll.u32 %v9701_v55, %v745_v49  ;;  %v750_v54 = vsub.s32 4294967266, %v745_v49 }
 0x105   : > { %v650_v48 = vand.u32 2147483647, %v649_v43  ;;  %v420_v57 = vadd.s32 1, %v9725_v30  ;;  %v761_v9 = vsel %vm676_vm4, %v760_v17, %v9692_v42  ;;  %v9747_v56 = vshrl.u32 %v478_v16, 5 }
 0x106   : > { %v481_v58 = vsub.s32 32, %v480_v46  ;;  %v748_v60 = vshrl.u32 %v730_v45, %v746_v52  ;;  %v751_v62 = vadd.s32 127, %v750_v54  ;;  %v483_v29 = vshll.u32 %v9111_v31, %v480_v46 }
 0x107   : > { %v653_v61 = vmul.f32 %v652_v15, %v650_v48  ;;  %v421_v5 = vsel %vm419_vm7, %v420_v57, %v9725_v30  ;;  %v486_v6 = vshll.u32 %v9112_v33, %v480_v46  ;;  %v489_v42 = vshll.u32 %v9113_v35, %v480_v46 }
 0x108   : > { %v422_v41 = vadd.s32 %v421_v5, %v417_v50  ;;  %v484_v55 = vshrl.u32 %v9112_v33, %v481_v58  ;;  %v749_v7 = vor.u32 %v748_v60, %v747_v53  ;;  %v752_v8 = vshll.u32 %v751_v62, 23 }
 0x109   : > { %v654_v3 = vxor.u32 2147483648, %v653_v61  ;;  %v487_v10 = vshrl.u32 %v9113_v35, %v481_v58  ;;  %v490_v18 = vshrl.u32 %v9114_v37, %v481_v58  ;;  %v492_v19 = vshll.u32 %v9114_v37, %v480_v46 }
 0x10a   : > { %v423_v13 = vadd.s32 536870912, %v422_v41  ;;  %v753_v21 = vor.u32 4788187, %v752_v8  ;;  %v756_v23 = vcvt.s32.f32 %v749_v7  ;;  %v485_v2 = vor.u32 %v484_v55, %v483_v29 }
 0x10b   : > { %v655_v12 = vsel %vm572_vm12, %v654_v3, %v653_v61  ;;  %v488_v25 = vor.u32 %v487_v10, %v486_v6  ;;  %v493_v11 = vshrl.u32 %v9115_v39, %v481_v58  ;;  %v495_v36 = vshll.u32 %v9115_v39, %v480_v46 }
 0x10c   : > { %v658_v20 = vsel %vm9671_vm14, %v9557_v0, %v655_v12  ;;  %v9762_v24 = vshrl.u32 %v423_v13, 30  ;;  %v754_v34 = vand.u32 2147483647, %v753_v21  ;;  %v496_v38 = vshrl.u32 %v9116_v47, %v481_v58 }
 0x10d   : > { %8771 = vcosq.f32 %v658_v20  ;;  %v763_v27 = vsel %vm9738_vm8, 0, %v761_v9  ;;  %v494_v30 = vor.u32 %v493_v11, %v492_v19  ;;  %vm498_vm9 = vcmp.lt.s32.totalorder %v9747_v56, 1 }
 0x10e   : > { %8773 = vsinq.f32 %v658_v20  ;;  %v425_v28 = vshll.u32 %v9762_v24, 30  ;;  %v757_v43 = vmul.f32 %v756_v23, %v754_v34  ;;  %v482_v15 = vshrl.u32 %v9111_v31, %v481_v58 }
 0x10f   : > { %v491_v17 = vor.u32 %v490_v18, %v489_v42  ;;  %v9774_v16 = vshll.u32 %v474_v32, 8  ;;  %v497_v46 = vor.u32 %v496_v38, %v495_v36  ;;  %vm500_vm10 = vcmp.lt.s32.totalorder %v9747_v56, 3 }
 0x110   : > { %v9776_v45 = vsub.s32 %v422_v41, %v425_v28  ;;  %vm501_vm11 = vcmp.lt.s32.totalorder %v9747_v56, 4  ;;  %v758_v48 = vxor.u32 2147483648, %v757_v43  ;;  %vm499_vm12 = vcmp.lt.s32.totalorder %v9747_v56, 2 }
 0x111   : > { %v503_v49 = vsel %vm501_vm11, %v491_v17, 2102212464  ;;  %v506_v50 = vsel %vm498_vm9, %v485_v2, %v488_v25  ;;  %v767_v52 = vadd.s32 3, %v763_v27  ;;  %v507_v32 = vsel %vm501_vm11, %v494_v30, 920167782  ;;  %v9838_v27 = vld [vmem:[%s9546_s13] sm:$0xff] }
 0x112   : > { %v428_v22 = vsub.s32 0, %v9776_v45  ;;  %vm665_vm13 = vcmp.lt.s32.totalorder %v9729_v44, 2  ;;  %v759_v53 = vsel %vm676_vm4, %v758_v48, %v757_v43  ;;  %v502_v54 = vsel %vm498_vm9, %v482_v15, %v485_v2  ;;  %v1777_v2 = vld [vmem:[#allocation2 + $0x30] sm:$0x1] }
 0x113   : > { %v504_v57 = vsel %vm500_vm10, %v488_v25, %v503_v49  ;;  %v508_v61 = vsel %vm500_vm10, %v491_v17, %v507_v32  ;;  %v762_v9 = vsel %vm9738_vm8, %v9560_v1, %v759_v53  ;;  %v510_v62 = vsel %vm498_vm9, %v488_v25, %v491_v17 }
 0x114   : > { %v8297_v58 = vmin.u32 %v428_v22, %v9776_v45  ;;  %v509_v60 = vsel %vm499_vm12, %v506_v50, %v508_v61  ;;  %8775 = vcosq.f32 %v762_v9  ;;  %v511_v5 = vsel %vm501_vm11, %v497_v46, 1326507024 }
 0x115   : > { %v9808_v29 = vmul.u32.u64.low %v9774_v16, %v509_v60  ;;  %v9809_v3 = vmul.u32.u64.high %v9774_v16, %v509_v60, %v9808_v29  ;;  %vm662_vm14 = vweird.f32 %v9557_v0  ;;  %vm666_vm15 = vcmp.eq.s32.totalorder %v9729_v44, 0 }
 0x116   : > { %8777 = vsinq.f32 %v762_v9  ;;  %v430_v51 = vclz %v8297_v58  ;;  %v505_v55 = vsel %vm499_vm12, %v502_v54, %v504_v57  ;;  %vm669_vm0 = vcmp.eq.s32.totalorder %v9729_v44, 2 }
 0x117   : > { %v8772_v41 = vpop.eup %8771  ;;  %v768_v8 = vand.u32 3, %v767_v52  ;;  %v512_v10 = vsel %vm500_vm10, %v494_v30, %v511_v5  ;;  %v418_v18 = vadd.s32 %v9724_v26, %v9721_v40  ;;  %v521_v21 = vmul.u32 %v9774_v16, %v505_v55 }
 0x118   : > { %v8774_v6 = vpop.eup %8773  ;;  %v670_v7 = vxor.u32 2147483648, %v8772_v41  ;;  %v8298_v12 = vadd.s32 4294967294, %v430_v51  ;;  %v513_v13 = vsel %vm499_vm12, %v510_v62, %v512_v10  ;;  %v9117_v23 = vmov 0  }
 0x119   : > { %v667_v42 = vxor.u32 2147483648, %v8774_v6  ;;  %v9824_v19 = vmul.u32.u64.low %v9774_v16, %v513_v13  ;;  %v9825_v20 = vmul.u32.u64.high %v9774_v16, %v513_v13, %v9824_v19  ;;  %8737 = vset.pattern.permute.xlu1 %v9117_v23  ;;  %v524_v25 = vadd.s32 1, %v9809_v3 }
 0x11a   : > { %vm8299_vm1 = vcmp.lt.s32.totalorder %v8298_v12, 0  ;;  %vm1774_vm2 = vcmask 1040384   ;;  %vm1775_vm3 = vsmask.f32 256  ;;  %v671_v40 = vsel %vm669_vm0, %v670_v7, %v8774_v6  ;;  %v9873_v19 = vld [vmem:[%s9546_s13 + $0x8] sm:$0xff] }
 0x11b   : > { %v668_v56 = vsel %vm666_vm15, %v8772_v41, %v667_v42  ;;  %v433_v26 = vsel %vm8299_vm1, 0, %v8298_v12  ;;  %vm1776_vm4 = vmand %vm1774_vm2, %vm1775_vm3  ;;  %v9833_v11 = vsel %vm1774_vm2, 65535, %v9117_v23  ;;  %vm766_vm5 = vweird.f32 %v9560_v1 }
 0x11c   : > { %v434_v34 = vsub.s32 32, %v433_v26  ;;  %v435_v36 = vshll.u32 %v9776_v45, %v433_v26  ;;  %v438_v38 = vsub.s32 4294967266, %v433_v26  ;;  %vm769_vm6 = vcmp.lt.s32.totalorder %v768_v8, 2 }
 0x11d   : > { %vm770_vm7 = vcmp.eq.s32.totalorder %v768_v8, 0  ;;  %vm523_vm8 = vc.u32 %v9825_v20, %v9808_v29  ;;  %v1778_v28 = vsel %vm1776_vm4, 1065369472, %v1777_v2  ;;  %v672_v30 = vsel %vm665_vm13, %v668_v56, %v671_v40 }
 0x11e   : > { %v436_v43 = vshrl.u32 %v418_v18, %v434_v34  ;;  %v439_v15 = vadd.s32 127, %v438_v38  ;;  %v525_v17 = vsel %vm523_vm8, %v524_v25, %v9809_v3  ;;  %1779 = vst [vmem:[#allocation2 + $0x30] sm:$0x1] %v1778_v28  ;;  %v8776_v16 = vpop.eup %8775  ;;  %vm773_vm9 = vcmp.eq.s32.totalorder %v768_v8, 2 }
 0x11f   : > { %v448_v45 = vsub.s32 4, %v9762_v24  ;;  %v526_v46 = vadd.s32 %v525_v17, %v521_v21  ;;  %v792_v48 = vand.u32 2139095040, %v9838_v27  ;;  %v774_v50 = vxor.u32 2147483648, %v8776_v16 }
 0x120   : > { %v8778_v49 = vpop.eup %8777  ;;  %v437_v52 = vor.u32 %v436_v43, %v435_v36  ;;  %v440_v22 = vshll.u32 %v439_v15, 23  ;;  %v789_v32 = vand.u32 2147483647, %v9838_v27  ;;  %v673_v44 = vsel %vm662_vm14, nan, %v672_v30 }
 0x121   : > { %v771_v53 = vxor.u32 2147483648, %v8778_v49  ;;  %v527_v54 = vadd.s32 536870912, %v526_v46  ;;  %v793_v57 = vshrl.u32 %v792_v48, 23  ;;  %v775_v61 = vsel %vm773_vm9, %v774_v50, %v8778_v49 }
 0x122   : > { %vm364_vm10 = vcmp.lt.s32.totalorder %v9565_v4, 0  ;;  %v441_v9 = vor.u32 4788187, %v440_v22  ;;  %v444_v58 = vcvt.s32.f32 %v437_v52  ;;  %v780_v51 = vadd.f32 %v673_v44, %v9557_v0 }
 0x123   : > { %v772_v60 = vsel %vm770_vm7, %v8776_v16, %v771_v53  ;;  %v449_v62 = vsel %vm364_vm10, %v448_v45, %v9762_v24  ;;  %v528_v5 = vshrl.u32 %v527_v54, 30  ;;  %v8312_v3 = vadd.s32 4294967169, %v793_v57 }
 0x124   : > { %v776_v41 = vsel %vm769_vm6, %v772_v60, %v775_v61  ;;  %v442_v55 = vand.u32 2147483647, %v441_v9  ;;  %v796_v6 = vand.u32 8388607, %v789_v32  ;;  %vm9864_vm11 = vcmp.le.f32.partialorder %v362_v14, 0.7853982 }
 0x125   : > { %v777_v7 = vsel %vm766_vm5, nan, %v776_v41  ;;  %v529_v10 = vshll.u32 %v528_v5, 30  ;;  %v799_v42 = vadd.s32 1, %v8312_v3  ;;  %v451_v0 = vsel %vm9864_vm11, 0, %v449_v62 }
 0x126   : > { %v781_v12 = vadd.f32 %v777_v7, %v9560_v1  ;;  %v445_v8 = vmul.f32 %v444_v58, %v442_v55  ;;  %v552_v18 = vsub.s32 4, %v528_v5  ;;  %vm9879_vm13 = vcmp.le.f32.partialorder %v466_v63, 0.7853982 }
 0x127   : > { %v9870_v13 = vsub.s32 %v526_v46, %v529_v10  ;;  %vm800_vm12 = vcmp.gt.s32.totalorder %v799_v42, 0  ;;  %vm468_vm14 = vcmp.lt.s32.totalorder %v9649_v59, 0  ;;  %v797_v25 = vor.u32 8388608, %v796_v6 }
 0x128   : > { %v9875_v21 = vpack.i.bf16 %v781_v12, %v780_v51  ;;  %v8397_v23 = vpack.c.bf16 %v781_v12, %v780_v51  ;;  %v446_v1 = vxor.u32 2147483648, %v445_v8  ;;  %v801_v56 = vsel %vm800_vm12, %v799_v42, 0 }
 0x129   : > { %v532_v2 = vsub.s32 0, %v9870_v13  ;;  %v455_v26 = vadd.s32 3, %v451_v0  ;;  %v803_v34 = vand.u32 31, %v801_v56  ;;  %v896_v63 = vand.u32 2139095040, %v9873_v19 }
 0x12a   : > { %8733 = vrot.lane.b32.xlu1 %v9875_v21, %s9118_s11  ;;  %8419 = vst [vmem:[#allocation2 + $0x8] sm:$0xff] %v8397_v23   ;;  %v447_v40 = vsel %vm364_vm10, %v446_v1, %v445_v8  ;;  %v522_v38 = vadd.s32 %v9808_v29, %v9825_v20  ;;  %v553_v30 = vsel %vm468_vm14, %v552_v18, %v528_v5  ;;  %v893_v16 = vand.u32 2147483647, %v9873_v19 }
 0x12b   : > { %v450_v36 = vsel %vm9864_vm11, %v9565_v4, %v447_v40  ;;  %v8301_v28 = vmin.u32 %v532_v2, %v9870_v13  ;;  %v804_v43 = vsub.s32 32, %v803_v34  ;;  %v806_v15 = vshll.u32 %v9111_v31, %v803_v34 }
 0x12c   : > { %v809_v17 = vshll.u32 %v9112_v33, %v803_v34  ;;  %8779 = vcosq.f32 %v450_v36  ;;  %v802_v46 = vshrl.u32 %v801_v56, 5  ;;  %v9901_v48 = vshll.u32 %v797_v25, 8 }
 0x12d   : > { %v534_v45 = vclz %v8301_v28  ;;  %v555_v4 = vsel %vm9879_vm13, 0, %v553_v30  ;;  %v807_v29 = vshrl.u32 %v9112_v33, %v804_v43  ;;  %v810_v20 = vshrl.u32 %v9113_v35, %v804_v43 }
 0x12e   : > { %v897_v49 = vshrl.u32 %v896_v63, 23  ;;  %v812_v52 = vshll.u32 %v9113_v35, %v803_v34  ;;  %v813_v22 = vshrl.u32 %v9114_v37, %v804_v43  ;;  %v815_v44 = vshll.u32 %v9114_v37, %v803_v34 }
 0x12f   : > { %v8302_v50 = vadd.s32 4294967294, %v534_v45  ;;  %v808_v53 = vor.u32 %v807_v29, %v806_v15  ;;  %v811_v54 = vor.u32 %v810_v20, %v809_v17  ;;  %v816_v57 = vshrl.u32 %v9115_v39, %v804_v43 }
 0x130   : > { %v818_v61 = vshll.u32 %v9115_v39, %v803_v34  ;;  %8781 = vsinq.f32 %v450_v36  ;;  %v819_v9 = vshrl.u32 %v9116_v47, %v804_v43  ;;  %vm821_vm0 = vcmp.lt.s32.totalorder %v802_v46, 1 }
 0x131   : > { %vm8303_vm15 = vcmp.lt.s32.totalorder %v8302_v50, 0  ;;  %v814_v60 = vor.u32 %v813_v22, %v812_v52  ;;  %v817_v62 = vor.u32 %v816_v57, %v815_v44  ;;  %vm823_vm1 = vcmp.lt.s32.totalorder %v802_v46, 3 }
 0x132   : > { %v537_v58 = vsel %vm8303_vm15, 0, %v8302_v50  ;;  %v820_v51 = vor.u32 %v819_v9, %v818_v61  ;;  %v805_v55 = vshrl.u32 %v9111_v31, %v804_v43  ;;  %vm822_vm2 = vcmp.lt.s32.totalorder %v802_v46, 2 }
 0x133   : > { %v538_v5 = vsub.s32 32, %v537_v58  ;;  %v539_v3 = vshll.u32 %v9870_v13, %v537_v58  ;;  %v542_v41 = vsub.s32 4294967266, %v537_v58  ;;  %vm824_vm3 = vcmp.lt.s32.totalorder %v802_v46, 4 }
 0x134   : > { %v829_v6 = vsel %vm821_vm0, %v808_v53, %v811_v54  ;;  %v826_v42 = vsel %vm824_vm3, %v814_v60, 2102212464  ;;  %v830_v12 = vsel %vm824_vm3, %v817_v62, 920167782  ;;  %v833_v8 = vsel %vm821_vm0, %v811_v54, %v814_v60 }
 0x135   : > { %v540_v7 = vshrl.u32 %v522_v38, %v538_v5  ;;  %v543_v10 = vadd.s32 127, %v542_v41  ;;  %v831_v24 = vsel %vm823_vm1, %v814_v60, %v830_v12  ;;  %v834_v0 = vsel %vm824_vm3, %v820_v51, 1326507024 }
 0x136   : > { %v8316_v18 = vadd.s32 4294967169, %v897_v49  ;;  %v9918_v23 = vpop.eup %8779  ;;  %v9920_v13 = vand.u32 3, %v455_v26  ;;  %v9924_v25 = vand.u32 8388607, %v893_v16  ;;  %v825_v56 = vsel %vm821_vm0, %v805_v55, %v808_v53 }
 0x137   : > { %v541_v1 = vor.u32 %v540_v7, %v539_v3  ;;  %v544_v2 = vshll.u32 %v543_v10, 23  ;;  %v827_v40 = vsel %vm823_vm1, %v811_v54, %v826_v42  ;;  %v832_v34 = vsel %vm822_vm2, %v829_v6, %v831_v24 }
 0x138   : > { %v835_v63 = vsel %vm823_vm1, %v817_v62, %v834_v0  ;;  %v559_v28 = vadd.s32 3, %v555_v4  ;;  %v462_v30 = vxor.u32 2147483648, %v9918_v23  ;;  %v903_v17 = vadd.s32 1, %v8316_v18 }
 0x139   : > { %v545_v36 = vor.u32 4788187, %v544_v2  ;;  %v548_v38 = vcvt.s32.f32 %v541_v1  ;;  %v836_v26 = vsel %vm822_vm2, %v833_v8, %v835_v63  ;;  %v828_v20 = vsel %vm822_vm2, %v825_v56, %v827_v40 }
 0x13a   : > { %v9933_v43 = vmul.u32.u64.low %v9901_v48, %v836_v26  ;;  %v9934_v15 = vmul.u32.u64.high %v9901_v48, %v836_v26, %v9933_v43  ;;  %v8782_v45 = vpop.eup %8781  ;;  %v9938_v49 = vmul.u32.u64.low %v9901_v48, %v832_v34  ;;  %v9939_v50 = vmul.u32.u64.high %v9901_v48, %v832_v34, %v9938_v49 }
 0x13b   : > { %v546_v29 = vand.u32 2147483647, %v545_v36  ;;  %vm458_vm4 = vcmp.eq.s32.totalorder %v9920_v13, 0  ;;  %vm461_vm5 = vcmp.eq.s32.totalorder %v9920_v13, 2  ;;  %vm904_vm6 = vcmp.gt.s32.totalorder %v903_v17, 0 }
 0x13c   : > { %v9944_v52 = vand.u32 3, %v559_v28  ;;  %v901_v22 = vor.u32 8388608, %v9924_v25  ;;  %v905_v44 = vsel %vm904_vm6, %v903_v17, 0  ;;  %v459_v53 = vxor.u32 2147483648, %v8782_v45 }
 0x13d   : > { %v549_v4 = vmul.f32 %v548_v38, %v546_v29  ;;  %v844_v46 = vmul.u32 %v9901_v48, %v828_v20  ;;  %vm846_vm7 = vc.u32 %v9934_v15, %v9938_v49  ;;  %v907_v54 = vand.u32 31, %v905_v44  ;;  %v8819_v29 = vld [vmem:[%s9531_s8] sm:$0xff]  ;;  %s15371_s8 = smov 32  }
 0x13e   : > { %v463_v57 = vsel %vm461_vm5, %v462_v30, %v8782_v45  ;;  %v847_v9 = vadd.s32 1, %v9939_v50  ;;  %v906_v58 = vshrl.u32 %v905_v44, 5  ;;  %vm457_vm8 = vcmp.lt.s32.totalorder %v9920_v13, 2 }
 0x13f   : > { %v550_v61 = vxor.u32 2147483648, %v549_v4  ;;  %v908_v60 = vsub.s32 32, %v907_v54  ;;  %v910_v62 = vshll.u32 %v9111_v31, %v907_v54  ;;  %v913_v5 = vshll.u32 %v9112_v33, %v907_v54 }
 0x140   : > { %v916_v3 = vshll.u32 %v9113_v35, %v907_v54  ;;  %v848_v41 = vsel %vm846_vm7, %v847_v9, %v9939_v50  ;;  %v919_v51 = vshll.u32 %v9114_v37, %v907_v54  ;;  %v922_v55 = vshll.u32 %v9115_v39, %v907_v54 }
 0x141   : > { %v551_v48 = vsel %vm468_vm14, %v550_v61, %v549_v4  ;;  %v849_v7 = vadd.s32 %v848_v41, %v844_v46  ;;  %v909_v10 = vshrl.u32 %v9111_v31, %v908_v60  ;;  %v911_v42 = vshrl.u32 %v9112_v33, %v908_v60  ;;  %v9982_v4 = vld [vmem:[%s9546_s13 + $0x10] sm:$0xff] }
 0x142   : > { %v554_v6 = vsel %vm9879_vm13, %v9649_v59, %v551_v48  ;;  %v914_v12 = vshrl.u32 %v9113_v35, %v908_v60  ;;  %v917_v24 = vshrl.u32 %v9114_v37, %v908_v60  ;;  %v920_v8 = vshrl.u32 %v9115_v39, %v908_v60 }
 0x143   : > { %8783 = vcosq.f32 %v554_v6  ;;  %v850_v0 = vadd.s32 536870912, %v849_v7  ;;  %v912_v18 = vor.u32 %v911_v42, %v910_v62  ;;  %v923_v1 = vshrl.u32 %v9116_v47, %v908_v60 }
 0x144   : > { %8785 = vsinq.f32 %v554_v6  ;;  %v915_v2 = vor.u32 %v914_v12, %v913_v5  ;;  %v918_v14 = vor.u32 %v917_v24, %v916_v3  ;;  %v921_v25 = vor.u32 %v920_v8, %v919_v51 }
 0x145   : > { %vm925_vm9 = vcmp.lt.s32.totalorder %v906_v58, 1  ;;  %v460_v56 = vsel %vm458_vm4, %v9918_v23, %v459_v53  ;;  %v9972_v40 = vshrl.u32 %v850_v0, 30  ;;  %v924_v34 = vor.u32 %v923_v1, %v922_v55 }
 0x146   : > { %vm927_vm10 = vcmp.lt.s32.totalorder %v906_v58, 3  ;;  %vm926_vm11 = vcmp.lt.s32.totalorder %v906_v58, 2  ;;  %vm928_vm12 = vcmp.lt.s32.totalorder %v906_v58, 4  ;;  %v933_v63 = vsel %vm925_vm9, %v912_v18, %v915_v2 }
 0x147   : > { %v941_v36 = vshll.u32 %v901_v22, 8  ;;  %v852_v38 = vshll.u32 %v9972_v40, 30  ;;  %v929_v28 = vsel %vm925_vm9, %v909_v10, %v912_v18  ;;  %v930_v26 = vsel %vm928_vm12, %v918_v14, 2102212464 }
 0x148   : > { %v934_v30 = vsel %vm928_vm12, %v921_v25, 920167782  ;;  %v931_v43 = vsel %vm927_vm10, %v915_v2, %v930_v26  ;;  %v937_v23 = vsel %vm925_vm9, %v915_v2, %v918_v14  ;;  %v938_v45 = vsel %vm928_vm12, %v924_v34, 1326507024 }
 0x149   : > { %v935_v17 = vsel %vm927_vm10, %v918_v14, %v934_v30  ;;  %vm454_vm13 = vweird.f32 %v8819_v29  ;;  %v9978_v20 = vsub.s32 %v849_v7, %v852_v38  ;;  %v464_v22 = vsel %vm457_vm8, %v460_v56, %v463_v57 }
 0x14a   : > { %v936_v50 = vsel %vm926_vm11, %v933_v63, %v935_v17  ;;  %v939_v44 = vsel %vm927_vm10, %v921_v25, %v938_v45  ;;  %vm561_vm14 = vcmp.lt.s32.totalorder %v9944_v52, 2  ;;  %v932_v61 = vsel %vm926_vm11, %v929_v28, %v931_v43 }
 0x14b   : > { %v9987_v53 = vmul.u32.u64.low %v941_v36, %v936_v50  ;;  %v9988_v46 = vmul.u32.u64.high %v941_v36, %v936_v50, %v9987_v53  ;;  %v855_v54 = vsub.s32 0, %v9978_v20  ;;  %v940_v9 = vsel %vm926_vm11, %v937_v23, %v939_v44 }
 0x14c   : > { %vm565_vm15 = vcmp.eq.s32.totalorder %v9944_v52, 2  ;;  %v9996_v62 = vmul.u32.u64.low %v941_v36, %v940_v9  ;;  %v9997_v13 = vmul.u32.u64.high %v941_v36, %v940_v9, %v9996_v62  ;;  %v1000_v57 = vand.u32 2139095040, %v9982_v4  ;;  %v10043_v9 = vld [vmem:[%s9546_s13 + $0x18] sm:$0xff]  ;;  %s15341_s13 = smov 64  }
 0x14d   : > { %v8784_v60 = vpop.eup %8783  ;;  %v465_v3 = vsel %vm454_vm13, nan, %v464_v22  ;;  %vm562_vm0 = vcmp.eq.s32.totalorder %v9944_v52, 0  ;;  %v8313_v41 = vmin.u32 %v855_v54, %v9978_v20  ;;  %v948_v55 = vmul.u32 %v941_v36, %v932_v61 }
 0x14e   : > { %v8786_v5 = vpop.eup %8785  ;;  %v566_v48 = vxor.u32 2147483648, %v8784_v60  ;;  %v951_v58 = vadd.s32 1, %v9988_v46  ;;  %v1001_v6 = vshrl.u32 %v1000_v57, 23  ;;  %vm558_vm1 = vweird.f32 %v9649_v59 }
 0x14f   : > { %v563_v51 = vxor.u32 2147483648, %v8786_v5  ;;  %v857_v10 = vclz %v8313_v41  ;;  %v997_v42 = vand.u32 2147483647, %v9982_v4  ;;  %v778_v24 = vadd.f32 %v8819_v29, %v465_v3 }
 0x150   : > { %v567_v7 = vsel %vm565_vm15, %v566_v48, %v8786_v5  ;;  %v875_v8 = vsub.s32 4, %v9972_v40  ;;  %vm950_vm2 = vc.u32 %v9997_v13, %v9987_v53  ;;  %v8320_v2 = vadd.s32 4294967169, %v1001_v6 }
 0x151   : > { %v564_v12 = vsel %vm562_vm0, %v8784_v60, %v563_v51  ;;  %v8314_v18 = vadd.s32 4294967294, %v857_v10  ;;  %v952_v1 = vsel %vm950_vm2, %v951_v58, %v9988_v46  ;;  %vm791_vm3 = vcmp.lt.s32.totalorder %v9838_v27, 0 }
 0x152   : > { %v568_v0 = vsel %vm561_vm14, %v564_v12, %v567_v7  ;;  %v845_v25 = vadd.s32 %v9938_v49, %v9934_v15  ;;  %v953_v56 = vadd.s32 %v952_v1, %v948_v55  ;;  %v1004_v63 = vand.u32 8388607, %v997_v42 }
 0x153   : > { %v569_v14 = vsel %vm558_vm1, nan, %v568_v0  ;;  %vm8315_vm4 = vcmp.lt.s32.totalorder %v8314_v18, 0  ;;  %v1007_v36 = vadd.s32 1, %v8320_v2  ;;  %vm10020_vm5 = vcmp.le.f32.partialorder %v789_v32, 0.7853982 }
 0x154   : > { %v779_v34 = vadd.f32 %v569_v14, %v9649_v59  ;;  %v860_v38 = vsel %vm8315_vm4, 0, %v8314_v18  ;;  %v876_v28 = vsel %vm791_vm3, %v875_v8, %v9972_v40  ;;  %v954_v15 = vadd.s32 536870912, %v953_v56 }
 0x155   : > { %v861_v26 = vsub.s32 32, %v860_v38  ;;  %v862_v30 = vshll.u32 %v9978_v20, %v860_v38  ;;  %v865_v43 = vsub.s32 4294967266, %v860_v38  ;;  %vm1008_vm6 = vcmp.gt.s32.totalorder %v1007_v36, 0 }
 0x156   : > { %v10027_v49 = vpack.i.bf16 %v779_v34, %v778_v24  ;;  %v8392_v59 = vpack.c.bf16 %v779_v34, %v778_v24  ;;  %v10030_v17 = vshrl.u32 %v954_v15, 30  ;;  %v878_v40 = vsel %vm10020_vm5, 0, %v876_v28 }
 0x157   : > { %v863_v32 = vshrl.u32 %v845_v25, %v861_v26  ;;  %v1005_v23 = vor.u32 8388608, %v1004_v63  ;;  %v1009_v45 = vsel %vm1008_vm6, %v1007_v36, 0  ;;  %v866_v29 = vadd.s32 127, %v865_v43 }
 0x158   : > { %8718 = vrot.lane.b32.xlu0 %v10027_v49, %s9119_s5  ;;  %8393 = vst [vmem:[#allocation2] sm:$0xff] %v8392_v59   ;;  %v956_v50 = vshll.u32 %v10030_v17, 30  ;;  %v1011_v20 = vand.u32 31, %v1009_v45  ;;  %v10036_v46 = vadd.s32 3, %v878_v40  ;;  %v949_v54 = vadd.s32 %v9987_v53, %v9997_v13 }
 0x159   : > { %v864_v22 = vor.u32 %v863_v32, %v862_v30  ;;  %v867_v44 = vshll.u32 %v866_v29, 23  ;;  %v10046_v60 = vshrl.u32 %v1009_v45, 5  ;;  %v10049_v5 = vshll.u32 %v1005_v23, 8 }
 0x15a   : > { %v10040_v61 = vsub.s32 %v953_v56, %v956_v50  ;;  %v1012_v62 = vsub.s32 32, %v1011_v20  ;;  %v1014_v57 = vshll.u32 %v9111_v31, %v1011_v20  ;;  %v1017_v51 = vshll.u32 %v9112_v33, %v1011_v20 }
 0x15b   : > { %v868_v3 = vor.u32 4788187, %v867_v44  ;;  %v871_v48 = vcvt.s32.f32 %v864_v22  ;;  %v1020_v55 = vshll.u32 %v9113_v35, %v1011_v20  ;;  %vm895_vm7 = vcmp.lt.s32.totalorder %v9873_v19, 0 }
 0x15c   : > { %8723 = vrot.lane.b32.xlu0 %v9875_v21, %s9119_s5  ;;  %v959_v41 = vsub.s32 0, %v10040_v61  ;;  %v1015_v53 = vshrl.u32 %v9112_v33, %v1012_v62  ;;  %v1018_v13 = vshrl.u32 %v9113_v35, %v1012_v62  ;;  %v1104_v21 = vand.u32 2139095040, %v10043_v9  ;;  %s15264_s5 = smov 72  }
 0x15d   : > { %v869_v58 = vand.u32 2147483647, %v868_v3  ;;  %v1013_v7 = vshrl.u32 %v9111_v31, %v1012_v62  ;;  %v1021_v10 = vshrl.u32 %v9114_v37, %v1012_v62  ;;  %v1023_v8 = vshll.u32 %v9114_v37, %v1011_v20 }
 0x15e   : > { %v8317_v6 = vmin.u32 %v959_v41, %v10040_v61  ;;  %v1016_v12 = vor.u32 %v1015_v53, %v1014_v57  ;;  %v1019_v24 = vor.u32 %v1018_v13, %v1017_v51  ;;  %v1024_v0 = vshrl.u32 %v9115_v39, %v1012_v62 }
 0x15f   : > { %v872_v18 = vmul.f32 %v871_v48, %v869_v58  ;;  %v979_v2 = vsub.s32 4, %v10030_v17  ;;  %vm1029_vm8 = vcmp.lt.s32.totalorder %v10046_v60, 1  ;;  %v1022_v14 = vor.u32 %v1021_v10, %v1020_v55 }
 0x160   : > { %v961_v1 = vclz %v8317_v6  ;;  %v1025_v25 = vor.u32 %v1024_v0, %v1023_v8  ;;  %v1026_v56 = vshll.u32 %v9115_v39, %v1011_v20  ;;  %v1105_v34 = vshrl.u32 %v1104_v21, 23  ;;  %8728 = vrot.lane.b32.xlu0 %v10027_v49, %s9118_s11  ;;  %s15346_s11 = smov 68  }
 0x161   : > { %v873_v63 = vxor.u32 2147483648, %v872_v18  ;;  %vm10068_vm9 = vcmp.le.f32.partialorder %v893_v16, 0.7853982  ;;  %v1027_v28 = vshrl.u32 %v9116_v47, %v1012_v62  ;;  %vm1030_vm10 = vcmp.lt.s32.totalorder %v10046_v60, 2 }
 0x162   : > { %v8318_v38 = vadd.s32 4294967294, %v961_v1  ;;  %vm1031_vm11 = vcmp.lt.s32.totalorder %v10046_v60, 3  ;;  %vm1032_vm12 = vcmp.lt.s32.totalorder %v10046_v60, 4  ;;  %v1033_v15 = vsel %vm1029_vm8, %v1013_v7, %v1016_v12 }
 0x163   : > { %v1037_v59 = vsel %vm1029_vm8, %v1016_v12, %v1019_v24  ;;  %v874_v16 = vsel %vm791_vm3, %v873_v63, %v872_v18  ;;  %v1028_v26 = vor.u32 %v1027_v28, %v1026_v56  ;;  %v1034_v30 = vsel %vm1032_vm12, %v1022_v14, 2102212464 }
 0x164   : > { %vm8319_vm13 = vcmp.lt.s32.totalorder %v8318_v38, 0  ;;  %v877_v43 = vsel %vm10020_vm5, %v9838_v27, %v874_v16  ;;  %v1035_v40 = vsel %vm1031_vm11, %v1019_v24, %v1034_v30  ;;  %v1038_v23 = vsel %vm1032_vm12, %v1025_v25, 920167782 }
 0x165   : > { %v964_v32 = vsel %vm8319_vm13, 0, %v8318_v38  ;;  %8787 = vcosq.f32 %v877_v43  ;;  %v980_v22 = vsel %vm895_vm7, %v979_v2, %v10030_v17  ;;  %v1039_v52 = vsel %vm1031_vm11, %v1022_v14, %v1038_v23 }
 0x166   : > { %v965_v45 = vsub.s32 32, %v964_v32  ;;  %v966_v29 = vshll.u32 %v10040_v61, %v964_v32  ;;  %v969_v50 = vsub.s32 4294967266, %v964_v32  ;;  %8789 = vsinq.f32 %v877_v43 }
 0x167   : > { %v1041_v20 = vsel %vm1029_vm8, %v1019_v24, %v1022_v14  ;;  %v1040_v57 = vsel %vm1030_vm10, %v1037_v59, %v1039_v52  ;;  %v1042_v61 = vsel %vm1032_vm12, %v1028_v26, 1326507024  ;;  %v1036_v3 = vsel %vm1030_vm10, %v1033_v15, %v1035_v40 }
 0x168   : > { %v967_v44 = vshrl.u32 %v949_v54, %v965_v45  ;;  %v970_v62 = vadd.s32 127, %v969_v50  ;;  %v1043_v17 = vsel %vm1031_vm11, %v1025_v25, %v1042_v61  ;;  %v8324_v13 = vadd.s32 4294967169, %v1105_v34  ;;  %v10146_v45 = vld [vmem:[%s9539_s9] sm:$0xff] }
 0x169   : > { %v10109_v48 = vmul.u32.u64.low %v10049_v5, %v1040_v57  ;;  %v10110_v41 = vmul.u32.u64.high %v10049_v5, %v1040_v57, %v10109_v48  ;;  %v1044_v53 = vsel %vm1030_vm10, %v1041_v20, %v1043_v17  ;;  %v982_v55 = vsel %vm10068_vm9, 0, %v980_v22 }
 0x16a   : > { %v968_v51 = vor.u32 %v967_v44, %v966_v29  ;;  %v971_v54 = vshll.u32 %v970_v62, 23  ;;  %v10118_v21 = vmul.u32.u64.low %v10049_v5, %v1044_v53  ;;  %v10119_v58 = vmul.u32.u64.high %v10049_v5, %v1044_v53, %v10118_v21 }
 0x16b   : > { %v1111_v10 = vadd.s32 1, %v8324_v13  ;;  %v883_v12 = vand.u32 3, %v10036_v46  ;;  %v1052_v60 = vmul.u32 %v10049_v5, %v1036_v3  ;;  %v1055_v24 = vadd.s32 1, %v10110_v41 }
 0x16c   : > { %v972_v6 = vor.u32 4788187, %v971_v54  ;;  %v975_v7 = vcvt.s32.f32 %v968_v51  ;;  %v9120_v0 = vmov 127   ;;  %v986_v18 = vadd.s32 3, %v982_v55 }
 0x16d   : > { %vm1112_vm14 = vcmp.gt.s32.totalorder %v1111_v10, 0  ;;  %8748 = vset.pattern.permute.xlu0 %v9120_v0  ;;  %vm1054_vm15 = vc.u32 %v10119_v58, %v10109_v48  ;;  %v1101_v1 = vand.u32 2147483647, %v10043_v9  ;;  %v1210_v5 = vstv %s10123_s6  ;;  %s15204_s6 = smov 76  }
 0x16e   : > { %v973_v8 = vand.u32 2147483647, %v972_v6  ;;  %v1113_v2 = vsel %vm1112_vm14, %v1111_v10, 0  ;;  %v1056_v25 = vsel %vm1054_vm15, %v1055_v24, %v10110_v41  ;;  %vm881_vm0 = vweird.f32 %v9838_v27 }
 0x16f   : > { %v8788_v46 = vpop.eup %8787  ;;  %v1115_v56 = vand.u32 31, %v1113_v2  ;;  %vm885_vm1 = vcmp.eq.s32.totalorder %v883_v12, 0  ;;  %vm888_vm2 = vcmp.eq.s32.totalorder %v883_v12, 2  ;;  %v1057_v63 = vadd.s32 %v1056_v25, %v1052_v60 }
 0x170   : > { %v976_v14 = vmul.f32 %v975_v7, %v973_v8  ;;  %v8790_v34 = vpop.eup %8789  ;;  %v889_v49 = vxor.u32 2147483648, %v8788_v46  ;;  %vm884_vm3 = vcmp.lt.s32.totalorder %v883_v12, 2  ;;  %v10137_v59 = vand.u32 3, %v986_v18 }
 0x171   : > { %v886_v38 = vxor.u32 2147483648, %v8790_v34  ;;  %v1116_v15 = vsub.s32 32, %v1115_v56  ;;  %v1058_v16 = vadd.s32 536870912, %v1057_v63  ;;  %v1108_v26 = vand.u32 8388607, %v1101_v1 }
 0x172   : > { %v977_v28 = vxor.u32 2147483648, %v976_v14  ;;  %v1118_v30 = vshll.u32 %v9111_v31, %v1115_v56  ;;  %v890_v32 = vsel %vm888_vm2, %v889_v49, %v8790_v34  ;;  %v1121_v23 = vshll.u32 %v9112_v33, %v1115_v56 }
 0x173   : > { %v887_v43 = vsel %vm885_vm1, %v8788_v46, %v886_v38  ;;  %v10151_v50 = vshrl.u32 %v1058_v16, 30  ;;  %v1119_v22 = vshrl.u32 %v9112_v33, %v1116_v15  ;;  %v1122_v52 = vshrl.u32 %v9113_v35, %v1116_v15 }
 0x174   : > { %v978_v40 = vsel %vm895_vm7, %v977_v28, %v976_v14  ;;  %v1114_v20 = vshrl.u32 %v1113_v2, 5  ;;  %v1124_v44 = vshll.u32 %v9113_v35, %v1115_v56  ;;  %v1125_v62 = vshrl.u32 %v9114_v37, %v1116_v15 }
 0x175   : > { %v981_v29 = vsel %vm10068_vm9, %v9873_v19, %v978_v40  ;;  %v1060_v57 = vshll.u32 %v10151_v50, 30  ;;  %v1109_v61 = vor.u32 8388608, %v1108_v26  ;;  %v1257_v3 = vand.u32 2139095040, %v10146_v45 }
 0x176   : > { %8791 = vcosq.f32 %v981_v29  ;;  %v891_v36 = vsel %vm884_vm3, %v887_v43, %v890_v32  ;;  %vm992_vm4 = vcmp.eq.s32.totalorder %v10137_v59, 2  ;;  %v1127_v17 = vshll.u32 %v9114_v37, %v1115_v56 }
 0x177   : > { %8793 = vsinq.f32 %v981_v29  ;;  %v1128_v41 = vshrl.u32 %v9115_v39, %v1116_v15  ;;  %v1254_v51 = vand.u32 2147483647, %v10146_v45  ;;  %vm989_vm5 = vcmp.eq.s32.totalorder %v10137_v59, 0 }
 0x178   : > { %vm10165_vm6 = vcmp.eq.s32.totalorder %v1210_v5, 1  ;;  %v10169_v53 = vsub.s32 %v1057_v63, %v1060_v57  ;;  %v1120_v13 = vor.u32 %v1119_v22, %v1118_v30  ;;  %v1123_v55 = vor.u32 %v1122_v52, %v1121_v23 }
 0x179   : > { %v1130_v21 = vshll.u32 %v9115_v39, %v1115_v56  ;;  %vm988_vm7 = vcmp.lt.s32.totalorder %v10137_v59, 2  ;;  %v1126_v6 = vor.u32 %v1125_v62, %v1124_v44  ;;  %v1129_v7 = vor.u32 %v1128_v41, %v1127_v17 }
 0x17a   : > { %v1131_v10 = vshrl.u32 %v9116_v47, %v1116_v15  ;;  %vm1133_vm8 = vcmp.lt.s32.totalorder %v1114_v20, 1  ;;  %vm985_vm9 = vweird.f32 %v9873_v19  ;;  %v1063_v12 = vsub.s32 0, %v10169_v53 }
 0x17b   : > { %v1117_v60 = vshrl.u32 %v9111_v31, %v1116_v15  ;;  %vm1135_vm10 = vcmp.lt.s32.totalorder %v1114_v20, 3  ;;  %v1258_v24 = vshrl.u32 %v1257_v3, 23  ;;  %v892_v8 = vsel %vm881_vm0, nan, %v891_v36 }
 0x17c   : > { %v1132_v18 = vor.u32 %v1131_v10, %v1130_v21  ;;  %vm1134_vm11 = vcmp.lt.s32.totalorder %v1114_v20, 2  ;;  %vm1136_vm12 = vcmp.lt.s32.totalorder %v1114_v20, 4  ;;  %v8321_v2 = vmin.u32 %v1063_v12, %v10169_v53 }
 0x17d   : > { %v1138_v46 = vsel %vm1136_vm12, %v1126_v6, 2102212464  ;;  %v1141_v14 = vsel %vm1133_vm8, %v1120_v13, %v1123_v55  ;;  %v1142_v5 = vsel %vm1136_vm12, %v1129_v7, 920167782  ;;  %v1145_v56 = vsel %vm1133_vm8, %v1123_v55, %v1126_v6 }
 0x17e   : > { %v1143_v25 = vsel %vm1135_vm10, %v1126_v6, %v1142_v5  ;;  %v1146_v34 = vsel %vm1136_vm12, %v1132_v18, 1326507024  ;;  %v1149_v49 = vshll.u32 %v1109_v61, 8  ;;  %v1053_v63 = vadd.s32 %v10109_v48, %v10119_v58 }
 0x17f   : > { %v1065_v38 = vclz %v8321_v2  ;;  %v1137_v28 = vsel %vm1133_vm8, %v1117_v60, %v1120_v13  ;;  %v1139_v15 = vsel %vm1135_vm10, %v1123_v55, %v1138_v46  ;;  %v1205_v26 = vadd.f32 %v892_v8, %v9838_v27 }
 0x180   : > { %v8792_v16 = vpop.eup %8791  ;;  %v1144_v30 = vsel %vm1134_vm11, %v1141_v14, %v1143_v25  ;;  %v1147_v43 = vsel %vm1135_vm10, %v1129_v7, %v1146_v34  ;;  %v8328_v32 = vadd.s32 4294967169, %v1258_v24  ;;  %v1261_v48 = vand.u32 8388607, %v1254_v51 }
 0x181   : > { %v8794_v40 = vpop.eup %8793  ;;  %v993_v23 = vxor.u32 2147483648, %v8792_v16  ;;  %v8322_v29 = vadd.s32 4294967294, %v1065_v38  ;;  %v1148_v22 = vsel %vm1134_vm11, %v1145_v56, %v1147_v43  ;;  %v1140_v52 = vsel %vm1134_vm11, %v1137_v28, %v1139_v15 }
 0x182   : > { %v990_v58 = vxor.u32 2147483648, %v8794_v40  ;;  %v10194_v44 = vmul.u32.u64.low %v1149_v49, %v1148_v22  ;;  %v10195_v62 = vmul.u32.u64.high %v1149_v49, %v1148_v22, %v10194_v44  ;;  %v1212_v36 = vsel %vm10165_vm6, 0.0, %v1205_v26 }
 0x183   : > { %v994_v27 = vsel %vm992_vm4, %v993_v23, %v8794_v40  ;;  %vm8323_vm13 = vcmp.lt.s32.totalorder %v8322_v29, 0  ;;  %v10199_v57 = vmul.u32.u64.low %v1149_v49, %v1144_v30  ;;  %v10200_v61 = vmul.u32.u64.high %v1149_v49, %v1144_v30, %v10199_v57 }
 0x184   : > { %v991_v3 = vsel %vm989_vm5, %v8792_v16, %v990_v58  ;;  %v1068_v17 = vsel %vm8323_vm13, 0, %v8322_v29  ;;  %v1264_v20 = vadd.s32 1, %v8328_v32  ;;  %v1156_v7 = vmul.u32 %v1149_v49, %v1140_v52  ;;  %v10232_v32 = vld [vmem:[%s9539_s9 + $0x8] sm:$0xff] }
 0x185   : > { %v995_v41 = vsel %vm988_vm7, %v991_v3, %v994_v27  ;;  %v1069_v13 = vsub.s32 32, %v1068_v17  ;;  %v1070_v55 = vshll.u32 %v10169_v53, %v1068_v17  ;;  %v1073_v21 = vsub.s32 4294967266, %v1068_v17 }
 0x186   : > { %v996_v6 = vsel %vm985_vm9, nan, %v995_v41  ;;  %vm1158_vm14 = vc.u32 %v10195_v62, %v10199_v57  ;;  %vm1265_vm15 = vcmp.gt.s32.totalorder %v1264_v20, 0  ;;  %v1159_v24 = vadd.s32 1, %v10200_v61 }
 0x187   : > { %v1206_v10 = vadd.f32 %v996_v6, %v9873_v19  ;;  %v1071_v12 = vshrl.u32 %v1053_v63, %v1069_v13  ;;  %v1074_v60 = vadd.s32 127, %v1073_v21  ;;  %v1266_v59 = vsel %vm1265_vm15, %v1264_v20, 0 }
 0x188   : > { %vm10220_vm0 = vcmp.le.f32.partialorder %v997_v42, 0.7853982  ;;  %v1160_v46 = vsel %vm1158_vm14, %v1159_v24, %v10200_v61  ;;  %vm999_vm1 = vcmp.lt.s32.totalorder %v9982_v4, 0  ;;  %v1268_v5 = vand.u32 31, %v1266_v59 }
 0x189   : > { %v1213_v8 = vsel %vm10165_vm6, 0.0, %v1206_v10  ;;  %v1072_v18 = vor.u32 %v1071_v12, %v1070_v55  ;;  %v1075_v2 = vshll.u32 %v1074_v60, 23  ;;  %v1161_v19 = vadd.s32 %v1160_v46, %v1156_v7 }
 0x18a   : > { %v8738_v14 = vpack.i.bf16 %v1213_v8, %v1212_v36  ;;  %v1083_v34 = vsub.s32 4, %v10151_v50  ;;  %v1262_v49 = vor.u32 8388608, %v1261_v48  ;;  %v1267_v63 = vshrl.u32 %v1266_v59, 5 }
 0x18b   : > { %v1076_v25 = vor.u32 4788187, %v1075_v2  ;;  %v1079_v56 = vcvt.s32.f32 %v1072_v18  ;;  %v1162_v42 = vadd.s32 536870912, %v1161_v19  ;;  %v1269_v38 = vsub.s32 32, %v1268_v5 }
 0x18c   : > { %8739 = vperm.xlu1 %8737, %v8738_v14   ;;  %v1271_v28 = vshll.u32 %v9111_v31, %v1268_v5  ;;  %v1274_v16 = vshll.u32 %v9112_v33, %v1268_v5  ;;  %v1277_v26 = vshll.u32 %v9113_v35, %v1268_v5  ;;  %v1280_v30 = vshll.u32 %v9114_v37, %v1268_v5 }
 0x18d   : > { %v1077_v15 = vand.u32 2147483647, %v1076_v25  ;;  %v1163_v43 = vshrl.u32 %v1162_v42, 30  ;;  %v1272_v40 = vshrl.u32 %v9112_v33, %v1269_v38  ;;  %v1275_v23 = vshrl.u32 %v9113_v35, %v1269_v38 }
 0x18e   : > { %v1283_v29 = vshll.u32 %v9115_v39, %v1268_v5  ;;  %v1278_v48 = vshrl.u32 %v9114_v37, %v1269_v38  ;;  %v1281_v58 = vshrl.u32 %v9115_v39, %v1269_v38  ;;  %v1284_v52 = vshrl.u32 %v9116_v47, %v1269_v38 }
 0x18f   : > { %v1080_v22 = vmul.f32 %v1079_v56, %v1077_v15  ;;  %v1084_v44 = vsel %vm999_vm1, %v1083_v34, %v10151_v50  ;;  %vm1103_vm2 = vcmp.lt.s32.totalorder %v10043_v9, 0  ;;  %v1164_v27 = vshll.u32 %v1163_v43, 30 }
 0x190   : > { %v10244_v61 = vshll.u32 %v1262_v49, 8  ;;  %v1270_v36 = vshrl.u32 %v9111_v31, %v1269_v38  ;;  %v1282_v17 = vor.u32 %v1281_v58, %v1280_v30  ;;  %v1361_v20 = vand.u32 2139095040, %v10232_v32 }
 0x191   : > { %v1081_v3 = vxor.u32 2147483648, %v1080_v22  ;;  %v10248_v41 = vsub.s32 %v1161_v19, %v1164_v27  ;;  %v1273_v13 = vor.u32 %v1272_v40, %v1271_v28  ;;  %v1276_v55 = vor.u32 %v1275_v23, %v1274_v16 }
 0x192   : > { %v1279_v21 = vor.u32 %v1278_v48, %v1277_v26  ;;  %v1285_v50 = vor.u32 %v1284_v52, %v1283_v29  ;;  %vm1286_vm3 = vcmp.lt.s32.totalorder %v1267_v63, 1  ;;  %vm1289_vm4 = vcmp.lt.s32.totalorder %v1267_v63, 4 }
 0x193   : > { %v1082_v6 = vsel %vm999_vm1, %v1081_v3, %v1080_v22  ;;  %v1167_v10 = vsub.s32 0, %v10248_v41  ;;  %v1187_v12 = vsub.s32 4, %v1163_v43  ;;  %vm1288_vm5 = vcmp.lt.s32.totalorder %v1267_v63, 3 }
 0x194   : > { %v1085_v7 = vsel %vm10220_vm0, %v9982_v4, %v1082_v6  ;;  %vm1287_vm7 = vcmp.lt.s32.totalorder %v1267_v63, 2  ;;  %v1291_v60 = vsel %vm1289_vm4, %v1279_v21, 2102212464  ;;  %v1295_v24 = vsel %vm1289_vm4, %v1282_v17, 920167782 }
 0x195   : > { %v1362_v59 = vshrl.u32 %v1361_v20, 23  ;;  %v8325_v8 = vmin.u32 %v1167_v10, %v10248_v41  ;;  %v1290_v18 = vsel %vm1286_vm3, %v1270_v36, %v1273_v13  ;;  %v1292_v2 = vsel %vm1288_vm5, %v1276_v55, %v1291_v60 }
 0x196   : > { %v1294_v46 = vsel %vm1286_vm3, %v1273_v13, %v1276_v55  ;;  %8795 = vcosq.f32 %v1085_v7  ;;  %v1296_v14 = vsel %vm1288_vm5, %v1279_v21, %v1295_v24  ;;  %v1298_v19 = vsel %vm1286_vm3, %v1276_v55, %v1279_v21 }
 0x197   : > { %v1299_v5 = vsel %vm1289_vm4, %v1285_v50, 1326507024  ;;  %v1086_v25 = vsel %vm10220_vm0, 0, %v1084_v44  ;;  %8797 = vsinq.f32 %v1085_v7  ;;  %v1169_v56 = vclz %v8325_v8 }
 0x198   : > { %v1188_v34 = vsel %vm1103_vm2, %v1187_v12, %v1163_v43  ;;  %v1293_v49 = vsel %vm1287_vm7, %v1290_v18, %v1292_v2  ;;  %v1297_v42 = vsel %vm1287_vm7, %v1294_v46, %v1296_v14  ;;  %v1300_v38 = vsel %vm1288_vm5, %v1282_v17, %v1299_v5 }
 0x199   : > { %v8332_v28 = vadd.s32 4294967169, %v1362_v59  ;;  %v8326_v15 = vadd.s32 4294967294, %v1169_v56  ;;  %v1301_v16 = vsel %vm1287_vm7, %v1298_v19, %v1300_v38  ;;  %vm10280_vm8 = vcmp.le.f32.partialorder %v1101_v1, 0.7853982 }
 0x19a   : > { %v10274_v26 = vmul.u32.u64.low %v10244_v61, %v1297_v42  ;;  %v10275_v30 = vmul.u32.u64.high %v10244_v61, %v1297_v42, %v10274_v26  ;;  %v10285_v43 = vmul.u32.u64.low %v10244_v61, %v1301_v16  ;;  %v10286_v40 = vmul.u32.u64.high %v10244_v61, %v1301_v16, %v10285_v43 }
 0x19b   : > { %v1368_v23 = vadd.s32 1, %v8332_v28  ;;  %v1090_v29 = vadd.s32 3, %v1086_v25  ;;  %v1157_v63 = vadd.s32 %v10199_v57, %v10195_v62  ;;  %vm8327_vm9 = vcmp.lt.s32.totalorder %v8326_v15, 0 }
 0x19c   : > { %v1358_v22 = vand.u32 2147483647, %v10232_v32  ;;  %v1172_v48 = vsel %vm8327_vm9, 0, %v8326_v15  ;;  %v1190_v58 = vsel %vm10280_vm8, 0, %v1188_v34  ;;  %v1309_v1 = vmul.u32 %v10244_v61, %v1293_v49 }
 0x19d   : > { %vm1369_vm10 = vcmp.gt.s32.totalorder %v1368_v23, 0  ;;  %v1173_v52 = vsub.s32 32, %v1172_v48  ;;  %v1174_v44 = vshll.u32 %v10248_v41, %v1172_v48  ;;  %v1177_v27 = vsub.s32 4294967266, %v1172_v48 }
 0x19e   : > { %v1312_v3 = vadd.s32 1, %v10275_v30  ;;  %vm1311_vm11 = vc.u32 %v10286_v40, %v10274_v26  ;;  %v1370_v62 = vsel %vm1369_vm10, %v1368_v23, 0  ;;  %v10298_v57 = vand.u32 3, %v1090_v29 }
 0x19f   : > { %v1175_v36 = vshrl.u32 %v1157_v63, %v1173_v52  ;;  %v1178_v17 = vadd.s32 127, %v1177_v27  ;;  %v1194_v55 = vadd.s32 3, %v1190_v58  ;;  %v1365_v21 = vand.u32 8388607, %v1358_v22 }
 0x1a0   : > { %v1313_v20 = vsel %vm1311_vm11, %v1312_v3, %v10275_v30  ;;  %v8796_v13 = vpop.eup %8795  ;;  %v1372_v41 = vand.u32 31, %v1370_v62  ;;  %vm1093_vm12 = vcmp.eq.s32.totalorder %v10298_v57, 0  ;;  %vm1096_vm13 = vcmp.eq.s32.totalorder %v10298_v57, 2 }
 0x1a1   : > { %v1314_v61 = vadd.s32 %v1313_v20, %v1309_v1  ;;  %v8798_v6 = vpop.eup %8797  ;;  %v1176_v50 = vor.u32 %v1175_v36, %v1174_v44  ;;  %v1179_v7 = vshll.u32 %v1178_v17, 23  ;;  %v1097_v59 = vxor.u32 2147483648, %v8796_v13 }
 0x1a2   : > { %v1373_v12 = vsub.s32 32, %v1372_v41  ;;  %v10305_v8 = vand.u32 3, %v1194_v55  ;;  %v1366_v2 = vor.u32 8388608, %v1365_v21  ;;  %vm1092_vm14 = vcmp.lt.s32.totalorder %v10298_v57, 2 }
 0x1a3   : > { %v1315_v10 = vadd.s32 536870912, %v1314_v61  ;;  %v1180_v60 = vor.u32 4788187, %v1179_v7  ;;  %v1183_v24 = vcvt.s32.f32 %v1176_v50  ;;  %v1094_v46 = vxor.u32 2147483648, %v8798_v6 }
 0x1a4   : > { %v1371_v19 = vshrl.u32 %v1370_v62, 5  ;;  %v1375_v5 = vshll.u32 %v9111_v31, %v1372_v41  ;;  %v1376_v56 = vshrl.u32 %v9112_v33, %v1373_v12  ;;  %v1378_v34 = vshll.u32 %v9112_v33, %v1372_v41 }
 0x1a5   : > { %v10307_v18 = vshrl.u32 %v1315_v10, 30  ;;  %v1181_v14 = vand.u32 2147483647, %v1180_v60  ;;  %v1379_v49 = vshrl.u32 %v9113_v35, %v1373_v12  ;;  %v1381_v38 = vshll.u32 %v9113_v35, %v1372_v41 }
 0x1a6   : > { %v1382_v28 = vshrl.u32 %v9114_v37, %v1373_v12  ;;  %v1384_v15 = vshll.u32 %v9114_v37, %v1372_v41  ;;  %v1098_v16 = vsel %vm1096_vm13, %v1097_v59, %v8798_v6  ;;  %v1385_v43 = vshrl.u32 %v9115_v39, %v1373_v12  ;;  %v10342_v6 = vld [vmem:[%s9539_s9 + $0x10] sm:$0xff] }
 0x1a7   : > { %v1317_v25 = vshll.u32 %v10307_v18, 30  ;;  %v1184_v42 = vmul.f32 %v1183_v24, %v1181_v14  ;;  %v10323_v23 = vshll.u32 %v1366_v2, 8  ;;  %v1095_v29 = vsel %vm1093_vm12, %v8796_v13, %v1094_v46 }
 0x1a8   : > { %v1387_v48 = vshll.u32 %v9115_v39, %v1372_v41  ;;  %v1388_v58 = vshrl.u32 %v9116_v47, %v1373_v12  ;;  %vm1089_vm15 = vweird.f32 %v9982_v4  ;;  %v1374_v52 = vshrl.u32 %v9111_v31, %v1373_v12 }
 0x1a9   : > { %v10320_v30 = vsub.s32 %v1314_v61, %v1317_v25  ;;  %v1185_v63 = vxor.u32 2147483648, %v1184_v42  ;;  %v1377_v44 = vor.u32 %v1376_v56, %v1375_v5  ;;  %v1380_v27 = vor.u32 %v1379_v49, %v1378_v34 }
 0x1aa   : > { %v1383_v62 = vor.u32 %v1382_v28, %v1381_v38  ;;  %v1386_v36 = vor.u32 %v1385_v43, %v1384_v15  ;;  %vm1390_vm0 = vcmp.lt.s32.totalorder %v1371_v19, 1  ;;  %v1389_v13 = vor.u32 %v1388_v58, %v1387_v48 }
 0x1ab   : > { %v1320_v1 = vsub.s32 0, %v10320_v30  ;;  %v1186_v3 = vsel %vm1103_vm2, %v1185_v63, %v1184_v42  ;;  %vm1393_vm1 = vcmp.lt.s32.totalorder %v1371_v19, 4  ;;  %vm1391_vm3 = vcmp.lt.s32.totalorder %v1371_v19, 2 }
 0x1ac   : > { %v1189_v17 = vsel %vm10280_vm8, %v10043_v9, %v1186_v3  ;;  %vm1392_vm4 = vcmp.lt.s32.totalorder %v1371_v19, 3  ;;  %v1395_v55 = vsel %vm1393_vm1, %v1383_v62, 2102212464  ;;  %v1394_v21 = vsel %vm1390_vm0, %v1374_v52, %v1377_v44 }
 0x1ad   : > { %v8329_v20 = vmin.u32 %v1320_v1, %v10320_v30  ;;  %8799 = vcosq.f32 %v1189_v17  ;;  %v1398_v41 = vsel %vm1390_vm0, %v1377_v44, %v1380_v27  ;;  %v1310_v53 = vadd.s32 %v10274_v26, %v10286_v40 }
 0x1ae   : > { %8801 = vsinq.f32 %v1189_v17  ;;  %v1396_v50 = vsel %vm1392_vm4, %v1380_v27, %v1395_v55  ;;  %v1399_v7 = vsel %vm1393_vm1, %v1386_v36, 920167782  ;;  %v1402_v10 = vsel %vm1390_vm0, %v1380_v27, %v1383_v62 }
 0x1af   : > { %v1322_v61 = vclz %v8329_v20  ;;  %v1099_v12 = vsel %vm1092_vm14, %v1095_v29, %v1098_v16  ;;  %v1400_v24 = vsel %vm1392_vm4, %v1383_v62, %v1399_v7  ;;  %v1403_v59 = vsel %vm1393_vm1, %v1389_v13, 1326507024 }
 0x1b0   : > { %vm1256_vm2 = vcmp.lt.s32.totalorder %v10146_v45, 0  ;;  %v1397_v2 = vsel %vm1391_vm3, %v1394_v21, %v1396_v50  ;;  %v1401_v26 = vsel %vm1391_vm3, %v1398_v41, %v1400_v24  ;;  %v1404_v40 = vsel %vm1392_vm4, %v1386_v36, %v1403_v59 }
 0x1b1   : > { %v8330_v60 = vadd.s32 4294967294, %v1322_v61  ;;  %v1465_v46 = vand.u32 2139095040, %v10342_v6  ;;  %vm1193_vm5 = vweird.f32 %v10043_v9  ;;  %v1405_v57 = vsel %vm1391_vm3, %v1402_v10, %v1404_v40 }
 0x1b2   : > { %v10361_v14 = vmul.u32.u64.low %v10323_v23, %v1401_v26  ;;  %v10362_v5 = vmul.u32.u64.high %v10323_v23, %v1401_v26, %v10361_v14  ;;  %v10366_v56 = vmul.u32.u64.low %v10323_v23, %v1405_v57  ;;  %v10367_v34 = vmul.u32.u64.high %v10323_v23, %v1405_v57, %v10366_v56 }
 0x1b3   : > { %vm8331_vm7 = vcmp.lt.s32.totalorder %v8330_v60, 0  ;;  %v1466_v49 = vshrl.u32 %v1465_v46, 23  ;;  %vm1196_vm8 = vcmp.lt.s32.totalorder %v10305_v8, 2  ;;  %v1100_v19 = vsel %vm1089_vm15, nan, %v1099_v12 }
 0x1b4   : > { %v1325_v25 = vsel %vm8331_vm7, 0, %v8330_v60  ;;  %vm1197_vm9 = vcmp.eq.s32.totalorder %v10305_v8, 0  ;;  %v1413_v15 = vmul.u32 %v10323_v23, %v1397_v2  ;;  %v1340_v63 = vsub.s32 4, %v10307_v18 }
 0x1b5   : > { %v1326_v42 = vsub.s32 32, %v1325_v25  ;;  %v1327_v38 = vshll.u32 %v10320_v30, %v1325_v25  ;;  %v1330_v28 = vsub.s32 4294967266, %v1325_v25  ;;  %v8336_v16 = vadd.s32 4294967169, %v1466_v49 }
 0x1b6   : > { %v1416_v48 = vadd.s32 1, %v10362_v5  ;;  %vm1200_vm10 = vcmp.eq.s32.totalorder %v10305_v8, 2  ;;  %vm1415_vm11 = vc.u32 %v10367_v34, %v10361_v14  ;;  %v1462_v30 = vand.u32 2147483647, %v10342_v6 }
 0x1b7   : > { %v1328_v43 = vshrl.u32 %v1310_v53, %v1326_v42  ;;  %v1331_v29 = vadd.s32 127, %v1330_v28  ;;  %v8800_v58 = vpop.eup %8799  ;;  %v1472_v1 = vadd.s32 1, %v8336_v16  ;;  %v1207_v36 = vadd.f32 %v1100_v19, %v9982_v4 }
 0x1b8   : > { %v8802_v52 = vpop.eup %8801  ;;  %v1201_v44 = vxor.u32 2147483648, %v8800_v58  ;;  %v1417_v3 = vsel %vm1415_vm11, %v1416_v48, %v10362_v5  ;;  %v1341_v55 = vsel %vm1256_vm2, %v1340_v63, %v10307_v18  ;;  %vm10394_vm13 = vcmp.le.f32.partialorder %v1254_v51, 0.7853982 }
 0x1b9   : > { %v1329_v27 = vor.u32 %v1328_v43, %v1327_v38  ;;  %v1332_v23 = vshll.u32 %v1331_v29, 23  ;;  %v1198_v62 = vxor.u32 2147483648, %v8802_v52  ;;  %v1418_v17 = vadd.s32 %v1417_v3, %v1413_v15  ;;  %v10423_v43 = vld [vmem:[%s9539_s9 + $0x18] sm:$0xff]  ;;  %s15350_s9 = smov 52  }
 0x1ba   : > { %vm1473_vm12 = vcmp.gt.s32.totalorder %v1472_v1, 0  ;;  %v1202_v20 = vsel %vm1200_vm10, %v1201_v44, %v8802_v52  ;;  %v1214_v59 = vsel %vm10165_vm6, 0.0, %v1207_v36  ;;  %v1343_v8 = vsel %vm10394_vm13, 0, %v1341_v55 }
 0x1bb   : > { %v1333_v13 = vor.u32 4788187, %v1332_v23  ;;  %v1474_v61 = vsel %vm1473_vm12, %v1472_v1, 0  ;;  %v1199_v21 = vsel %vm1197_vm9, %v8800_v58, %v1198_v62  ;;  %v1336_v41 = vcvt.s32.f32 %v1329_v27 }
 0x1bc   : > { %v1419_v53 = vadd.s32 536870912, %v1418_v17  ;;  %v1476_v50 = vand.u32 31, %v1474_v61  ;;  %v1203_v7 = vsel %vm1196_vm8, %v1199_v21, %v1202_v20  ;;  %v1469_v2 = vand.u32 8388607, %v1462_v30 }
 0x1bd   : > { %v1334_v10 = vand.u32 2147483647, %v1333_v13  ;;  %v1204_v4 = vsel %vm1193_vm5, nan, %v1203_v7  ;;  %v1475_v57 = vshrl.u32 %v1474_v61, 5  ;;  %v10418_v28 = vadd.s32 3, %v1343_v8 }
 0x1be   : > { %v10398_v18 = vshrl.u32 %v1419_v53, 30  ;;  %v1477_v60 = vsub.s32 32, %v1476_v50  ;;  %v1208_v24 = vadd.f32 %v1204_v4, %v10043_v9  ;;  %v1479_v40 = vshll.u32 %v9111_v31, %v1476_v50 }
 0x1bf   : > { %v1337_v26 = vmul.f32 %v1336_v41, %v1334_v10  ;;  %v1482_v5 = vshll.u32 %v9112_v33, %v1476_v50  ;;  %v1485_v42 = vshll.u32 %v9113_v35, %v1476_v50  ;;  %v1470_v19 = vor.u32 8388608, %v1469_v2 }
 0x1c0   : > { %v1421_v51 = vshll.u32 %v10398_v18, 30  ;;  %v1480_v46 = vshrl.u32 %v9112_v33, %v1477_v60  ;;  %v1215_v9 = vsel %vm10165_vm6, 0.0, %v1208_v24  ;;  %v1483_v25 = vshrl.u32 %v9113_v35, %v1477_v60 }
 0x1c1   : > { %v8743_v56 = vpack.i.bf16 %v1215_v9, %v1214_v59  ;;  %v1486_v38 = vshrl.u32 %v9114_v37, %v1477_v60  ;;  %v1478_v15 = vshrl.u32 %v9111_v31, %v1477_v60  ;;  %v1338_v54 = vxor.u32 2147483648, %v1337_v26 }
 0x1c2   : > { %v10414_v49 = vsub.s32 %v1418_v17, %v1421_v51  ;;  %v1481_v29 = vor.u32 %v1480_v46, %v1479_v40  ;;  %v1488_v63 = vshll.u32 %v9114_v37, %v1476_v50  ;;  %v1484_v48 = vor.u32 %v1483_v25, %v1482_v5 }
 0x1c3   : > { %8744 = vperm.xlu1 %8737, %v8743_v56   ;;  %v1489_v58 = vshrl.u32 %v9115_v39, %v1477_v60  ;;  %v1491_v1 = vshll.u32 %v9115_v39, %v1476_v50  ;;  %v1492_v52 = vshrl.u32 %v9116_v47, %v1477_v60  ;;  %v1414_v44 = vadd.s32 %v10361_v14, %v10367_v34 }
 0x1c4   : > { %v1424_v16 = vsub.s32 0, %v10414_v49  ;;  %v1487_v23 = vor.u32 %v1486_v38, %v1485_v42  ;;  %vm1494_vm6 = vcmp.lt.s32.totalorder %v1475_v57, 1  ;;  %v1510_v36 = vshll.u32 %v1470_v19, 8 }
 0x1c5   : > { %v1490_v3 = vor.u32 %v1489_v58, %v1488_v63  ;;  %v1493_v62 = vor.u32 %v1492_v52, %v1491_v1  ;;  %v1569_v17 = vand.u32 2139095040, %v10423_v43  ;;  %v1339_v20 = vsel %vm1256_vm2, %v1338_v54, %v1337_v26 }
 0x1c6   : > { %v8333_v27 = vmin.u32 %v1424_v16, %v10414_v49  ;;  %v1444_v55 = vsub.s32 4, %v10398_v18  ;;  %vm1496_vm14 = vcmp.lt.s32.totalorder %v1475_v57, 3  ;;  %vm1495_vm15 = vcmp.lt.s32.totalorder %v1475_v57, 2 }
 0x1c7   : > { %8754 = vset.pattern.permute.xlu1 %v9120_v0  ;;  %vm1497_vm0 = vcmp.lt.s32.totalorder %v1475_v57, 4  ;;  %v1498_v14 = vsel %vm1494_vm6, %v1478_v15, %v1481_v29  ;;  %v1502_v34 = vsel %vm1494_vm6, %v1481_v29, %v1484_v48  ;;  %v1506_v53 = vsel %vm1494_vm6, %v1484_v48, %v1487_v23 }
 0x1c8   : > { %v1426_v13 = vclz %v8333_v27  ;;  %v1499_v21 = vsel %vm1497_vm0, %v1487_v23, 2102212464  ;;  %v1503_v41 = vsel %vm1497_vm0, %v1490_v3, 920167782  ;;  %v1507_v7 = vsel %vm1497_vm0, %v1493_v62, 1326507024 }
 0x1c9   : > { %v1500_v0 = vsel %vm1496_vm14, %v1484_v48, %v1499_v21  ;;  %v1504_v50 = vsel %vm1496_vm14, %v1487_v23, %v1503_v41  ;;  %v1570_v10 = vshrl.u32 %v1569_v17, 23  ;;  %v1342_v4 = vsel %vm10394_vm13, %v10146_v45, %v1339_v20 }
 0x1ca   : > { %v8334_v61 = vadd.s32 4294967294, %v1426_v13  ;;  %v1505_v60 = vsel %vm1495_vm15, %v1502_v34, %v1504_v50  ;;  %v1508_v24 = vsel %vm1496_vm14, %v1490_v3, %v1507_v7  ;;  %v1501_v9 = vsel %vm1495_vm15, %v1498_v14, %v1500_v0 }
 0x1cb   : > { %v1509_v8 = vsel %vm1495_vm15, %v1506_v53, %v1508_v24  ;;  %v10448_v2 = vmul.u32.u64.low %v1510_v36, %v1505_v60  ;;  %v10449_v26 = vmul.u32.u64.high %v1510_v36, %v1505_v60, %v10448_v2  ;;  %8803 = vcosq.f32 %v1342_v4 }
 0x1cc   : > { %vm8335_vm1 = vcmp.lt.s32.totalorder %v8334_v61, 0  ;;  %v10454_v12 = vmul.u32.u64.low %v1510_v36, %v1509_v8  ;;  %v10455_v5 = vmul.u32.u64.high %v1510_v36, %v1509_v8, %v10454_v12  ;;  %v8340_v25 = vadd.s32 4294967169, %v1570_v10 }
 0x1cd   : > { %v1429_v59 = vsel %vm8335_vm1, 0, %v8334_v61  ;;  %8805 = vsinq.f32 %v1342_v4  ;;  %vm1360_vm3 = vcmp.lt.s32.totalorder %v10232_v32, 0  ;;  %v1517_v38 = vmul.u32 %v1510_v36, %v1501_v9 }
 0x1ce   : > { %v1430_v51 = vsub.s32 32, %v1429_v59  ;;  %v1431_v40 = vshll.u32 %v10414_v49, %v1429_v59  ;;  %v1434_v46 = vsub.s32 4294967266, %v1429_v59  ;;  %v1520_v19 = vadd.s32 1, %v10449_v26 }
 0x1cf   : > { %v1576_v15 = vadd.s32 1, %v8340_v25  ;;  %v1445_v57 = vsel %vm1360_vm3, %v1444_v55, %v10398_v18  ;;  %v10463_v49 = vand.u32 3, %v10418_v28  ;;  %vm10467_vm4 = vcmp.le.f32.partialorder %v1358_v22, 0.7853982 }
 0x1d0   : > { %v1432_v56 = vshrl.u32 %v1414_v44, %v1430_v51  ;;  %v1435_v42 = vadd.s32 127, %v1434_v46  ;;  %vm1519_vm2 = vc.u32 %v10455_v5, %v10448_v2  ;;  %v1566_v1 = vand.u32 2147483647, %v10423_v43 }
 0x1d1   : > { %vm1577_vm5 = vcmp.gt.s32.totalorder %v1576_v15, 0  ;;  %v1521_v58 = vsel %vm1519_vm2, %v1520_v19, %v10449_v26  ;;  %v1447_v18 = vsel %vm10467_vm4, 0, %v1445_v57  ;;  %vm1350_vm7 = vcmp.eq.s32.totalorder %v10463_v49, 0 }
 0x1d2   : > { %v1433_v54 = vor.u32 %v1432_v56, %v1431_v40  ;;  %v1436_v16 = vshll.u32 %v1435_v42, 23  ;;  %v1522_v28 = vadd.s32 %v1521_v58, %v1517_v38  ;;  %v1578_v52 = vsel %vm1577_vm5, %v1576_v15, 0 }
 0x1d3   : > { %v1580_v22 = vand.u32 31, %v1578_v52  ;;  %vm1353_vm8 = vcmp.eq.s32.totalorder %v10463_v49, 2  ;;  %v1451_v3 = vadd.s32 3, %v1447_v18  ;;  %v1573_v62 = vand.u32 8388607, %v1566_v1 }
 0x1d4   : > { %v1437_v63 = vor.u32 4788187, %v1436_v16  ;;  %v1440_v48 = vcvt.s32.f32 %v1433_v54  ;;  %v1523_v27 = vadd.s32 536870912, %v1522_v28  ;;  %v10483_v13 = vshrl.u32 %v1578_v52, 5 }
 0x1d5   : > { %v1581_v36 = vsub.s32 32, %v1580_v22  ;;  %v8804_v17 = vpop.eup %8803  ;;  %v1583_v55 = vshll.u32 %v9111_v31, %v1580_v22  ;;  %v1586_v14 = vshll.u32 %v9112_v33, %v1580_v22  ;;  %vm1349_vm9 = vcmp.lt.s32.totalorder %v10463_v49, 2 }
 0x1d6   : > { %v1438_v44 = vand.u32 2147483647, %v1437_v63  ;;  %v10481_v20 = vshrl.u32 %v1523_v27, 30  ;;  %v1592_v53 = vshll.u32 %v9114_v37, %v1580_v22  ;;  %v1589_v50 = vshll.u32 %v9113_v35, %v1580_v22 }
 0x1d7   : > { %v8806_v34 = vpop.eup %8805  ;;  %v1584_v21 = vshrl.u32 %v9112_v33, %v1581_v36  ;;  %v1587_v41 = vshrl.u32 %v9113_v35, %v1581_v36  ;;  %v1590_v7 = vshrl.u32 %v9114_v37, %v1581_v36  ;;  %v1593_v10 = vshrl.u32 %v9115_v39, %v1581_v36 }
 0x1d8   : > { %v1441_v23 = vmul.f32 %v1440_v48, %v1438_v44  ;;  %v1525_v0 = vshll.u32 %v10481_v20, 30  ;;  %v1354_v4 = vxor.u32 2147483648, %v8804_v17  ;;  %v1574_v24 = vor.u32 8388608, %v1573_v62 }
 0x1d9   : > { %v1595_v33 = vshll.u32 %v9115_v39, %v1580_v22  ;;  %vm1346_vm10 = vweird.f32 %v10146_v45  ;;  %v1351_v59 = vxor.u32 2147483648, %v8806_v34  ;;  %v1585_v37 = vor.u32 %v1584_v21, %v1583_v55 }
 0x1da   : > { %v1442_v61 = vxor.u32 2147483648, %v1441_v23  ;;  %v10503_v35 = vsub.s32 %v1522_v28, %v1525_v0  ;;  %v1588_v26 = vor.u32 %v1587_v41, %v1586_v14  ;;  %v1594_v51 = vor.u32 %v1593_v10, %v1592_v53 }
 0x1db   : > { %v1596_v40 = vshrl.u32 %v9116_v47, %v1581_v36  ;;  %v1591_v46 = vor.u32 %v1590_v7, %v1589_v50  ;;  %vm1598_vm11 = vcmp.lt.s32.totalorder %v10483_v13, 1  ;;  %v1582_v9 = vshrl.u32 %v9111_v31, %v1581_v36 }
 0x1dc   : > { %v1443_v60 = vsel %vm1360_vm3, %v1442_v61, %v1441_v23  ;;  %v1528_v39 = vsub.s32 0, %v10503_v35  ;;  %vm1601_vm12 = vcmp.lt.s32.totalorder %v10483_v13, 4  ;;  %v1614_v25 = vshll.u32 %v1574_v24, 8 }
 0x1dd   : > { %v1446_v8 = vsel %vm10467_vm4, %v10232_v32, %v1443_v60  ;;  %v1597_v12 = vor.u32 %v1596_v40, %v1595_v33  ;;  %v1355_v56 = vsel %vm1353_vm8, %v1354_v4, %v8806_v34  ;;  %vm1600_vm13 = vcmp.lt.s32.totalorder %v10483_v13, 3 }
 0x1de   : > { %8807 = vcosq.f32 %v1446_v8  ;;  %v8337_v47 = vmin.u32 %v1528_v39, %v10503_v35  ;;  %v1603_v42 = vsel %vm1601_vm12, %v1591_v46, 2102212464  ;;  %v1352_v38 = vsel %vm1350_vm7, %v8804_v17, %v1351_v59 }
 0x1df   : > { %8809 = vsinq.f32 %v1446_v8  ;;  %vm1599_vm6 = vcmp.lt.s32.totalorder %v10483_v13, 2  ;;  %v1606_v31 = vsel %vm1598_vm11, %v1585_v37, %v1588_v26  ;;  %v1607_v19 = vsel %vm1601_vm12, %v1594_v51, 920167782 }
 0x1e0   : > { %vm1450_vm14 = vweird.f32 %v10232_v32  ;;  %v1452_v15 = vand.u32 3, %v1451_v3  ;;  %v1675_v54 = vstv %s10508_s18  ;;  %v1530_v16 = vclz %v8337_v47  ;;  %s15221_s18 = smov 80  }
 0x1e1   : > { %v1610_v57 = vsel %vm1598_vm11, %v1588_v26, %v1591_v46  ;;  %v1602_v29 = vsel %vm1598_vm11, %v1582_v9, %v1585_v37  ;;  %v1604_v63 = vsel %vm1600_vm13, %v1588_v26, %v1603_v42  ;;  %v1608_v48 = vsel %vm1600_vm13, %v1591_v46, %v1607_v19 }
 0x1e2   : > { %v1611_v58 = vsel %vm1601_vm12, %v1597_v12, 1326507024  ;;  %v1356_v18 = vsel %vm1349_vm9, %v1352_v38, %v1355_v56  ;;  %v8338_v28 = vadd.s32 4294967294, %v1530_v16  ;;  %v1609_v52 = vsel %vm1599_vm6, %v1606_v31, %v1608_v48  ;;  %v8761_v31 = vld [vmem:[#allocation2] sm:$0xff]  }
 0x1e3   : > { %v1612_v44 = vsel %vm1600_vm13, %v1594_v51, %v1611_v58  ;;  %v1518_v22 = vadd.s32 %v10448_v2, %v10455_v5  ;;  %v10549_v23 = vmul.u32.u64.low %v1614_v25, %v1609_v52  ;;  %v10550_v3 = vmul.u32.u64.high %v1614_v25, %v1609_v52, %v10549_v23  ;;  %8435 = vmatprep.subr.bf16.mxu0 %v8761_v31  ;;  %8457 = vmatprep.subr.bf16.mxu1 %v8761_v31 }
 0x1e4   : > { %v1613_v27 = vsel %vm1599_vm6, %v1610_v57, %v1612_v44  ;;  %vm8339_vm15 = vcmp.lt.s32.totalorder %v8338_v28, 0  ;;  %v1605_v49 = vsel %vm1599_vm6, %v1602_v29, %v1604_v63  ;;  %v1357_v55 = vsel %vm1346_vm10, nan, %v1356_v18  ;;  %8436 = vmatpush3.bf16.msra.mxu0 %v8761_v31  ;;  %8464 = vmatpush3.bf16.msra.mxu1 %v8761_v31 }
 0x1e5   : > { %v10554_v62 = vmul.u32.u64.low %v1614_v25, %v1613_v27  ;;  %v10555_v36 = vmul.u32.u64.high %v1614_v25, %v1613_v27, %v10554_v62  ;;  %vm1453_vm0 = vcmp.lt.s32.totalorder %v1452_v15, 2  ;;  %vm1457_vm1 = vcmp.eq.s32.totalorder %v1452_v15, 2 }
 0x1e6   : > { %v1533_v2 = vsel %vm8339_vm15, 0, %v8338_v28  ;;  %vm1454_vm3 = vcmp.eq.s32.totalorder %v1452_v15, 0  ;;  %v1621_v13 = vmul.u32 %v1614_v25, %v1605_v49  ;;  %v1624_v53 = vadd.s32 1, %v10550_v3  ;;  %v10593_v49 = vpop.permute.xlu1 %8733 }
 0x1e7   : > { %v1534_v34 = vsub.s32 32, %v1533_v2  ;;  %v1538_v61 = vsub.s32 4294967266, %v1533_v2  ;;  %v1535_v41 = vshll.u32 %v10503_v35, %v1533_v2  ;;  %v1670_v50 = vadd.f32 %v1357_v55, %v10146_v45  ;;  %v8719_v2 = vpop.permute.xlu0 %8718 }
 0x1e8   : > { %v8808_v17 = vpop.eup %8807  ;;  %vm10562_vm4 = vcmp.eq.s32.totalorder %v1675_v54, 1  ;;  %vm1623_vm2 = vc.u32 %v10555_v36, %v10549_v23  ;;  %vm1464_vm5 = vcmp.lt.s32.totalorder %v10342_v6, 0  ;;  %vm10579_vm7 = vcmp.le.f32.partialorder %v1462_v30, 0.7853982 }
 0x1e9   : > { %v8810_v5 = vpop.eup %8809  ;;  %v1458_v14 = vxor.u32 2147483648, %v8808_v17  ;;  %v1536_v7 = vshrl.u32 %v1518_v22, %v1534_v34  ;;  %v1539_v10 = vadd.s32 127, %v1538_v61  ;;  %v1625_v59 = vsel %vm1623_vm2, %v1624_v53, %v10550_v3 }
 0x1ea   : > { %v1455_v21 = vxor.u32 2147483648, %v8810_v5  ;;  %v1626_v37 = vadd.s32 %v1625_v59, %v1621_v13  ;;  %v1677_v26 = vsel %vm10562_vm4, 0.0, %v1670_v50  ;;  %v1622_v29 = vadd.s32 %v10549_v23, %v10555_v36 }
 0x1eb   : > { %v1459_v0 = vsel %vm1457_vm1, %v1458_v14, %v8810_v5  ;;  %v1540_v33 = vshll.u32 %v1539_v10, 23  ;;  %v1537_v35 = vor.u32 %v1536_v7, %v1535_v41  ;;  %v1548_v63 = vsub.s32 4, %v10481_v20  ;;  %v8724_v60 = vpop.permute.xlu0 %8723 }
 0x1ec   : > { %v1456_v4 = vsel %vm1454_vm3, %v8808_v17, %v1455_v21  ;;  %v1627_v40 = vadd.s32 536870912, %v1626_v37  ;;  %v14876_v52 = vlaneseq  ;;  %v8721_v61 = vunpack.i.h.bf16 %v8719_v2 }
 0x1ed   : > { %v1460_v24 = vsel %vm1453_vm0, %v1456_v4, %v1459_v0  ;;  %v1541_v51 = vor.u32 4788187, %v1540_v33  ;;  %v1544_v12 = vcvt.s32.f32 %v1537_v35  ;;  %v1549_v27 = vsel %vm1464_vm5, %v1548_v63, %v10481_v20  ;;  %v8762_v63 = vld [vmem:[#allocation2 + $0x8] sm:$0xff]  }
 0x1ee   : > { %v1461_v8 = vsel %vm1450_vm14, nan, %v1460_v24  ;;  %v1628_v25 = vshrl.u32 %v1627_v40, 30  ;;  %v10596_v62 = vand.u32 127, %v14876_v52  ;;  %v1551_v36 = vsel %vm10579_vm7, 0, %v1549_v27  ;;  %8437 = vmatprep.subr.bf16.mxu0 %v8762_v63  ;;  %8458 = vmatprep.subr.bf16.mxu1 %v8762_v63 }
 0x1ef   : > { %v1671_v45 = vadd.f32 %v1461_v8, %v10232_v32  ;;  %v1542_v9 = vand.u32 2147483647, %v1541_v51  ;;  %v1555_v34 = vadd.s32 3, %v1551_v36  ;;  %v8720_v41 = vunpack.i.l.bf16 %v8719_v2  ;;  %8438 = vmatpush3.bf16.msra.mxu0 %v8762_v63  ;;  %8465 = vmatpush3.bf16.msra.mxu1 %v8762_v63  ;;  %v8729_v36 = vpop.permute.xlu0 %8728 }
 0x1f0   : > { %v1629_v56 = vshll.u32 %v1628_v25, 30  ;;  %v1652_v14 = vsub.s32 4, %v1628_v25  ;;  %vm1216_vm9 = vcmp.eq.s32.totalorder %v10596_v62, 127  ;;  %vm10603_vm10 = vcmp.le.f32.partialorder %v1566_v1, 0.7853982 }
 0x1f1   : > { %v1678_v39 = vsel %vm10562_vm4, 0.0, %v1671_v45  ;;  %v1545_v47 = vmul.f32 %v1544_v12, %v1542_v9  ;;  %vm1568_vm11 = vcmp.lt.s32.totalorder %v10423_v43, 0  ;;  %v1556_v59 = vand.u32 3, %v1555_v34 }
 0x1f2   : > { %v8749_v46 = vpack.i.bf16 %v1678_v39, %v1677_v26  ;;  %v1630_v42 = vsub.s32 %v1626_v37, %v1629_v56  ;;  %v1653_v10 = vsel %vm1568_vm11, %v1652_v14, %v1628_v25  ;;  %vm1554_vm14 = vweird.f32 %v10342_v6 }
 0x1f3   : > { %v1546_v19 = vxor.u32 2147483648, %v1545_v47  ;;  %v1655_v37 = vsel %vm10603_vm10, 0, %v1653_v10  ;;  %vm1558_vm12 = vcmp.eq.s32.totalorder %v1556_v59, 0  ;;  %vm1561_vm13 = vcmp.eq.s32.totalorder %v1556_v59, 2 }
 0x1f4   : > { %8750 = vperm.xlu0 %8748, %v8749_v46   ;;  %v1632_v38 = vsub.s32 0, %v1630_v42  ;;  %v1659_v51 = vadd.s32 3, %v1655_v37  ;;  %vm1557_vm6 = vcmp.lt.s32.totalorder %v1556_v59, 2  ;;  %vm1658_vm3 = vweird.f32 %v10423_v43 }
 0x1f5   : > { %v1547_v16 = vsel %vm1464_vm5, %v1546_v19, %v1545_v47  ;;  %vm1860_vm2 = vcmask 793600   ;;  %v8730_v2 = vunpack.i.l.bf16 %v8729_v36  ;;  %vm15401_vm5 = vcmask 31744  }
 0x1f6   : > { %v8341_v32 = vmin.u32 %v1632_v38, %v1630_v42  ;;  %v1550_v48 = vsel %vm10579_vm7, %v10342_v6, %v1547_v16  ;;  %v1660_v46 = vand.u32 3, %v1659_v51  ;;  %vm7827_vm7 = vcmask 64512  }
 0x1f7   : > { %8811 = vcosq.f32 %v1550_v48 }
 0x1f8   : > { %v1634_v15 = vclz %v8341_v32  ;;  %8813 = vsinq.f32 %v1550_v48  ;;  %vm1665_vm15 = vcmp.eq.s32.totalorder %v1660_v46, 2  ;;  %vm1662_vm0 = vcmp.eq.s32.totalorder %v1660_v46, 0 }
 0x1f9   : > { %vm1661_vm1 = vcmp.lt.s32.totalorder %v1660_v46, 2 }
 0x1fa   : > { %v8342_v57 = vadd.s32 4294967294, %v1634_v15 }
 0x1fc   : > { %vm8343_vm8 = vcmp.lt.s32.totalorder %v8342_v57, 0 }
 0x1fd   : > { %v1637_v58 = vsel %vm8343_vm8, 0, %v8342_v57  ;;  %vm7830_vm8 = vcmask 97280  }
 0x1fe   : > { %v1638_v18 = vsub.s32 32, %v1637_v58  ;;  %v1639_v28 = vshll.u32 %v1630_v42, %v1637_v58  ;;  %v1642_v30 = vsub.s32 4294967266, %v1637_v58 }
 0x200   : > { %v1640_v44 = vshrl.u32 %v1622_v29, %v1638_v18  ;;  %v1643_v22 = vadd.s32 127, %v1642_v30  ;;  %v8726_v18 = vunpack.i.h.bf16 %v8724_v60 }
 0x201   : > { %v8812_v50 = vpop.eup %8811 }
 0x202   : > { %v1641_v23 = vor.u32 %v1640_v44, %v1639_v28  ;;  %v1644_v3 = vshll.u32 %v1643_v22, 23  ;;  %v8814_v33 = vpop.eup %8813  ;;  %v1562_v26 = vxor.u32 2147483648, %v8812_v50  ;;  %v8725_v28 = vunpack.i.l.bf16 %v8724_v60 }
 0x203   : > { %v1559_v45 = vxor.u32 2147483648, %v8814_v33 }
 0x204   : > { %v1645_v17 = vor.u32 4788187, %v1644_v3  ;;  %v1648_v55 = vcvt.s32.f32 %v1641_v23  ;;  %v1563_v39 = vsel %vm1561_vm13, %v1562_v26, %v8814_v33  ;;  %vm15357_vm13 = vcmask 261120  }
 0x205   : > { %v1560_v40 = vsel %vm1558_vm12, %v8812_v50, %v1559_v45  ;;  %vm15403_vm12 = vcmask 228352  }
 0x206   : > { %v1646_v5 = vand.u32 2147483647, %v1645_v17  ;;  %v1564_v9 = vsel %vm1557_vm6, %v1560_v40, %v1563_v39  ;;  %vm15358_vm6 = vcmask 293888  }
 0x207   : > { %v1565_v25 = vsel %vm1554_vm14, nan, %v1564_v9  ;;  %vm15362_vm14 = vcmask 326656  }
 0x208   : > { %v1649_v21 = vmul.f32 %v1648_v55, %v1646_v5  ;;  %v1672_v31 = vadd.f32 %v1565_v25, %v10342_v6  ;;  %v8767_v6 = vld [vmem:[#allocation9] sm:$0xff]   ;;  %v8731_v55 = vunpack.i.h.bf16 %v8729_v36 }
 0x209   : > { %8449 = vmatprep.mubr.msk.bf16.mxu0 %vm1860_vm2, %v8767_v6 }
 0x20a   : > { %v1650_v7 = vxor.u32 2147483648, %v1649_v21  ;;  %v1679_v16 = vsel %vm10562_vm4, 0.0, %v1672_v31 }
 0x20b   : > { %v8740_v20 = vpop.permute.xlu1 %8739 }
 0x20c   : > { %v8742_v13 = vunpack.i.h.bf16 %v8740_v20  ;;  %v8741_v53 = vunpack.i.l.bf16 %v8740_v20  ;;  %v1651_v35 = vsel %vm1568_vm11, %v1650_v7, %v1649_v21  ;;  %vm15356_vm11 = vcmask 195584  }
 0x20d   : > { %v1654_v1 = vsel %vm10603_vm10, %v10423_v43, %v1651_v35  ;;  %vm15404_vm10 = vcmask 162816  }
 0x20e   : > { %v1245_v4 = vsel %vm1216_vm9, %v8741_v53, %v8720_v41  ;;  %v1246_v24 = vsel %vm1216_vm9, %v8742_v13, %v8721_v61  ;;  %8815 = vcosq.f32 %v1654_v1  ;;  %v8736_v13 = vunpack.i.h.bf16 %v10593_v49 }
 0x20f   : > { %v8402_v8 = vpack.c.bf16 %v1246_v24, %v1245_v4  ;;  %8817 = vsinq.f32 %v1654_v1  ;;  %v8735_v53 = vunpack.i.l.bf16 %v10593_v49  ;;  %v8760_v24 = vld [vmem:[#allocation2 + $0x30] ss:$0 sps:$4 sm:$0x11]   ;;  %v8768_v49 = vld [vmem:[#allocation9 + $0x8] sm:$0xff]  }
 0x210   : > { %v1877_v33 = vand.u32 %v8760_v24, %v9833_v11 }
 0x211   : > { %8420 = vst [vmem:[#allocation2 + $0x10] sm:$0xff] %v8402_v8   ;;  %v8770_v8 = vld [vmem:[#allocation9 + $0x18] sm:$0xff]  }
 0x218   : > { %v8816_v12 = vpop.eup %8815  ;;  %v8763_v48 = vld [vmem:[#allocation2 + $0x10] sm:$0xff]  }
 0x219   : > { %v8818_v56 = vpop.eup %8817  ;;  %v1666_v47 = vxor.u32 2147483648, %v8816_v12  ;;  %8439 = vmatprep.subr.bf16.mxu0 %v8763_v48  ;;  %8459 = vmatprep.subr.bf16.mxu1 %v8763_v48 }
 0x21a   : > { %v1663_v42 = vxor.u32 2147483648, %v8818_v56  ;;  %8440 = vmatpush3.bf16.msra.mxu0 %v8763_v48  ;;  %8466 = vmatpush3.bf16.msra.mxu1 %v8763_v48 }
 0x21b   : > { %v1667_v38 = vsel %vm1665_vm15, %v1666_v47, %v8818_v56  ;;  %vm15361_vm15 = vcmask 359424  }
 0x21c   : > { %v1664_v19 = vsel %vm1662_vm0, %v8816_v12, %v1663_v42  ;;  %vm15363_vm0 = vcmask 392192  }
 0x21d   : > { %v1668_v32 = vsel %vm1661_vm1, %v1664_v19, %v1667_v38  ;;  %vm15364_vm1 = vcmask 424960  }
 0x21e   : > { %v1669_v15 = vsel %vm1658_vm3, nan, %v1668_v32  ;;  %vm15367_vm3 = vcmask 457728  }
 0x21f   : > { %v1673_v54 = vadd.f32 %v1669_v15, %v10423_v43  ;;  %v8769_v43 = vld [vmem:[#allocation9 + $0x10] sm:$0xff]  }
 0x220   : > { %8453 = vmatprep.mubr.msk.bf16.mxu1 %vm1860_vm2, %v8769_v43 }
 0x221   : > { %v1680_v57 = vsel %vm10562_vm4, 0.0, %v1673_v54  ;;  %vm1681_vm4 = vcmp.eq.s32.totalorder %v10596_v62, 0 }
 0x222   : > { %v8755_v29 = vpack.i.bf16 %v1680_v57, %v1679_v16 }
 0x224   : > { %8756 = vperm.xlu1 %8754, %v8755_v29  }
 0x242   : > { %v8745_v58 = vpop.permute.xlu1 %8744 }
 0x243   : > { %v8747_v30 = vunpack.i.h.bf16 %v8745_v58  ;;  %v8746_v44 = vunpack.i.l.bf16 %v8745_v58 }
 0x245   : > { %v1247_v22 = vsel %vm1216_vm9, %v8746_v44, %v8725_v28  ;;  %v1248_v27 = vsel %vm1216_vm9, %v8747_v30, %v8726_v18  ;;  %vm15402_vm9 = vcmask 130048  }
 0x246   : > { %v8407_v23 = vpack.c.bf16 %v1248_v27, %v1247_v22 }
 0x248   : > { %8421 = vst [vmem:[#allocation2 + $0x18] sm:$0xff] %v8407_v23  }
 0x24f   : > { %v8764_v3 = vld [vmem:[#allocation2 + $0x18] sm:$0xff]  }
 0x250   : > { %8441 = vmatprep.subr.bf16.mxu0 %v8764_v3  ;;  %8460 = vmatprep.subr.bf16.mxu1 %v8764_v3 }
 0x251   : > { %8442 = vmatpush3.bf16.msra.mxu0 %v8764_v3  ;;  %8467 = vmatpush3.bf16.msra.mxu1 %v8764_v3 }
 0x273   : > { %v8751_v17 = vpop.permute.xlu0 %8750 }
 0x274   : > { %v8753_v5 = vunpack.i.h.bf16 %v8751_v17  ;;  %v8752_v14 = vunpack.i.l.bf16 %v8751_v17 }
 0x276   : > { %v1710_v34 = vsel %vm1681_vm4, %v8752_v14, %v8730_v2  ;;  %v1711_v61 = vsel %vm1681_vm4, %v8753_v5, %v8731_v55 }
 0x277   : > { %v8412_v20 = vpack.c.bf16 %v1711_v61, %v1710_v34 }
 0x279   : > { %8422 = vst [vmem:[#allocation2 + $0x20] sm:$0xff] %v8412_v20  }
 0x280   : > { %v8765_v21 = vld [vmem:[#allocation2 + $0x20] sm:$0xff]  }
 0x281   : > { %8443 = vmatprep.subr.bf16.mxu0 %v8765_v21  ;;  %8461 = vmatprep.subr.bf16.mxu1 %v8765_v21 }
 0x282   : > { %8444 = vmatpush3.bf16.msra.mxu0 %v8765_v21  ;;  %8468 = vmatpush3.bf16.msra.mxu1 %v8765_v21 }
 0x2a3   : > { %v8757_v41 = vpop.permute.xlu1 %8756 }
 0x2a4   : > { %v8759_v0 = vunpack.i.h.bf16 %v8757_v41  ;;  %v8758_v50 = vunpack.i.l.bf16 %v8757_v41 }
 0x2a6   : > { %v1712_v7 = vsel %vm1681_vm4, %v8758_v50, %v8735_v53  ;;  %v1713_v10 = vsel %vm1681_vm4, %v8759_v0, %v8736_v13  ;;  %vm15369_vm4 = vcmask 523264  }
 0x2a7   : > { %v8417_v4 = vpack.c.bf16 %v1713_v10, %v1712_v7 }
 0x2a9   : > { %8423 = vst [vmem:[#allocation2 + $0x28] sm:$0xff] %v8417_v4  }
 0x2b0   : > { %v8766_v59 = vld [vmem:[#allocation2 + $0x28] sm:$0xff]  }
 0x2b1   : > { %8445 = vmatprep.subr.bf16.mxu0 %v8766_v59  ;;  %8462 = vmatprep.subr.bf16.mxu1 %v8766_v59 }
 0x2b2   : > { %8446 = vmatpush3.bf16.msra.mxu0 %v8766_v59  ;;  %8469 = vmatpush3.bf16.msra.mxu1 %v8766_v59 }
 0x2b3   : > { %8447 = vmatprep.subr.bf16.mxu0 %v1877_v33  ;;  %8463 = vmatprep.subr.bf16.mxu1 %v1877_v33 }
 0x2b6   : > { %8448 = vmatpush3.bf16.msra.mxu0 %v1877_v33  ;;  %8470 = vmatpush3.bf16.msra.mxu1 %v1877_v33 }
 0x2b9   : > { %8450 = vmatmul.mubr.msk.bf16.vlgmr.msra.gmra.mrb[0].mxu0 %vm1860_vm2, %v8768_v49  ;;  %8454 = vmatmul.mubr.msk.bf16.vlgmr.msra.gmra.mrb[0].mxu1 %vm1860_vm2, %v8770_v8  ;;  %vm15368_vm2 = vcmask 490496  }
 0x38c   : > { %v8451_v62 = vpop.f32.mrb[0].mxu0  ;;  %v8455_v35 = vpop.f32.mrb[0].mxu1 }
 0x38d   : > { %2096 = vxpose.xlu0.b32.start.end [1/1] (short) %v8451_v62, 128  ;;  %v10645_v1 = vpop.f32.mrb[1].mxu0  ;;  %v1929_v11 = vpop.f32.mrb[1].mxu1  ;;  %v1954_v40 = vcombine.high %v8451_v62, %v8451_v62  ;;  %v1958_v39 = vcombine.high %v8455_v35, %v8455_v35 }
 0x38e   : > { %1968 = vxpose.xlu1.b32.start.end [1/1] (short) %v10645_v1, 128  ;;  %v10648_v37 = vpop.f32.mrb[2].mxu0  ;;  %v10650_v45 = vpop.f32.mrb[2].mxu1  ;;  %v1956_v23 = vcombine.high %v1929_v11, %v1929_v11 }
 0x38f   : > { %v10652_v26 = vpop.f32.mrb[3].mxu0  ;;  %v10654_v51 = vpop.f32.mrb[3].mxu1 }
 0x3ca   : > { %2352 = vxpose.xlu0.b32.start.end [1/1] (short) %v8455_v35, 128 }
 0x3cb   : > { %2128 = vxpose.xlu1.b32.start.end [1/1] (short) %v1954_v40, 128 }
 0x407   : > { %2224 = vxpose.xlu0.b32.start.end [1/1] (short) %v1929_v11, 128 }
 0x408   : > { %2384 = vxpose.xlu1.b32.start.end [1/1] (short) %v1958_v39, 128 }
 0x40d   : > { %v10656_v46 = vpop.trf.xlu0 }
 0x40e   : > { %v10658_v9 = vpop.trf.xlu1 }
 0x411   : > { %v10660_v12 = vpop.trf.xlu0 }
 0x412   : > { %v10662_v25 = vpop.trf.xlu1 }
 0x415   : > { %v10664_v56 = vpop.trf.xlu0 }
 0x416   : > { %v10666_v47 = vpop.trf.xlu1 }
 0x417   : > { %15504 = vst [vmem:[#allocation37_spill] sm:$0xff] %v10666_v47 }
 0x419   : > { %v10668_v42 = vpop.trf.xlu0 }
 0x41a   : > { %v10670_v38 = vpop.trf.xlu1 }
 0x41b   : > { %15505 = vst [vmem:[#allocation38_spill] sm:$0xff] %v10670_v38 }
 0x41d   : > { %v10672_v31 = vpop.trf.xlu0 }
 0x41e   : > { %v10674_v19 = vpop.trf.xlu1 }
 0x41f   : > { %15506 = vst [vmem:[#allocation39_spill] sm:$0xff] %v10674_v19 }
 0x421   : > { %v10676_v32 = vpop.trf.xlu0 }
 0x422   : > { %v10678_v15 = vpop.trf.xlu1 }
 0x423   : > { %15507 = vst [vmem:[#allocation40_spill] sm:$0xff] %v10678_v15 }
 0x425   : > { %v10680_v54 = vpop.trf.xlu0 }
 0x426   : > { %v10682_v16 = vpop.trf.xlu1 }
 0x427   : > { %15508 = vst [vmem:[#allocation41_spill] sm:$0xff] %v10682_v16 }
 0x429   : > { %v10684_v57 = vpop.trf.xlu0 }
 0x42a   : > { %v10686_v29 = vpop.trf.xlu1 }
 0x42b   : > { %15509 = vst [vmem:[#allocation42_spill] sm:$0xff] %v10686_v29 }
 0x42d   : > { %v10688_v63 = vpop.trf.xlu0 }
 0x42e   : > { %v10690_v48 = vpop.trf.xlu1 }
 0x42f   : > { %15510 = vst [vmem:[#allocation43_spill] sm:$0xff] %v10690_v48 }
 0x431   : > { %v10692_v6 = vpop.trf.xlu0 }
 0x432   : > { %v10694_v43 = vpop.trf.xlu1 }
 0x433   : > { %15511 = vst [vmem:[#allocation44_spill] sm:$0xff] %v10694_v43 }
 0x435   : > { %v10696_v60 = vpop.trf.xlu0 }
 0x436   : > { %v10698_v58 = vpop.trf.xlu1 }
 0x437   : > { %15512 = vst [vmem:[#allocation45_spill] sm:$0xff] %v10698_v58 }
 0x439   : > { %v10700_v18 = vpop.trf.xlu0 }
 0x43a   : > { %v10702_v28 = vpop.trf.xlu1 }
 0x43b   : > { %15513 = vst [vmem:[#allocation46_spill] sm:$0xff] %v10702_v28 }
 0x43d   : > { %v10704_v30 = vpop.trf.xlu0 }
 0x43e   : > { %v10706_v44 = vpop.trf.xlu1 }
 0x43f   : > { %15514 = vst [vmem:[#allocation47_spill] sm:$0xff] %v10706_v44 }
 0x441   : > { %v10708_v22 = vpop.trf.xlu0 }
 0x442   : > { %v10710_v27 = vpop.trf.xlu1 }
 0x443   : > { %15515 = vst [vmem:[#allocation48_spill] sm:$0xff] %v10710_v27 }
 0x445   : > { %v10712_v3 = vpop.trf.xlu0  ;;  %2160 = vxpose.xlu0.b32.start.end [1/1] (short) %v10648_v37, 128 }
 0x446   : > { %v10715_v36 = vpop.trf.xlu1  ;;  %2256 = vxpose.xlu1.b32.start.end [1/1] (short) %v1956_v23, 128 }
 0x447   : > { %15516 = vst [vmem:[#allocation49_spill] sm:$0xff] %v10715_v36  ;;  %v1955_v36 = vcombine.high %v10648_v37, %v10648_v37 }
 0x449   : > { %v10717_v17 = vpop.trf.xlu0 }
 0x44a   : > { %15517 = vst [vmem:[#allocation50_spill] sm:$0xff] %v10717_v17  ;;  %v10719_v55 = vpop.trf.xlu1  ;;  %v1952_v17 = vcombine.high %v10645_v1, %v10645_v1 }
 0x44b   : > { %15518 = vst [vmem:[#allocation51_spill] sm:$0xff] %v10719_v55 }
 0x44d   : > { %v10721_v2 = vpop.trf.xlu0 }
 0x44e   : > { %15519 = vst [vmem:[#allocation52_spill] sm:$0xff] %v10721_v2  ;;  %v10723_v5 = vpop.trf.xlu1 }
 0x451   : > { %v10725_v14 = vpop.trf.xlu0 }
 0x452   : > { %15520 = vst [vmem:[#allocation53_spill] sm:$0xff] %v10725_v14  ;;  %v10727_v34 = vpop.trf.xlu1 }
 0x455   : > { %v10729_v61 = vpop.trf.xlu0 }
 0x456   : > { %15521 = vst [vmem:[#allocation54_spill] sm:$0xff] %v10729_v61  ;;  %v10731_v20 = vpop.trf.xlu1 }
 0x459   : > { %v10733_v21 = vpop.trf.xlu0 }
 0x45a   : > { %15522 = vst [vmem:[#allocation55_spill] sm:$0xff] %v10733_v21  ;;  %v10735_v41 = vpop.trf.xlu1 }
 0x45d   : > { %v10737_v13 = vpop.trf.xlu0 }
 0x45e   : > { %15523 = vst [vmem:[#allocation56_spill] sm:$0xff] %v10737_v13  ;;  %v10739_v53 = vpop.trf.xlu1 }
 0x461   : > { %v10741_v0 = vpop.trf.xlu0 }
 0x462   : > { %15524 = vst [vmem:[#allocation57_spill] sm:$0xff] %v10741_v0  ;;  %v10743_v50 = vpop.trf.xlu1 }
 0x465   : > { %v10745_v7 = vpop.trf.xlu0 }
 0x466   : > { %15525 = vst [vmem:[#allocation58_spill] sm:$0xff] %v10745_v7  ;;  %v10747_v10 = vpop.trf.xlu1 }
 0x469   : > { %v10749_v4 = vpop.trf.xlu0 }
 0x46a   : > { %15526 = vst [vmem:[#allocation59_spill] sm:$0xff] %v10749_v4  ;;  %v10751_v24 = vpop.trf.xlu1 }
 0x46d   : > { %v10753_v33 = vpop.trf.xlu0 }
 0x46e   : > { %15527 = vst [vmem:[#allocation60_spill] sm:$0xff] %v10753_v33  ;;  %v10755_v59 = vpop.trf.xlu1 }
 0x471   : > { %v10757_v49 = vpop.trf.xlu0 }
 0x472   : > { %15528 = vst [vmem:[#allocation61_spill] sm:$0xff] %v10757_v49  ;;  %v10759_v8 = vpop.trf.xlu1 }
 0x475   : > { %v10761_v62 = vpop.trf.xlu0 }
 0x476   : > { %15529 = vst [vmem:[#allocation62_spill] sm:$0xff] %v10761_v62  ;;  %v10763_v35 = vpop.trf.xlu1 }
 0x479   : > { %v10765_v11 = vpop.trf.xlu0 }
 0x47a   : > { %15530 = vst [vmem:[#allocation63_spill] sm:$0xff] %v10765_v11  ;;  %v10767_v40 = vpop.trf.xlu1 }
 0x47d   : > { %v10769_v39 = vpop.trf.xlu0 }
 0x47e   : > { %15531 = vst [vmem:[#allocation64_spill] sm:$0xff] %v10769_v39  ;;  %v10771_v23 = vpop.trf.xlu1 }
 0x481   : > { %v10773_v52 = vpop.trf.xlu0 }
 0x482   : > { %15532 = vst [vmem:[#allocation65_spill] sm:$0xff] %v10773_v52  ;;  %v10775_v55 = vpop.trf.xlu1 }
 0x485   : > { %v10781_v62 = vpop.trf.xlu0  ;;  %2000 = vxpose.xlu0.b32.start.end [1/1] (short) %v1952_v17, 128 }
 0x486   : > { %15533 = vst [vmem:[#allocation66_spill] sm:$0xff] %v10781_v62  ;;  %v10783_v11 = vpop.trf.xlu1  ;;  %2192 = vxpose.xlu1.b32.start.end [1/1] (short) %v1955_v36, 128 }
 0x489   : > { %v10785_v49 = vpop.trf.xlu0 }
 0x48a   : > { %15534 = vst [vmem:[#allocation67_spill] sm:$0xff] %v10785_v49  ;;  %v10787_v4 = vpop.trf.xlu1 }
 0x48b   : > { %15535 = vst [vmem:[#allocation68_spill] sm:$0xff] %v10787_v4 }
 0x48d   : > { %v10789_v7 = vpop.trf.xlu0 }
 0x48e   : > { %15536 = vst [vmem:[#allocation69_spill] sm:$0xff] %v10789_v7  ;;  %v10791_v52 = vpop.trf.xlu1 }
 0x48f   : > { %15537 = vst [vmem:[#allocation70_spill] sm:$0xff] %v10791_v52 }
 0x491   : > { %v10793_v39 = vpop.trf.xlu0 }
 0x492   : > { %15538 = vst [vmem:[#allocation71_spill] sm:$0xff] %v10793_v39  ;;  %v10795_v1 = vpop.trf.xlu1 }
 0x493   : > { %15539 = vst [vmem:[#allocation72_spill] sm:$0xff] %v10795_v1 }
 0x495   : > { %v10797_v0 = vpop.trf.xlu0 }
 0x496   : > { %15540 = vst [vmem:[#allocation73_spill] sm:$0xff] %v10797_v0  ;;  %v10799_v37 = vpop.trf.xlu1 }
 0x497   : > { %15541 = vst [vmem:[#allocation74_spill] sm:$0xff] %v10799_v37 }
 0x499   : > { %v10801_v17 = vpop.trf.xlu0 }
 0x49a   : > { %15542 = vst [vmem:[#allocation75_spill] sm:$0xff] %v10801_v17  ;;  %v10803_v62 = vpop.trf.xlu1 }
 0x49b   : > { %15543 = vst [vmem:[#allocation76_spill] sm:$0xff] %v10803_v62 }
 0x49d   : > { %v10805_v36 = vpop.trf.xlu0 }
 0x49e   : > { %15544 = vst [vmem:[#allocation77_spill] sm:$0xff] %v10805_v36  ;;  %v10807_v49 = vpop.trf.xlu1 }
 0x49f   : > { %15545 = vst [vmem:[#allocation78_spill] sm:$0xff] %v10807_v49 }
 0x4a1   : > { %v10809_v4 = vpop.trf.xlu0 }
 0x4a2   : > { %15546 = vst [vmem:[#allocation79_spill] sm:$0xff] %v10809_v4  ;;  %v10811_v27 = vpop.trf.xlu1 }
 0x4a3   : > { %15547 = vst [vmem:[#allocation80_spill] sm:$0xff] %v10811_v27 }
 0x4a5   : > { %v10813_v33 = vpop.trf.xlu0 }
 0x4a6   : > { %15548 = vst [vmem:[#allocation81_spill] sm:$0xff] %v10813_v33  ;;  %v10815_v21 = vpop.trf.xlu1 }
 0x4a7   : > { %15549 = vst [vmem:[#allocation82_spill] sm:$0xff] %v10815_v21 }
 0x4a9   : > { %v10817_v44 = vpop.trf.xlu0 }
 0x4aa   : > { %15550 = vst [vmem:[#allocation83_spill] sm:$0xff] %v10817_v44  ;;  %v10819_v28 = vpop.trf.xlu1 }
 0x4ab   : > { %15551 = vst [vmem:[#allocation84_spill] sm:$0xff] %v10819_v28 }
 0x4ad   : > { %v10821_v58 = vpop.trf.xlu0 }
 0x4ae   : > { %15552 = vst [vmem:[#allocation85_spill] sm:$0xff] %v10821_v58  ;;  %v10823_v17 = vpop.trf.xlu1 }
 0x4af   : > { %15553 = vst [vmem:[#allocation86_spill] sm:$0xff] %v10823_v17 }
 0x4b1   : > { %v10825_v62 = vpop.trf.xlu0 }
 0x4b2   : > { %15554 = vst [vmem:[#allocation87_spill] sm:$0xff] %v10825_v62  ;;  %v10827_v36 = vpop.trf.xlu1  ;;  %v1953_v62 = vcombine.high %v10652_v26, %v10652_v26 }
 0x4b3   : > { %15555 = vst [vmem:[#allocation88_spill] sm:$0xff] %v10827_v36 }
 0x4b5   : > { %v10829_v49 = vpop.trf.xlu0 }
 0x4b6   : > { %15556 = vst [vmem:[#allocation89_spill] sm:$0xff] %v10829_v49  ;;  %v10831_v4 = vpop.trf.xlu1 }
 0x4b7   : > { %15557 = vst [vmem:[#allocation90_spill] sm:$0xff] %v10831_v4 }
 0x4b9   : > { %v10833_v27 = vpop.trf.xlu0 }
 0x4ba   : > { %15558 = vst [vmem:[#allocation91_spill] sm:$0xff] %v10833_v27  ;;  %v10835_v33 = vpop.trf.xlu1 }
 0x4bb   : > { %15559 = vst [vmem:[#allocation92_spill] sm:$0xff] %v10835_v33 }
 0x4bd   : > { %v10837_v21 = vpop.trf.xlu0 }
 0x4be   : > { %15560 = vst [vmem:[#allocation93_spill] sm:$0xff] %v10837_v21  ;;  %v10839_v44 = vpop.trf.xlu1 }
 0x4bf   : > { %15561 = vst [vmem:[#allocation94_spill] sm:$0xff] %v10839_v44 }
 0x4c1   : > { %v10841_v28 = vpop.trf.xlu0 }
 0x4c2   : > { %15562 = vst [vmem:[#allocation95_spill] sm:$0xff] %v10841_v28  ;;  %v10843_v58 = vpop.trf.xlu1 }
 0x4c3   : > { %15563 = vst [vmem:[#allocation96_spill] sm:$0xff] %v10843_v58 }
 0x4c5   : > { %v10847_v36 = vpop.trf.xlu0  ;;  %2032 = vxpose.xlu0.b32.start.end [1/1] (short) %v10652_v26, 128 }
 0x4c6   : > { %15564 = vst [vmem:[#allocation97_spill] sm:$0xff] %v10847_v36  ;;  %v10850_v49 = vpop.trf.xlu1  ;;  %2064 = vxpose.xlu1.b32.start.end [1/1] (short) %v1953_v62, 128 }
 0x4c7   : > { %15565 = vst [vmem:[#allocation98_spill] sm:$0xff] %v10850_v49 }
 0x4c9   : > { %v10852_v27 = vpop.trf.xlu0 }
 0x4ca   : > { %15566 = vst [vmem:[#allocation99_spill] sm:$0xff] %v10852_v27  ;;  %v10854_v33 = vpop.trf.xlu1 }
 0x4cb   : > { %15567 = vst [vmem:[#allocation100_spill] sm:$0xff] %v10854_v33 }
 0x4cd   : > { %v2176_v4 = vpop.trf.xlu0 }
 0x4ce   : > { %v10856_v21 = vpop.trf.xlu1  ;;  %v2513_v16 = vcombine.high %v10656_v46, %v2176_v4 }
 0x4cf   : > { %15568 = vst [vmem:[#allocation101_spill] sm:$0xff] %v10856_v21  ;;  %v15583_v21 = vlaneseq }
 0x4d1   : > { %v10858_v28 = vpop.trf.xlu0  ;;  %v10918_v7 = vshrl.u32 %v15583_v21, 7 }
 0x4d2   : > { %v10860_v58 = vpop.trf.xlu1 }
 0x4d3   : > { %15569 = vst [vmem:[#allocation102_spill] sm:$0xff] %v10860_v58 }
 0x4d5   : > { %v10862_v44 = vpop.trf.xlu0 }
 0x4d6   : > { %v10864_v17 = vpop.trf.xlu1 }
 0x4d7   : > { %15570 = vst [vmem:[#allocation103_spill] sm:$0xff] %v10864_v17 }
 0x4d9   : > { %v10866_v36 = vpop.trf.xlu0 }
 0x4da   : > { %v10868_v26 = vpop.trf.xlu1 }
 0x4db   : > { %15571 = vst [vmem:[#allocation104_spill] sm:$0xff] %v10868_v26 }
 0x4dd   : > { %v10870_v62 = vpop.trf.xlu0 }
 0x4de   : > { %v10872_v27 = vpop.trf.xlu1 }
 0x4df   : > { %15572 = vst [vmem:[#allocation105_spill] sm:$0xff] %v10872_v27 }
 0x4e1   : > { %v10874_v33 = vpop.trf.xlu0 }
 0x4e2   : > { %v10876_v49 = vpop.trf.xlu1 }
 0x4e3   : > { %15573 = vst [vmem:[#allocation106_spill] sm:$0xff] %v10876_v49 }
 0x4e5   : > { %v10878_v13 = vpop.trf.xlu0 }
 0x4e6   : > { %v10880_v43 = vpop.trf.xlu1 }
 0x4e7   : > { %15574 = vst [vmem:[#allocation107_spill] sm:$0xff] %v10880_v43 }
 0x4e9   : > { %v10882_v48 = vpop.trf.xlu0 }
 0x4ea   : > { %v10884_v0 = vpop.trf.xlu1 }
 0x4eb   : > { %15575 = vst [vmem:[#allocation108_spill] sm:$0xff] %v10884_v0 }
 0x4ed   : > { %v10886_v17 = vpop.trf.xlu0 }
 0x4ee   : > { %v10888_v37 = vpop.trf.xlu1 }
 0x4ef   : > { %15576 = vst [vmem:[#allocation109_spill] sm:$0xff] %v10888_v37  ;;  %v1957_v37 = vcombine.high %v10654_v51, %v10654_v51 }
 0x4f1   : > { %v10890_v26 = vpop.trf.xlu0 }
 0x4f2   : > { %v10892_v61 = vpop.trf.xlu1 }
 0x4f3   : > { %15577 = vst [vmem:[#allocation110_spill] sm:$0xff] %v10892_v61  ;;  %v9121_v61 = vmov 1983009808  }
 0x4f4   : > { %v2483_v52 = vunpack.c.l.s4 %v9121_v61  ;;  %v2512_v61 = vcombine.low %v10656_v46, %v2176_v4  ;;  %v2784_v4 = vcombine.low %v10660_v12, %v10858_v28 }
 0x4f5   : > { %v10894_v27 = vpop.trf.xlu0 }
 0x4f6   : > { %v10896_v58 = vpop.trf.xlu1 }
 0x4f7   : > { %15578 = vst [vmem:[#allocation111_spill] sm:$0xff] %v10896_v58 }
 0x4f9   : > { %v10898_v49 = vpop.trf.xlu0 }
 0x4fa   : > { %v10900_v39 = vpop.trf.xlu1 }
 0x4fb   : > { %15579 = vst [vmem:[#allocation112_spill] sm:$0xff] %v10900_v39  ;;  %v2484_v39 = vunpack.c.0.s8 %v2483_v52 }
 0x4fd   : > { %v10902_v43 = vpop.trf.xlu0 }
 0x4fe   : > { %v10904_v1 = vpop.trf.xlu1 }
 0x4ff   : > { %15580 = vst [vmem:[#allocation113_spill] sm:$0xff] %v10904_v1 }
 0x501   : > { %v10906_v0 = vpop.trf.xlu0 }
 0x502   : > { %v10908_v14 = vpop.trf.xlu1 }
 0x503   : > { %15581 = vst [vmem:[#allocation114_spill] sm:$0xff] %v10908_v14  ;;  %v10925_v14 = vsub.s32 %v2484_v39, %v10918_v7 }
 0x505   : > { %v10912_v2 = vpop.trf.xlu0  ;;  %2288 = vxpose.xlu0.b32.start.end [1/1] (short) %v10654_v51, 128  ;;  %v10934_v21 = vrot.slane %v2512_v61, %v10925_v14 }
 0x506   : > { %v10915_v58 = vpop.trf.xlu1  ;;  %2320 = vxpose.xlu1.b32.start.end [1/1] (short) %v1957_v37, 128 }
 0x507   : > { %15582 = vst [vmem:[#allocation115_spill] sm:$0xff] %v10915_v58 }
 0x509   : > { %v10920_v1 = vpop.trf.xlu0 }
 0x50a   : > { %15584 = vst [vmem:[#allocation116_spill] sm:$0xff] %v10920_v1  ;;  %v10922_v29 = vpop.trf.xlu1  ;;  %v10937_v1 = vrot.slane %v2513_v16, %v10925_v14  ;;  %v10968_v16 = vrot.slane %v2784_v4, %v10925_v14  ;;  %v3328_v4 = vcombine.low %v10668_v42, %v10866_v36 }
 0x50b   : > { %15585 = vst [vmem:[#allocation117_spill] sm:$0xff] %v10922_v29 }
 0x50d   : > { %v10929_v15 = vpop.trf.xlu0 }
 0x50e   : > { %v2208_v51 = vpop.trf.xlu1 }
 0x50f   : > { %v2528_v37 = vcombine.low %v10723_v5, %v2208_v51  ;;  %v2529_v52 = vcombine.high %v10723_v5, %v2208_v51  ;;  %v2785_v5 = vcombine.high %v10660_v12, %v10858_v28  ;;  %v3056_v12 = vcombine.low %v10664_v56, %v10862_v44 }
 0x510   : > { %v3057_v28 = vcombine.high %v10664_v56, %v10862_v44 }
 0x511   : > { %v10940_v39 = vrot.slane %v2528_v37, %v10925_v14  ;;  %v10943_v29 = vrot.slane %v2529_v52, %v10925_v14  ;;  %v10945_v46 = vpop.trf.xlu0  ;;  %v10971_v37 = vrot.slane %v2785_v5, %v10925_v14 }
 0x512   : > { %v2209_v51 = vpop.trf.xlu1  ;;  %v10993_v5 = vrot.slane %v3057_v28, %v10925_v14  ;;  %v11024_v28 = vrot.slane %v3328_v4, %v10925_v14  ;;  %v3872_v4 = vcombine.low %v10676_v32, %v10874_v33 }
 0x513   : > { %v2800_v58 = vcombine.low %v10727_v34, %v2209_v51  ;;  %v2801_v19 = vcombine.high %v10727_v34, %v2209_v51 }
 0x514   : > { %15587 = vst [vmem:[#allocation119_spill] sm:$0xff] %v10993_v5 }
 0x515   : > { %v10965_v61 = vpop.trf.xlu0  ;;  %v10974_v52 = vrot.slane %v2800_v58, %v10925_v14  ;;  %v10977_v38 = vrot.slane %v2801_v19, %v10925_v14  ;;  %v10990_v19 = vrot.slane %v3056_v12, %v10925_v14  ;;  %v3329_v58 = vcombine.high %v10668_v42, %v10866_v36 }
 0x516   : > { %v2210_v34 = vpop.trf.xlu1  ;;  %v3600_v42 = vcombine.low %v10672_v31, %v10870_v62  ;;  %v3601_v36 = vcombine.high %v10672_v31, %v10870_v62 }
 0x517   : > { %15586 = vst [vmem:[#allocation118_spill] sm:$0xff] %v10977_v38  ;;  %v3072_v51 = vcombine.low %v10731_v20, %v2210_v34  ;;  %v3073_v47 = vcombine.high %v10731_v20, %v2210_v34 }
 0x519   : > { %v10996_v20 = vrot.slane %v3072_v51, %v10925_v14  ;;  %v10999_v34 = vrot.slane %v3073_v47, %v10925_v14  ;;  %v11001_v56 = vpop.trf.xlu0  ;;  %v11027_v51 = vrot.slane %v3329_v58, %v10925_v14  ;;  %v11049_v58 = vrot.slane %v3601_v36, %v10925_v14 }
 0x51a   : > { %15589 = vst [vmem:[#allocation121_spill] sm:$0xff] %v11001_v56  ;;  %v2211_v44 = vpop.trf.xlu1  ;;  %v11080_v36 = vrot.slane %v3872_v4, %v10925_v14  ;;  %v4416_v4 = vcombine.low %v10684_v57, %v10882_v48 }
 0x51b   : > { %15588 = vst [vmem:[#allocation120_spill] sm:$0xff] %v10999_v34  ;;  %v3344_v56 = vcombine.low %v10735_v41, %v2211_v44  ;;  %v3345_v38 = vcombine.high %v10735_v41, %v2211_v44  ;;  %15592 = vst [vmem:[#allocation124_spill] sm:$0xff] %v11049_v58 }
 0x51d   : > { %v11021_v12 = vpop.trf.xlu0  ;;  %v11030_v47 = vrot.slane %v3344_v56, %v10925_v14  ;;  %v11033_v34 = vrot.slane %v3345_v38, %v10925_v14  ;;  %v11046_v38 = vrot.slane %v3600_v42, %v10925_v14  ;;  %v3873_v56 = vcombine.high %v10676_v32, %v10874_v33 }
 0x51e   : > { %v2212_v41 = vpop.trf.xlu1  ;;  %v4144_v32 = vcombine.low %v10680_v54, %v10878_v13  ;;  %v4145_v33 = vcombine.high %v10680_v54, %v10878_v13 }
 0x51f   : > { %15590 = vst [vmem:[#allocation122_spill] sm:$0xff] %v11033_v34  ;;  %v3616_v44 = vcombine.low %v10739_v53, %v2212_v41  ;;  %v3617_v5 = vcombine.high %v10739_v53, %v2212_v41  ;;  %15591 = vst [vmem:[#allocation123_spill] sm:$0xff] %v11046_v38 }
 0x521   : > { %v11052_v53 = vrot.slane %v3616_v44, %v10925_v14  ;;  %v11055_v41 = vrot.slane %v3617_v5, %v10925_v14  ;;  %v11057_v31 = vpop.trf.xlu0  ;;  %v11083_v44 = vrot.slane %v3873_v56, %v10925_v14  ;;  %v11105_v56 = vrot.slane %v4145_v33, %v10925_v14 }
 0x522   : > { %15595 = vst [vmem:[#allocation127_spill] sm:$0xff] %v11057_v31  ;;  %v2213_v62 = vpop.trf.xlu1  ;;  %v11136_v33 = vrot.slane %v4416_v4, %v10925_v14  ;;  %v4960_v4 = vcombine.low %v10692_v6, %v10890_v26 }
 0x523   : > { %15593 = vst [vmem:[#allocation125_spill] sm:$0xff] %v11052_v53  ;;  %15594 = vst [vmem:[#allocation126_spill] sm:$0xff] %v11055_v41  ;;  %v3888_v31 = vcombine.low %v10743_v50, %v2213_v62  ;;  %v3889_v34 = vcombine.high %v10743_v50, %v2213_v62 }
 0x524   : > { %15597 = vst [vmem:[#allocation129_spill] sm:$0xff] %v11105_v56 }
 0x525   : > { %v11077_v42 = vpop.trf.xlu0  ;;  %v11086_v5 = vrot.slane %v3888_v31, %v10925_v14  ;;  %v11089_v41 = vrot.slane %v3889_v34, %v10925_v14  ;;  %v11102_v34 = vrot.slane %v4144_v32, %v10925_v14  ;;  %v4417_v31 = vcombine.high %v10684_v57, %v10882_v48 }
 0x526   : > { %v2214_v50 = vpop.trf.xlu1  ;;  %v4688_v57 = vcombine.low %v10688_v63, %v10886_v17  ;;  %v4689_v48 = vcombine.high %v10688_v63, %v10886_v17 }
 0x527   : > { %15596 = vst [vmem:[#allocation128_spill] sm:$0xff] %v11089_v41  ;;  %v4160_v62 = vcombine.low %v10747_v10, %v2214_v50  ;;  %v4161_v58 = vcombine.high %v10747_v10, %v2214_v50 }
 0x529   : > { %v11108_v10 = vrot.slane %v4160_v62, %v10925_v14  ;;  %v11111_v50 = vrot.slane %v4161_v58, %v10925_v14  ;;  %v11113_v54 = vpop.trf.xlu0  ;;  %v11139_v62 = vrot.slane %v4417_v31, %v10925_v14  ;;  %v11161_v31 = vrot.slane %v4689_v48, %v10925_v14 }
 0x52a   : > { %15599 = vst [vmem:[#allocation131_spill] sm:$0xff] %v11113_v54  ;;  %v2215_v13 = vpop.trf.xlu1  ;;  %v11192_v48 = vrot.slane %v4960_v4, %v10925_v14  ;;  %v5504_v4 = vcombine.low %v10700_v18, %v10898_v49 }
 0x52b   : > { %15598 = vst [vmem:[#allocation130_spill] sm:$0xff] %v11111_v50  ;;  %v4432_v54 = vcombine.low %v10751_v24, %v2215_v13  ;;  %v4433_v41 = vcombine.high %v10751_v24, %v2215_v13  ;;  %15601 = vst [vmem:[#allocation133_spill] sm:$0xff] %v11161_v31 }
 0x52d   : > { %v11133_v32 = vpop.trf.xlu0  ;;  %v11142_v58 = vrot.slane %v4432_v54, %v10925_v14  ;;  %v11145_v50 = vrot.slane %v4433_v41, %v10925_v14  ;;  %v11158_v41 = vrot.slane %v4688_v57, %v10925_v14  ;;  %v4961_v54 = vcombine.high %v10692_v6, %v10890_v26 }
 0x52e   : > { %15600 = vst [vmem:[#allocation132_spill] sm:$0xff] %v11133_v32  ;;  %v2216_v24 = vpop.trf.xlu1  ;;  %v5232_v6 = vcombine.low %v10696_v60, %v10894_v27  ;;  %v5233_v26 = vcombine.high %v10696_v60, %v10894_v27 }
 0x52f   : > { %v4704_v13 = vcombine.low %v10755_v59, %v2216_v24  ;;  %v4705_v56 = vcombine.high %v10755_v59, %v2216_v24 }
 0x531   : > { %v11164_v59 = vrot.slane %v4704_v13, %v10925_v14  ;;  %v11167_v24 = vrot.slane %v4705_v56, %v10925_v14  ;;  %v11169_v63 = vpop.trf.xlu0  ;;  %v11195_v13 = vrot.slane %v4961_v54, %v10925_v14  ;;  %v11217_v54 = vrot.slane %v5233_v26, %v10925_v14 }
 0x532   : > { %15603 = vst [vmem:[#allocation135_spill] sm:$0xff] %v11169_v63  ;;  %v2217_v17 = vpop.trf.xlu1  ;;  %v11248_v26 = vrot.slane %v5504_v4, %v10925_v14  ;;  %v6048_v4 = vcombine.low %v10708_v22, %v10906_v0 }
 0x533   : > { %15602 = vst [vmem:[#allocation134_spill] sm:$0xff] %v11167_v24  ;;  %v4976_v63 = vcombine.low %v10759_v8, %v2217_v17  ;;  %v4977_v32 = vcombine.high %v10759_v8, %v2217_v17  ;;  %15605 = vst [vmem:[#allocation137_spill] sm:$0xff] %v11195_v13 }
 0x534   : > { %15608 = vst [vmem:[#allocation140_spill] sm:$0xff] %v11217_v54  ;;  %15613 = vst [vmem:[#allocation145_spill] sm:$0xff] %v11248_v26 }
 0x535   : > { %v11189_v57 = vpop.trf.xlu0  ;;  %v11198_v56 = vrot.slane %v4976_v63, %v10925_v14  ;;  %v11201_v24 = vrot.slane %v4977_v32, %v10925_v14  ;;  %v11214_v32 = vrot.slane %v5232_v6, %v10925_v14  ;;  %v5505_v63 = vcombine.high %v10700_v18, %v10898_v49 }
 0x536   : > { %15604 = vst [vmem:[#allocation136_spill] sm:$0xff] %v11189_v57  ;;  %v2218_v8 = vpop.trf.xlu1  ;;  %v5776_v18 = vcombine.low %v10704_v30, %v10902_v43  ;;  %v5777_v49 = vcombine.high %v10704_v30, %v10902_v43 }
 0x537   : > { %15606 = vst [vmem:[#allocation138_spill] sm:$0xff] %v11201_v24  ;;  %v5248_v17 = vcombine.low %v10763_v35, %v2218_v8  ;;  %v5249_v31 = vcombine.high %v10763_v35, %v2218_v8  ;;  %15607 = vst [vmem:[#allocation139_spill] sm:$0xff] %v11214_v32 }
 0x539   : > { %v11220_v35 = vrot.slane %v5248_v17, %v10925_v14  ;;  %v11223_v8 = vrot.slane %v5249_v31, %v10925_v14  ;;  %v11225_v60 = vpop.trf.xlu0  ;;  %v11251_v17 = vrot.slane %v5505_v63, %v10925_v14  ;;  %v11273_v63 = vrot.slane %v5777_v49, %v10925_v14 }
 0x53a   : > { %15611 = vst [vmem:[#allocation143_spill] sm:$0xff] %v11225_v60  ;;  %v2219_v27 = vpop.trf.xlu1 }
 0x53b   : > { %15609 = vst [vmem:[#allocation141_spill] sm:$0xff] %v11220_v35  ;;  %15610 = vst [vmem:[#allocation142_spill] sm:$0xff] %v11223_v8  ;;  %v5520_v60 = vcombine.low %v10767_v40, %v2219_v27  ;;  %v5521_v57 = vcombine.high %v10767_v40, %v2219_v27 }
 0x53c   : > { %15614 = vst [vmem:[#allocation146_spill] sm:$0xff] %v11251_v17  ;;  %15618 = vst [vmem:[#allocation150_spill] sm:$0xff] %v11273_v63  ;;  %v9122_v63 = vmov 1934713408  }
 0x53d   : > { %v11245_v6 = vpop.trf.xlu0  ;;  %v11254_v31 = vrot.slane %v5520_v60, %v10925_v14  ;;  %v11257_v8 = vrot.slane %v5521_v57, %v10925_v14  ;;  %v11270_v57 = vrot.slane %v5776_v18, %v10925_v14  ;;  %v6049_v60 = vcombine.high %v10708_v22, %v10906_v0 }
 0x53e   : > { %15612 = vst [vmem:[#allocation144_spill] sm:$0xff] %v11245_v6  ;;  %v2220_v40 = vpop.trf.xlu1  ;;  %v6320_v0 = vcombine.low %v10712_v3, %v10912_v2  ;;  %v6321_v18 = vcombine.high %v10712_v3, %v10912_v2  ;;  %v2547_v3 = vunpack.c.l.s4 %v9122_v63 }
 0x53f   : > { %15615 = vst [vmem:[#allocation147_spill] sm:$0xff] %v11254_v31  ;;  %15616 = vst [vmem:[#allocation148_spill] sm:$0xff] %v11257_v8  ;;  %v5792_v27 = vcombine.low %v10771_v23, %v2220_v40  ;;  %v5793_v54 = vcombine.high %v10771_v23, %v2220_v40 }
 0x540   : > { %15617 = vst [vmem:[#allocation149_spill] sm:$0xff] %v11270_v57  ;;  %v11332_v63 = vrot.slane %v6321_v18, %v10925_v14 }
 0x541   : > { %v11276_v23 = vrot.slane %v5792_v27, %v10925_v14  ;;  %v11279_v40 = vrot.slane %v5793_v54, %v10925_v14  ;;  %v11281_v43 = vpop.trf.xlu0  ;;  %v11307_v27 = vrot.slane %v6048_v4, %v10925_v14  ;;  %v11310_v54 = vrot.slane %v6049_v60, %v10925_v14 }
 0x542   : > { %15621 = vst [vmem:[#allocation153_spill] sm:$0xff] %v11281_v43  ;;  %v2221_v30 = vpop.trf.xlu1  ;;  %v1959_v43 = vcombine.high %v10650_v45, %v10650_v45  ;;  %15628 = vst [vmem:[#allocation160_spill] sm:$0xff] %v11332_v63 }
 0x543   : > { %15619 = vst [vmem:[#allocation151_spill] sm:$0xff] %v11276_v23  ;;  %15620 = vst [vmem:[#allocation152_spill] sm:$0xff] %v11279_v40  ;;  %v6064_v6 = vcombine.low %v10775_v55, %v2221_v30  ;;  %v6065_v22 = vcombine.high %v10775_v55, %v2221_v30 }
 0x544   : > { %15623 = vst [vmem:[#allocation155_spill] sm:$0xff] %v11307_v27  ;;  %15624 = vst [vmem:[#allocation156_spill] sm:$0xff] %v11310_v54 }
 0x545   : > { %v11303_v49 = vpop.trf.xlu0  ;;  %2416 = vxpose.xlu0.b32.start.end [1/1] (short) %v10650_v45, 128  ;;  %v11313_v40 = vrot.slane %v6064_v6, %v10925_v14  ;;  %v11316_v55 = vrot.slane %v6065_v22, %v10925_v14  ;;  %v2548_v22 = vunpack.c.0.s8 %v2547_v3 }
 0x546   : > { %15622 = vst [vmem:[#allocation154_spill] sm:$0xff] %v11303_v49  ;;  %v2222_v30 = vpop.trf.xlu1  ;;  %2448 = vxpose.xlu1.b32.start.end [1/1] (short) %v1959_v43, 128  ;;  %v11329_v43 = vrot.slane %v6320_v0, %v10925_v14 }
 0x547   : > { %15625 = vst [vmem:[#allocation157_spill] sm:$0xff] %v11313_v40  ;;  %15626 = vst [vmem:[#allocation158_spill] sm:$0xff] %v11316_v55  ;;  %v6336_v2 = vcombine.low %v10783_v11, %v2222_v30  ;;  %v6337_v45 = vcombine.high %v10783_v11, %v2222_v30  ;;  %v11357_v54 = vsub.s32 %v2548_v22, %v10918_v7 }
 0x548   : > { %15627 = vst [vmem:[#allocation159_spill] sm:$0xff] %v11329_v43 }
 0x549   : > { %v11335_v11 = vrot.slane %v6336_v2, %v10925_v14  ;;  %v11338_v30 = vrot.slane %v6337_v45, %v10925_v14  ;;  %v11340_v4 = vpop.trf.xlu0 }
 0x54a   : > { %15631 = vst [vmem:[#allocation163_spill] sm:$0xff] %v11340_v4  ;;  %v11342_v60 = vpop.trf.xlu1 }
 0x54b   : > { %15629 = vst [vmem:[#allocation161_spill] sm:$0xff] %v11335_v11  ;;  %15630 = vst [vmem:[#allocation162_spill] sm:$0xff] %v11338_v30 }
 0x54c   : > { %15632 = vst [vmem:[#allocation164_spill] sm:$0xff] %v11342_v60 }
 0x54d   : > { %v2048_v49 = vpop.trf.xlu0 }
 0x54e   : > { %v2480_v45 = vcombine.low %v10658_v9, %v2048_v49  ;;  %v2481_v4 = vcombine.high %v10658_v9, %v2048_v49  ;;  %v2080_v55 = vpop.trf.xlu1 }
 0x54f   : > { %v2496_v60 = vcombine.low %v10929_v15, %v2080_v55  ;;  %v2497_v6 = vcombine.high %v10929_v15, %v2080_v55  ;;  %v15633_v15 = vcombine.low %v10934_v21, %v10940_v39  ;;  %v15635_v55 = vcombine.high %v10934_v21, %v10940_v39 }
 0x550   : > { %v2488_v0 = vrot.slane %v2480_v45, %v10925_v14  ;;  %v2495_v18 = vrot.slane %v2481_v4, %v10925_v14 }
 0x551   : > { %v2504_v2 = vrot.slane %v2496_v60, %v10925_v14  ;;  %v2511_v3 = vrot.slane %v2497_v6, %v10925_v14  ;;  %v2049_v30 = vpop.trf.xlu0  ;;  %v11368_v7 = vrot.slane %v15633_v15, %v11357_v54  ;;  %v11374_v4 = vrot.slane %v15635_v55, %v11357_v54 }
 0x552   : > { %v2752_v63 = vcombine.low %v10662_v25, %v2049_v30  ;;  %v2081_v9 = vpop.trf.xlu1  ;;  %v2753_v15 = vcombine.high %v10662_v25, %v2049_v30 }
 0x553   : > { %v2544_v49 = vcombine.low %v2488_v0, %v2504_v2  ;;  %v2545_v11 = vcombine.high %v2488_v0, %v2504_v2  ;;  %v2560_v43 = vcombine.low %v2495_v18, %v2511_v3  ;;  %15634 = vst [vmem:[#allocation165_spill] sm:$0xff] %v11368_v7  ;;  %v2768_v60 = vcombine.low %v10945_v46, %v2081_v9 }
 0x554   : > { %v2561_v6 = vcombine.high %v2495_v18, %v2511_v3  ;;  %v2760_v22 = vrot.slane %v2752_v63, %v10925_v14  ;;  %v2769_v40 = vcombine.high %v10945_v46, %v2081_v9 }
 0x555   : > { %v2050_v45 = vpop.trf.xlu0  ;;  %v11379_v0 = vrot.slane %v2544_v49, %v11357_v54  ;;  %v11382_v2 = vrot.slane %v2545_v11, %v11357_v54  ;;  %v2776_v21 = vrot.slane %v2768_v60, %v10925_v14  ;;  %v11388_v55 = vrot.slane %v2560_v43, %v11357_v54 }
 0x556   : > { %v2082_v39 = vpop.trf.xlu1  ;;  %v15637_v11 = vcombine.low %v10937_v1, %v10943_v29  ;;  %v11403_v30 = vrot.slane %v2561_v6, %v11357_v54  ;;  %v2767_v43 = vrot.slane %v2753_v15, %v10925_v14  ;;  %v2783_v9 = vrot.slane %v2769_v40, %v10925_v14  ;;  %v15640_v40 = vld [vmem:[#allocation37_spill] sm:$0xff] }
 0x557   : > { %15636 = vst [vmem:[#allocation166_spill] sm:$0xff] %v11379_v0  ;;  %v2816_v25 = vcombine.low %v2760_v22, %v2776_v21  ;;  %v15639_v6 = vcombine.low %v10968_v16, %v10974_v52  ;;  %v3024_v27 = vcombine.low %v15640_v40, %v2050_v45  ;;  %v3040_v23 = vcombine.low %v10965_v61, %v2082_v39 }
 0x558   : > { %v11398_v3 = vrot.slane %v15637_v11, %v11357_v54  ;;  %v15638_v11 = vcombine.high %v10937_v1, %v10943_v29  ;;  %v2832_v57 = vcombine.low %v2767_v43, %v2783_v9  ;;  %v2833_v35 = vcombine.high %v2767_v43, %v2783_v9 }
 0x559   : > { %v11400_v46 = vpop.trf.xlu0  ;;  %v11423_v15 = vrot.slane %v15639_v6, %v11357_v54  ;;  %v2817_v6 = vcombine.high %v2760_v22, %v2776_v21  ;;  %v3032_v18 = vrot.slane %v3024_v27, %v10925_v14  ;;  %v3048_v29 = vrot.slane %v3040_v23, %v10925_v14  ;;  %v15644_v27 = vld [vmem:[#allocation118_spill] sm:$0xff] }
 0x55a   : > { %v11407_v49 = vpop.trf.xlu1  ;;  %v11417_v63 = vrot.slane %v15638_v11, %v11357_v54  ;;  %v11436_v11 = vrot.slane %v2816_v25, %v11357_v54  ;;  %v11454_v22 = vrot.slane %v2832_v57, %v11357_v54  ;;  %v15642_v21 = vcombine.high %v10968_v16, %v10974_v52 }
 0x55b   : > { %v11451_v25 = vrot.slane %v2817_v6, %v11357_v54  ;;  %v15645_v23 = vcombine.low %v10971_v37, %v15644_v27  ;;  %v3088_v32 = vcombine.low %v3032_v18, %v3048_v29  ;;  %v11483_v9 = vrot.slane %v2833_v35, %v11357_v54 }
 0x55c   : > { %15641 = vst [vmem:[#allocation37_spill] sm:$0xff] %v11454_v22  ;;  %v11460_v17 = vrot.slane %v15642_v21, %v11357_v54  ;;  %v3025_v21 = vcombine.high %v15640_v40, %v2050_v45  ;;  %v15648_v57 = vcombine.high %v10971_v37, %v15644_v27  ;;  %v3089_v13 = vcombine.high %v3032_v18, %v3048_v29  ;;  %v15654_v27 = vld [vmem:[#allocation121_spill] sm:$0xff] }
 0x55d   : > { %v11427_v60 = vpop.trf.xlu0  ;;  %v11466_v31 = vrot.slane %v15645_v23, %v11357_v54  ;;  %v3041_v23 = vcombine.high %v10965_v61, %v2082_v39  ;;  %15647 = vst [vmem:[#allocation168_spill] sm:$0xff] %v11483_v9  ;;  %v11494_v52 = vrot.slane %v3088_v32, %v11357_v54  ;;  %v15651_v18 = vcombine.low %v10990_v19, %v10996_v20  ;;  %v15653_v32 = vld [vmem:[#allocation38_spill] sm:$0xff] }
 0x55e   : > { %v11438_v8 = vpop.trf.xlu1  ;;  %15643 = vst [vmem:[#allocation167_spill] sm:$0xff] %v11460_v17  ;;  %v11489_v6 = vrot.slane %v15648_v57, %v11357_v54  ;;  %v3039_v45 = vrot.slane %v3025_v21, %v10925_v14  ;;  %v3296_v29 = vcombine.low %v15653_v32, %v11400_v46  ;;  %v3312_v57 = vcombine.low %v15654_v27, %v11407_v49 }
 0x55f   : > { %15646 = vst [vmem:[#allocation118_spill] sm:$0xff] %v11466_v31  ;;  %15650 = vst [vmem:[#allocation170_spill] sm:$0xff] %v11494_v52  ;;  %v3055_v61 = vrot.slane %v3041_v23, %v10925_v14  ;;  %v11508_v40 = vrot.slane %v15651_v18, %v11357_v54  ;;  %v15655_v21 = vcombine.high %v10990_v19, %v10996_v20 }
 0x560   : > { %15649 = vst [vmem:[#allocation169_spill] sm:$0xff] %v11489_v6  ;;  %v11529_v9 = vrot.slane %v3089_v13, %v11357_v54  ;;  %v3304_v19 = vrot.slane %v3296_v29, %v10925_v14  ;;  %v3320_v20 = vrot.slane %v3312_v57, %v10925_v14  ;;  %v3297_v6 = vcombine.high %v15653_v32, %v11400_v46  ;;  %v15660_v57 = vld [vmem:[#allocation119_spill] sm:$0xff] }
 0x561   : > { %v11446_v26 = vpop.trf.xlu0  ;;  %15652 = vst [vmem:[#allocation171_spill] sm:$0xff] %v11508_v40  ;;  %v11518_v23 = vrot.slane %v15655_v21, %v11357_v54  ;;  %v3104_v31 = vcombine.low %v3039_v45, %v3055_v61  ;;  %v3105_v22 = vcombine.high %v3039_v45, %v3055_v61  ;;  %v3313_v13 = vcombine.high %v15654_v27, %v11407_v49  ;;  %v15661_v21 = vld [vmem:[#allocation120_spill] sm:$0xff] }
 0x562   : > { %v11448_v1 = vpop.trf.xlu1  ;;  %15657 = vst [vmem:[#allocation121_spill] sm:$0xff] %v11529_v9  ;;  %v15662_v18 = vcombine.low %v15660_v57, %v15661_v21  ;;  %v15664_v46 = vcombine.high %v15660_v57, %v15661_v21  ;;  %v3360_v32 = vcombine.low %v3304_v19, %v3320_v20  ;;  %v3311_v27 = vrot.slane %v3297_v6, %v10925_v14 }
 0x563   : > { %15656 = vst [vmem:[#allocation38_spill] sm:$0xff] %v11518_v23  ;;  %v11548_v61 = vrot.slane %v3104_v31, %v11357_v54  ;;  %v11551_v29 = vrot.slane %v3105_v22, %v11357_v54  ;;  %v3327_v31 = vrot.slane %v3313_v13, %v10925_v14  ;;  %v3361_v9 = vcombine.high %v3304_v19, %v3320_v20  ;;  %v15669_v13 = vld [vmem:[#allocation39_spill] sm:$0xff] }
 0x564   : > { %v11557_v23 = vrot.slane %v15662_v18, %v11357_v54  ;;  %v11563_v49 = vrot.slane %v15664_v46, %v11357_v54  ;;  %v11580_v6 = vrot.slane %v3360_v32, %v11357_v54  ;;  %v15667_v19 = vcombine.low %v11024_v28, %v11030_v47 }
 0x565   : > { %v11468_v24 = vpop.trf.xlu0  ;;  %15658 = vst [vmem:[#allocation172_spill] sm:$0xff] %v11548_v61  ;;  %15659 = vst [vmem:[#allocation173_spill] sm:$0xff] %v11551_v29  ;;  %v3568_v46 = vcombine.low %v15669_v13, %v11427_v60  ;;  %v3376_v18 = vcombine.low %v3311_v27, %v3327_v31  ;;  %v3569_v52 = vcombine.high %v15669_v13, %v11427_v60 }
 0x566   : > { %v11480_v43 = vpop.trf.xlu1  ;;  %15663 = vst [vmem:[#allocation119_spill] sm:$0xff] %v11557_v23  ;;  %15665 = vst [vmem:[#allocation120_spill] sm:$0xff] %v11563_v49  ;;  %v11586_v20 = vrot.slane %v15667_v19, %v11357_v54  ;;  %v3584_v21 = vcombine.low %v11021_v12, %v11438_v8  ;;  %v11597_v32 = vrot.slane %v3361_v9, %v11357_v54  ;;  %v15673_v9 = vld [vmem:[#allocation122_spill] sm:$0xff] }
 0x567   : > { %15666 = vst [vmem:[#allocation174_spill] sm:$0xff] %v11580_v6  ;;  %v3377_v49 = vcombine.high %v3311_v27, %v3327_v31  ;;  %v3585_v19 = vcombine.high %v11021_v12, %v11438_v8  ;;  %v15671_v13 = vcombine.high %v11024_v28, %v11030_v47  ;;  %v15674_v27 = vcombine.low %v11027_v51, %v15673_v9 }
 0x568   : > { %15668 = vst [vmem:[#allocation175_spill] sm:$0xff] %v11586_v20  ;;  %15670 = vst [vmem:[#allocation39_spill] sm:$0xff] %v11597_v32  ;;  %v11620_v12 = vrot.slane %v3568_v46, %v10925_v14  ;;  %v11623_v8 = vrot.slane %v3584_v21, %v10925_v14  ;;  %v11632_v47 = vrot.slane %v3376_v18, %v11357_v54 }
 0x569   : > { %v11491_v16 = vpop.trf.xlu0  ;;  %v11611_v61 = vrot.slane %v15671_v13, %v11357_v54  ;;  %v11617_v31 = vrot.slane %v15674_v27, %v11357_v54  ;;  %v3583_v13 = vrot.slane %v3569_v52, %v10925_v14  ;;  %v3599_v27 = vrot.slane %v3585_v19, %v10925_v14  ;;  %v15683_v19 = vld [vmem:[#allocation40_spill] sm:$0xff] }
 0x56a   : > { %v11498_v39 = vpop.trf.xlu1  ;;  %15676 = vst [vmem:[#allocation177_spill] sm:$0xff] %v11620_v12  ;;  %15677 = vst [vmem:[#allocation178_spill] sm:$0xff] %v11623_v8  ;;  %v11639_v21 = vrot.slane %v3377_v49, %v11357_v54  ;;  %v15681_v18 = vcombine.high %v11027_v51, %v15673_v9  ;;  %v3633_v52 = vcombine.high %v11620_v12, %v11623_v8  ;;  %v15684_v49 = vld [vmem:[#allocation127_spill] sm:$0xff] }
 0x56b   : > { %15672 = vst [vmem:[#allocation176_spill] sm:$0xff] %v11611_v61  ;;  %15675 = vst [vmem:[#allocation122_spill] sm:$0xff] %v11617_v31  ;;  %v3840_v61 = vcombine.low %v15683_v19, %v11446_v26  ;;  %v3856_v32 = vcombine.low %v15684_v49, %v11448_v1  ;;  %v3648_v20 = vcombine.low %v3583_v13, %v3599_v27 }
 0x56c   : > { %15678 = vst [vmem:[#allocation179_spill] sm:$0xff] %v11632_v47  ;;  %15680 = vst [vmem:[#allocation181_spill] sm:$0xff] %v11639_v21  ;;  %v11649_v28 = vrot.slane %v15681_v18, %v11357_v54  ;;  %v15687_v9 = vcombine.high %v11046_v38, %v11052_v53  ;;  %v3649_v12 = vcombine.high %v3583_v13, %v3599_v27  ;;  %v15694_v13 = vld [vmem:[#allocation126_spill] sm:$0xff] }
 0x56d   : > { %v11520_v35 = vpop.trf.xlu0  ;;  %v3848_v8 = vrot.slane %v3840_v61, %v10925_v14  ;;  %v3864_v31 = vrot.slane %v3856_v32, %v10925_v14  ;;  %v11681_v51 = vrot.slane %v3648_v20, %v11357_v54 }
 0x56e   : > { %v11531_v17 = vpop.trf.xlu1  ;;  %15682 = vst [vmem:[#allocation182_spill] sm:$0xff] %v11649_v28  ;;  %v11669_v18 = vrot.slane %v15687_v9, %v11357_v54  ;;  %v15693_v9 = vld [vmem:[#allocation124_spill] sm:$0xff] }
 0x56f   : > { %15692 = vst [vmem:[#allocation187_spill] sm:$0xff] %v11681_v51  ;;  %v15695_v27 = vcombine.low %v15693_v9, %v15694_v13  ;;  %v3904_v32 = vcombine.low %v3848_v8, %v3864_v31 }
 0x570   : > { %15688 = vst [vmem:[#allocation183_spill] sm:$0xff] %v11669_v18 }
 0x571   : > { %v11543_v37 = vpop.trf.xlu0  ;;  %v11689_v61 = vrot.slane %v15695_v27, %v11357_v54 }
 0x572   : > { %v11545_v45 = vpop.trf.xlu1 }
 0x573   : > { %15696 = vst [vmem:[#allocation124_spill] sm:$0xff] %v11689_v61 }
 0x575   : > { %v11567_v22 = vpop.trf.xlu0 }
 0x576   : > { %v11577_v57 = vpop.trf.xlu1 }
 0x579   : > { %v11594_v40 = vpop.trf.xlu0 }
 0x57a   : > { %v11601_v29 = vpop.trf.xlu1 }
 0x57d   : > { %v11625_v23 = vpop.trf.xlu0 }
 0x57e   : > { %v11636_v46 = vpop.trf.xlu1 }
 0x57f   : > { %15679 = vst [vmem:[#allocation180_spill] sm:$0xff] %v11636_v46 }
 0x581   : > { %v11657_v6 = vpop.trf.xlu0 }
 0x582   : > { %15685 = vst [vmem:[#allocation40_spill] sm:$0xff] %v11657_v6  ;;  %v11659_v46 = vpop.trf.xlu1 }
 0x583   : > { %15686 = vst [vmem:[#allocation127_spill] sm:$0xff] %v11659_v46  ;;  %v11676_v46 = vrot.slane %v3633_v52, %v11357_v54  ;;  %v11694_v52 = vrot.slane %v3649_v12, %v11357_v54 }
 0x585   : > { %v11673_v47 = vpop.trf.xlu0  ;;  %15690 = vst [vmem:[#allocation185_spill] sm:$0xff] %v11676_v46  ;;  %15698 = vst [vmem:[#allocation188_spill] sm:$0xff] %v11694_v52 }
 0x586   : > { %15689 = vst [vmem:[#allocation184_spill] sm:$0xff] %v11673_v47  ;;  %v11678_v60 = vpop.trf.xlu1 }
 0x587   : > { %15691 = vst [vmem:[#allocation186_spill] sm:$0xff] %v11678_v60  ;;  %v15700_v60 = vcombine.high %v15693_v9, %v15694_v13  ;;  %v3905_v13 = vcombine.high %v3848_v8, %v3864_v31 }
 0x589   : > { %v11691_v38 = vpop.trf.xlu0  ;;  %v11706_v27 = vrot.slane %v15700_v60, %v11357_v54  ;;  %v11723_v60 = vrot.slane %v3904_v32, %v11357_v54  ;;  %v11736_v53 = vrot.slane %v3905_v13, %v11357_v54  ;;  %v15706_v32 = vcombine.high %v11080_v36, %v11086_v5 }
 0x58a   : > { %15697 = vst [vmem:[#allocation126_spill] sm:$0xff] %v11691_v38  ;;  %v11696_v47 = vpop.trf.xlu1  ;;  %v15702_v38 = vcombine.low %v11080_v36, %v11086_v5  ;;  %v3857_v36 = vcombine.high %v15684_v49, %v11448_v1 }
 0x58b   : > { %15699 = vst [vmem:[#allocation189_spill] sm:$0xff] %v11696_v47  ;;  %15701 = vst [vmem:[#allocation190_spill] sm:$0xff] %v11706_v27  ;;  %v11742_v47 = vrot.slane %v15706_v32, %v11357_v54 }
 0x58c   : > { %v11712_v12 = vrot.slane %v15702_v38, %v11357_v54  ;;  %15704 = vst [vmem:[#allocation192_spill] sm:$0xff] %v11723_v60  ;;  %15705 = vst [vmem:[#allocation193_spill] sm:$0xff] %v11736_v53  ;;  %v3841_v60 = vcombine.high %v15683_v19, %v11446_v26  ;;  %v3871_v18 = vrot.slane %v3857_v36, %v10925_v14  ;;  %v15714_v26 = vld [vmem:[#allocation41_spill] sm:$0xff] }
 0x58d   : > { %v11714_v28 = vpop.trf.xlu0  ;;  %15707 = vst [vmem:[#allocation194_spill] sm:$0xff] %v11742_v47  ;;  %v4112_v1 = vcombine.low %v15714_v26, %v11468_v24  ;;  %v4128_v19 = vcombine.low %v11077_v42, %v11480_v43  ;;  %v15717_v36 = vcombine.high %v11379_v0, %v11368_v7 }
 0x58e   : > { %15703 = vst [vmem:[#allocation191_spill] sm:$0xff] %v11712_v12  ;;  %v11725_v9 = vpop.trf.xlu1  ;;  %v3855_v27 = vrot.slane %v3841_v60, %v10925_v14 }
 0x590   : > { %v3920_v47 = vcombine.low %v3855_v27, %v3871_v18 }
 0x591   : > { %v11731_v46 = vpop.trf.xlu0 }
 0x592   : > { %v11733_v20 = vpop.trf.xlu1  ;;  %v11781_v60 = vrot.slane %v3920_v47, %v11357_v54  ;;  %v4136_v47 = vrot.slane %v4128_v19, %v10925_v14 }
 0x594   : > { %15716 = vst [vmem:[#allocation201_spill] sm:$0xff] %v11781_v60 }
 0x595   : > { %v11744_v31 = vpop.trf.xlu0 }
 0x596   : > { %v11746_v8 = vpop.trf.xlu1 }
 0x599   : > { %v11752_v12 = vpop.trf.xlu0 }
 0x59a   : > { %v11754_v13 = vpop.trf.xlu1 }
 0x59d   : > { %v11760_v5 = vpop.trf.xlu0 }
 0x59e   : > { %15708 = vst [vmem:[#allocation195_spill] sm:$0xff] %v11760_v5  ;;  %v11762_v32 = vpop.trf.xlu1 }
 0x59f   : > { %15709 = vst [vmem:[#allocation196_spill] sm:$0xff] %v11762_v32 }
 0x5a1   : > { %v11766_v52 = vpop.trf.xlu0 }
 0x5a2   : > { %15710 = vst [vmem:[#allocation197_spill] sm:$0xff] %v11766_v52  ;;  %v11768_v38 = vpop.trf.xlu1  ;;  %v3921_v52 = vcombine.high %v3855_v27, %v3871_v18  ;;  %v4113_v27 = vcombine.high %v15714_v26, %v11468_v24 }
 0x5a3   : > { %15711 = vst [vmem:[#allocation198_spill] sm:$0xff] %v11768_v38 }
 0x5a4   : > { %v11806_v0 = vrot.slane %v3921_v52, %v11357_v54  ;;  %v4127_v24 = vrot.slane %v4113_v27, %v10925_v14 }
 0x5a5   : > { %v11770_v53 = vpop.trf.xlu0 }
 0x5a6   : > { %15712 = vst [vmem:[#allocation199_spill] sm:$0xff] %v11770_v53  ;;  %v11772_v61 = vpop.trf.xlu1  ;;  %15724 = vst [vmem:[#allocation205_spill] sm:$0xff] %v11806_v0 }
 0x5a7   : > { %15713 = vst [vmem:[#allocation200_spill] sm:$0xff] %v11772_v61  ;;  %v15719_v61 = vld [vmem:[#allocation128_spill] sm:$0xff] }
 0x5a8   : > { %v15720_v51 = vcombine.low %v11083_v44, %v15719_v61 }
 0x5a9   : > { %v11778_v49 = vpop.trf.xlu0 }
 0x5aa   : > { %15715 = vst [vmem:[#allocation41_spill] sm:$0xff] %v11778_v49  ;;  %6834 = vrot.lane.b32.xlu0 %v15717_v36, %s15389_s15  ;;  %v11787_v53 = vpop.trf.xlu1  ;;  %v11793_v38 = vrot.slane %v15720_v51, %v11357_v54  ;;  %v4120_v49 = vrot.slane %v4112_v1, %v10925_v14  ;;  %v15725_v51 = vcombine.high %v11083_v44, %v15719_v61 }
 0x5ab   : > { %15718 = vst [vmem:[#allocation202_spill] sm:$0xff] %v11787_v53  ;;  %v4129_v1 = vcombine.high %v11077_v42, %v11480_v43  ;;  %v15729_v44 = vcombine.low %v11102_v34, %v11108_v10 }
 0x5ac   : > { %15721 = vst [vmem:[#allocation128_spill] sm:$0xff] %v11793_v38  ;;  %v11812_v18 = vrot.slane %v15725_v51, %v11357_v54  ;;  %v4176_v19 = vcombine.low %v4120_v49, %v4136_v47  ;;  %v4177_v53 = vcombine.high %v4120_v49, %v4136_v47 }
 0x5ad   : > { %v11797_v21 = vpop.trf.xlu0  ;;  %v11828_v61 = vrot.slane %v15729_v44, %v11357_v54  ;;  %v4143_v26 = vrot.slane %v4129_v1, %v10925_v14  ;;  %v15735_v1 = vcombine.high %v11102_v34, %v11108_v10  ;;  %v15742_v34 = vld [vmem:[#allocation130_spill] sm:$0xff] }
 0x5ae   : > { %15722 = vst [vmem:[#allocation203_spill] sm:$0xff] %v11797_v21  ;;  %v11801_v7 = vpop.trf.xlu1  ;;  %15726 = vst [vmem:[#allocation206_spill] sm:$0xff] %v11812_v18  ;;  %v11837_v49 = vrot.slane %v4176_v19, %v11357_v54  ;;  %v11842_v51 = vrot.slane %v4177_v53, %v11357_v54  ;;  %v15737_v19 = vld [vmem:[#allocation42_spill] sm:$0xff] }
 0x5af   : > { %15723 = vst [vmem:[#allocation204_spill] sm:$0xff] %v11801_v7  ;;  %15730 = vst [vmem:[#allocation209_spill] sm:$0xff] %v11828_v61  ;;  %v11852_v52 = vrot.slane %v15735_v1, %v11357_v54  ;;  %v4192_v43 = vcombine.low %v4127_v24, %v4143_v26  ;;  %v15741_v61 = vld [vmem:[#allocation129_spill] sm:$0xff] }
 0x5b0   : > { %15732 = vst [vmem:[#allocation211_spill] sm:$0xff] %v11837_v49  ;;  %15734 = vst [vmem:[#allocation213_spill] sm:$0xff] %v11842_v51  ;;  %v15743_v10 = vcombine.low %v15741_v61, %v15742_v34 }
 0x5b1   : > { %v11818_v6 = vpop.trf.xlu0  ;;  %15736 = vst [vmem:[#allocation214_spill] sm:$0xff] %v11852_v52  ;;  %v4385_v52 = vcombine.high %v15737_v19, %v11491_v16 }
 0x5b2   : > { %15727 = vst [vmem:[#allocation207_spill] sm:$0xff] %v11818_v6  ;;  %v11820_v36 = vpop.trf.xlu1  ;;  %v4193_v6 = vcombine.high %v4127_v24, %v4143_v26  ;;  %v11868_v1 = vrot.slane %v15743_v10, %v11357_v54  ;;  %v11877_v26 = vrot.slane %v4192_v43, %v11357_v54 }
 0x5b3   : > { %15728 = vst [vmem:[#allocation208_spill] sm:$0xff] %v11820_v36 }
 0x5b4   : > { %15744 = vst [vmem:[#allocation129_spill] sm:$0xff] %v11868_v1  ;;  %15746 = vst [vmem:[#allocation215_spill] sm:$0xff] %v11877_v26  ;;  %v11882_v27 = vrot.slane %v4193_v6, %v11357_v54 }
 0x5b5   : > { %v11832_v42 = vpop.trf.xlu0 }
 0x5b6   : > { %15731 = vst [vmem:[#allocation210_spill] sm:$0xff] %v11832_v42  ;;  %v11839_v47 = vpop.trf.xlu1  ;;  %v4384_v42 = vcombine.low %v15737_v19, %v11491_v16  ;;  %15748 = vst [vmem:[#allocation217_spill] sm:$0xff] %v11882_v27 }
 0x5b7   : > { %15733 = vst [vmem:[#allocation212_spill] sm:$0xff] %v11839_v47  ;;  %v15738_v47 = vld [vmem:[#allocation131_spill] sm:$0xff] }
 0x5b8   : > { %v4400_v53 = vcombine.low %v15738_v47, %v11498_v39  ;;  %v4392_v49 = vrot.slane %v4384_v42, %v10925_v14  ;;  %v4401_v6 = vcombine.high %v15738_v47, %v11498_v39  ;;  %v11918_v39 = vrot.slane %v4385_v52, %v10925_v14 }
 0x5b9   : > { %v11858_v36 = vpop.trf.xlu0 }
 0x5ba   : > { %15739 = vst [vmem:[#allocation42_spill] sm:$0xff] %v11858_v36  ;;  %v11860_v44 = vpop.trf.xlu1  ;;  %v4408_v18 = vrot.slane %v4400_v53, %v10925_v14  ;;  %v15749_v53 = vcombine.high %v15741_v61, %v15742_v34  ;;  %v15753_v61 = vcombine.low %v11136_v33, %v11142_v58 }
 0x5bb   : > { %15740 = vst [vmem:[#allocation131_spill] sm:$0xff] %v11860_v44 }
 0x5bc   : > { %v11892_v36 = vrot.slane %v15749_v53, %v11357_v54  ;;  %v4448_v24 = vcombine.low %v4392_v49, %v4408_v18  ;;  %v4449_v51 = vcombine.high %v4392_v49, %v4408_v18  ;;  %v11908_v34 = vrot.slane %v15753_v61, %v11357_v54 }
 0x5bd   : > { %v11872_v0 = vpop.trf.xlu0  ;;  %v11921_v18 = vrot.slane %v4401_v6, %v10925_v14  ;;  %v15761_v6 = vld [vmem:[#allocation69_spill] sm:$0xff] }
 0x5be   : > { %15745 = vst [vmem:[#allocation130_spill] sm:$0xff] %v11872_v0  ;;  %v11879_v44 = vpop.trf.xlu1  ;;  %15750 = vst [vmem:[#allocation218_spill] sm:$0xff] %v11892_v36  ;;  %v11915_v19 = vrot.slane %v4448_v24, %v11357_v54  ;;  %v11926_v47 = vrot.slane %v4449_v51, %v11357_v54  ;;  %v15759_v24 = vcombine.high %v11136_v33, %v11142_v58 }
 0x5bf   : > { %15747 = vst [vmem:[#allocation216_spill] sm:$0xff] %v11879_v44  ;;  %15754 = vst [vmem:[#allocation221_spill] sm:$0xff] %v11908_v34  ;;  %v2616_v42 = vcombine.low %v15761_v6, %v11714_v28  ;;  %v4464_v61 = vcombine.low %v11918_v39, %v11921_v18  ;;  %v15765_v34 = vld [vmem:[#allocation52_spill] sm:$0xff]  ;;  %v15776_v44 = vld [vmem:[#allocation102_spill] sm:$0xff] }
 0x5c0   : > { %15756 = vst [vmem:[#allocation223_spill] sm:$0xff] %v11915_v19  ;;  %15758 = vst [vmem:[#allocation225_spill] sm:$0xff] %v11926_v47  ;;  %v11936_v52 = vrot.slane %v15759_v24, %v11357_v54 }
 0x5c1   : > { %v11894_v43 = vpop.trf.xlu0  ;;  %v2624_v33 = vrot.slane %v2616_v42, %v10925_v14  ;;  %v15768_v42 = vcombine.low %v11139_v62, %v11145_v50 }
 0x5c2   : > { %15751 = vst [vmem:[#allocation219_spill] sm:$0xff] %v11894_v43  ;;  %v11900_v10 = vpop.trf.xlu1  ;;  %15760 = vst [vmem:[#allocation226_spill] sm:$0xff] %v11936_v52  ;;  %v2617_v43 = vcombine.high %v15761_v6, %v11714_v28 }
 0x5c3   : > { %15752 = vst [vmem:[#allocation220_spill] sm:$0xff] %v11900_v10 }
 0x5c4   : > { %v2631_v28 = vrot.slane %v2617_v43, %v10925_v14 }
 0x5c5   : > { %v11910_v53 = vpop.trf.xlu0 }
 0x5c6   : > { %15755 = vst [vmem:[#allocation222_spill] sm:$0xff] %v11910_v53  ;;  %v11923_v49 = vpop.trf.xlu1 }
 0x5c7   : > { %15757 = vst [vmem:[#allocation224_spill] sm:$0xff] %v11923_v49  ;;  %v15762_v49 = vld [vmem:[#allocation101_spill] sm:$0xff] }
 0x5c8   : > { %v2632_v53 = vcombine.low %v15762_v49, %v11725_v9  ;;  %v2633_v52 = vcombine.high %v15762_v49, %v11725_v9 }
 0x5c9   : > { %v11942_v51 = vpop.trf.xlu0 }
 0x5ca   : > { %15763 = vst [vmem:[#allocation69_spill] sm:$0xff] %v11942_v51  ;;  %v11946_v10 = vpop.trf.xlu1  ;;  %v2640_v58 = vrot.slane %v2632_v53, %v10925_v14  ;;  %v11956_v51 = vrot.slane %v4464_v61, %v11357_v54  ;;  %v11965_v53 = vrot.slane %v15768_v42, %v11357_v54  ;;  %v2647_v6 = vrot.slane %v2633_v52, %v10925_v14 }
 0x5cb   : > { %15764 = vst [vmem:[#allocation101_spill] sm:$0xff] %v11946_v10  ;;  %v15767_v10 = vld [vmem:[#allocation70_spill] sm:$0xff] }
 0x5cc   : > { %15766 = vst [vmem:[#allocation52_spill] sm:$0xff] %v11956_v51  ;;  %15769 = vst [vmem:[#allocation70_spill] sm:$0xff] %v11965_v53  ;;  %v2680_v61 = vcombine.low %v2624_v33, %v2640_v58  ;;  %v2681_v47 = vcombine.high %v2624_v33, %v2640_v58  ;;  %v2696_v58 = vcombine.low %v2631_v28, %v2647_v6 }
 0x5cd   : > { %v2432_v24 = vpop.trf.xlu0 }
 0x5ce   : > { %v2648_v19 = vcombine.low %v15765_v34, %v2432_v24  ;;  %v2464_v36 = vpop.trf.xlu1  ;;  %v2649_v27 = vcombine.high %v15765_v34, %v2432_v24  ;;  %v2695_v9 = vrot.slane %v2681_v47, %v11357_v54 }
 0x5cf   : > { %v2664_v1 = vcombine.low %v15767_v10, %v2464_v36  ;;  %v2665_v16 = vcombine.high %v15767_v10, %v2464_v36  ;;  %v15774_v36 = vld [vmem:[#allocation72_spill] sm:$0xff] }
 0x5d0   : > { %v2656_v34 = vrot.slane %v2648_v19, %v10925_v14  ;;  %v2663_v10 = vrot.slane %v2649_v27, %v10925_v14  ;;  %v11982_v19 = vrot.slane %v2680_v61, %v11357_v54  ;;  %v15772_v61 = vcombine.low %v11382_v2, %v11374_v4 }
 0x5d1   : > { %v2672_v24 = vrot.slane %v2664_v1, %v10925_v14  ;;  %v2679_v42 = vrot.slane %v2665_v16, %v10925_v14  ;;  %v2433_v47 = vpop.trf.xlu0 }
 0x5d2   : > { %15770 = vst [vmem:[#allocation227_spill] sm:$0xff] %v11982_v19  ;;  %v2465_v52 = vpop.trf.xlu1 }
 0x5d3   : > { %v2712_v26 = vcombine.low %v2656_v34, %v2672_v24  ;;  %v2713_v38 = vcombine.high %v2656_v34, %v2672_v24  ;;  %v2728_v33 = vcombine.low %v2663_v10, %v2679_v42  ;;  %v2729_v34 = vcombine.high %v2663_v10, %v2679_v42  ;;  %v15773_v24 = vld [vmem:[#allocation53_spill] sm:$0xff] }
 0x5d5   : > { %v2727_v49 = vrot.slane %v2713_v38, %v11357_v54  ;;  %v11985_v1 = vrot.slane %v2712_v26, %v11357_v54  ;;  %v2736_v38 = vrot.slane %v2728_v33, %v11357_v54  ;;  %v2704_v26 = vrot.slane %v2696_v58, %v11357_v54  ;;  %v15775_v33 = vld [vmem:[#allocation71_spill] sm:$0xff] }
 0x5d6   : > { %v2888_v60 = vcombine.low %v15775_v33, %v11731_v46  ;;  %v15777_v58 = vcombine.high %v11382_v2, %v11374_v4  ;;  %v15778_v4 = vcombine.low %v11388_v55, %v11398_v3 }
 0x5d7   : > { %15771 = vst [vmem:[#allocation228_spill] sm:$0xff] %v11985_v1  ;;  %v2746_v27 = vcombine.low %v2695_v9, %v2727_v49  ;;  %v2745_v16 = vcombine.high %v11982_v19, %v11985_v1  ;;  %v2747_v43 = vcombine.high %v2695_v9, %v2727_v49  ;;  %v2748_v9 = vcombine.low %v2704_v26, %v2736_v38  ;;  %v15822_v19 = vld [vmem:[#allocation142_spill] sm:$0xff] }
 0x5d8   : > { %v2697_v49 = vcombine.high %v2631_v28, %v2647_v6  ;;  %v2743_v28 = vrot.slane %v2729_v34, %v11357_v54  ;;  %v2896_v6 = vrot.slane %v2888_v60, %v10925_v14  ;;  %v15779_v60 = vcombine.high %v11388_v55, %v11398_v3 }
 0x5d9   : > { %6844 = vrot.lane.b32.xlu0 %v2746_v27, %s15387_s3  ;;  %6836 = vrot.lane.b32.xlu1 %v2745_v16, %s15389_s15  ;;  %v2920_v27 = vcombine.low %v15773_v24, %v2433_v47  ;;  %v2936_v16 = vcombine.low %v15774_v36, %v2465_v52  ;;  %v2889_v3 = vcombine.high %v15775_v33, %v11731_v46 }
 0x5db   : > { %v2928_v10 = vrot.slane %v2920_v27, %v10925_v14  ;;  %v2944_v42 = vrot.slane %v2936_v16, %v10925_v14  ;;  %v12047_v46 = vrot.slane %v2889_v3, %v10925_v14  ;;  %v15798_v3 = vld [vmem:[#allocation54_spill] sm:$0xff] }
 0x5dd   : > { %6852 = vrot.lane.b32.xlu0 %v2747_v43, %s15383_s23  ;;  %6842 = vrot.lane.b32.xlu1 %v15772_v61, %s15387_s3  ;;  %v2904_v43 = vcombine.low %v15776_v44, %v11733_v20  ;;  %v2749_v61 = vcombine.high %v2704_v26, %v2736_v38  ;;  %v2984_v2 = vcombine.low %v2928_v10, %v2944_v42 }
 0x5df   : > { %v2912_v0 = vrot.slane %v2904_v43, %v10925_v14  ;;  %v2992_v26 = vrot.slane %v2984_v2, %v11357_v54  ;;  %v2921_v43 = vcombine.high %v15773_v24, %v2433_v47 }
 0x5e1   : > { %6860 = vrot.lane.b32.xlu0 %v2748_v9, %s15385_s1  ;;  %6850 = vrot.lane.b32.xlu1 %v15777_v58, %s15383_s23  ;;  %v2711_v9 = vrot.slane %v2697_v49, %v11357_v54  ;;  %v2952_v16 = vcombine.low %v2896_v6, %v2912_v0  ;;  %v15780_v49 = vcombine.low %v11403_v30, %v11417_v63 }
 0x5e2   : > { %v2937_v58 = vcombine.high %v15774_v36, %v2465_v52  ;;  %v2935_v47 = vrot.slane %v2921_v43, %v10925_v14 }
 0x5e3   : > { %v2750_v27 = vcombine.low %v2711_v9, %v2743_v28  ;;  %v2751_v38 = vcombine.high %v2711_v9, %v2743_v28  ;;  %v2960_v34 = vrot.slane %v2952_v16, %v11357_v54  ;;  %v2905_v28 = vcombine.high %v15776_v44, %v11733_v20  ;;  %v12050_v20 = vpop.trf.xlu0 }
 0x5e4   : > { %v2953_v9 = vcombine.high %v2896_v6, %v2912_v0  ;;  %v2951_v36 = vrot.slane %v2937_v58, %v10925_v14  ;;  %v15783_v6 = vcombine.high %v11436_v11, %v11423_v15 }
 0x5e5   : > { %6868 = vrot.lane.b32.xlu0 %v2749_v61, %s15381_s14  ;;  %6858 = vrot.lane.b32.xlu1 %v15778_v4, %s15385_s1  ;;  %v2985_v61 = vcombine.high %v2928_v10, %v2944_v42  ;;  %v3016_v55 = vcombine.low %v2960_v34, %v2992_v26  ;;  %v15781_v4 = vcombine.high %v11403_v30, %v11417_v63  ;;  %v12060_v42 = vpop.trf.xlu1 }
 0x5e6   : > { %v3017_v52 = vcombine.high %v2960_v34, %v2992_v26  ;;  %v2919_v0 = vrot.slane %v2905_v28, %v10925_v14  ;;  %v2967_v63 = vrot.slane %v2953_v9, %v11357_v54  ;;  %v15782_v30 = vcombine.low %v11436_v11, %v11423_v15  ;;  %v15799_v9 = vld [vmem:[#allocation167_spill] sm:$0xff] }
 0x5e7   : > { %v2999_v24 = vrot.slane %v2985_v61, %v11357_v54  ;;  %v3000_v44 = vcombine.low %v2935_v47, %v2951_v36  ;;  %v12066_v2 = vpop.trf.xlu0  ;;  %v15786_v26 = vcombine.low %v11158_v41, %v11164_v59  ;;  %v15788_v15 = vcombine.high %v11158_v41, %v11164_v59 }
 0x5e8   : > { %v2968_v10 = vcombine.low %v12047_v46, %v2919_v0  ;;  %v15796_v41 = vcombine.low %v11192_v48, %v11198_v56  ;;  %v3192_v28 = vcombine.low %v15798_v3, %v12050_v20 }
 0x5e9   : > { %6876 = vrot.lane.b32.xlu0 %v2750_v27, %s15379_s26  ;;  %6866 = vrot.lane.b32.xlu1 %v15779_v60, %s15381_s14  ;;  %v3018_v33 = vcombine.low %v2967_v63, %v2999_v24  ;;  %v3019_v27 = vcombine.high %v2967_v63, %v2999_v24  ;;  %v3008_v16 = vrot.slane %v3000_v44, %v11357_v54  ;;  %v15801_v24 = vld [vmem:[#allocation74_spill] sm:$0xff] }
 0x5ea   : > { %v15784_v60 = vcombine.high %v11139_v62, %v11145_v50  ;;  %v12079_v34 = vrot.slane %v15786_v26, %v11357_v54  ;;  %v12085_v11 = vrot.slane %v15788_v15, %v11357_v54  ;;  %v15790_v50 = vld [vmem:[#allocation133_spill] sm:$0xff]  ;;  %v15791_v62 = vld [vmem:[#allocation134_spill] sm:$0xff]  ;;  %v12105_v59 = vrot.slane %v15796_v41, %v11357_v54  ;;  %v15810_v15 = vld [vmem:[#allocation139_spill] sm:$0xff] }
 0x5eb   : > { %v15792_v43 = vcombine.low %v15790_v50, %v15791_v62  ;;  %v15794_v61 = vcombine.high %v15790_v50, %v15791_v62  ;;  %v3208_v63 = vcombine.low %v15801_v24, %v12060_v42  ;;  %v15811_v50 = vld [vmem:[#allocation141_spill] sm:$0xff]  ;;  %v2969_v41 = vcombine.high %v12047_v46, %v2919_v0 }
 0x5ec   : > { %15787 = vst [vmem:[#allocation72_spill] sm:$0xff] %v12079_v34  ;;  %15789 = vst [vmem:[#allocation71_spill] sm:$0xff] %v12085_v11  ;;  %v15812_v62 = vcombine.low %v15810_v15, %v15811_v50  ;;  %v12170_v44 = vrot.slane %v3192_v28, %v10925_v14  ;;  %v15827_v28 = vld [vmem:[#allocation145_spill] sm:$0xff] }
 0x5ed   : > { %6884 = vrot.lane.b32.xlu0 %v2751_v38, %s15375_s7  ;;  %6874 = vrot.lane.b32.xlu1 %v15780_v49, %s15379_s26  ;;  %v12073_v38 = vrot.slane %v15784_v60, %v11357_v54  ;;  %v2976_v49 = vrot.slane %v2968_v10, %v11357_v54  ;;  %v12093_v58 = vrot.slane %v15792_v43, %v11357_v54 }
 0x5ee   : > { %15797 = vst [vmem:[#allocation134_spill] sm:$0xff] %v12105_v59  ;;  %v12139_v43 = vrot.slane %v15812_v62, %v11357_v54  ;;  %v15928_v59 = vld [vmem:[#allocation203_spill] sm:$0xff] }
 0x5ef   : > { %15785 = vst [vmem:[#allocation53_spill] sm:$0xff] %v12073_v38  ;;  %15793 = vst [vmem:[#allocation102_spill] sm:$0xff] %v12093_v58  ;;  %v3021_v1 = vcombine.high %v2976_v49, %v3008_v16  ;;  %v15910_v38 = vld [vmem:[#allocation104_spill] sm:$0xff] }
 0x5f1   : > { %6892 = vrot.lane.b32.xlu0 %v3016_v55, %s15371_s8  ;;  %6882 = vrot.lane.b32.xlu1 %v15781_v4, %s15375_s7  ;;  %v12099_v55 = vrot.slane %v15794_v61, %v11357_v54  ;;  %v15800_v4 = vcombine.low %v11451_v25, %v15799_v9 }
 0x5f3   : > { %15795 = vst [vmem:[#allocation133_spill] sm:$0xff] %v12099_v55 }
 0x5f5   : > { %6900 = vrot.lane.b32.xlu0 %v3017_v52, %s15365_s20  ;;  %6890 = vrot.lane.b32.xlu1 %v15782_v30, %s15371_s8  ;;  %v3001_v52 = vcombine.high %v2935_v47, %v2951_v36  ;;  %v3020_v30 = vcombine.low %v2976_v49, %v3008_v16 }
 0x5f9   : > { %6908 = vrot.lane.b32.xlu0 %v3018_v33, %s15359_s21  ;;  %6898 = vrot.lane.b32.xlu1 %v15783_v6, %s15365_s20  ;;  %v15802_v33 = vcombine.high %v11192_v48, %v11198_v56  ;;  %v15804_v6 = vld [vmem:[#allocation137_spill] sm:$0xff]  ;;  %v12141_v48 = vpop.trf.xlu1  ;;  %v15814_v56 = vcombine.high %v15810_v15, %v15811_v50  ;;  %v15819_v50 = vld [vmem:[#allocation132_spill] sm:$0xff] }
 0x5fa   : > { %15813 = vst [vmem:[#allocation137_spill] sm:$0xff] %v12139_v43  ;;  %v4672_v46 = vcombine.low %v15819_v50, %v11531_v17  ;;  %v4673_v0 = vcombine.high %v15819_v50, %v11531_v17 }
 0x5fb   : > { %v12121_v10 = vrot.slane %v15802_v33, %v11357_v54  ;;  %v12147_v61 = vrot.slane %v15814_v56, %v11357_v54  ;;  %v15820_v56 = vcombine.high %v11451_v25, %v15799_v9  ;;  %v15828_v9 = vld [vmem:[#allocation147_spill] sm:$0xff] }
 0x5fc   : > { %v15831_v16 = vcombine.high %v15827_v28, %v15828_v9 }
 0x5fd   : > { %6916 = vrot.lane.b32.xlu0 %v3019_v27, %s15354_s12  ;;  %6906 = vrot.lane.b32.xlu1 %v15800_v4, %s15359_s21  ;;  %15803 = vst [vmem:[#allocation54_spill] sm:$0xff] %v12121_v10  ;;  %v15805_v27 = vld [vmem:[#allocation138_spill] sm:$0xff]  ;;  %v15816_v4 = vld [vmem:[#allocation73_spill] sm:$0xff] }
 0x5fe   : > { %v15806_v60 = vcombine.low %v15804_v6, %v15805_v27  ;;  %v15808_v47 = vcombine.high %v15804_v6, %v15805_v27  ;;  %15815 = vst [vmem:[#allocation138_spill] sm:$0xff] %v12147_v61  ;;  %v3160_v33 = vcombine.low %v15816_v4, %v11744_v31  ;;  %v15817_v6 = vld [vmem:[#allocation103_spill] sm:$0xff]  ;;  %v12198_v49 = vrot.slane %v15831_v16, %v11357_v54  ;;  %v12226_v16 = vpop.trf.xlu1 }
 0x5ff   : > { %v3176_v27 = vcombine.low %v15817_v6, %v11746_v8  ;;  %15837 = vst [vmem:[#allocation132_spill] sm:$0xff] %v12226_v16 }
 0x600   : > { %v12127_v26 = vrot.slane %v15806_v60, %v11357_v54  ;;  %v12133_v36 = vrot.slane %v15808_v47, %v11357_v54  ;;  %v12154_v60 = vpop.trf.xlu0  ;;  %v15818_v47 = vld [vmem:[#allocation43_spill] sm:$0xff]  ;;  %15832 = vst [vmem:[#allocation103_spill] sm:$0xff] %v12198_v49 }
 0x601   : > { %6924 = vrot.lane.b32.xlu0 %v3020_v30, %s15352_s29  ;;  %v4656_v62 = vcombine.low %v15818_v47, %v11520_v35  ;;  %v4657_v15 = vcombine.high %v15818_v47, %v11520_v35  ;;  %6914 = vrot.lane.b32.xlu1 %v15820_v56, %s15354_s12  ;;  %v12173_v30 = vrot.slane %v3208_v63, %v10925_v14  ;;  %v15821_v47 = vld [vmem:[#allocation140_spill] sm:$0xff] }
 0x602   : > { %15807 = vst [vmem:[#allocation167_spill] sm:$0xff] %v12127_v26  ;;  %15809 = vst [vmem:[#allocation74_spill] sm:$0xff] %v12133_v36  ;;  %v3015_v35 = vrot.slane %v3001_v52, %v11357_v54  ;;  %v15823_v61 = vcombine.low %v15821_v47, %v15822_v19  ;;  %v15825_v17 = vcombine.high %v15821_v47, %v15822_v19  ;;  %v15833_v52 = vld [vmem:[#allocation146_spill] sm:$0xff] }
 0x603   : > { %v15829_v63 = vcombine.low %v15827_v28, %v15828_v9  ;;  %v12207_v19 = vrot.slane %v3160_v33, %v10925_v14  ;;  %v12210_v47 = vrot.slane %v3176_v27, %v10925_v14  ;;  %v12215_v28 = vrot.slane %v4656_v62, %v10925_v14  ;;  %v15838_v27 = vld [vmem:[#allocation37_spill] sm:$0xff] }
 0x604   : > { %v12180_v43 = vrot.slane %v15823_v61, %v11357_v54  ;;  %v12186_v25 = vrot.slane %v15825_v17, %v11357_v54  ;;  %v15834_v61 = vld [vmem:[#allocation148_spill] sm:$0xff]  ;;  %v2983_v17 = vrot.slane %v2969_v41, %v11357_v54  ;;  %v12218_v9 = vrot.slane %v4657_v15, %v10925_v14  ;;  %v15843_v15 = vld [vmem:[#allocation149_spill] sm:$0xff] }
 0x605   : > { %v12192_v50 = vrot.slane %v15829_v63, %v11357_v54  ;;  %v15835_v56 = vcombine.low %v15833_v52, %v15834_v61  ;;  %6932 = vrot.lane.b32.xlu0 %v3021_v1, %s15350_s9  ;;  %v12221_v63 = vrot.slane %v4672_v46, %v10925_v14  ;;  %v12224_v33 = vrot.slane %v4673_v0, %v10925_v14  ;;  %v15844_v46 = vld [vmem:[#allocation151_spill] sm:$0xff] }
 0x606   : > { %15824 = vst [vmem:[#allocation139_spill] sm:$0xff] %v12180_v43  ;;  %15826 = vst [vmem:[#allocation141_spill] sm:$0xff] %v12186_v25  ;;  %v15841_v41 = vcombine.high %v15833_v52, %v15834_v61  ;;  %v3256_v0 = vcombine.low %v12170_v44, %v12173_v30  ;;  %v3022_v25 = vcombine.low %v2983_v17, %v3015_v35  ;;  %v15850_v52 = vld [vmem:[#allocation150_spill] sm:$0xff]  ;;  %v15851_v61 = vld [vmem:[#allocation152_spill] sm:$0xff] }
 0x607   : > { %15830 = vst [vmem:[#allocation73_spill] sm:$0xff] %v12192_v50  ;;  %v12204_v43 = vrot.slane %v15835_v56, %v11357_v54  ;;  %v15839_v56 = vld [vmem:[#allocation118_spill] sm:$0xff]  ;;  %v12246_v50 = vpop.trf.xlu0  ;;  %v3224_v21 = vcombine.low %v12207_v19, %v12210_v47  ;;  %v15906_v53 = vcombine.high %v12215_v28, %v12221_v63 }
 0x608   : > { %v15840_v1 = vcombine.low %v15838_v27, %v15839_v56  ;;  %v12236_v62 = vrot.slane %v15841_v41, %v11357_v54  ;;  %15847 = vst [vmem:[#allocation145_spill] sm:$0xff] %v12246_v50  ;;  %v15852_v41 = vcombine.low %v15850_v52, %v15851_v61  ;;  %v15855_v50 = vcombine.high %v15850_v52, %v15851_v61 }
 0x609   : > { %15836 = vst [vmem:[#allocation43_spill] sm:$0xff] %v12204_v43  ;;  %v15845_v43 = vcombine.low %v15843_v15, %v15844_v46  ;;  %6940 = vrot.lane.b32.xlu0 %v3022_v25, %s15348_s10 }
 0x60a   : > { %6922 = vrot.lane.b32.xlu1 %v15840_v1, %s15352_s29  ;;  %15842 = vst [vmem:[#allocation140_spill] sm:$0xff] %v12236_v62  ;;  %v15848_v1 = vcombine.high %v15843_v15, %v15844_v46  ;;  %v12258_v62 = vrot.slane %v15852_v41, %v11357_v54  ;;  %v12268_v7 = vrot.slane %v15855_v50, %v11357_v54  ;;  %v15857_v15 = vld [vmem:[#allocation155_spill] sm:$0xff]  ;;  %v15858_v46 = vld [vmem:[#allocation157_spill] sm:$0xff] }
 0x60b   : > { %v12242_v49 = vrot.slane %v15845_v43, %v11357_v54  ;;  %v15854_v43 = vld [vmem:[#allocation44_spill] sm:$0xff]  ;;  %v15861_v41 = vld [vmem:[#allocation135_spill] sm:$0xff]  ;;  %v3264_v50 = vrot.slane %v3256_v0, %v11357_v54  ;;  %v15867_v0 = vld [vmem:[#allocation105_spill] sm:$0xff] }
 0x60c   : > { %v12252_v36 = vrot.slane %v15848_v1, %v11357_v54  ;;  %15853 = vst [vmem:[#allocation146_spill] sm:$0xff] %v12258_v62  ;;  %v4929_v26 = vcombine.high %v15854_v43, %v11543_v37  ;;  %15856 = vst [vmem:[#allocation148_spill] sm:$0xff] %v12268_v7  ;;  %v15859_v1 = vcombine.low %v15857_v15, %v15858_v46 }
 0x60d   : > { %15846 = vst [vmem:[#allocation142_spill] sm:$0xff] %v12242_v49  ;;  %v4928_v49 = vcombine.low %v15854_v43, %v11543_v37  ;;  %v4944_v62 = vcombine.low %v15861_v41, %v11545_v45  ;;  %v15862_v43 = vcombine.high %v15838_v27, %v15839_v56  ;;  %v3023_v7 = vcombine.high %v2983_v17, %v3015_v35  ;;  %v12308_v56 = vpop.trf.xlu1  ;;  %v15866_v35 = vld [vmem:[#allocation77_spill] sm:$0xff] }
 0x60e   : > { %15849 = vst [vmem:[#allocation147_spill] sm:$0xff] %v12252_v36  ;;  %v12274_v36 = vrot.slane %v15859_v1, %v11357_v54  ;;  %v15863_v1 = vld [vmem:[#allocation56_spill] sm:$0xff]  ;;  %v12304_v61 = vrot.slane %v4929_v26, %v10925_v14  ;;  %v4945_v27 = vcombine.high %v15861_v41, %v11545_v45  ;;  %15865 = vst [vmem:[#allocation118_spill] sm:$0xff] %v12308_v56  ;;  %v15869_v45 = vld [vmem:[#allocation45_spill] sm:$0xff] }
 0x60f   : > { %6930 = vrot.lane.b32.xlu1 %v15862_v43, %s15350_s9  ;;  %v3736_v25 = vcombine.low %v15863_v1, %v12154_v60  ;;  %v12301_v46 = vrot.slane %v4928_v49, %v10925_v14  ;;  %v12311_v43 = vrot.slane %v4944_v62, %v10925_v14  ;;  %v3704_v17 = vcombine.low %v15866_v35, %v11760_v5  ;;  %v15894_v5 = vld [vmem:[#allocation55_spill] sm:$0xff] }
 0x610   : > { %15860 = vst [vmem:[#allocation37_spill] sm:$0xff] %v12274_v36  ;;  %v15864_v36 = vld [vmem:[#allocation78_spill] sm:$0xff]  ;;  %v3720_v52 = vcombine.low %v15867_v0, %v11762_v32  ;;  %6948 = vrot.lane.b32.xlu0 %v3023_v7, %s15339_s25  ;;  %v3232_v26 = vrot.slane %v3224_v21, %v11357_v54  ;;  %v5200_v49 = vcombine.low %v15869_v45, %v11567_v22  ;;  %v15870_v0 = vld [vmem:[#allocation168_spill] sm:$0xff] }
 0x611   : > { %v3752_v37 = vcombine.low %v15864_v36, %v12226_v16  ;;  %v12317_v36 = vpop.trf.xlu0  ;;  %v5201_v62 = vcombine.high %v15869_v45, %v11567_v22  ;;  %v3193_v41 = vcombine.high %v15798_v3, %v12050_v20  ;;  %v3209_v56 = vcombine.high %v15801_v24, %v12060_v42  ;;  %v15875_v42 = vld [vmem:[#allocation136_spill] sm:$0xff] }
 0x612   : > { %15868 = vst [vmem:[#allocation149_spill] sm:$0xff] %v12317_v36  ;;  %v15871_v36 = vld [vmem:[#allocation169_spill] sm:$0xff]  ;;  %v3257_v7 = vcombine.high %v12170_v44, %v12173_v30  ;;  %v12336_v21 = vrot.slane %v3736_v25, %v10925_v14  ;;  %v3288_v22 = vcombine.low %v3232_v26, %v3264_v50  ;;  %v12342_v20 = vrot.slane %v4945_v27, %v10925_v14 }
 0x613   : > { %v15872_v32 = vcombine.low %v15870_v0, %v15871_v36  ;;  %v12339_v35 = vrot.slane %v3752_v37, %v10925_v14  ;;  %v5216_v3 = vcombine.low %v15875_v42, %v11577_v57  ;;  %v5217_v24 = vcombine.high %v15875_v42, %v11577_v57 }
 0x614   : > { %15873 = vst [vmem:[#allocation151_spill] sm:$0xff] %v12336_v21  ;;  %v3177_v44 = vcombine.high %v15817_v6, %v11746_v8  ;;  %v3225_v30 = vcombine.high %v12207_v19, %v12210_v47  ;;  %v12355_v37 = vrot.slane %v3704_v17, %v10925_v14  ;;  %v12358_v25 = vrot.slane %v3720_v52, %v10925_v14  ;;  %v12372_v6 = vpop.trf.xlu1 }
 0x615   : > { %6938 = vrot.lane.b32.xlu1 %v15872_v32, %s15348_s10  ;;  %15874 = vst [vmem:[#allocation150_spill] sm:$0xff] %v12339_v35  ;;  %v3161_v32 = vcombine.high %v15816_v4, %v11744_v31  ;;  %6956 = vrot.lane.b32.xlu0 %v3288_v22, %s15341_s13  ;;  %v12364_v31 = vrot.slane %v5200_v49, %v10925_v14  ;;  %15878 = vst [vmem:[#allocation155_spill] sm:$0xff] %v12372_v6  ;;  %v12383_v27 = vpop.trf.xlu0 }
 0x616   : > { %15876 = vst [vmem:[#allocation152_spill] sm:$0xff] %v12355_v37  ;;  %15877 = vst [vmem:[#allocation44_spill] sm:$0xff] %v12358_v25  ;;  %v12367_v8 = vrot.slane %v5201_v62, %v10925_v14  ;;  %v12370_v4 = vrot.slane %v3193_v41, %v10925_v14  ;;  %v15879_v19 = vcombine.high %v15870_v0, %v15871_v36  ;;  %v15881_v36 = vld [vmem:[#allocation46_spill] sm:$0xff] }
 0x617   : > { %v12379_v47 = vrot.slane %v3209_v56, %v10925_v14  ;;  %v3800_v52 = vcombine.low %v12336_v21, %v12339_v35  ;;  %15880 = vst [vmem:[#allocation135_spill] sm:$0xff] %v12383_v27  ;;  %v3289_v17 = vcombine.high %v3232_v26, %v3264_v50  ;;  %v3271_v45 = vrot.slane %v3257_v7, %v11357_v54  ;;  %v15882_v56 = vld [vmem:[#allocation143_spill] sm:$0xff]  ;;  %v15895_v35 = vld [vmem:[#allocation76_spill] sm:$0xff] }
 0x618   : > { %v12387_v49 = vrot.slane %v5216_v3, %v10925_v14  ;;  %v12390_v62 = vrot.slane %v5217_v24, %v10925_v14  ;;  %v5472_v0 = vcombine.low %v15881_v36, %v11594_v40  ;;  %v5488_v41 = vcombine.low %v15882_v56, %v11601_v29 }
 0x619   : > { %6946 = vrot.lane.b32.xlu1 %v15879_v19, %s15339_s25  ;;  %v12397_v22 = vrot.slane %v3161_v32, %v10925_v14  ;;  %v12400_v42 = vrot.slane %v3177_v44, %v10925_v14  ;;  %v3768_v50 = vcombine.low %v12355_v37, %v12358_v25  ;;  %6964 = vrot.lane.b32.xlu0 %v3289_v17, %s15346_s11  ;;  %v15883_v44 = vld [vmem:[#allocation170_spill] sm:$0xff]  ;;  %v15884_v19 = vld [vmem:[#allocation171_spill] sm:$0xff]  ;;  %v12443_v27 = vpop.trf.xlu0 }
 0x61a   : > { %v3239_v26 = vrot.slane %v3225_v30, %v11357_v54  ;;  %v5473_v24 = vcombine.high %v15881_v36, %v11594_v40  ;;  %v5489_v32 = vcombine.high %v15882_v56, %v11601_v29  ;;  %v15885_v57 = vcombine.low %v15883_v44, %v15884_v19  ;;  %v12433_v56 = vpop.trf.xlu1  ;;  %15888 = vst [vmem:[#allocation168_spill] sm:$0xff] %v12443_v27 }
 0x61b   : > { %v3272_v17 = vcombine.low %v12370_v4, %v12379_v47  ;;  %v12423_v3 = vrot.slane %v3800_v52, %v11357_v54  ;;  %15887 = vst [vmem:[#allocation45_spill] sm:$0xff] %v12433_v56  ;;  %v12436_v30 = vrot.slane %v5472_v0, %v10925_v14  ;;  %v12439_v52 = vrot.slane %v5488_v41, %v10925_v14  ;;  %v15890_v41 = vld [vmem:[#allocation47_spill] sm:$0xff] }
 0x61c   : > { %v3290_v7 = vcombine.low %v3239_v26, %v3271_v45  ;;  %v3240_v40 = vcombine.low %v12397_v22, %v12400_v42  ;;  %v12447_v36 = vrot.slane %v3768_v50, %v11357_v54  ;;  %v12453_v0 = vrot.slane %v5489_v32, %v10925_v14  ;;  %v15893_v50 = vld [vmem:[#allocation144_spill] sm:$0xff]  ;;  %v15898_v32 = vld [vmem:[#allocation75_spill] sm:$0xff] }
 0x61d   : > { %6954 = vrot.lane.b32.xlu1 %v15885_v57, %s15341_s13  ;;  %15886 = vst [vmem:[#allocation56_spill] sm:$0xff] %v12423_v3  ;;  %v12450_v57 = vrot.slane %v5473_v24, %v10925_v14  ;;  %v5744_v29 = vcombine.low %v15890_v41, %v11625_v23  ;;  %v15891_v6 = vcombine.high %v15883_v44, %v15884_v19 }
 0x61e   : > { %6972 = vrot.lane.b32.xlu0 %v3290_v7, %s15264_s5  ;;  %15889 = vst [vmem:[#allocation169_spill] sm:$0xff] %v12447_v36  ;;  %v15892_v7 = vld [vmem:[#allocation180_spill] sm:$0xff]  ;;  %v3291_v25 = vcombine.high %v3239_v26, %v3271_v45  ;;  %v3280_v24 = vrot.slane %v3272_v17, %v11357_v54  ;;  %v3464_v21 = vcombine.low %v15894_v5, %v12066_v2  ;;  %v15901_v45 = vld [vmem:[#allocation38_spill] sm:$0xff] }
 0x61f   : > { %v5760_v37 = vcombine.low %v15893_v50, %v15892_v7  ;;  %v3480_v56 = vcombine.low %v15895_v35, %v12141_v48  ;;  %v5761_v19 = vcombine.high %v15893_v50, %v15892_v7  ;;  %v3248_v17 = vrot.slane %v3240_v40, %v11357_v54  ;;  %v12502_v40 = vpop.trf.xlu0 }
 0x620   : > { %v3432_v16 = vcombine.low %v15898_v32, %v11752_v12  ;;  %15903 = vst [vmem:[#allocation143_spill] sm:$0xff] %v12502_v40  ;;  %v15908_v7 = vcombine.low %v12218_v9, %v12224_v33  ;;  %v3241_v40 = vcombine.high %v12397_v22, %v12400_v42 }
 0x621   : > { %6962 = vrot.lane.b32.xlu1 %v15891_v6, %s15346_s11  ;;  %v15896_v6 = vcombine.high %v11918_v39, %v11921_v18  ;;  %v3273_v39 = vcombine.high %v12370_v4, %v12379_v47  ;;  %v12492_v18 = vpop.trf.xlu1  ;;  %v3292_v50 = vcombine.low %v3248_v17, %v3280_v24  ;;  %v15904_v4 = vcombine.low %v12215_v28, %v12221_v63 }
 0x622   : > { %6980 = vrot.lane.b32.xlu0 %v3291_v25, %s15204_s6  ;;  %15899 = vst [vmem:[#allocation46_spill] sm:$0xff] %v12492_v18  ;;  %v12520_v25 = vrot.slane %v15908_v7, %v11357_v54  ;;  %v12530_v51 = vrot.slane %v3480_v56, %v10925_v14  ;;  %v12546_v56 = vrot.slane %v5744_v29, %v10925_v14 }
 0x623   : > { %v12478_v44 = vrot.slane %v15896_v6, %v11357_v54  ;;  %v15900_v6 = vld [vmem:[#allocation121_spill] sm:$0xff]  ;;  %v12508_v47 = vrot.slane %v15904_v4, %v11357_v54  ;;  %v12527_v4 = vrot.slane %v3464_v21, %v10925_v14  ;;  %v12554_v63 = vrot.slane %v5760_v37, %v10925_v14 }
 0x624   : > { %v15902_v26 = vcombine.low %v15900_v6, %v15901_v45  ;;  %15909 = vst [vmem:[#allocation47_spill] sm:$0xff] %v12520_v25  ;;  %v15911_v7 = vcombine.high %v15900_v6, %v15901_v45  ;;  %v12557_v22 = vrot.slane %v3432_v16, %v10925_v14  ;;  %v3293_v28 = vcombine.high %v3248_v17, %v3280_v24  ;;  %v15917_v17 = vld [vmem:[#allocation60_spill] sm:$0xff] }
 0x625   : > { %15897 = vst [vmem:[#allocation136_spill] sm:$0xff] %v12478_v44  ;;  %15905 = vst [vmem:[#allocation170_spill] sm:$0xff] %v12508_v47  ;;  %v3448_v44 = vcombine.low %v15910_v38, %v11754_v13  ;;  %v12564_v42 = vpop.trf.xlu1  ;;  %v3255_v45 = vrot.slane %v3241_v40, %v11357_v54  ;;  %v15915_v16 = vcombine.low %v12301_v46, %v12311_v43  ;;  %v15918_v40 = vld [vmem:[#allocation86_spill] sm:$0xff] }
 0x626   : > { %6970 = vrot.lane.b32.xlu1 %v15902_v26, %s15264_s5  ;;  %v12514_v26 = vrot.slane %v15906_v53, %v11357_v54  ;;  %6988 = vrot.lane.b32.xlu0 %v3292_v50, %s15221_s18  ;;  %v3287_v50 = vrot.slane %v3273_v39, %v11357_v54  ;;  %15912 = vst [vmem:[#allocation180_spill] sm:$0xff] %v12564_v42  ;;  %v12585_v53 = vpop.trf.xlu0  ;;  %v15936_v42 = vld [vmem:[#allocation48_spill] sm:$0xff]  ;;  %s15393_s5 = smov 120  }
 0x627   : > { %v12562_v29 = vrot.slane %v3448_v44, %v10925_v14  ;;  %v15913_v39 = vcombine.high %v12218_v9, %v12224_v33  ;;  %v12577_v24 = vrot.slane %v15915_v16, %v11357_v54  ;;  %v3528_v44 = vcombine.low %v12527_v4, %v12530_v51  ;;  %15919 = vst [vmem:[#allocation76_spill] sm:$0xff] %v12585_v53  ;;  %v15923_v16 = vld [vmem:[#allocation119_spill] sm:$0xff] }
 0x628   : > { %15907 = vst [vmem:[#allocation171_spill] sm:$0xff] %v12514_v26  ;;  %v4824_v6 = vcombine.low %v15917_v17, %v12443_v27  ;;  %v15920_v9 = vcombine.high %v12301_v46, %v12311_v43  ;;  %v3294_v58 = vcombine.low %v3255_v45, %v3287_v50  ;;  %v15927_v53 = vcombine.high %v15890_v41, %v11625_v23 }
 0x629   : > { %v12571_v37 = vrot.slane %v15913_v39, %v11357_v54  ;;  %15916 = vst [vmem:[#allocation55_spill] sm:$0xff] %v12577_v24  ;;  %v15922_v39 = vld [vmem:[#allocation172_spill] sm:$0xff]  ;;  %v12623_v46 = vrot.slane %v5761_v19, %v10925_v14  ;;  %v3496_v43 = vcombine.low %v12557_v22, %v12562_v29  ;;  %v15931_v24 = vld [vmem:[#allocation109_spill] sm:$0xff]  ;;  %v15933_v19 = vcombine.high %v12304_v61, %v12342_v20 }
 0x62a   : > { %6978 = vrot.lane.b32.xlu1 %v15911_v7, %s15204_s6  ;;  %v4840_v7 = vcombine.low %v15918_v40, %v12492_v18  ;;  %s15231_s6 = smov 84   ;;  %v12592_v33 = vrot.slane %v15920_v9, %v11357_v54  ;;  %v15924_v21 = vcombine.low %v15922_v39, %v15923_v16  ;;  %v15929_v9 = vld [vmem:[#allocation85_spill] sm:$0xff]  ;;  %v12645_v26 = vrot.slane %v4824_v6, %v10925_v14 }
 0x62b   : > { %15914 = vst [vmem:[#allocation144_spill] sm:$0xff] %v12571_v37  ;;  %6996 = vrot.lane.b32.xlu0 %v3293_v28, %s15231_s6  ;;  %v12620_v28 = vrot.slane %v15927_v53, %v10925_v14  ;;  %v4792_v10 = vcombine.low %v15929_v9, %v15928_v59  ;;  %v12640_v53 = vrot.slane %v15933_v19, %v11357_v54  ;;  %v15935_v37 = vld [vmem:[#allocation40_spill] sm:$0xff] }
 0x62c   : > { %15921 = vst [vmem:[#allocation75_spill] sm:$0xff] %v12592_v33  ;;  %v15930_v33 = vld [vmem:[#allocation204_spill] sm:$0xff]  ;;  %v6016_v11 = vcombine.low %v15936_v42, %v15935_v37  ;;  %15937 = vst [vmem:[#allocation104_spill] sm:$0xff] %v12645_v26  ;;  %v15940_v41 = vcombine.high %v15922_v39, %v15923_v16  ;;  %v3433_v6 = vcombine.high %v15898_v32, %v11752_v12 }
 0x62d   : > { %v4808_v55 = vcombine.low %v15931_v24, %v15930_v33  ;;  %15934 = vst [vmem:[#allocation38_spill] sm:$0xff] %v12640_v53  ;;  %v12650_v24 = vpop.trf.xlu1  ;;  %v3295_v23 = vcombine.high %v3255_v45, %v3287_v50  ;;  %v3504_v39 = vrot.slane %v3496_v43, %v11357_v54  ;;  %v3465_v12 = vcombine.high %v15894_v5, %v12066_v2  ;;  %v15949_v43 = vld [vmem:[#allocation173_spill] sm:$0xff]  ;;  %v16083_v33 = vld [vmem:[#allocation107_spill] sm:$0xff] }
 0x62e   : > { %6986 = vrot.lane.b32.xlu1 %v15924_v21, %s15221_s18  ;;  %v15925_v21 = vcombine.low %v12304_v61, %v12342_v20  ;;  %s15236_s18 = smov 88   ;;  %15939 = vst [vmem:[#allocation119_spill] sm:$0xff] %v12650_v24  ;;  %v3536_v61 = vrot.slane %v3528_v44, %v11357_v54  ;;  %v15947_v50 = vcombine.high %v12364_v31, %v12387_v49  ;;  %v16059_v44 = vld [vmem:[#allocation188_spill] sm:$0xff]  ;;  %v16072_v24 = vld [vmem:[#allocation113_spill] sm:$0xff] }
 0x62f   : > { %7004 = vrot.lane.b32.xlu0 %v3294_v58, %s15236_s18  ;;  %v12648_v58 = vrot.slane %v4840_v7, %v10925_v14  ;;  %v12663_v7 = vpop.trf.xlu0  ;;  %v12674_v20 = vrot.slane %v4808_v55, %v10925_v14  ;;  %v3481_v55 = vcombine.high %v15895_v35, %v12141_v48  ;;  %v3529_v5 = vcombine.high %v12527_v4, %v12530_v51  ;;  %v15954_v35 = vld [vmem:[#allocation127_spill] sm:$0xff]  ;;  %v15955_v4 = vld [vmem:[#allocation153_spill] sm:$0xff] }
 0x630   : > { %v12614_v25 = vrot.slane %v15925_v21, %v11357_v54  ;;  %15941 = vst [vmem:[#allocation40_spill] sm:$0xff] %v12663_v7  ;;  %v12666_v21 = vrot.slane %v4792_v10, %v10925_v14  ;;  %v15945_v10 = vcombine.low %v12364_v31, %v12387_v49  ;;  %v12689_v45 = vrot.slane %v15947_v50, %v11357_v54 }
 0x631   : > { %15938 = vst [vmem:[#allocation172_spill] sm:$0xff] %v12648_v58  ;;  %15944 = vst [vmem:[#allocation229_spill] sm:$0xff] %v12674_v20  ;;  %v4888_v2 = vcombine.low %v12645_v26, %v12648_v58  ;;  %v6032_v19 = vcombine.low %v15955_v4, %v15954_v35  ;;  %v6033_v7 = vcombine.high %v15955_v4, %v15954_v35  ;;  %v12717_v16 = vpop.trf.xlu1 }
 0x632   : > { %15926 = vst [vmem:[#allocation121_spill] sm:$0xff] %v12614_v25  ;;  %6994 = vrot.lane.b32.xlu1 %v15940_v41, %s15231_s6  ;;  %15942 = vst [vmem:[#allocation48_spill] sm:$0xff] %v12666_v21  ;;  %s15239_s6 = smov 92   ;;  %v12683_v32 = vrot.slane %v15945_v10, %v11357_v54  ;;  %v3560_v41 = vcombine.low %v3504_v39, %v3536_v61  ;;  %v3497_v31 = vcombine.high %v12557_v22, %v12562_v29  ;;  %v16069_v25 = vld [vmem:[#allocation130_spill] sm:$0xff] }
 0x633   : > { %7012 = vrot.lane.b32.xlu0 %v3295_v23, %s15239_s6  ;;  %15948 = vst [vmem:[#allocation231_spill] sm:$0xff] %v12689_v45  ;;  %v15950_v23 = vld [vmem:[#allocation120_spill] sm:$0xff]  ;;  %15956 = vst [vmem:[#allocation173_spill] sm:$0xff] %v12717_v16  ;;  %v12720_v49 = vrot.slane %v3433_v6, %v10925_v14  ;;  %v4856_v51 = vcombine.low %v12666_v21, %v12674_v20  ;;  %v12725_v48 = vrot.slane %v3465_v12, %v10925_v14  ;;  %v12727_v50 = vpop.trf.xlu0  ;;  %v15974_v16 = vld [vmem:[#allocation175_spill] sm:$0xff] }
 0x634   : > { %15946 = vst [vmem:[#allocation230_spill] sm:$0xff] %v12683_v32  ;;  %v15951_v10 = vcombine.low %v15949_v43, %v15950_v23  ;;  %15957 = vst [vmem:[#allocation120_spill] sm:$0xff] %v12727_v50  ;;  %v12737_v22 = vrot.slane %v3481_v55, %v10925_v14  ;;  %v15960_v29 = vcombine.high %v15949_v43, %v15950_v23  ;;  %v16060_v32 = vld [vmem:[#allocation190_spill] sm:$0xff]  ;;  %v16080_v21 = vld [vmem:[#allocation199_spill] sm:$0xff] }
 0x635   : > { %v3561_v6 = vcombine.high %v3504_v39, %v3536_v61  ;;  %v3543_v12 = vrot.slane %v3529_v5, %v11357_v54  ;;  %v12751_v4 = vrot.slane %v4888_v2, %v11357_v54  ;;  %v15965_v61 = vcombine.low %v12436_v30, %v12439_v52 }
 0x636   : > { %7002 = vrot.lane.b32.xlu1 %v15951_v10, %s15236_s18  ;;  %v3449_v10 = vcombine.high %v15910_v38, %v11754_v13  ;;  %s15251_s18 = smov 96   ;;  %v15958_v13 = vcombine.low %v12367_v8, %v12390_v62  ;;  %v12773_v23 = vrot.slane %v4856_v51, %v11357_v54  ;;  %v6024_v43 = vrot.slane %v6016_v11, %v10925_v14 }
 0x637   : > { %7020 = vrot.lane.b32.xlu0 %v3560_v41, %s15251_s18  ;;  %v15961_v41 = vcombine.high %v12367_v8, %v12390_v62  ;;  %15963 = vst [vmem:[#allocation232_spill] sm:$0xff] %v12751_v4  ;;  %v12761_v39 = vrot.slane %v15965_v61, %v11357_v54  ;;  %v3511_v8 = vrot.slane %v3497_v31, %v11357_v54 }
 0x638   : > { %v12734_v38 = vrot.slane %v15958_v13, %v11357_v54  ;;  %v12764_v5 = vrot.slane %v3449_v10, %v10925_v14  ;;  %15968 = vst [vmem:[#allocation234_spill] sm:$0xff] %v12773_v23  ;;  %v15970_v31 = vcombine.high %v12436_v30, %v12439_v52  ;;  %v6040_v2 = vrot.slane %v6032_v19, %v10925_v14  ;;  %v16052_v13 = vld [vmem:[#allocation198_spill] sm:$0xff] }
 0x639   : > { %v12748_v35 = vrot.slane %v15961_v41, %v11357_v54  ;;  %15966 = vst [vmem:[#allocation233_spill] sm:$0xff] %v12761_v39  ;;  %v3544_v51 = vcombine.low %v12725_v48, %v12737_v22  ;;  %v15973_v41 = vld [vmem:[#allocation174_spill] sm:$0xff]  ;;  %v3562_v10 = vcombine.low %v3511_v8, %v3543_v12  ;;  %v15978_v19 = vcombine.low %v12450_v57, %v12453_v0 }
 0x63a   : > { %15959 = vst [vmem:[#allocation127_spill] sm:$0xff] %v12734_v38  ;;  %7010 = vrot.lane.b32.xlu1 %v15960_v29, %s15239_s6  ;;  %s15254_s6 = smov 100   ;;  %v12783_v61 = vrot.slane %v15970_v31, %v11357_v54  ;;  %v15975_v55 = vcombine.low %v15973_v41, %v15974_v16  ;;  %v12795_v29 = vpop.trf.xlu0  ;;  %v15980_v52 = vcombine.high %v15936_v42, %v15935_v37  ;;  %v16004_v42 = vld [vmem:[#allocation158_spill] sm:$0xff] }
 0x63b   : > { %15962 = vst [vmem:[#allocation153_spill] sm:$0xff] %v12748_v35  ;;  %7028 = vrot.lane.b32.xlu0 %v3561_v6, %s15254_s6  ;;  %v12789_v6 = vpop.trf.xlu1  ;;  %15976 = vst [vmem:[#allocation174_spill] sm:$0xff] %v12795_v29  ;;  %v12805_v31 = vrot.slane %v15978_v19, %v11357_v54  ;;  %v5824_v29 = vcombine.low %v12620_v28, %v12623_v46  ;;  %v6047_v30 = vrot.slane %v6033_v7, %v10925_v14  ;;  %v15981_v19 = vld [vmem:[#allocation157_spill] sm:$0xff] }
 0x63c   : > { %15971 = vst [vmem:[#allocation235_spill] sm:$0xff] %v12783_v61  ;;  %15972 = vst [vmem:[#allocation236_spill] sm:$0xff] %v12789_v6  ;;  %v6031_v11 = vrot.slane %v15980_v52, %v10925_v14  ;;  %v15982_v61 = vcombine.high %v15857_v15, %v15981_v19  ;;  %v5825_v39 = vcombine.high %v12620_v28, %v12623_v46 }
 0x63d   : > { %15979 = vst [vmem:[#allocation175_spill] sm:$0xff] %v12805_v31  ;;  %v3512_v35 = vcombine.low %v12720_v49, %v12764_v5  ;;  %v6080_v37 = vcombine.low %v6024_v43, %v6040_v2  ;;  %v6081_v7 = vcombine.high %v6024_v43, %v6040_v2  ;;  %v15985_v15 = vcombine.high %v15973_v41, %v15974_v16  ;;  %v16053_v31 = vld [vmem:[#allocation106_spill] sm:$0xff] }
 0x63e   : > { %7018 = vrot.lane.b32.xlu1 %v15975_v55, %s15251_s18  ;;  %v5809_v55 = vcombine.high %v12546_v56, %v12554_v63  ;;  %v12822_v62 = vrot.slane %v15982_v61, %v11357_v54  ;;  %s15257_s18 = smov 104   ;;  %v3563_v46 = vcombine.high %v3511_v8, %v3543_v12  ;;  %v3552_v52 = vrot.slane %v3544_v51, %v11357_v54  ;;  %v12860_v51 = vpop.trf.xlu0 }
 0x63f   : > { %7036 = vrot.lane.b32.xlu0 %v3562_v10, %s15257_s18  ;;  %v15986_v10 = vcombine.high %v12450_v57, %v12453_v0  ;;  %v15988_v16 = vcombine.low %v12546_v56, %v12554_v63  ;;  %v6096_v43 = vcombine.low %v6031_v11, %v6047_v30  ;;  %v6097_v41 = vcombine.high %v6031_v11, %v6047_v30  ;;  %v16049_v30 = vld [vmem:[#allocation80_spill] sm:$0xff]  ;;  %v16050_v0 = vld [vmem:[#allocation197_spill] sm:$0xff] }
 0x640   : > { %15983 = vst [vmem:[#allocation157_spill] sm:$0xff] %v12822_v62  ;;  %v12855_v12 = vrot.slane %v5809_v55, %v11357_v54  ;;  %v12858_v8 = vrot.slane %v5824_v29, %v11357_v54  ;;  %15993 = vst [vmem:[#allocation242_spill] sm:$0xff] %v12860_v51  ;;  %v3520_v57 = vrot.slane %v3512_v35, %v11357_v54  ;;  %v15996_v55 = vld [vmem:[#allocation39_spill] sm:$0xff] }
 0x641   : > { %v12844_v19 = vrot.slane %v15986_v10, %v11357_v54  ;;  %v12850_v2 = vrot.slane %v15988_v16, %v11357_v54  ;;  %v3545_v29 = vcombine.high %v12725_v48, %v12737_v22  ;;  %v15997_v10 = vld [vmem:[#allocation176_spill] sm:$0xff]  ;;  %v12885_v48 = vrot.slane %v5825_v39, %v11357_v54  ;;  %v16028_v62 = vld [vmem:[#allocation195_spill] sm:$0xff] }
 0x642   : > { %7026 = vrot.lane.b32.xlu1 %v15985_v15, %s15254_s6  ;;  %v12852_v15 = vpop.trf.xlu1  ;;  %15991 = vst [vmem:[#allocation240_spill] sm:$0xff] %v12855_v12  ;;  %15992 = vst [vmem:[#allocation241_spill] sm:$0xff] %v12858_v8  ;;  %s15262_s6 = smov 108   ;;  %v15998_v16 = vcombine.low %v15996_v55, %v15997_v10  ;;  %v3564_v61 = vcombine.low %v3520_v57, %v3552_v52  ;;  %v12888_v22 = vrot.slane %v6080_v37, %v11357_v54  ;;  %v12931_v37 = vpop.trf.xlu0  ;;  %v16044_v39 = vld [vmem:[#allocation183_spill] sm:$0xff]  ;;  %v16048_v12 = vld [vmem:[#allocation118_spill] sm:$0xff] }
 0x643   : > { %15987 = vst [vmem:[#allocation237_spill] sm:$0xff] %v12844_v19  ;;  %15989 = vst [vmem:[#allocation238_spill] sm:$0xff] %v12850_v2  ;;  %7044 = vrot.lane.b32.xlu0 %v3563_v46, %s15262_s6  ;;  %v3513_v28 = vcombine.high %v12720_v49, %v12764_v5  ;;  %v12899_v56 = vrot.slane %v6081_v7, %v11357_v54  ;;  %v12902_v11 = vrot.slane %v6096_v43, %v11357_v54  ;;  %v16022_v49 = vld [vmem:[#allocation132_spill] sm:$0xff]  ;;  %v16047_v46 = vld [vmem:[#allocation57_spill] sm:$0xff] }
 0x644   : > { %15990 = vst [vmem:[#allocation239_spill] sm:$0xff] %v12852_v15  ;;  %16001 = vst [vmem:[#allocation39_spill] sm:$0xff] %v12885_v48 }
 0x645   : > { %16002 = vst [vmem:[#allocation176_spill] sm:$0xff] %v12888_v22  ;;  %16007 = vst [vmem:[#allocation158_spill] sm:$0xff] %v12899_v56  ;;  %v16031_v56 = vld [vmem:[#allocation105_spill] sm:$0xff] }
 0x646   : > { %7034 = vrot.lane.b32.xlu1 %v15998_v16, %s15257_s18  ;;  %v16003_v16 = vld [vmem:[#allocation156_spill] sm:$0xff]  ;;  %16008 = vst [vmem:[#allocation243_spill] sm:$0xff] %v12902_v11  ;;  %s15395_s18 = smov 112   ;;  %v12919_v43 = vpop.trf.xlu1  ;;  %16015 = vst [vmem:[#allocation246_spill] sm:$0xff] %v12931_v37  ;;  %v16025_v37 = vld [vmem:[#allocation151_spill] sm:$0xff] }
 0x647   : > { %v16005_v35 = vcombine.low %v16003_v16, %v16004_v42  ;;  %7052 = vrot.lane.b32.xlu0 %v3564_v61, %s15395_s18  ;;  %v16011_v5 = vcombine.high %v16003_v16, %v16004_v42  ;;  %16013 = vst [vmem:[#allocation245_spill] sm:$0xff] %v12919_v43  ;;  %v16014_v61 = vcombine.high %v15996_v55, %v15997_v10  ;;  %v16027_v11 = vld [vmem:[#allocation177_spill] sm:$0xff] }
 0x648   : > { %v3565_v42 = vcombine.high %v3520_v57, %v3552_v52  ;;  %v3559_v16 = vrot.slane %v3545_v29, %v11357_v54  ;;  %v12937_v55 = vrot.slane %v6097_v41, %v11357_v54  ;;  %v3527_v10 = vrot.slane %v3513_v28, %v11357_v54  ;;  %v16017_v52 = vld [vmem:[#allocation179_spill] sm:$0xff]  ;;  %v16018_v57 = vld [vmem:[#allocation122_spill] sm:$0xff] }
 0x649   : > { %v12894_v51 = vrot.slane %v16005_v35, %v11357_v54  ;;  %v12917_v7 = vrot.slane %v16011_v5, %v11357_v54  ;;  %v16019_v29 = vcombine.low %v16017_v52, %v16018_v57  ;;  %v12949_v5 = vpop.permute.xlu0 %6834  ;;  %v16021_v28 = vcombine.high %v16017_v52, %v16018_v57  ;;  %v16029_v52 = vld [vmem:[#allocation77_spill] sm:$0xff]  ;;  %v16033_v35 = vld [vmem:[#allocation152_spill] sm:$0xff] }
 0x64a   : > { %7042 = vrot.lane.b32.xlu1 %v16014_v61, %s15262_s6  ;;  %16016 = vst [vmem:[#allocation247_spill] sm:$0xff] %v12937_v55  ;;  %s15282_s6 = smov 116   ;;  %v3566_v41 = vcombine.low %v3527_v10, %v3559_v16  ;;  %v12951_v8 = vpop.trf.xlu1  ;;  %v16023_v61 = vld [vmem:[#allocation78_spill] sm:$0xff]  ;;  %v3705_v57 = vcombine.high %v16029_v52, %v16028_v62  ;;  %v3833_v62 = vcombine.high %v12447_v36, %v12423_v3 }
 0x64b   : > { %16006 = vst [vmem:[#allocation156_spill] sm:$0xff] %v12894_v51  ;;  %16012 = vst [vmem:[#allocation244_spill] sm:$0xff] %v12917_v7  ;;  %7060 = vrot.lane.b32.xlu0 %v3565_v42, %s15282_s6  ;;  %v3737_v42 = vcombine.high %v15863_v1, %v12154_v60  ;;  %v3753_v63 = vcombine.high %v16023_v61, %v16022_v49  ;;  %v16026_v51 = vld [vmem:[#allocation178_spill] sm:$0xff]  ;;  %v16032_v1 = vld [vmem:[#allocation44_spill] sm:$0xff] }
 0x64c   : > { %16020 = vst [vmem:[#allocation179_spill] sm:$0xff] %v12951_v8  ;;  %v3567_v8 = vcombine.high %v3527_v10, %v3559_v16  ;;  %v3769_v49 = vcombine.high %v16033_v35, %v16032_v1  ;;  %v16035_v16 = vld [vmem:[#allocation182_spill] sm:$0xff] }
 0x64d   : > { %v12964_v55 = vpop.permute.xlu0 %6844 }
 0x64e   : > { %7050 = vrot.lane.b32.xlu1 %v16019_v29, %s15395_s18  ;;  %v16024_v29 = vld [vmem:[#allocation150_spill] sm:$0xff]  ;;  %v12968_v43 = vpop.permute.xlu1 %6836 }
 0x64f   : > { %7068 = vrot.lane.b32.xlu0 %v3566_v41, %s15393_s5  ;;  %v3801_v7 = vcombine.high %v16025_v37, %v16024_v29  ;;  %v3632_v41 = vcombine.low %v16027_v11, %v16026_v51  ;;  %v16034_v37 = vld [vmem:[#allocation181_spill] sm:$0xff]  ;;  %v3751_v51 = vrot.slane %v3737_v42, %v10925_v14  ;;  %v3767_v11 = vrot.slane %v3753_v63, %v10925_v14  ;;  %v16038_v42 = vld [vmem:[#allocation123_spill] sm:$0xff] }
 0x650   : > { %v16036_v10 = vcombine.low %v16034_v37, %v16035_v16  ;;  %v3719_v29 = vrot.slane %v3705_v57, %v10925_v14  ;;  %v3783_v63 = vrot.slane %v3769_v49, %v11357_v54 }
 0x651   : > { %v12983_v61 = vpop.permute.xlu0 %6852  ;;  %v3817_v15 = vcombine.high %v3751_v51, %v3767_v11 }
 0x652   : > { %7058 = vrot.lane.b32.xlu1 %v16021_v28, %s15282_s6  ;;  %v16030_v28 = vld [vmem:[#allocation196_spill] sm:$0xff]  ;;  %s15391_s6 = smov 124   ;;  %v12988_v35 = vpop.permute.xlu1 %6842 }
 0x653   : > { %v3721_v60 = vcombine.high %v16031_v56, %v16030_v28  ;;  %7076 = vrot.lane.b32.xlu0 %v3567_v8, %s15391_s6  ;;  %v3815_v56 = vrot.slane %v3801_v7, %v11357_v54  ;;  %v12991_v8 = vrot.slane %v3632_v41, %v11357_v54  ;;  %v16039_v28 = vld [vmem:[#allocation125_spill] sm:$0xff]  ;;  %v16042_v7 = vcombine.high %v16034_v37, %v16035_v16 }
 0x654   : > { %v16040_v1 = vcombine.low %v16038_v42, %v16039_v28  ;;  %v3816_v41 = vcombine.low %v3751_v51, %v3767_v11 }
 0x655   : > { %16037 = vst [vmem:[#allocation122_spill] sm:$0xff] %v12991_v8  ;;  %v3735_v52 = vrot.slane %v3721_v60, %v10925_v14  ;;  %v13007_v22 = vpop.permute.xlu0 %6860  ;;  %v3834_v57 = vcombine.low %v3783_v63, %v3815_v56  ;;  %v3835_v37 = vcombine.high %v3783_v63, %v3815_v56  ;;  %v16043_v60 = vld [vmem:[#allocation185_spill] sm:$0xff]  ;;  %v4024_v56 = vcombine.low %v16049_v30, %v16048_v12 }
 0x656   : > { %7066 = vrot.lane.b32.xlu1 %v16036_v10, %s15393_s5  ;;  %v13001_v10 = vrot.slane %v16040_v1, %v11357_v54  ;;  %v3824_v16 = vrot.slane %v3816_v41, %v11357_v54  ;;  %v16045_v48 = vcombine.low %v16043_v60, %v16044_v39 }
 0x657   : > { %7084 = vrot.lane.b32.xlu0 %v3833_v62, %s15389_s15  ;;  %v13011_v62 = vpop.permute.xlu1 %6850  ;;  %v3784_v42 = vcombine.low %v3719_v29, %v3735_v52  ;;  %v4032_v11 = vrot.slane %v4024_v56, %v10925_v14 }
 0x658   : > { %16041 = vst [vmem:[#allocation132_spill] sm:$0xff] %v13001_v10  ;;  %v3697_v49 = vcombine.high %v12991_v8, %v13001_v10  ;;  %v3992_v8 = vcombine.low %v16053_v31, %v16052_v13 }
 0x659   : > { %v13017_v28 = vpop.permute.xlu0 %6868 }
 0x65a   : > { %7074 = vrot.lane.b32.xlu1 %v16042_v7, %s15391_s6  ;;  %v3792_v7 = vrot.slane %v3784_v42, %v11357_v54  ;;  %v16051_v42 = vld [vmem:[#allocation79_spill] sm:$0xff] }
 0x65b   : > { %7092 = vrot.lane.b32.xlu0 %v3834_v57, %s15387_s3  ;;  %v13020_v1 = vpop.permute.xlu1 %6858  ;;  %v16046_v57 = vld [vmem:[#allocation145_spill] sm:$0xff]  ;;  %v3976_v19 = vcombine.low %v16051_v42, %v16050_v0 }
 0x65c   : > { %v3836_v41 = vcombine.low %v3792_v7, %v3824_v16 }
 0x65d   : > { %v13032_v63 = vpop.permute.xlu0 %6876  ;;  %v3984_v3 = vrot.slane %v3976_v19, %v10925_v14 }
 0x65e   : > { %7082 = vrot.lane.b32.xlu1 %v3697_v49, %s15389_s15  ;;  %v4008_v49 = vcombine.low %v16047_v46, %v16046_v57 }
 0x65f   : > { %7100 = vrot.lane.b32.xlu0 %v3835_v37, %s15383_s23  ;;  %v13034_v2 = vpop.permute.xlu1 %6866  ;;  %v3785_v37 = vcombine.high %v3719_v29, %v3735_v52  ;;  %v3837_v29 = vcombine.high %v3792_v7, %v3824_v16  ;;  %v3831_v52 = vrot.slane %v3817_v15, %v11357_v54 }
 0x660   : > { %v4016_v51 = vrot.slane %v4008_v49, %v10925_v14  ;;  %v16056_v49 = vld [vmem:[#allocation124_spill] sm:$0xff] }
 0x661   : > { %v13047_v10 = vpop.permute.xlu0 %6884 }
 0x662   : > { %7090 = vrot.lane.b32.xlu1 %v16045_v48, %s15387_s3  ;;  %v16054_v48 = vcombine.high %v16043_v60, %v16044_v39  ;;  %v3799_v39 = vrot.slane %v3785_v37, %v11357_v54  ;;  %v16055_v60 = vld [vmem:[#allocation187_spill] sm:$0xff]  ;;  %v4072_v56 = vcombine.low %v4016_v51, %v4032_v11 }
 0x663   : > { %7108 = vrot.lane.b32.xlu0 %v3836_v41, %s15385_s1  ;;  %v13050_v38 = vpop.permute.xlu1 %6874  ;;  %v4000_v41 = vrot.slane %v3992_v8, %v10925_v14  ;;  %v16058_v19 = vcombine.high %v16055_v60, %v16056_v49 }
 0x664   : > { %v3838_v16 = vcombine.low %v3799_v39, %v3831_v52  ;;  %v3839_v37 = vcombine.high %v3799_v39, %v3831_v52  ;;  %v4073_v52 = vcombine.high %v4016_v51, %v4032_v11 }
 0x665   : > { %v13060_v36 = vpop.permute.xlu0 %6892  ;;  %v4040_v7 = vcombine.low %v3984_v3, %v4000_v41  ;;  %v4041_v53 = vcombine.high %v3984_v3, %v4000_v41 }
 0x666   : > { %7098 = vrot.lane.b32.xlu1 %v16054_v48, %s15383_s23  ;;  %v16057_v48 = vcombine.low %v16055_v60, %v16056_v49  ;;  %v4009_v60 = vcombine.high %v16047_v46, %v16046_v57  ;;  %v4025_v49 = vcombine.high %v16049_v30, %v16048_v12  ;;  %v16062_v46 = vcombine.high %v16059_v44, %v16060_v32 }
 0x667   : > { %7116 = vrot.lane.b32.xlu0 %v3837_v29, %s15381_s14  ;;  %v13062_v15 = vpop.permute.xlu1 %6882  ;;  %v4080_v29 = vrot.slane %v4072_v56, %v11357_v54  ;;  %v4048_v45 = vrot.slane %v4040_v7, %v11357_v54  ;;  %v3977_v7 = vcombine.high %v16051_v42, %v16050_v0  ;;  %v4087_v0 = vrot.slane %v4073_v52, %v11357_v54 }
 0x668   : > { %v4023_v12 = vrot.slane %v4009_v60, %v10925_v14  ;;  %v4039_v30 = vrot.slane %v4025_v49, %v10925_v14 }
 0x669   : > { %v13069_v8 = vpop.permute.xlu0 %6900  ;;  %v4104_v56 = vcombine.low %v4048_v45, %v4080_v29  ;;  %v4105_v51 = vcombine.high %v4048_v45, %v4080_v29  ;;  %v3991_v3 = vrot.slane %v3977_v7, %v10925_v14 }
 0x66a   : > { %7106 = vrot.lane.b32.xlu1 %v16057_v48, %s15385_s1  ;;  %v4088_v41 = vcombine.low %v4023_v12, %v4039_v30  ;;  %v4089_v47 = vcombine.high %v4023_v12, %v4039_v30 }
 0x66b   : > { %7124 = vrot.lane.b32.xlu0 %v3838_v16, %s15379_s26  ;;  %v13072_v48 = vpop.permute.xlu1 %6890  ;;  %v16061_v16 = vcombine.low %v16059_v44, %v16060_v32  ;;  %v4055_v44 = vrot.slane %v4041_v53, %v11357_v54  ;;  %v16063_v32 = vld [vmem:[#allocation192_spill] sm:$0xff] }
 0x66d   : > { %v13084_v39 = vpop.permute.xlu0 %6908  ;;  %v4106_v45 = vcombine.low %v4055_v44, %v4087_v0  ;;  %v4107_v52 = vcombine.high %v4055_v44, %v4087_v0  ;;  %v16073_v44 = vld [vmem:[#allocation193_spill] sm:$0xff] }
 0x66e   : > { %7114 = vrot.lane.b32.xlu1 %v16058_v19, %s15381_s14  ;;  %s16165_s14 = smov 116  }
 0x66f   : > { %7132 = vrot.lane.b32.xlu0 %v3839_v37, %s15375_s7  ;;  %v13086_v19 = vpop.permute.xlu1 %6898  ;;  %v3993_v37 = vcombine.high %v16053_v31, %v16052_v13  ;;  %v16064_v31 = vld [vmem:[#allocation191_spill] sm:$0xff] }
 0x670   : > { %v16065_v11 = vcombine.low %v16063_v32, %v16064_v31  ;;  %v16066_v49 = vcombine.high %v16063_v32, %v16064_v31  ;;  %v16070_v32 = vld [vmem:[#allocation93_spill] sm:$0xff] }
 0x671   : > { %v13099_v57 = vpop.permute.xlu0 %6916  ;;  %v4007_v13 = vrot.slane %v3993_v37, %v10925_v14  ;;  %v16067_v37 = vld [vmem:[#allocation64_spill] sm:$0xff]  ;;  %v5880_v31 = vcombine.low %v16070_v32, %v16069_v25  ;;  %v16081_v32 = vld [vmem:[#allocation81_spill] sm:$0xff] }
 0x672   : > { %7122 = vrot.lane.b32.xlu1 %v16061_v16, %s15379_s26  ;;  %v4248_v25 = vcombine.low %v16081_v32, %v16080_v21 }
 0x673   : > { %7140 = vrot.lane.b32.xlu0 %v4104_v56, %s15371_s8  ;;  %v13102_v42 = vpop.permute.xlu1 %6906  ;;  %v4056_v60 = vcombine.low %v3991_v3, %v4007_v13  ;;  %v4096_v56 = vrot.slane %v4088_v41, %v11357_v54  ;;  %v16074_v41 = vld [vmem:[#allocation194_spill] sm:$0xff]  ;;  %v13160_v30 = vrot.slane %v5880_v31, %v10925_v14 }
 0x674   : > { %v16075_v34 = vcombine.low %v16073_v44, %v16074_v41  ;;  %v4256_v31 = vrot.slane %v4248_v25, %v10925_v14 }
 0x675   : > { %v13112_v16 = vpop.permute.xlu0 %6924  ;;  %16086 = vst [vmem:[#allocation151_spill] sm:$0xff] %v13160_v30 }
 0x676   : > { %7130 = vrot.lane.b32.xlu1 %v16062_v46, %s15375_s7  ;;  %v5912_v46 = vcombine.low %v16067_v37, %v12727_v50  ;;  %v16076_v37 = vld [vmem:[#allocation149_spill] sm:$0xff]  ;;  %v16077_v50 = vld [vmem:[#allocation58_spill] sm:$0xff]  ;;  %s8295_s7 = sshll.u32 %s9527_s0, 6  ;;  %s16362_s0 = smov 8  }
 0x677   : > { %7148 = vrot.lane.b32.xlu0 %v4105_v51, %s15365_s20  ;;  %v13114_v29 = vpop.permute.xlu1 %6914  ;;  %v16068_v51 = vld [vmem:[#allocation94_spill] sm:$0xff]  ;;  %v4280_v23 = vcombine.low %v16077_v50, %v16076_v37  ;;  %s13523_s26 = scalar_lea.vmem [#allocation11], %s8295_s7  ;;  %s16203_s7 = smov 20  }
 0x679   : > { %v13121_v53 = vpop.permute.xlu0 %6932 }
 0x67a   : > { %7138 = vrot.lane.b32.xlu1 %v16065_v11, %s15371_s8  ;;  %v5928_v11 = vcombine.low %v16068_v51, %v12789_v6  ;;  %v16078_v51 = vld [vmem:[#allocation155_spill] sm:$0xff]  ;;  %v16079_v6 = vld [vmem:[#allocation82_spill] sm:$0xff]  ;;  %s16158_s8 = smov 108  }
 0x67b   : > { %7156 = vrot.lane.b32.xlu0 %v4106_v45, %s15359_s21  ;;  %v4064_v45 = vrot.slane %v4056_v60, %v11357_v54 }
 0x67c   : > { %v13124_v7 = vpop.permute.xlu1 %6922  ;;  %v13156_v12 = vrot.slane %v5928_v11, %v10925_v14 }
 0x67d   : > { %v13144_v4 = vpop.permute.xlu0 %6940  ;;  %v4108_v60 = vcombine.low %v4064_v45, %v4096_v56  ;;  %v4109_v11 = vcombine.high %v4064_v45, %v4096_v56 }
 0x67e   : > { %7146 = vrot.lane.b32.xlu1 %v16066_v49, %s15365_s20  ;;  %v16071_v49 = vld [vmem:[#allocation216_spill] sm:$0xff]  ;;  %16085 = vst [vmem:[#allocation150_spill] sm:$0xff] %v13156_v12  ;;  %s16150_s20 = smov 104  }
 0x67f   : > { %7164 = vrot.lane.b32.xlu0 %v4107_v52, %s15354_s12  ;;  %v5896_v0 = vcombine.low %v16072_v24, %v16071_v49  ;;  %v4296_v52 = vcombine.low %v16079_v6, %v16078_v51  ;;  %v4057_v24 = vcombine.high %v3991_v3, %v4007_v13  ;;  %v16082_v49 = vld [vmem:[#allocation200_spill] sm:$0xff]  ;;  %v16088_v3 = vcombine.high %v16073_v44, %v16074_v41  ;;  %v16089_v44 = vld [vmem:[#allocation201_spill] sm:$0xff] }
 0x680   : > { %v4264_v9 = vcombine.low %v16083_v33, %v16082_v49  ;;  %v4288_v13 = vrot.slane %v4280_v23, %v10925_v14  ;;  %v16090_v41 = vld [vmem:[#allocation128_spill] sm:$0xff] }
 0x681   : > { %v13148_v20 = vpop.permute.xlu1 %6930  ;;  %v13163_v59 = vrot.slane %v5896_v0, %v10925_v14  ;;  %v4071_v23 = vrot.slane %v4057_v24, %v11357_v54  ;;  %v16093_v24 = vcombine.high %v16089_v44, %v16090_v41 }
 0x682   : > { %7154 = vrot.lane.b32.xlu1 %v16075_v34, %s15359_s21  ;;  %v13153_v34 = vrot.slane %v5912_v46, %v10925_v14  ;;  %v4304_v46 = vrot.slane %v4296_v52, %v10925_v14  ;;  %v13171_v26 = vpop.permute.xlu0 %6948  ;;  %v4272_v0 = vrot.slane %v4264_v9, %v10925_v14  ;;  %v16091_v52 = vcombine.low %v16089_v44, %v16090_v41  ;;  %v16096_v44 = vld [vmem:[#allocation205_spill] sm:$0xff]  ;;  %v16097_v41 = vld [vmem:[#allocation206_spill] sm:$0xff]  ;;  %s16145_s21 = smov 100  }
 0x683   : > { %7172 = vrot.lane.b32.xlu0 %v4108_v60, %s15352_s29  ;;  %16087 = vst [vmem:[#allocation178_spill] sm:$0xff] %v13163_v59  ;;  %v4103_v60 = vrot.slane %v4089_v47, %v11357_v54  ;;  %v5944_v47 = vcombine.low %v13160_v30, %v13163_v59 }
 0x684   : > { %16084 = vst [vmem:[#allocation78_spill] sm:$0xff] %v13153_v34  ;;  %v5976_v40 = vcombine.low %v13153_v34, %v13156_v12  ;;  %v4344_v56 = vcombine.low %v4288_v13, %v4304_v46 }
 0x685   : > { %v4110_v25 = vcombine.low %v4071_v23, %v4103_v60  ;;  %v4111_v30 = vcombine.high %v4071_v23, %v4103_v60  ;;  %v13204_v34 = vrot.slane %v5944_v47, %v11357_v54  ;;  %v4281_v60 = vcombine.high %v16077_v50, %v16076_v37 }
 0x686   : > { %7162 = vrot.lane.b32.xlu1 %v16088_v3, %s15354_s12  ;;  %v4312_v3 = vcombine.low %v4256_v31, %v4272_v0  ;;  %v4352_v59 = vrot.slane %v4344_v56, %v11357_v54  ;;  %v4297_v23 = vcombine.high %v16079_v6, %v16078_v51  ;;  %v4345_v47 = vcombine.high %v4288_v13, %v4304_v46  ;;  %s16143_s12 = smov 96  }
 0x687   : > { %v13174_v58 = vpop.permute.xlu1 %6938  ;;  %7180 = vrot.lane.b32.xlu0 %v4109_v11, %s15350_s9  ;;  %v13188_v45 = vpop.permute.xlu0 %6956  ;;  %v13194_v11 = vrot.slane %v5976_v40, %v11357_v54  ;;  %16094 = vst [vmem:[#allocation195_spill] sm:$0xff] %v13204_v34  ;;  %v4313_v34 = vcombine.high %v4256_v31, %v4272_v0  ;;  %v16100_v50 = vcombine.high %v16096_v44, %v16097_v41  ;;  %v16102_v31 = vld [vmem:[#allocation211_spill] sm:$0xff]  ;;  %v16103_v0 = vld [vmem:[#allocation209_spill] sm:$0xff] }
 0x688   : > { %v4320_v40 = vrot.slane %v4312_v3, %v11357_v54  ;;  %v4249_v3 = vcombine.high %v16081_v32, %v16080_v21  ;;  %v4295_v6 = vrot.slane %v4281_v60, %v10925_v14  ;;  %v4311_v37 = vrot.slane %v4297_v23, %v10925_v14 }
 0x689   : > { %16092 = vst [vmem:[#allocation177_spill] sm:$0xff] %v13194_v11  ;;  %v4359_v21 = vrot.slane %v4345_v47, %v11357_v54  ;;  %v4327_v46 = vrot.slane %v4313_v34, %v11357_v54  ;;  %v16115_v11 = vld [vmem:[#allocation108_spill] sm:$0xff] }
 0x68a   : > { %7170 = vrot.lane.b32.xlu1 %v16091_v52, %s15352_s29  ;;  %v4377_v13 = vcombine.high %v4320_v40, %v4352_v59  ;;  %s16139_s29 = smov 92  }
 0x68b   : > { %v13190_v9 = vpop.permute.xlu1 %6946  ;;  %7188 = vrot.lane.b32.xlu0 %v4110_v25, %s15348_s10  ;;  %v13200_v52 = vpop.permute.xlu0 %6964  ;;  %v4265_v25 = vcombine.high %v16083_v33, %v16082_v49  ;;  %v4263_v33 = vrot.slane %v4249_v3, %v10925_v14  ;;  %v4379_v23 = vcombine.high %v4327_v46, %v4359_v21 }
 0x68d   : > { %v4279_v49 = vrot.slane %v4265_v25, %v10925_v14  ;;  %v16108_v25 = vcombine.high %v16102_v31, %v16103_v0 }
 0x68e   : > { %7178 = vrot.lane.b32.xlu1 %v16093_v24, %s15350_s9  ;;  %v16098_v24 = vcombine.low %v16096_v44, %v16097_v41  ;;  %v16104_v44 = vcombine.low %v16102_v31, %v16103_v0  ;;  %v4360_v41 = vcombine.low %v4295_v6, %v4311_v37  ;;  %v16116_v31 = vld [vmem:[#allocation213_spill] sm:$0xff]  ;;  %v16117_v0 = vld [vmem:[#allocation214_spill] sm:$0xff]  ;;  %s16134_s9 = smov 88  }
 0x68f   : > { %v13206_v12 = vpop.permute.xlu1 %6954  ;;  %7196 = vrot.lane.b32.xlu0 %v4111_v30, %s15339_s25  ;;  %v4376_v30 = vcombine.low %v4320_v40, %v4352_v59  ;;  %v4378_v59 = vcombine.low %v4327_v46, %v4359_v21  ;;  %v4328_v60 = vcombine.low %v4263_v33, %v4279_v49  ;;  %v4361_v21 = vcombine.high %v4295_v6, %v4311_v37  ;;  %v16119_v46 = vld [vmem:[#allocation135_spill] sm:$0xff] }
 0x690   : > { %16095 = vst [vmem:[#allocation77_spill] sm:$0xff] %v13206_v12  ;;  %v13220_v56 = vpop.permute.xlu0 %6972  ;;  %v4368_v47 = vrot.slane %v4360_v41, %v11357_v54  ;;  %v16120_v41 = vld [vmem:[#allocation59_spill] sm:$0xff]  ;;  %v16126_v6 = vcombine.high %v16116_v31, %v16117_v0 }
 0x691   : > { %v4336_v3 = vrot.slane %v4328_v60, %v11357_v54  ;;  %v4552_v27 = vcombine.low %v16120_v41, %v16119_v46 }
 0x692   : > { %7186 = vrot.lane.b32.xlu1 %v16098_v24, %s15348_s10  ;;  %s16130_s10 = smov 84  }
 0x693   : > { %v13222_v18 = vpop.permute.xlu1 %6962  ;;  %7204 = vrot.lane.b32.xlu0 %v4376_v30, %s15341_s13  ;;  %v4380_v60 = vcombine.low %v4336_v3, %v4368_v47  ;;  %v13292_v37 = vrot.slane %v4552_v27, %v10925_v14 }
 0x694   : > { %16099 = vst [vmem:[#allocation196_spill] sm:$0xff] %v13222_v18  ;;  %v13235_v51 = vpop.permute.xlu0 %6980 }
 0x696   : > { %7194 = vrot.lane.b32.xlu1 %v16100_v50, %s15339_s25  ;;  %s16107_s25 = smov 72   ;;  %v16112_v50 = vld [vmem:[#allocation41_spill] sm:$0xff] }
 0x697   : > { %7212 = vrot.lane.b32.xlu0 %v4377_v13, %s15346_s11  ;;  %v16113_v13 = vld [vmem:[#allocation83_spill] sm:$0xff] }
 0x698   : > { %v13238_v32 = vpop.permute.xlu1 %6970  ;;  %v13248_v24 = vpop.permute.xlu0 %6988 }
 0x699   : > { %16101 = vst [vmem:[#allocation105_spill] sm:$0xff] %v13238_v32  ;;  %16105 = vst [vmem:[#allocation44_spill] sm:$0xff] %v13248_v24 }
 0x69a   : > { %7202 = vrot.lane.b32.xlu1 %v16104_v44, %s15341_s13  ;;  %s16111_s13 = smov 76   ;;  %v4520_v44 = vcombine.low %v16113_v13, %v16112_v50 }
 0x69b   : > { %7220 = vrot.lane.b32.xlu0 %v4378_v59, %s16107_s25  ;;  %v16114_v59 = vld [vmem:[#allocation202_spill] sm:$0xff] }
 0x69c   : > { %v13250_v40 = vpop.permute.xlu1 %6978  ;;  %v4536_v17 = vcombine.low %v16115_v11, %v16114_v59  ;;  %v13282_v12 = vrot.slane %v4520_v44, %v10925_v14  ;;  %v4375_v44 = vrot.slane %v4361_v21, %v11357_v54 }
 0x69d   : > { %16106 = vst [vmem:[#allocation152_spill] sm:$0xff] %v13250_v40  ;;  %v13257_v34 = vpop.permute.xlu0 %6996  ;;  %v16122_v40 = vld [vmem:[#allocation84_spill] sm:$0xff] }
 0x69e   : > { %7210 = vrot.lane.b32.xlu1 %v16108_v25, %s15346_s11  ;;  %16109 = vst [vmem:[#allocation181_spill] sm:$0xff] %v13257_v34  ;;  %v16118_v25 = vcombine.low %v16116_v31, %v16117_v0  ;;  %v4329_v34 = vcombine.high %v4263_v33, %v4279_v49  ;;  %s16125_s11 = smov 80   ;;  %v4381_v49 = vcombine.high %v4336_v3, %v4368_v47  ;;  %v16131_v3 = vld [vmem:[#allocation215_spill] sm:$0xff] }
 0x69f   : > { %7228 = vrot.lane.b32.xlu0 %v4379_v23, %s16111_s13 }
 0x6a0   : > { %v13260_v30 = vpop.permute.xlu1 %6986  ;;  %v4343_v0 = vrot.slane %v4329_v34, %v11357_v54 }
 0x6a1   : > { %16110 = vst [vmem:[#allocation182_spill] sm:$0xff] %v13260_v30  ;;  %v16121_v30 = vld [vmem:[#allocation45_spill] sm:$0xff]  ;;  %v13276_v32 = vpop.permute.xlu0 %7004 }
 0x6a2   : > { %7218 = vrot.lane.b32.xlu1 %v16118_v25, %s16107_s25  ;;  %v4568_v23 = vcombine.low %v16122_v40, %v16121_v30  ;;  %16123 = vst [vmem:[#allocation123_spill] sm:$0xff] %v13276_v32  ;;  %v13285_v25 = vrot.slane %v4536_v17, %v10925_v14  ;;  %v4521_v17 = vcombine.high %v16113_v13, %v16112_v50  ;;  %v16128_v32 = vld [vmem:[#allocation228_spill] sm:$0xff]  ;;  %v16132_v50 = vld [vmem:[#allocation129_spill] sm:$0xff] }
 0x6a3   : > { %7236 = vrot.lane.b32.xlu0 %v4380_v60, %s16125_s11  ;;  %v16127_v60 = vld [vmem:[#allocation227_spill] sm:$0xff]  ;;  %v16133_v13 = vcombine.low %v16131_v3, %v16132_v50  ;;  %v4382_v21 = vcombine.low %v4343_v0, %v4375_v44 }
 0x6a4   : > { %v13278_v18 = vpop.permute.xlu1 %6994  ;;  %v16129_v24 = vcombine.low %v16127_v60, %v16128_v32  ;;  %v4584_v47 = vcombine.low %v13282_v12, %v13285_v25  ;;  %v13324_v34 = vrot.slane %v4521_v17, %v10925_v14  ;;  %v4585_v60 = vcombine.high %v13282_v12, %v13285_v25 }
 0x6a5   : > { %16124 = vst [vmem:[#allocation125_spill] sm:$0xff] %v13278_v18  ;;  %v13295_v18 = vrot.slane %v4568_v23, %v10925_v14  ;;  %v13297_v33 = vpop.permute.xlu0 %7012 }
 0x6a6   : > { %7226 = vrot.lane.b32.xlu1 %v16126_v6, %s16111_s13  ;;  %v7826_v31 = vsel %vm15401_vm5, %v16129_v24, %v12968_v43 }
 0x6a7   : > { %7244 = vrot.lane.b32.xlu0 %v4381_v49, %s16130_s10  ;;  %v4616_v43 = vcombine.low %v13292_v37, %v13295_v18  ;;  %v7829_v32 = vsel %vm7827_vm7, %v7826_v31, %v12964_v55  ;;  %v4537_v49 = vcombine.high %v16115_v11, %v16114_v59  ;;  %v4592_v11 = vrot.slane %v4584_v47, %v11357_v54  ;;  %v16136_v59 = vld [vmem:[#allocation166_spill] sm:$0xff]  ;;  %v16137_v31 = vld [vmem:[#allocation165_spill] sm:$0xff] }
 0x6a8   : > { %v13307_v27 = vpop.permute.xlu1 %7002  ;;  %v7832_v23 = vsel %vm7830_vm8, %v7829_v32, %v12983_v61  ;;  %v16135_v61 = vcombine.high %v16131_v3, %v16132_v50  ;;  %v4553_v3 = vcombine.high %v16120_v41, %v16119_v46 }
 0x6a9   : > { %v13321_v24 = vpop.permute.xlu0 %7020  ;;  %v7835_v55 = vsel %vm15402_vm9, %v7832_v23, %v13007_v22  ;;  %v4624_v23 = vrot.slane %v4616_v43, %v11357_v54 }
 0x6aa   : > { %7234 = vrot.lane.b32.xlu1 %v16133_v13, %s16125_s11  ;;  %v7838_v17 = vsel %vm15404_vm10, %v7835_v55, %v13017_v28  ;;  %v16138_v13 = vcombine.low %v16136_v59, %v16137_v31  ;;  %v4383_v28 = vcombine.high %v4343_v0, %v4375_v44 }
 0x6ab   : > { %7252 = vrot.lane.b32.xlu0 %v4382_v21, %s16134_s9  ;;  %v7841_v32 = vsel %vm15356_vm11, %v7838_v17, %v13032_v63  ;;  %v4649_v31 = vcombine.high %v4592_v11, %v4624_v23 }
 0x6ac   : > { %v13328_v6 = vpop.permute.xlu1 %7010  ;;  %v7825_v22 = vsel %vm15401_vm5, %v16138_v13, %v12949_v5  ;;  %v7844_v50 = vsel %vm15403_vm12, %v7841_v32, %v13047_v10  ;;  %v4569_v5 = vcombine.high %v16122_v40, %v16121_v30  ;;  %v16140_v40 = vld [vmem:[#allocation217_spill] sm:$0xff]  ;;  %v16141_v30 = vld [vmem:[#allocation218_spill] sm:$0xff] }
 0x6ad   : > { %v13351_v21 = vpop.permute.xlu0 %7028  ;;  %v7828_v47 = vsel %vm7827_vm7, %v7825_v22, %v12988_v35  ;;  %v7847_v44 = vsel %vm15357_vm13, %v7844_v50, %v13060_v36  ;;  %v4617_v35 = vcombine.high %v13292_v37, %v13295_v18  ;;  %v4648_v37 = vcombine.low %v4592_v11, %v4624_v23  ;;  %v16147_v11 = vld [vmem:[#allocation221_spill] sm:$0xff]  ;;  %v16149_v50 = vld [vmem:[#allocation44_spill] sm:$0xff] }
 0x6ae   : > { %7242 = vrot.lane.b32.xlu1 %v16135_v61, %s16130_s10  ;;  %v7831_v63 = vsel %vm7830_vm8, %v7828_v47, %v13011_v62  ;;  %v7850_v46 = vsel %vm15358_vm6, %v7847_v44, %v13069_v8  ;;  %v16142_v62 = vcombine.low %v16140_v40, %v16141_v30  ;;  %v16144_v61 = vcombine.high %v16140_v40, %v16141_v30 }
 0x6af   : > { %7260 = vrot.lane.b32.xlu0 %v4383_v28, %s16139_s29  ;;  %v7834_v10 = vsel %vm15402_vm9, %v7831_v63, %v13020_v1  ;;  %v7853_v41 = vsel %vm15362_vm14, %v7850_v46, %v13084_v39  ;;  %v13386_v1 = vrot.slane %v4553_v3, %v10925_v14  ;;  %v16152_v63 = vld [vmem:[#allocation181_spill] sm:$0xff]  ;;  %v16155_v46 = vld [vmem:[#allocation123_spill] sm:$0xff] }
 0x6b0   : > { %v13360_v55 = vpop.permute.xlu1 %7018  ;;  %v7837_v36 = vsel %vm15404_vm10, %v7834_v10, %v13034_v2  ;;  %v7856_v0 = vsel %vm15361_vm15, %v7853_v41, %v13099_v57  ;;  %v13395_v2 = vrot.slane %v4569_v5, %v10925_v14  ;;  %v16151_v5 = vld [vmem:[#allocation77_spill] sm:$0xff] }
 0x6b1   : > { %v13383_v18 = vpop.permute.xlu0 %7036  ;;  %v7840_v8 = vsel %vm15356_vm11, %v7837_v36, %v13050_v38  ;;  %v7859_v17 = vsel %vm15363_vm0, %v7856_v0, %v13112_v16  ;;  %vm15370_vm11 = vcmask 556032   ;;  %v16156_v36 = vld [vmem:[#allocation105_spill] sm:$0xff]  ;;  %v16157_v0 = vld [vmem:[#allocation152_spill] sm:$0xff] }
 0x6b2   : > { %7250 = vrot.lane.b32.xlu1 %v16142_v62, %s16134_s9  ;;  %v7843_v39 = vsel %vm15403_vm12, %v7840_v8, %v13062_v15  ;;  %v7862_v57 = vsel %vm15364_vm1, %v7859_v17, %v13121_v53  ;;  %v13418_v53 = vrot.slane %v4537_v49, %v10925_v14 }
 0x6b3   : > { %7268 = vrot.lane.b32.xlu0 %v4648_v37, %s16143_s12  ;;  %v7846_v38 = vsel %vm15357_vm13, %v7843_v39, %v13072_v48  ;;  %v7865_v16 = vsel %vm15367_vm3, %v7862_v57, %v13144_v4  ;;  %v4631_v48 = vrot.slane %v4617_v35, %v11357_v54  ;;  %vm15373_vm13 = vcmask 588800  }
 0x6b4   : > { %v13392_v43 = vpop.permute.xlu1 %7026  ;;  %v7849_v15 = vsel %vm15358_vm6, %v7846_v38, %v13086_v19  ;;  %v7868_v22 = vsel %vm15368_vm2, %v7865_v16, %v13171_v26  ;;  %vm15374_vm6 = vcmask 621568   ;;  %v4632_v26 = vcombine.low %v13386_v1, %v13395_v2  ;;  %v16160_v16 = vld [vmem:[#allocation225_spill] sm:$0xff] }
 0x6b5   : > { %v13414_v59 = vpop.permute.xlu0 %7044  ;;  %v7852_v13 = vsel %vm15362_vm14, %v7849_v15, %v13102_v42  ;;  %v7871_v19 = vsel %vm15369_vm4, %v7868_v22, %v13188_v45  ;;  %v4599_v42 = vrot.slane %v4585_v60, %v11357_v54  ;;  %v16146_v45 = vld [vmem:[#allocation223_spill] sm:$0xff]  ;;  %vm15378_vm14 = vcmask 687104  }
 0x6b6   : > { %7258 = vrot.lane.b32.xlu1 %v16144_v61, %s16139_s29  ;;  %v7855_v4 = vsel %vm15361_vm15, %v7852_v13, %v13114_v29  ;;  %v7874_v29 = vsel %vm15370_vm11, %v7871_v19, %v13200_v52  ;;  %vm15377_vm15 = vcmask 654336   ;;  %v16148_v28 = vcombine.low %v16146_v45, %v16147_v11  ;;  %v16159_v61 = vld [vmem:[#allocation182_spill] sm:$0xff] }
 0x6b7   : > { %7276 = vrot.lane.b32.xlu0 %v4649_v31, %s16145_s21  ;;  %v7858_v49 = vsel %vm15363_vm0, %v7855_v4, %v13124_v7  ;;  %v7877_v12 = vsel %vm15373_vm13, %v7874_v29, %v13220_v56  ;;  %v4650_v60 = vcombine.low %v4599_v42, %v4631_v48  ;;  %vm7887_vm0 = vcmask 719872   ;;  %v16161_v31 = vld [vmem:[#allocation226_spill] sm:$0xff] }
 0x6b8   : > { %v13424_v32 = vpop.permute.xlu1 %7034  ;;  %v7861_v23 = vsel %vm15364_vm1, %v7858_v49, %v13148_v20  ;;  %v7880_v52 = vsel %vm15374_vm6, %v7877_v12, %v13235_v51  ;;  %v4600_v47 = vcombine.low %v13324_v34, %v13418_v53  ;;  %vm7890_vm1 = vcmask 752640  }
 0x6b9   : > { %v7053_v25 = vpop.permute.xlu0 %7052  ;;  %v7864_v7 = vsel %vm15367_vm3, %v7861_v23, %v13174_v58  ;;  %v7883_v56 = vsel %vm15377_vm15, %v7880_v52, %v16149_v50  ;;  %vm7893_vm3 = vcmask 785408   ;;  %v16153_v44 = vcombine.high %v16146_v45, %v16147_v11 }
 0x6ba   : > { %7266 = vrot.lane.b32.xlu1 %v16148_v28, %s16143_s12  ;;  %v7867_v20 = vsel %vm15368_vm2, %v7864_v7, %v13190_v9  ;;  %v7886_v51 = vsel %vm15378_vm14, %v7883_v56, %v16152_v63  ;;  %v4651_v35 = vcombine.high %v4599_v42, %v4631_v48  ;;  %v16154_v9 = vld [vmem:[#allocation196_spill] sm:$0xff]  ;;  %vm7896_vm2 = vcmask 818176  }
 0x6bb   : > { %7284 = vrot.lane.b32.xlu0 %v4650_v60, %s16150_s20  ;;  %v7870_v58 = vsel %vm15369_vm4, %v7867_v20, %v16151_v5  ;;  %v7889_v40 = vsel %vm7887_vm0, %v7886_v51, %v16155_v46  ;;  %v4640_v62 = vrot.slane %v4632_v26, %v11357_v54  ;;  %vm7899_vm4 = vcmask 850944   ;;  %v16167_v60 = vld [vmem:[#allocation70_spill] sm:$0xff]  ;;  %v16170_v5 = vld [vmem:[#allocation168_spill] sm:$0xff] }
 0x6bc   : > { %v7043_v3 = vpop.permute.xlu1 %7042  ;;  %v7873_v10 = vsel %vm15370_vm11, %v7870_v58, %v16154_v9  ;;  %v7892_v37 = vsel %vm7890_vm1, %v7889_v40, %v13297_v33  ;;  %vm7902_vm11 = vcmask 883712   ;;  %v4608_v38 = vrot.slane %v4600_v47, %v11357_v54  ;;  %v16171_v58 = vld [vmem:[#allocation60_spill] sm:$0xff]  ;;  %v16172_v51 = vld [vmem:[#allocation46_spill] sm:$0xff] }
 0x6bd   : > { %v7061_v30 = vpop.permute.xlu0 %7060  ;;  %v7876_v41 = vsel %vm15373_vm13, %v7873_v10, %v16156_v36  ;;  %v7895_v17 = vsel %vm7893_vm3, %v7892_v37, %v13321_v24  ;;  %v4633_v57 = vcombine.high %v13386_v1, %v13395_v2  ;;  %vm15416_vm13 = vcmask 916480   ;;  %v16163_v24 = vld [vmem:[#allocation125_spill] sm:$0xff]  ;;  %v16174_v9 = vld [vmem:[#allocation172_spill] sm:$0xff]  ;;  %v16176_v36 = vld [vmem:[#allocation203_spill] sm:$0xff] }
 0x6be   : > { %7274 = vrot.lane.b32.xlu1 %v16153_v44, %s16145_s21  ;;  %v7879_v39 = vsel %vm15374_vm6, %v7876_v41, %v16157_v0  ;;  %v7898_v15 = vsel %vm7896_vm2, %v7895_v17, %v13351_v21  ;;  %v16162_v48 = vcombine.low %v16160_v16, %v16161_v31  ;;  %vm15415_vm6 = vcmask 949248   ;;  %v16173_v44 = vld [vmem:[#allocation86_spill] sm:$0xff]  ;;  %v16175_v10 = vld [vmem:[#allocation104_spill] sm:$0xff]  ;;  %v16177_v41 = vld [vmem:[#allocation85_spill] sm:$0xff] }
 0x6bf   : > { %7292 = vrot.lane.b32.xlu0 %v4651_v35, %s16158_s8  ;;  %v7882_v33 = vsel %vm15377_vm15, %v7879_v39, %v16159_v61  ;;  %v7901_v22 = vsel %vm7899_vm4, %v7898_v15, %v13383_v18  ;;  %v4652_v2 = vcombine.low %v4608_v38, %v4640_v62  ;;  %vm15414_vm15 = vcmask 982016   ;;  %v16179_v0 = vld [vmem:[#allocation109_spill] sm:$0xff]  ;;  %v16182_v61 = vld [vmem:[#allocation136_spill] sm:$0xff] }
 0x6c0   : > { %v7051_v8 = vpop.permute.xlu1 %7050  ;;  %v7885_v13 = vsel %vm15378_vm14, %v7882_v33, %v16163_v24  ;;  %v7904_v21 = vsel %vm7902_vm11, %v7901_v22, %v13414_v59  ;;  %v4601_v42 = vcombine.high %v13324_v34, %v13418_v53  ;;  %vm15400_vm14 = vcmask 1014784   ;;  %v16180_v17 = vld [vmem:[#allocation229_spill] sm:$0xff]  ;;  %v16185_v24 = vld [vmem:[#allocation232_spill] sm:$0xff] }
 0x6c1   : > { %v7069_v1 = vpop.permute.xlu0 %7068  ;;  %v7888_v4 = vsel %vm7887_vm0, %v7885_v13, %v13307_v27  ;;  %v7907_v18 = vsel %vm15416_vm13, %v7904_v21, %v7053_v25  ;;  %v16164_v59 = vcombine.high %v16160_v16, %v16161_v31  ;;  %v4653_v29 = vcombine.high %v4608_v38, %v4640_v62  ;;  %v16166_v25 = vld [vmem:[#allocation52_spill] sm:$0xff]  ;;  %v16183_v33 = vld [vmem:[#allocation53_spill] sm:$0xff]  ;;  %v16186_v13 = vld [vmem:[#allocation234_spill] sm:$0xff] }
 0x6c2   : > { %7282 = vrot.lane.b32.xlu1 %v16162_v48, %s16150_s20  ;;  %v7891_v26 = vsel %vm7890_vm1, %v7888_v4, %v13328_v6  ;;  %v7910_v27 = vsel %vm15415_vm6, %v7907_v18, %v7061_v30  ;;  %v4647_v45 = vrot.slane %v4633_v57, %v11357_v54  ;;  %v16169_v56 = vcombine.high %v16166_v25, %v16167_v60  ;;  %v16181_v38 = vld [vmem:[#allocation48_spill] sm:$0xff] }
 0x6c3   : > { %7300 = vrot.lane.b32.xlu0 %v4652_v2, %s15395_s18  ;;  %v7894_v49 = vsel %vm7893_vm3, %v7891_v26, %v13360_v55  ;;  %v7913_v6 = vsel %vm15414_vm15, %v7910_v27, %v7069_v1  ;;  %v4825_v63 = vcombine.high %v16171_v58, %v16170_v5  ;;  %v4841_v35 = vcombine.high %v16173_v44, %v16172_v51  ;;  %v16199_v51 = vld [vmem:[#allocation87_spill] sm:$0xff] }
 0x6c4   : > { %v7059_v19 = vpop.permute.xlu1 %7058  ;;  %v7897_v34 = vsel %vm7896_vm2, %v7894_v49, %v13392_v43  ;;  %v4615_v43 = vrot.slane %v4601_v42, %v11357_v54  ;;  %v4889_v46 = vcombine.high %v16175_v10, %v16174_v9  ;;  %v4793_v37 = vcombine.high %v16177_v41, %v16176_v36  ;;  %v16201_v9 = vld [vmem:[#allocation110_spill] sm:$0xff] }
 0x6c5   : > { %v7077_v53 = vpop.permute.xlu0 %7076  ;;  %v7900_v11 = vsel %vm7899_vm4, %v7897_v34, %v13424_v32  ;;  %v16168_v32 = vcombine.low %v16166_v25, %v16167_v60  ;;  %v4857_v57 = vcombine.high %v16181_v38, %v16180_v17  ;;  %v16184_v15 = vcombine.low %v16182_v61, %v16183_v33  ;;  %v16188_v34 = vld [vmem:[#allocation170_spill] sm:$0xff]  ;;  %v16194_v60 = vld [vmem:[#allocation143_spill] sm:$0xff] }
 0x6c6   : > { %7290 = vrot.lane.b32.xlu1 %v16164_v59, %s16158_s8  ;;  %v7916_v55 = vsel %vm15400_vm14, %v7913_v6, %v7077_v53  ;;  %v7903_v23 = vsel %vm7902_vm11, %v7900_v11, %v7043_v3  ;;  %v4654_v3 = vcombine.low %v4615_v43, %v4647_v45  ;;  %v4655_v30 = vcombine.high %v4615_v43, %v4647_v45  ;;  %v16189_v6 = vld [vmem:[#allocation72_spill] sm:$0xff]  ;;  %v16192_v43 = vld [vmem:[#allocation71_spill] sm:$0xff] }
 0x6c7   : > { %8107 = vst [vmem:[%s13523_s26 + $0x20] sm:$0xff] %v7916_v55  ;;  %7308 = vrot.lane.b32.xlu0 %v4653_v29, %s16165_s14  ;;  %v7906_v12 = vsel %vm15416_vm13, %v7903_v23, %v7051_v8  ;;  %v16178_v8 = vld [vmem:[#allocation204_spill] sm:$0xff]  ;;  %v4839_v16 = vrot.slane %v4825_v63, %v10925_v14  ;;  %v4855_v31 = vrot.slane %v4841_v35, %v10925_v14  ;;  %v16191_v23 = vld [vmem:[#allocation171_spill] sm:$0xff] }
 0x6c8   : > { %v7067_v28 = vpop.permute.xlu1 %7066  ;;  %v7909_v7 = vsel %vm15415_vm6, %v7906_v12, %v7059_v19  ;;  %v4809_v39 = vcombine.high %v16179_v0, %v16178_v8  ;;  %v4921_v22 = vcombine.high %v16186_v13, %v16185_v24  ;;  %v4903_v1 = vrot.slane %v4889_v46, %v11357_v54  ;;  %v16198_v63 = vld [vmem:[#allocation207_spill] sm:$0xff]  ;;  %v16200_v35 = vld [vmem:[#allocation208_spill] sm:$0xff] }
 0x6c9   : > { %v13534_v52 = vpop.permute.xlu0 %7084  ;;  %v7912_v47 = vsel %vm15414_vm15, %v7909_v7, %v7067_v28  ;;  %v4807_v4 = vrot.slane %v4793_v37, %v10925_v14  ;;  %v4871_v19 = vrot.slane %v4857_v57, %v11357_v54  ;;  %v16187_v42 = vcombine.high %v16182_v61, %v16183_v33  ;;  %v16204_v57 = vld [vmem:[#allocation47_spill] sm:$0xff]  ;;  %v16205_v61 = vld [vmem:[#allocation102_spill] sm:$0xff]  ;;  %v16264_v24 = vld [vmem:[#allocation92_spill] sm:$0xff] }
 0x6ca   : > { %7298 = vrot.lane.b32.xlu1 %v16168_v32, %s15395_s18  ;;  %v4823_v21 = vrot.slane %v4809_v39, %v10925_v14  ;;  %v4904_v26 = vcombine.low %v4839_v16, %v4855_v31  ;;  %v16190_v53 = vcombine.high %v16188_v34, %v16189_v6  ;;  %v16193_v12 = vcombine.low %v16191_v23, %v16192_v43  ;;  %v16195_v32 = vld [vmem:[#allocation61_spill] sm:$0xff]  ;;  %s16233_s18 = smov 48   ;;  %v16261_v34 = vld [vmem:[#allocation40_spill] sm:$0xff] }
 0x6cb   : > { %7316 = vrot.lane.b32.xlu0 %v4654_v3, %s15393_s5  ;;  %v4922_v49 = vcombine.low %v4871_v19, %v4903_v1  ;;  %v4923_v45 = vcombine.high %v4871_v19, %v4903_v1  ;;  %v4905_v25 = vcombine.high %v4839_v16, %v4855_v31  ;;  %v5096_v7 = vcombine.low %v16195_v32, %v16194_v60  ;;  %v16196_v3 = vld [vmem:[#allocation180_spill] sm:$0xff] }
 0x6cc   : > { %v7075_v20 = vpop.permute.xlu1 %7074  ;;  %v4872_v59 = vcombine.low %v4807_v4, %v4823_v21  ;;  %v4912_v11 = vrot.slane %v4904_v26, %v11357_v54  ;;  %v4873_v58 = vcombine.high %v4807_v4, %v4823_v21  ;;  %v5064_v44 = vcombine.low %v16199_v51, %v16198_v63 }
 0x6cd   : > { %v7915_v50 = vsel %vm15400_vm14, %v7912_v47, %v7075_v20  ;;  %v13550_v40 = vpop.permute.xlu0 %7092  ;;  %v16197_v47 = vld [vmem:[#allocation88_spill] sm:$0xff]  ;;  %v5080_v10 = vcombine.low %v16201_v9, %v16200_v35  ;;  %v16202_v46 = vcombine.high %v16191_v23, %v16192_v43  ;;  %v4919_v8 = vrot.slane %v4905_v25, %v11357_v54 }
 0x6ce   : > { %8103 = vst [vmem:[%s13523_s26] sm:$0xff] %v7915_v50  ;;  %7306 = vrot.lane.b32.xlu1 %v16169_v56, %s16165_s14  ;;  %v4880_v28 = vrot.slane %v4872_v59, %v11357_v54  ;;  %v5112_v20 = vcombine.low %v16197_v47, %v16196_v3  ;;  %v5072_v39 = vrot.slane %v5064_v44, %v10925_v14  ;;  %v16210_v59 = vld [vmem:[#allocation144_spill] sm:$0xff]  ;;  %vm16283_vm14 = vcmask 195584  }
 0x6cf   : > { %7324 = vrot.lane.b32.xlu0 %v4655_v30, %s15391_s6  ;;  %v5104_v30 = vrot.slane %v5096_v7, %v10925_v14  ;;  %v5088_v17 = vrot.slane %v5080_v10, %v10925_v14  ;;  %v4887_v38 = vrot.slane %v4873_v58, %v11357_v54  ;;  %v16206_v33 = vcombine.low %v16204_v57, %v16205_v61  ;;  %v16216_v10 = vld [vmem:[#allocation55_spill] sm:$0xff] }
 0x6d0   : > { %v13552_v62 = vpop.permute.xlu1 %7082  ;;  %v4924_v56 = vcombine.low %v4880_v28, %v4912_v11  ;;  %v5120_v36 = vrot.slane %v5112_v20, %v10925_v14  ;;  %v4925_v37 = vcombine.high %v4880_v28, %v4912_v11  ;;  %v16208_v4 = vcombine.high %v16204_v57, %v16205_v61 }
 0x6d1   : > { %v13567_v48 = vpop.permute.xlu0 %7100  ;;  %v4926_v31 = vcombine.low %v4887_v38, %v4919_v8  ;;  %v5128_v1 = vcombine.low %v5072_v39, %v5088_v17  ;;  %v4927_v19 = vcombine.high %v4887_v38, %v4919_v8  ;;  %v5097_v11 = vcombine.high %v16195_v32, %v16194_v60 }
 0x6d2   : > { %7314 = vrot.lane.b32.xlu1 %v16184_v15, %s15393_s5  ;;  %v5160_v15 = vcombine.low %v5104_v30, %v5120_v36  ;;  %v5113_v28 = vcombine.high %v16197_v47, %v16196_v3  ;;  %v5161_v23 = vcombine.high %v5104_v30, %v5120_v36  ;;  %v5065_v7 = vcombine.high %v16199_v51, %v16198_v63  ;;  %s16221_s5 = smov 44  }
 0x6d3   : > { %7332 = vrot.lane.b32.xlu0 %v4921_v22, %s15389_s15  ;;  %v5081_v20 = vcombine.high %v16201_v9, %v16200_v35  ;;  %v5111_v32 = vrot.slane %v5097_v11, %v10925_v14  ;;  %v16228_v11 = vld [vmem:[#allocation90_spill] sm:$0xff] }
 0x6d4   : > { %v13572_v2 = vpop.permute.xlu1 %7090  ;;  %v5127_v3 = vrot.slane %v5113_v28, %v10925_v14  ;;  %v5175_v63 = vrot.slane %v5161_v23, %v11357_v54  ;;  %v5079_v44 = vrot.slane %v5065_v7, %v10925_v14 }
 0x6d5   : > { %v13582_v18 = vpop.permute.xlu0 %7108  ;;  %v5095_v35 = vrot.slane %v5081_v20, %v10925_v14 }
 0x6d6   : > { %7322 = vrot.lane.b32.xlu1 %v16187_v42, %s15391_s6  ;;  %v5168_v42 = vrot.slane %v5160_v15, %v11357_v54  ;;  %v5176_v36 = vcombine.low %v5111_v32, %v5127_v3  ;;  %s16219_s6 = smov 40  }
 0x6d7   : > { %7340 = vrot.lane.b32.xlu0 %v4922_v49, %s15387_s3  ;;  %v5136_v49 = vrot.slane %v5128_v1, %v11357_v54  ;;  %v16222_v1 = vld [vmem:[#allocation75_spill] sm:$0xff]  ;;  %v5145_v20 = vcombine.high %v5079_v44, %v5095_v35 }
 0x6d8   : > { %v13584_v27 = vpop.permute.xlu1 %7098 }
 0x6d9   : > { %v13591_v29 = vpop.permute.xlu0 %7116  ;;  %v5193_v58 = vcombine.high %v5136_v49, %v5168_v42 }
 0x6da   : > { %7330 = vrot.lane.b32.xlu1 %v16190_v53, %s15389_s15  ;;  %v16211_v53 = vld [vmem:[#allocation133_spill] sm:$0xff]  ;;  %s16215_s15 = smov 36  }
 0x6db   : > { %7348 = vrot.lane.b32.xlu0 %v4923_v45, %s15383_s23  ;;  %v16212_v45 = vcombine.low %v16210_v59, %v16211_v53  ;;  %v16214_v60 = vcombine.high %v16210_v59, %v16211_v53  ;;  %v16226_v59 = vld [vmem:[#allocation62_spill] sm:$0xff] }
 0x6dc   : > { %v13594_v55 = vpop.permute.xlu1 %7106 }
 0x6dd   : > { %v13606_v50 = vpop.permute.xlu0 %7124 }
 0x6de   : > { %7338 = vrot.lane.b32.xlu1 %v16193_v12, %s15387_s3  ;;  %v5192_v12 = vcombine.low %v5136_v49, %v5168_v42  ;;  %s16213_s3 = smov 32   ;;  %v5177_v42 = vcombine.high %v5111_v32, %v5127_v3  ;;  %v16225_v49 = vld [vmem:[#allocation76_spill] sm:$0xff] }
 0x6df   : > { %7356 = vrot.lane.b32.xlu0 %v4924_v56, %s15385_s1  ;;  %v5129_v56 = vcombine.high %v5072_v39, %v5088_v17  ;;  %v5144_v17 = vcombine.low %v5079_v44, %v5095_v35  ;;  %v5368_v53 = vcombine.low %v16226_v59, %v16225_v49 }
 0x6e0   : > { %v13608_v5 = vpop.permute.xlu1 %7114  ;;  %v5191_v35 = vrot.slane %v5177_v42, %v11357_v54 }
 0x6e1   : > { %v13621_v41 = vpop.permute.xlu0 %7132  ;;  %v5143_v9 = vrot.slane %v5129_v56, %v11357_v54  ;;  %v16229_v56 = vld [vmem:[#allocation210_spill] sm:$0xff]  ;;  %v5376_v3 = vrot.slane %v5368_v53, %v10925_v14 }
 0x6e2   : > { %7346 = vrot.lane.b32.xlu1 %v16202_v46, %s15383_s23  ;;  %s16207_s23 = smov 24   ;;  %v16217_v46 = vld [vmem:[#allocation134_spill] sm:$0xff] }
 0x6e3   : > { %7364 = vrot.lane.b32.xlu0 %v4925_v37, %s16203_s7  ;;  %v16218_v30 = vcombine.low %v16216_v10, %v16217_v46  ;;  %v5194_v8 = vcombine.low %v5143_v9, %v5175_v63  ;;  %v16220_v38 = vcombine.high %v16216_v10, %v16217_v46  ;;  %v5195_v61 = vcombine.high %v5143_v9, %v5175_v63  ;;  %v16231_v63 = vld [vmem:[#allocation212_spill] sm:$0xff]  ;;  %v16232_v9 = vld [vmem:[#allocation111_spill] sm:$0xff] }
 0x6e4   : > { %v13624_v0 = vpop.permute.xlu1 %7122  ;;  %v5352_v10 = vcombine.low %v16232_v9, %v16231_v63 }
 0x6e5   : > { %v13634_v16 = vpop.permute.xlu0 %7140 }
 0x6e6   : > { %7354 = vrot.lane.b32.xlu1 %v16206_v33, %s15385_s1  ;;  %s16209_s1 = smov 28   ;;  %v5184_v33 = vrot.slane %v5176_v36, %v11357_v54 }
 0x6e7   : > { %7372 = vrot.lane.b32.xlu0 %v4926_v31, %s16207_s23  ;;  %v5152_v31 = vrot.slane %v5144_v17, %v11357_v54  ;;  %v5360_v17 = vrot.slane %v5352_v10, %v10925_v14 }
 0x6e8   : > { %v13636_v22 = vpop.permute.xlu1 %7130 }
 0x6e9   : > { %v13643_v21 = vpop.permute.xlu0 %7148  ;;  %v5197_v44 = vcombine.high %v5152_v31, %v5184_v33 }
 0x6ea   : > { %7362 = vrot.lane.b32.xlu1 %v16208_v4, %s16203_s7  ;;  %v16223_v4 = vld [vmem:[#allocation54_spill] sm:$0xff] }
 0x6eb   : > { %7380 = vrot.lane.b32.xlu0 %v4927_v19, %s16209_s1  ;;  %v16224_v19 = vcombine.low %v16222_v1, %v16223_v4  ;;  %v16234_v32 = vcombine.high %v16222_v1, %v16223_v4  ;;  %v16237_v1 = vld [vmem:[#allocation167_spill] sm:$0xff] }
 0x6ec   : > { %v13646_v26 = vpop.permute.xlu1 %7138 }
 0x6ed   : > { %v13658_v43 = vpop.permute.xlu0 %7156 }
 0x6ee   : > { %7370 = vrot.lane.b32.xlu1 %v16212_v45, %s16207_s23  ;;  %v16227_v45 = vld [vmem:[#allocation119_spill] sm:$0xff] }
 0x6ef   : > { %7388 = vrot.lane.b32.xlu0 %v5192_v12, %s16213_s3  ;;  %v5384_v28 = vcombine.low %v16228_v11, %v16227_v45  ;;  %v5196_v12 = vcombine.low %v5152_v31, %v5184_v33 }
 0x6f0   : > { %v13660_v25 = vpop.permute.xlu1 %7146 }
 0x6f1   : > { %v13673_v47 = vpop.permute.xlu0 %7164  ;;  %v5392_v46 = vrot.slane %v5384_v28, %v10925_v14 }
 0x6f2   : > { %7378 = vrot.lane.b32.xlu1 %v16214_v60, %s16209_s1  ;;  %v16230_v60 = vld [vmem:[#allocation89_spill] sm:$0xff] }
 0x6f3   : > { %7396 = vrot.lane.b32.xlu0 %v5193_v58, %s16215_s15  ;;  %v5336_v58 = vcombine.low %v16230_v60, %v16229_v56 }
 0x6f4   : > { %v13676_v51 = vpop.permute.xlu1 %7154 }
 0x6f5   : > { %v13686_v37 = vpop.permute.xlu0 %7172 }
 0x6f6   : > { %7386 = vrot.lane.b32.xlu1 %v16218_v30, %s16213_s3 }
 0x6f7   : > { %7404 = vrot.lane.b32.xlu0 %v5194_v8, %s16219_s6  ;;  %v5344_v8 = vrot.slane %v5336_v58, %v10925_v14 }
 0x6f8   : > { %v13688_v39 = vpop.permute.xlu1 %7162 }
 0x6f9   : > { %v13695_v57 = vpop.permute.xlu0 %7180  ;;  %v5400_v42 = vcombine.low %v5344_v8, %v5360_v17  ;;  %v5401_v6 = vcombine.high %v5344_v8, %v5360_v17  ;;  %v16251_v8 = vld [vmem:[#allocation230_spill] sm:$0xff]  ;;  %v16252_v17 = vld [vmem:[#allocation137_spill] sm:$0xff] }
 0x6fa   : > { %7394 = vrot.lane.b32.xlu1 %v16220_v38, %s16215_s15  ;;  %v5159_v38 = vrot.slane %v5145_v20, %v11357_v54 }
 0x6fb   : > { %7412 = vrot.lane.b32.xlu0 %v5195_v61, %s16221_s5  ;;  %v16236_v61 = vld [vmem:[#allocation121_spill] sm:$0xff] }
 0x6fc   : > { %v13698_v15 = vpop.permute.xlu1 %7170  ;;  %v16238_v4 = vcombine.low %v16236_v61, %v16237_v1  ;;  %v5198_v33 = vcombine.low %v5159_v38, %v5191_v35  ;;  %v16240_v28 = vcombine.high %v16236_v61, %v16237_v1  ;;  %v5199_v20 = vcombine.high %v5159_v38, %v5191_v35 }
 0x6fd   : > { %v13710_v23 = vpop.permute.xlu0 %7188  ;;  %v5369_v61 = vcombine.high %v16226_v59, %v16225_v49  ;;  %v5385_v1 = vcombine.high %v16228_v11, %v16227_v45  ;;  %v5433_v35 = vcombine.high %v5376_v3, %v5392_v46 }
 0x6fe   : > { %7402 = vrot.lane.b32.xlu1 %v16224_v19, %s16219_s6  ;;  %v5432_v19 = vcombine.low %v5376_v3, %v5392_v46  ;;  %v5415_v46 = vrot.slane %v5401_v6, %v11357_v54 }
 0x6ff   : > { %7420 = vrot.lane.b32.xlu0 %v5196_v12, %s16233_s18  ;;  %v5383_v59 = vrot.slane %v5369_v61, %v10925_v14  ;;  %v5399_v45 = vrot.slane %v5385_v1, %v10925_v14  ;;  %v16255_v1 = vcombine.high %v16251_v8, %v16252_v17 }
 0x700   : > { %v13712_v7 = vpop.permute.xlu1 %7178  ;;  %v5440_v58 = vrot.slane %v5432_v19, %v11357_v54 }
 0x701   : > { %v13725_v30 = vpop.permute.xlu0 %7196 }
 0x702   : > { %7410 = vrot.lane.b32.xlu1 %v16234_v32, %s16221_s5  ;;  %v5408_v32 = vrot.slane %v5400_v42, %v11357_v54  ;;  %v5337_v42 = vcombine.high %v16230_v60, %v16229_v56  ;;  %v5447_v56 = vrot.slane %v5433_v35, %v11357_v54 }
 0x703   : > { %7428 = vrot.lane.b32.xlu0 %v5197_v44, %s16235_s2  ;;  %v16243_v44 = vld [vmem:[#allocation38_spill] sm:$0xff] }
 0x704   : > { %v13728_v36 = vpop.permute.xlu1 %7186  ;;  %v5464_v19 = vcombine.low %v5408_v32, %v5440_v58  ;;  %v5465_v3 = vcombine.high %v5408_v32, %v5440_v58  ;;  %v5466_v58 = vcombine.low %v5415_v46, %v5447_v56  ;;  %v5467_v35 = vcombine.high %v5415_v46, %v5447_v56 }
 0x705   : > { %v13738_v53 = vpop.permute.xlu0 %7204 }
 0x706   : > { %7418 = vrot.lane.b32.xlu1 %v16238_v4, %s16233_s18  ;;  %v16244_v4 = vld [vmem:[#allocation74_spill] sm:$0xff] }
 0x707   : > { %7436 = vrot.lane.b32.xlu0 %v5198_v33, %s16239_s27  ;;  %v16245_v33 = vcombine.low %v16243_v44, %v16244_v4  ;;  %v16248_v49 = vcombine.high %v16243_v44, %v16244_v4  ;;  %v16253_v44 = vcombine.low %v16251_v8, %v16252_v17  ;;  %v5448_v4 = vcombine.low %v5383_v59, %v5399_v45  ;;  %v16262_v8 = vld [vmem:[#allocation63_spill] sm:$0xff] }
 0x708   : > { %v13740_v31 = vpop.permute.xlu1 %7194  ;;  %v5640_v17 = vcombine.low %v16262_v8, %v16261_v34 }
 0x709   : > { %v13747_v12 = vpop.permute.xlu0 %7212 }
 0x70a   : > { %7426 = vrot.lane.b32.xlu1 %v16240_v28, %s16235_s2 }
 0x70b   : > { %7444 = vrot.lane.b32.xlu0 %v5199_v20, %s16242_s22  ;;  %v5353_v20 = vcombine.high %v16232_v9, %v16231_v63  ;;  %v5351_v63 = vrot.slane %v5337_v42, %v10925_v14 }
 0x70c   : > { %v13750_v10 = vpop.permute.xlu1 %7202 }
 0x70d   : > { %16241 = vst [vmem:[#allocation185_spill] sm:$0xff] %v13750_v10  ;;  %v13762_v38 = vpop.permute.xlu0 %7220  ;;  %v5367_v9 = vrot.slane %v5353_v20, %v10925_v14 }
 0x70e   : > { %7434 = vrot.lane.b32.xlu1 %v16245_v33, %s16239_s27 }
 0x70f   : > { %7452 = vrot.lane.b32.xlu0 %v5464_v19, %s16247_s19  ;;  %v5416_v61 = vcombine.low %v5351_v63, %v5367_v9  ;;  %v5456_v19 = vrot.slane %v5448_v4, %v11357_v54 }
 0x710   : > { %v13764_v28 = vpop.permute.xlu1 %7210 }
 0x711   : > { %16246 = vst [vmem:[#allocation183_spill] sm:$0xff] %v13764_v28  ;;  %v13777_v11 = vpop.permute.xlu0 %7228  ;;  %v5424_v20 = vrot.slane %v5416_v61, %v11357_v54  ;;  %v16268_v61 = vld [vmem:[#allocation91_spill] sm:$0xff]  ;;  %v16270_v28 = vld [vmem:[#allocation112_spill] sm:$0xff] }
 0x712   : > { %7442 = vrot.lane.b32.xlu1 %v16248_v49, %s16242_s22  ;;  %v16258_v49 = vld [vmem:[#allocation231_spill] sm:$0xff] }
 0x713   : > { %7460 = vrot.lane.b32.xlu0 %v5465_v3, %s16250_s30  ;;  %v16259_v3 = vld [vmem:[#allocation138_spill] sm:$0xff]  ;;  %v5468_v4 = vcombine.low %v5424_v20, %v5456_v19 }
 0x714   : > { %v13780_v60 = vpop.permute.xlu1 %7218 }
 0x715   : > { %16249 = vst [vmem:[#allocation145_spill] sm:$0xff] %v13780_v60  ;;  %v13790_v33 = vpop.permute.xlu0 %7236  ;;  %v16269_v60 = vld [vmem:[#allocation131_spill] sm:$0xff] }
 0x716   : > { %7450 = vrot.lane.b32.xlu1 %v16253_v44, %s16247_s19  ;;  %v16260_v44 = vcombine.low %v16258_v49, %v16259_v3 }
 0x717   : > { %7468 = vrot.lane.b32.xlu0 %v5466_v58, %s16107_s25  ;;  %v5449_v58 = vcombine.high %v5383_v59, %v5399_v45  ;;  %v16271_v59 = vcombine.high %v16258_v49, %v16259_v3  ;;  %v13828_v45 = vrot.slane %v5640_v17, %v10925_v14  ;;  %v16274_v3 = vld [vmem:[#allocation169_spill] sm:$0xff]  ;;  %v16275_v17 = vld [vmem:[#allocation56_spill] sm:$0xff] }
 0x718   : > { %v13792_v32 = vpop.permute.xlu1 %7226 }
 0x719   : > { %16254 = vst [vmem:[#allocation57_spill] sm:$0xff] %v13792_v32  ;;  %v13799_v6 = vpop.permute.xlu0 %7244 }
 0x71a   : > { %7458 = vrot.lane.b32.xlu1 %v16255_v1, %s16250_s30  ;;  %16256 = vst [vmem:[#allocation118_spill] sm:$0xff] %v13799_v6  ;;  %v16263_v1 = vld [vmem:[#allocation173_spill] sm:$0xff]  ;;  %v5624_v6 = vcombine.low %v16270_v28, %v16269_v60 }
 0x71b   : > { %7476 = vrot.lane.b32.xlu0 %v5467_v35, %s16111_s13  ;;  %v5656_v56 = vcombine.low %v16264_v24, %v16263_v1  ;;  %v5417_v35 = vcombine.high %v5351_v63, %v5367_v9  ;;  %v5469_v9 = vcombine.high %v5424_v20, %v5456_v19  ;;  %v16277_v20 = vld [vmem:[#allocation127_spill] sm:$0xff] }
 0x71c   : > { %v13802_v42 = vpop.permute.xlu1 %7234  ;;  %v13842_v10 = vrot.slane %v5624_v6, %v10925_v14 }
 0x71d   : > { %16257 = vst [vmem:[#allocation80_spill] sm:$0xff] %v13802_v42  ;;  %v13814_v46 = vpop.permute.xlu0 %7252  ;;  %v16267_v42 = vld [vmem:[#allocation42_spill] sm:$0xff]  ;;  %v5431_v49 = vrot.slane %v5417_v35, %v11357_v54 }
 0x71e   : > { %7466 = vrot.lane.b32.xlu1 %v16260_v44, %s16107_s25  ;;  %16265 = vst [vmem:[#allocation197_spill] sm:$0xff] %v13814_v46  ;;  %v5608_v32 = vcombine.low %v16268_v61, %v16267_v42  ;;  %v13831_v44 = vrot.slane %v5656_v56, %v10925_v14  ;;  %v16276_v56 = vcombine.low %v16274_v3, %v16275_v17  ;;  %v16280_v17 = vld [vmem:[#allocation132_spill] sm:$0xff] }
 0x71f   : > { %7484 = vrot.lane.b32.xlu0 %v5468_v4, %s16125_s11 }
 0x720   : > { %v13816_v13 = vpop.permute.xlu1 %7242  ;;  %v13839_v4 = vrot.slane %v5608_v32, %v10925_v14  ;;  %v7918_v19 = vsel %vm15401_vm5, %v16276_v56, %v13534_v52  ;;  %v5704_v32 = vcombine.low %v13828_v45, %v13831_v44  ;;  %v16281_v56 = vld [vmem:[#allocation122_spill] sm:$0xff] }
 0x721   : > { %16266 = vst [vmem:[#allocation79_spill] sm:$0xff] %v13816_v13  ;;  %v13833_v63 = vpop.permute.xlu0 %7260  ;;  %v5463_v13 = vrot.slane %v5449_v58, %v11357_v54  ;;  %v16278_v58 = vld [vmem:[#allocation139_spill] sm:$0xff]  ;;  %v7920_v6 = vsel %vm7827_vm7, %v7918_v19, %v13550_v40 }
 0x722   : > { %7474 = vrot.lane.b32.xlu1 %v16271_v59, %s16111_s13  ;;  %16272 = vst [vmem:[#allocation198_spill] sm:$0xff] %v13833_v63  ;;  %v16279_v59 = vcombine.low %v16277_v20, %v16278_v58  ;;  %v5672_v52 = vcombine.low %v13839_v4, %v13842_v10 }
 0x723   : > { %7492 = vrot.lane.b32.xlu0 %v5469_v9, %s16130_s10  ;;  %v5470_v35 = vcombine.low %v5431_v49, %v5463_v13 }
 0x724   : > { %v13836_v46 = vpop.permute.xlu1 %7250 }
 0x725   : > { %16273 = vst [vmem:[#allocation106_spill] sm:$0xff] %v13836_v46  ;;  %v13859_v9 = vpop.permute.xlu0 %7268  ;;  %v7922_v46 = vsel %vm7830_vm8, %v7920_v6, %v13567_v48  ;;  %v16282_v48 = vcombine.high %v16277_v20, %v16278_v58  ;;  %v16287_v58 = vld [vmem:[#allocation141_spill] sm:$0xff] }
 0x726   : > { %7482 = vrot.lane.b32.xlu1 %v16279_v59, %s16125_s11  ;;  %v3696_v59 = vcombine.low %v16281_v56, %v16280_v17  ;;  %v7924_v63 = vsel %vm15402_vm9, %v7922_v46, %v13582_v18  ;;  %v5471_v56 = vcombine.high %v5431_v49, %v5463_v13  ;;  %v5712_v18 = vrot.slane %v5704_v32, %v11357_v54 }
 0x727   : > { %7500 = vrot.lane.b32.xlu0 %v5470_v35, %s16134_s9  ;;  %v7926_v40 = vsel %vm15404_vm10, %v7924_v63, %v13591_v29  ;;  %v5680_v13 = vrot.slane %v5672_v52, %v11357_v54  ;;  %v5705_v32 = vcombine.high %v13828_v45, %v13831_v44 }
 0x728   : > { %v13863_v3 = vpop.permute.xlu1 %7258  ;;  %v7917_v19 = vsel %vm15401_vm5, %v3696_v59, %v13552_v62  ;;  %v7928_v6 = vsel %vm16283_vm14, %v7926_v40, %v13606_v50  ;;  %vm16284_vm5 = vcmask 261120   ;;  %v5641_v50 = vcombine.high %v16262_v8, %v16261_v34 }
 0x729   : > { %v13882_v17 = vpop.permute.xlu0 %7276  ;;  %v7919_v46 = vsel %vm7827_vm7, %v7917_v19, %v13572_v2  ;;  %v7930_v29 = vsel %vm15403_vm12, %v7928_v6, %v13621_v41  ;;  %v5657_v2 = vcombine.high %v16264_v24, %v16263_v1  ;;  %vm16285_vm14 = vcmask 293888   ;;  %v16304_v6 = vld [vmem:[#allocation233_spill] sm:$0xff] }
 0x72a   : > { %7490 = vrot.lane.b32.xlu1 %v16282_v48, %s16130_s10  ;;  %v7921_v20 = vsel %vm7830_vm8, %v7919_v46, %v13584_v27  ;;  %v7932_v62 = vsel %vm16284_vm5, %v7930_v29, %v13634_v16  ;;  %v16286_v27 = vld [vmem:[#allocation153_spill] sm:$0xff]  ;;  %vm16289_vm5 = vcmask 326656   ;;  %v5737_v44 = vcombine.high %v5680_v13, %v5712_v18 }
 0x72b   : > { %7508 = vrot.lane.b32.xlu0 %v5471_v56, %s16139_s29  ;;  %v7923_v41 = vsel %vm15402_vm9, %v7921_v20, %v13594_v55  ;;  %v7934_v49 = vsel %vm16285_vm14, %v7932_v62, %v13643_v21  ;;  %v16288_v16 = vcombine.low %v16286_v27, %v16287_v58  ;;  %v5736_v55 = vcombine.low %v5680_v13, %v5712_v18  ;;  %v16305_v56 = vld [vmem:[#allocation73_spill] sm:$0xff] }
 0x72c   : > { %v13889_v63 = vpop.permute.xlu1 %7266  ;;  %v7925_v34 = vsel %vm15404_vm10, %v7923_v41, %v13608_v5  ;;  %v7936_v24 = vsel %vm16289_vm5, %v7934_v49, %v13658_v43  ;;  %v5609_v21 = vcombine.high %v16268_v61, %v16267_v42  ;;  %vm16290_vm14 = vcmask 195584   ;;  %v16315_v41 = vld [vmem:[#allocation118_spill] sm:$0xff]  ;;  %v16318_v49 = vld [vmem:[#allocation183_spill] sm:$0xff] }
 0x72d   : > { %v13915_v8 = vpop.permute.xlu0 %7284  ;;  %v7927_v1 = vsel %vm16290_vm14, %v7925_v34, %v13624_v0  ;;  %vm16291_vm9 = vcmask 359424   ;;  %v5625_v5 = vcombine.high %v16270_v28, %v16269_v60  ;;  %v5673_v43 = vcombine.high %v13839_v4, %v13842_v10  ;;  %v16321_v34 = vld [vmem:[#allocation145_spill] sm:$0xff] }
 0x72e   : > { %7498 = vrot.lane.b32.xlu1 %v16288_v16, %s16134_s9  ;;  %v7938_v35 = vsel %vm16291_vm9, %v7936_v24, %v13673_v47  ;;  %v7929_v45 = vsel %vm15403_vm12, %v7927_v1, %v13636_v22  ;;  %vm16292_vm5 = vcmask 392192   ;;  %v13935_v0 = vrot.slane %v5641_v50, %v10925_v14 }
 0x72f   : > { %v7940_v42 = vsel %vm16292_vm5, %v7938_v35, %v13686_v37  ;;  %7516 = vrot.lane.b32.xlu0 %v5736_v55, %s16143_s12  ;;  %v13938_v47 = vrot.slane %v5657_v2, %v10925_v14  ;;  %vm16293_vm9 = vcmask 261120   ;;  %vm16294_vm14 = vcmask 424960   ;;  %v16323_v55 = vld [vmem:[#allocation198_spill] sm:$0xff]  ;;  %v16324_v35 = vld [vmem:[#allocation57_spill] sm:$0xff] }
 0x730   : > { %v13923_v52 = vpop.permute.xlu1 %7274  ;;  %v7931_v28 = vsel %vm16293_vm9, %v7929_v45, %v13646_v26  ;;  %v7942_v10 = vsel %vm16294_vm14, %v7940_v42, %v13695_v57  ;;  %v16295_v22 = vcombine.high %v16286_v27, %v16287_v58  ;;  %vm16296_vm5 = vcmask 293888   ;;  %v16326_v42 = vld [vmem:[#allocation80_spill] sm:$0xff] }
 0x731   : > { %v7933_v37 = vsel %vm16296_vm5, %v7931_v28, %v13660_v25  ;;  %vm16297_vm12 = vcmask 457728   ;;  %v7293_v61 = vpop.permute.xlu0 %7292  ;;  %v5719_v4 = vrot.slane %v5705_v32, %v11357_v54  ;;  %v13954_v26 = vrot.slane %v5609_v21, %v10925_v14 }
 0x732   : > { %7506 = vrot.lane.b32.xlu1 %v16295_v22, %s16139_s29  ;;  %v7944_v60 = vsel %vm16297_vm12, %v7942_v10, %v13710_v23  ;;  %vm16298_vm9 = vcmask 326656   ;;  %vm16299_vm14 = vcmask 490496   ;;  %v13961_v48 = vrot.slane %v5625_v5, %v10925_v14  ;;  %v16328_v22 = vld [vmem:[#allocation235_spill] sm:$0xff] }
 0x733   : > { %v7935_v57 = vsel %vm16298_vm9, %v7933_v37, %v13676_v51  ;;  %v7946_v59 = vsel %vm16299_vm14, %v7944_v60, %v13725_v30  ;;  %vm16300_vm5 = vcmask 359424   ;;  %vm16301_vm12 = vcmask 523264   ;;  %7524 = vrot.lane.b32.xlu0 %v5737_v44, %s16145_s21  ;;  %v16329_v37 = vld [vmem:[#allocation103_spill] sm:$0xff] }
 0x734   : > { %v7283_v40 = vpop.permute.xlu1 %7282  ;;  %v7937_v25 = vsel %vm16300_vm5, %v7935_v57, %v13688_v39  ;;  %v7948_v23 = vsel %vm16301_vm12, %v7946_v59, %v13738_v53  ;;  %v5687_v19 = vrot.slane %v5673_v43, %v11357_v54  ;;  %vm16302_vm10 = vcmask 392192  }
 0x735   : > { %v7939_v51 = vsel %vm16302_vm10, %v7937_v25, %v13698_v15  ;;  %vm16303_vm9 = vcmask 556032   ;;  %v16306_v18 = vcombine.low %v16304_v6, %v16305_v56  ;;  %v5720_v39 = vcombine.low %v13935_v0, %v13938_v47  ;;  %v7301_v29 = vpop.permute.xlu0 %7300 }
 0x736   : > { %v7950_v30 = vsel %vm16303_vm9, %v7948_v23, %v13747_v12  ;;  %vm16307_vm14 = vcmask 424960   ;;  %vm16308_vm5 = vcmask 588800   ;;  %v5738_v20 = vcombine.low %v5687_v19, %v5719_v4  ;;  %v16332_v23 = vld [vmem:[#allocation106_spill] sm:$0xff] }
 0x737   : > { %7514 = vrot.lane.b32.xlu1 %v16306_v18, %s16143_s12  ;;  %v7941_v53 = vsel %vm16307_vm14, %v7939_v51, %v13712_v7  ;;  %v7952_v46 = vsel %vm16308_vm5, %v7950_v30, %v13762_v38  ;;  %vm16309_vm10 = vcmask 457728   ;;  %vm16310_vm12 = vcmask 621568   ;;  %v16313_v38 = vld [vmem:[#allocation185_spill] sm:$0xff] }
 0x738   : > { %v7943_v15 = vsel %vm16309_vm10, %v7941_v53, %v13728_v36  ;;  %v7954_v12 = vsel %vm16310_vm12, %v7952_v46, %v13777_v11  ;;  %v7291_v62 = vpop.permute.xlu1 %7290  ;;  %v5688_v13 = vcombine.low %v13954_v26, %v13961_v48  ;;  %vm16311_vm9 = vcmask 490496   ;;  %7532 = vrot.lane.b32.xlu0 %v5738_v20, %s16150_s20  ;;  %v16336_v20 = vld [vmem:[#allocation175_spill] sm:$0xff] }
 0x739   : > { %v7945_v50 = vsel %vm16311_vm9, %v7943_v15, %v13740_v31  ;;  %vm16312_vm14 = vcmask 654336   ;;  %vm16314_vm5 = vcmask 523264   ;;  %vm16316_vm10 = vcmask 687104   ;;  %v16320_v31 = vld [vmem:[#allocation197_spill] sm:$0xff]  ;;  %v16337_v15 = vld [vmem:[#allocation43_spill] sm:$0xff] }
 0x73a   : > { %v7956_v7 = vsel %vm16312_vm14, %v7954_v12, %v13790_v33  ;;  %v7947_v2 = vsel %vm16314_vm5, %v7945_v50, %v16313_v38  ;;  %v16317_v11 = vcombine.high %v16304_v6, %v16305_v56  ;;  %vm16319_vm12 = vcmask 556032   ;;  %v7309_v33 = vpop.permute.xlu0 %7308 }
 0x73b   : > { %v7958_v36 = vsel %vm16316_vm10, %v7956_v7, %v16315_v41  ;;  %v7949_v27 = vsel %vm16319_vm12, %v7947_v2, %v16318_v49  ;;  %v5739_v16 = vcombine.high %v5687_v19, %v5719_v4  ;;  %v5728_v32 = vrot.slane %v5720_v39, %v11357_v54  ;;  %v16331_v4 = vld [vmem:[#allocation79_spill] sm:$0xff]  ;;  %v16342_v41 = vld [vmem:[#allocation120_spill] sm:$0xff] }
 0x73c   : > { %7522 = vrot.lane.b32.xlu1 %v16317_v11, %s16145_s21  ;;  %v7960_v58 = vsel %vm7887_vm0, %v7958_v36, %v16320_v31  ;;  %vm16322_vm9 = vcmask 588800   ;;  %v7299_v1 = vpop.permute.xlu1 %7298  ;;  %vm16325_vm14 = vcmask 621568   ;;  %v5696_v45 = vrot.slane %v5688_v13, %v11357_v54  ;;  %v16343_v36 = vld [vmem:[#allocation64_spill] sm:$0xff] }
 0x73d   : > { %v7951_v24 = vsel %vm16322_vm9, %v7949_v27, %v16321_v34  ;;  %v7962_v21 = vsel %vm7890_vm1, %v7960_v58, %v16323_v55  ;;  %7540 = vrot.lane.b32.xlu0 %v5739_v16, %s16158_s8  ;;  %vm16327_vm5 = vcmask 654336   ;;  %v16330_v60 = vcombine.low %v16328_v22, %v16329_v37  ;;  %v16344_v49 = vld [vmem:[#allocation236_spill] sm:$0xff]  ;;  %v16345_v27 = vld [vmem:[#allocation94_spill] sm:$0xff] }
 0x73e   : > { %v7953_v5 = vsel %vm16325_vm14, %v7951_v24, %v16324_v35  ;;  %v7964_v43 = vsel %vm7893_vm3, %v7962_v21, %v13859_v9  ;;  %v5721_v44 = vcombine.high %v13935_v0, %v13938_v47  ;;  %v7317_v59 = vpop.permute.xlu0 %7316  ;;  %v5740_v25 = vcombine.low %v5696_v45, %v5728_v32  ;;  %v16346_v58 = vld [vmem:[#allocation150_spill] sm:$0xff]  ;;  %v16349_v21 = vld [vmem:[#allocation93_spill] sm:$0xff]  ;;  %v16350_v35 = vld [vmem:[#allocation216_spill] sm:$0xff] }
 0x73f   : > { %v7955_v28 = vsel %vm16327_vm5, %v7953_v5, %v16326_v42  ;;  %v7966_v10 = vsel %vm7896_vm2, %v7964_v43, %v13882_v17  ;;  %v5689_v30 = vcombine.high %v13954_v26, %v13961_v48  ;;  %v5741_v56 = vcombine.high %v5696_v45, %v5728_v32  ;;  %v16348_v55 = vld [vmem:[#allocation130_spill] sm:$0xff]  ;;  %v16351_v5 = vld [vmem:[#allocation113_spill] sm:$0xff]  ;;  %v16353_v42 = vld [vmem:[#allocation151_spill] sm:$0xff] }
 0x740   : > { %7530 = vrot.lane.b32.xlu1 %v16330_v60, %s16150_s20  ;;  %v7957_v9 = vsel %vm16316_vm10, %v7955_v28, %v16331_v4  ;;  %v7968_v57 = vsel %vm7899_vm4, %v7966_v10, %v13915_v8  ;;  %v7307_v51 = vpop.permute.xlu1 %7306  ;;  %v5735_v18 = vrot.slane %v5721_v44, %v11357_v54  ;;  %vm16335_vm12 = vcmask 1014784   ;;  %v16352_v45 = vld [vmem:[#allocation178_spill] sm:$0xff]  ;;  %v16355_v10 = vld [vmem:[#allocation237_spill] sm:$0xff] }
 0x741   : > { %v7959_v19 = vsel %vm7887_vm0, %v7957_v9, %v16332_v23  ;;  %v7970_v17 = vsel %vm7902_vm11, %v7968_v57, %v7293_v61  ;;  %7548 = vrot.lane.b32.xlu0 %v5740_v25, %s16333_s17  ;;  %v16334_v61 = vcombine.high %v16328_v22, %v16329_v37  ;;  %v16338_v12 = vcombine.low %v16336_v20, %v16337_v15  ;;  %vm16339_vm9 = vmmov %vm16335_vm12  ;;  %v16356_v22 = vld [vmem:[#allocation140_spill] sm:$0xff]  ;;  %v16358_v9 = vld [vmem:[#allocation177_spill] sm:$0xff] }
 0x742   : > { %v7961_v0 = vsel %vm7890_vm1, %v7959_v19, %v13863_v3  ;;  %v7972_v47 = vsel %vm15416_vm13, %v7970_v17, %v7301_v29  ;;  %v7325_v3 = vpop.permute.xlu0 %7324  ;;  %v5703_v29 = vrot.slane %v5689_v30, %v11357_v54  ;;  %v16341_v2 = vcombine.high %v16336_v20, %v16337_v15  ;;  %v16359_v57 = vld [vmem:[#allocation195_spill] sm:$0xff]  ;;  %v16370_v15 = vld [vmem:[#allocation174_spill] sm:$0xff] }
 0x743   : > { %v7963_v8 = vsel %vm7893_vm3, %v7961_v0, %v13889_v63  ;;  %v7974_v6 = vsel %vm15415_vm6, %v7972_v47, %v7309_v33  ;;  %v5913_v11 = vcombine.high %v16343_v36, %v16342_v41  ;;  %v5929_v31 = vcombine.high %v16345_v27, %v16344_v49  ;;  %v16347_v33 = vld [vmem:[#allocation78_spill] sm:$0xff]  ;;  %v16375_v49 = vld [vmem:[#allocation95_spill] sm:$0xff] }
 0x744   : > { %7538 = vrot.lane.b32.xlu1 %v16334_v61, %s16158_s8  ;;  %v7965_v26 = vsel %vm7896_vm2, %v7963_v8, %v13923_v52  ;;  %v7976_v48 = vsel %vm15414_vm15, %v7974_v6, %v7317_v59  ;;  %v7315_v53 = vpop.permute.xlu1 %7314  ;;  %v5742_v50 = vcombine.low %v5703_v29, %v5735_v18  ;;  %v5977_v16 = vcombine.high %v16347_v33, %v16346_v58  ;;  %v16377_v58 = vld [vmem:[#allocation114_spill] sm:$0xff] }
 0x745   : > { %v7967_v39 = vsel %vm7899_vm4, %v7965_v26, %v7283_v40  ;;  %v7978_v63 = vsel %vm16335_vm12, %v7976_v48, %v7325_v3  ;;  %7556 = vrot.lane.b32.xlu0 %v5741_v56, %s16165_s14  ;;  %v5743_v34 = vcombine.high %v5703_v29, %v5735_v18  ;;  %v5897_v43 = vcombine.high %v16351_v5, %v16350_v35  ;;  %v16363_v26 = vld [vmem:[#allocation238_spill] sm:$0xff]  ;;  %v16368_v29 = vld [vmem:[#allocation147_spill] sm:$0xff] }
 0x746   : > { %v7969_v46 = vsel %vm7902_vm11, %v7967_v39, %v7291_v62  ;;  %8108 = vst [vmem:[%s13523_s26 + $0x28] sm:$0xff] %v7978_v63  ;;  %v14063_v13 = vpop.permute.xlu0 %7332  ;;  %v5945_v28 = vcombine.high %v16353_v42, %v16352_v45  ;;  %v16357_v37 = vcombine.low %v16355_v10, %v16356_v22  ;;  %v5927_v60 = vrot.slane %v5913_v11, %v10925_v14  ;;  %v16364_v48 = vld [vmem:[#allocation142_spill] sm:$0xff]  ;;  %v16374_v11 = vld [vmem:[#allocation219_spill] sm:$0xff] }
 0x747   : > { %v7971_v52 = vsel %vm15416_vm13, %v7969_v46, %v7299_v1  ;;  %v5881_v1 = vcombine.high %v16349_v21, %v16348_v55  ;;  %v5943_v44 = vrot.slane %v5929_v31, %v10925_v14  ;;  %v6009_v59 = vcombine.high %v16359_v57, %v16358_v9  ;;  %v16367_v46 = vld [vmem:[#allocation240_spill] sm:$0xff] }
 0x748   : > { %7546 = vrot.lane.b32.xlu1 %v16338_v12, %s16333_s17  ;;  %v7973_v40 = vsel %vm15415_vm6, %v7971_v52, %v7307_v51  ;;  %v7323_v62 = vpop.permute.xlu1 %7322  ;;  %v5991_v25 = vrot.slane %v5977_v16, %v11357_v54  ;;  %v5911_v17 = vrot.slane %v5897_v43, %v10925_v14  ;;  %v5959_v51 = vrot.slane %v5945_v28, %v11357_v54  ;;  %v16371_v12 = vld [vmem:[#allocation65_spill] sm:$0xff]  ;;  %v16376_v31 = vld [vmem:[#allocation220_spill] sm:$0xff] }
 0x749   : > { %v7975_v7 = vsel %vm15414_vm15, %v7973_v40, %v7315_v53  ;;  %7564 = vrot.lane.b32.xlu0 %v5742_v50, %s16340_s16  ;;  %v5895_v19 = vrot.slane %v5881_v1, %v10925_v14  ;;  %v16361_v30 = vcombine.high %v16355_v10, %v16356_v22  ;;  %v5992_v0 = vcombine.low %v5927_v60, %v5943_v44  ;;  %v16372_v50 = vld [vmem:[#allocation239_spill] sm:$0xff]  ;;  %v16380_v28 = vld [vmem:[#allocation241_spill] sm:$0xff]  ;;  %v16381_v10 = vld [vmem:[#allocation146_spill] sm:$0xff] }
 0x74a   : > { %v7977_v38 = vsel %vm16339_vm9, %v7975_v7, %v7323_v62  ;;  %v14079_v32 = vpop.permute.xlu0 %7340  ;;  %v6010_v8 = vcombine.low %v5959_v51, %v5991_v25  ;;  %v16365_v3 = vcombine.high %v16363_v26, %v16364_v48  ;;  %v6011_v18 = vcombine.high %v5959_v51, %v5991_v25  ;;  %v16373_v7 = vld [vmem:[#allocation96_spill] sm:$0xff] }
 0x74b   : > { %8104 = vst [vmem:[%s13523_s26 + $0x8] sm:$0xff] %v7977_v38  ;;  %v5960_v61 = vcombine.low %v5895_v19, %v5911_v17  ;;  %v6000_v39 = vrot.slane %v5992_v0, %v11357_v54  ;;  %v16369_v52 = vcombine.low %v16367_v46, %v16368_v29  ;;  %v5993_v20 = vcombine.high %v5927_v60, %v5943_v44 }
 0x74c   : > { %7554 = vrot.lane.b32.xlu1 %v16341_v2, %s16165_s14  ;;  %v14081_v24 = vpop.permute.xlu1 %7330  ;;  %v6184_v40 = vcombine.low %v16371_v12, %v16370_v15  ;;  %v6200_v62 = vcombine.low %v16373_v7, %v16372_v50  ;;  %v5961_v36 = vcombine.high %v5895_v19, %v5911_v17  ;;  %v6152_v27 = vcombine.low %v16375_v49, %v16374_v11 }
 0x74d   : > { %7572 = vrot.lane.b32.xlu0 %v5743_v34, %s16354_s28  ;;  %v5968_v53 = vrot.slane %v5960_v61, %v11357_v54  ;;  %v6168_v33 = vcombine.low %v16377_v58, %v16376_v31  ;;  %v16379_v16 = vcombine.high %v16367_v46, %v16368_v29  ;;  %v6007_v35 = vrot.slane %v5993_v20, %v11357_v54  ;;  %v16385_v61 = vld [vmem:[#allocation39_spill] sm:$0xff] }
 0x74e   : > { %v14096_v4 = vpop.permute.xlu0 %7348  ;;  %v6192_v34 = vrot.slane %v6184_v40, %v10925_v14  ;;  %v6208_v55 = vrot.slane %v6200_v62, %v10925_v14  ;;  %v6160_v43 = vrot.slane %v6152_v27, %v10925_v14  ;;  %v5975_v42 = vrot.slane %v5961_v36, %v11357_v54 }
 0x74f   : > { %v6012_v2 = vcombine.low %v5968_v53, %v6000_v39  ;;  %v6013_v1 = vcombine.high %v5968_v53, %v6000_v39  ;;  %v6176_v45 = vrot.slane %v6168_v33, %v10925_v14  ;;  %v16382_v22 = vcombine.low %v16380_v28, %v16381_v10  ;;  %v16391_v33 = vld [vmem:[#allocation176_spill] sm:$0xff] }
 0x750   : > { %7562 = vrot.lane.b32.xlu1 %v16357_v37, %s16340_s16  ;;  %v14101_v23 = vpop.permute.xlu1 %7338  ;;  %v6248_v37 = vcombine.low %v6192_v34, %v6208_v55  ;;  %v6014_v44 = vcombine.low %v5975_v42, %v6007_v35  ;;  %v16383_v19 = vcombine.high %v16380_v28, %v16381_v10  ;;  %v6015_v51 = vcombine.high %v5975_v42, %v6007_v35 }
 0x751   : > { %7580 = vrot.lane.b32.xlu0 %v6009_v59, %s16360_s4  ;;  %v6216_v25 = vcombine.low %v6160_v43, %v6176_v45  ;;  %v6185_v39 = vcombine.high %v16371_v12, %v16370_v15  ;;  %v6201_v53 = vcombine.high %v16373_v7, %v16372_v50  ;;  %v6249_v46 = vcombine.high %v6192_v34, %v6208_v55 }
 0x752   : > { %v14111_v47 = vpop.permute.xlu0 %7356  ;;  %v6153_v40 = vcombine.high %v16375_v49, %v16374_v11  ;;  %v6169_v62 = vcombine.high %v16377_v58, %v16376_v31  ;;  %vm16467_vm14 = vcmask 31744   ;;  %vm16469_vm5 = vcmask 130048  }
 0x753   : > { %v6199_v12 = vrot.slane %v6185_v39, %v10925_v14  ;;  %v6215_v50 = vrot.slane %v6201_v53, %v10925_v14  ;;  %v6263_v11 = vrot.slane %v6249_v46, %v11357_v54  ;;  %v16404_v39 = vld [vmem:[#allocation98_spill] sm:$0xff]  ;;  %vm16470_vm10 = vcmask 162816   ;;  %vm16475_vm12 = vmmov %vm16467_vm14 }
 0x754   : > { %7570 = vrot.lane.b32.xlu1 %v16361_v30, %s16354_s28  ;;  %v14113_v6 = vpop.permute.xlu1 %7346  ;;  %v6256_v30 = vrot.slane %v6248_v37, %v11357_v54  ;;  %v6167_v27 = vrot.slane %v6153_v40, %v10925_v14  ;;  %v6183_v31 = vrot.slane %v6169_v62, %v10925_v14  ;;  %vm16476_vm9 = vcmask 195584  }
 0x755   : > { %7588 = vrot.lane.b32.xlu0 %v6010_v8, %s16362_s0  ;;  %v6224_v8 = vrot.slane %v6216_v25, %v11357_v54  ;;  %v6264_v55 = vcombine.low %v6199_v12, %v6215_v50  ;;  %v16398_v25 = vld [vmem:[#allocation158_spill] sm:$0xff] }
 0x756   : > { %v14120_v56 = vpop.permute.xlu0 %7364  ;;  %v6233_v62 = vcombine.high %v6167_v27, %v6183_v31 }
 0x757   : > { %v6281_v36 = vcombine.high %v6224_v8, %v6256_v30 }
 0x758   : > { %7578 = vrot.lane.b32.xlu1 %v16365_v3, %s16360_s4  ;;  %v14123_v63 = vpop.permute.xlu1 %7354  ;;  %s16378_s4 = smov 16   ;;  %v16386_v3 = vld [vmem:[#allocation148_spill] sm:$0xff] }
 0x759   : > { %7596 = vrot.lane.b32.xlu0 %v6011_v18, %s16366_s24  ;;  %v16387_v18 = vcombine.low %v16385_v61, %v16386_v3  ;;  %v16389_v15 = vcombine.high %v16385_v61, %v16386_v3  ;;  %v16402_v61 = vld [vmem:[#allocation66_spill] sm:$0xff] }
 0x75a   : > { %v14135_v38 = vpop.permute.xlu0 %7372 }
 0x75c   : > { %7586 = vrot.lane.b32.xlu1 %v16369_v52, %s16362_s0  ;;  %v14137_v41 = vpop.permute.xlu1 %7362  ;;  %v6280_v52 = vcombine.low %v6224_v8, %v6256_v30  ;;  %v6265_v30 = vcombine.high %v6199_v12, %v6215_v50  ;;  %v16401_v8 = vld [vmem:[#allocation242_spill] sm:$0xff] }
 0x75d   : > { %7604 = vrot.lane.b32.xlu0 %v6012_v2, %s16378_s4  ;;  %v6217_v2 = vcombine.high %v6160_v43, %v6176_v45  ;;  %v6232_v45 = vcombine.low %v6167_v27, %v6183_v31  ;;  %v6456_v3 = vcombine.low %v16402_v61, %v16401_v8 }
 0x75e   : > { %v14150_v21 = vpop.permute.xlu0 %7380  ;;  %v6279_v31 = vrot.slane %v6265_v30, %v11357_v54 }
 0x75f   : > { %v6231_v58 = vrot.slane %v6217_v2, %v11357_v54  ;;  %v16407_v2 = vld [vmem:[#allocation222_spill] sm:$0xff]  ;;  %v6464_v50 = vrot.slane %v6456_v3, %v10925_v14  ;;  %v6247_v3 = vrot.slane %v6233_v62, %v11357_v54 }
 0x760   : > { %7594 = vrot.lane.b32.xlu1 %v16379_v16, %s16366_s24  ;;  %v14153_v5 = vpop.permute.xlu1 %7370  ;;  %v16392_v16 = vld [vmem:[#allocation37_spill] sm:$0xff] }
 0x761   : > { %7612 = vrot.lane.b32.xlu0 %v6013_v1, %s16203_s7  ;;  %v16393_v34 = vcombine.low %v16391_v33, %v16392_v16  ;;  %v6282_v35 = vcombine.low %v6231_v58, %v6263_v11  ;;  %v16395_v42 = vcombine.high %v16391_v33, %v16392_v16  ;;  %v6283_v10 = vcombine.high %v6231_v58, %v6263_v11  ;;  %v16409_v11 = vld [vmem:[#allocation224_spill] sm:$0xff]  ;;  %v16410_v58 = vld [vmem:[#allocation115_spill] sm:$0xff] }
 0x762   : > { %v14163_v60 = vpop.permute.xlu0 %7388  ;;  %v6440_v33 = vcombine.low %v16410_v58, %v16409_v11  ;;  %v6286_v48 = vcombine.low %v6247_v3, %v6279_v31 }
 0x764   : > { %7602 = vrot.lane.b32.xlu1 %v16382_v22, %s16378_s4  ;;  %v14165_v59 = vpop.permute.xlu1 %7378  ;;  %v6272_v22 = vrot.slane %v6264_v55, %v11357_v54  ;;  %v16413_v55 = vld [vmem:[#allocation184_spill] sm:$0xff] }
 0x765   : > { %7620 = vrot.lane.b32.xlu0 %v6014_v44, %s16207_s23  ;;  %v6240_v44 = vrot.slane %v6232_v45, %v11357_v54 }
 0x766   : > { %v14172_v17 = vpop.permute.xlu0 %7396 }
 0x767   : > { %v6285_v27 = vcombine.high %v6240_v44, %v6272_v22 }
 0x768   : > { %7610 = vrot.lane.b32.xlu1 %v16383_v19, %s16203_s7  ;;  %v14175_v0 = vpop.permute.xlu1 %7386  ;;  %v16399_v19 = vld [vmem:[#allocation157_spill] sm:$0xff] }
 0x769   : > { %16384 = vst [vmem:[#allocation187_spill] sm:$0xff] %v14175_v0  ;;  %7628 = vrot.lane.b32.xlu0 %v6015_v51, %s16209_s1  ;;  %v16400_v51 = vcombine.low %v16398_v25, %v16399_v19  ;;  %v16411_v12 = vcombine.high %v16398_v25, %v16399_v19  ;;  %v6448_v19 = vrot.slane %v6440_v33, %v10925_v14 }
 0x76a   : > { %v14187_v29 = vpop.permute.xlu0 %7404 }
 0x76c   : > { %7618 = vrot.lane.b32.xlu1 %v16387_v18, %s16207_s23  ;;  %v14189_v20 = vpop.permute.xlu1 %7394  ;;  %v16403_v18 = vld [vmem:[#allocation245_spill] sm:$0xff]  ;;  %s16598_s23 = sld [smem:[#allocation252_spill]] }
 0x76d   : > { %16388 = vst [vmem:[#allocation124_spill] sm:$0xff] %v14189_v20  ;;  %7636 = vrot.lane.b32.xlu0 %v6280_v52, %s16213_s3  ;;  %v6472_v53 = vcombine.low %v16404_v39, %v16403_v18  ;;  %v6284_v52 = vcombine.low %v6240_v44, %v6272_v22  ;;  %v16418_v22 = vld [vmem:[#allocation243_spill] sm:$0xff]  ;;  %v16419_v44 = vld [vmem:[#allocation156_spill] sm:$0xff] }
 0x76e   : > { %v14202_v7 = vpop.permute.xlu0 %7412  ;;  %v16420_v30 = vcombine.low %v16418_v22, %v16419_v44  ;;  %v16423_v62 = vcombine.high %v16418_v22, %v16419_v44  ;;  %v6457_v22 = vcombine.high %v16402_v61, %v16401_v8  ;;  %v16432_v61 = vld [vmem:[#allocation159_spill] sm:$0xff] }
 0x76f   : > { %v6480_v16 = vrot.slane %v6472_v53, %v10925_v14 }
 0x770   : > { %7626 = vrot.lane.b32.xlu1 %v16389_v15, %s16209_s1  ;;  %v14205_v49 = vpop.permute.xlu1 %7402  ;;  %v16408_v15 = vld [vmem:[#allocation97_spill] sm:$0xff] }
 0x771   : > { %16390 = vst [vmem:[#allocation188_spill] sm:$0xff] %v14205_v49  ;;  %7644 = vrot.lane.b32.xlu0 %v6281_v36, %s16215_s15  ;;  %v6424_v36 = vcombine.low %v16408_v15, %v16407_v2  ;;  %v6520_v53 = vcombine.low %v6464_v50, %v6480_v16 }
 0x772   : > { %v14215_v1 = vpop.permute.xlu0 %7420  ;;  %s16599_s1 = smov %s16598_s23 }
 0x773   : > { %v6432_v25 = vrot.slane %v6424_v36, %v10925_v14  ;;  %v6528_v57 = vrot.slane %v6520_v53, %v11357_v54 }
 0x774   : > { %7634 = vrot.lane.b32.xlu1 %v16393_v34, %s16213_s3  ;;  %v14217_v43 = vpop.permute.xlu1 %7410 }
 0x775   : > { %16394 = vst [vmem:[#allocation190_spill] sm:$0xff] %v14217_v43  ;;  %7652 = vrot.lane.b32.xlu0 %v6282_v35, %s16219_s6  ;;  %v16414_v35 = vld [vmem:[#allocation49_spill] sm:$0xff]  ;;  %v6488_v33 = vcombine.low %v6432_v25, %v6448_v19 }
 0x776   : > { %v14224_v28 = vpop.permute.xlu0 %7428  ;;  %v6288_v45 = vcombine.low %v16414_v35, %v16413_v55 }
 0x777   : > { %16396 = vst [vmem:[#allocation192_spill] sm:$0xff] %v14224_v28 }
 0x778   : > { %7642 = vrot.lane.b32.xlu1 %v16395_v42, %s16215_s15  ;;  %v14227_v37 = vpop.permute.xlu1 %7418  ;;  %v16415_v42 = vld [vmem:[#allocation186_spill] sm:$0xff]  ;;  %v6296_v26 = vrot.slane %v6288_v45, %v10925_v14  ;;  %v6496_v45 = vrot.slane %v6488_v33, %v11357_v54  ;;  %v6425_v33 = vcombine.high %v16408_v15, %v16407_v2 }
 0x779   : > { %16397 = vst [vmem:[#allocation191_spill] sm:$0xff] %v14227_v37  ;;  %7660 = vrot.lane.b32.xlu0 %v6283_v10, %s16221_s5  ;;  %v16416_v10 = vld [vmem:[#allocation154_spill] sm:$0xff] }
 0x77a   : > { %v14239_v46 = vpop.permute.xlu0 %7436  ;;  %v6552_v53 = vcombine.low %v6496_v45, %v6528_v57  ;;  %v16456_v37 = vld [vmem:[#allocation126_spill] sm:$0xff] }
 0x77b   : > { %16405 = vst [vmem:[#allocation193_spill] sm:$0xff] %v14239_v46 }
 0x77c   : > { %7650 = vrot.lane.b32.xlu1 %v16400_v51, %s16219_s6  ;;  %v14241_v40 = vpop.permute.xlu1 %7426  ;;  %v6304_v51 = vcombine.low %v16416_v10, %v16415_v42 }
 0x77d   : > { %16406 = vst [vmem:[#allocation194_spill] sm:$0xff] %v14241_v40  ;;  %7668 = vrot.lane.b32.xlu0 %v6284_v52, %s16233_s18 }
 0x77e   : > { %v14254_v34 = vpop.permute.xlu0 %7444  ;;  %v6312_v9 = vrot.slane %v6304_v51, %v10925_v14  ;;  %v16426_v51 = vld [vmem:[#allocation247_spill] sm:$0xff] }
 0x77f   : > { %16412 = vst [vmem:[#allocation149_spill] sm:$0xff] %v14254_v34 }
 0x780   : > { %7658 = vrot.lane.b32.xlu1 %v16411_v12, %s16221_s5  ;;  %v14261_v52 = vpop.permute.xlu1 %7434 }
 0x781   : > { %16417 = vst [vmem:[#allocation58_spill] sm:$0xff] %v14261_v52  ;;  %7676 = vrot.lane.b32.xlu0 %v6285_v27, %s16235_s2  ;;  %v6352_v52 = vcombine.low %v6296_v26, %v6312_v9 }
 0x782   : > { %v14271_v12 = vpop.permute.xlu0 %7452 }
 0x783   : > { %16421 = vst [vmem:[#allocation155_spill] sm:$0xff] %v14271_v12 }
 0x784   : > { %7666 = vrot.lane.b32.xlu1 %v16420_v30, %s16233_s18  ;;  %v14275_v36 = vpop.permute.xlu1 %7442  ;;  %v6287_v30 = vcombine.high %v6247_v3, %v6279_v31  ;;  %v6473_v31 = vcombine.high %v16404_v39, %v16403_v18  ;;  %v6521_v3 = vcombine.high %v6464_v50, %v6480_v16  ;;  %v16433_v18 = vld [vmem:[#allocation161_spill] sm:$0xff]  ;;  %v6471_v16 = vrot.slane %v6457_v22, %v10925_v14 }
 0x785   : > { %16422 = vst [vmem:[#allocation82_spill] sm:$0xff] %v14275_v36  ;;  %7684 = vrot.lane.b32.xlu0 %v6286_v48, %s16239_s27  ;;  %v16427_v48 = vld [vmem:[#allocation244_spill] sm:$0xff]  ;;  %v16434_v39 = vcombine.low %v16432_v61, %v16433_v18 }
 0x786   : > { %v14282_v27 = vpop.permute.xlu0 %7460  ;;  %v16428_v36 = vcombine.low %v16426_v51, %v16427_v48  ;;  %v16431_v8 = vcombine.high %v16426_v51, %v16427_v48  ;;  %v6487_v2 = vrot.slane %v6473_v31, %v10925_v14 }
 0x787   : > { %16424 = vst [vmem:[#allocation199_spill] sm:$0xff] %v14282_v27  ;;  %v6392_v50 = vrot.slane %v16434_v39, %v11357_v54 }
 0x788   : > { %7674 = vrot.lane.b32.xlu1 %v16423_v62, %s16235_s2  ;;  %v14285_v40 = vpop.permute.xlu1 %7450  ;;  %s16581_s2 = sld [smem:[#allocation24_spill]] }
 0x789   : > { %16425 = vst [vmem:[#allocation81_spill] sm:$0xff] %v14285_v40  ;;  %7692 = vrot.lane.b32.xlu0 %v6287_v30, %s16242_s22  ;;  %v6360_v30 = vrot.slane %v6352_v52, %v11357_v54  ;;  %v6489_v40 = vcombine.high %v6432_v25, %v6448_v19  ;;  %v6289_v52 = vcombine.high %v16414_v35, %v16413_v55 }
 0x78a   : > { %v14297_v44 = vpop.permute.xlu0 %7468  ;;  %v6305_v25 = vcombine.high %v16416_v10, %v16415_v42  ;;  %v6353_v19 = vcombine.high %v6296_v26, %v6312_v9 }
 0x78b   : > { %16429 = vst [vmem:[#allocation200_spill] sm:$0xff] %v14297_v44  ;;  %v6416_v48 = vcombine.low %v6360_v30, %v6392_v50  ;;  %v14334_v35 = vrot.slane %v6289_v52, %v10925_v14  ;;  %v6417_v42 = vcombine.high %v6360_v30, %v6392_v50  ;;  %v16455_v44 = vld [vmem:[#allocation117_spill] sm:$0xff] }
 0x78c   : > { %7682 = vrot.lane.b32.xlu1 %v16428_v36, %s16239_s27  ;;  %v14299_v62 = vpop.permute.xlu1 %7458  ;;  %v6441_v36 = vcombine.high %v16410_v58, %v16409_v11  ;;  %v6553_v11 = vcombine.high %v6496_v45, %v6528_v57  ;;  %v6535_v58 = vrot.slane %v6521_v3, %v11357_v54  ;;  %v6503_v57 = vrot.slane %v6489_v40, %v11357_v54  ;;  %s8127_s27 = sshll.u32 %s13523_s26, 4  ;;  %s14758_s27 = int_to_ptr.vmem [resolvable:$true] %s8127_s27 }
 0x78d   : > { %16430 = vst [vmem:[#allocation107_spill] sm:$0xff] %v14299_v62  ;;  %7700 = vrot.lane.b32.xlu0 %v6552_v53, %s16247_s19  ;;  %v6439_v53 = vrot.slane %v6425_v33, %v10925_v14  ;;  %v6536_v45 = vcombine.low %v6471_v16, %v6487_v2  ;;  %v14337_v9 = vrot.slane %v6305_v25, %v10925_v14  ;;  %v16442_v25 = vld [vmem:[#allocation164_spill] sm:$0xff]  ;;  %v16451_v62 = vld [vmem:[#allocation50_spill] sm:$0xff] }
 0x78e   : > { %v14317_v15 = vpop.permute.xlu0 %7476  ;;  %v6455_v22 = vrot.slane %v6441_v36, %v10925_v14  ;;  %v6554_v55 = vcombine.low %v6503_v57, %v6535_v58  ;;  %v6367_v10 = vrot.slane %v6353_v19, %v11357_v54  ;;  %v16439_v40 = vcombine.high %v16432_v61, %v16433_v18  ;;  %v16443_v19 = vld [vmem:[#allocation68_spill] sm:$0xff]  ;;  %v16444_v18 = vld [vmem:[#allocation246_spill] sm:$0xff] }
 0x78f   : > { %16435 = vst [vmem:[#allocation201_spill] sm:$0xff] %v14317_v15  ;;  %v6544_v39 = vrot.slane %v6536_v45, %v11357_v54  ;;  %v6368_v30 = vcombine.low %v14334_v35, %v14337_v9  ;;  %v6537_v61 = vcombine.high %v6471_v16, %v6487_v2  ;;  %v16446_v45 = vld [vmem:[#allocation179_spill] sm:$0xff]  ;;  %v16454_v15 = vld [vmem:[#allocation101_spill] sm:$0xff] }
 0x790   : > { %7690 = vrot.lane.b32.xlu1 %v16431_v8, %s16242_s22  ;;  %v14324_v51 = vpop.permute.xlu1 %7466  ;;  %v6504_v3 = vcombine.low %v6439_v53, %v6455_v22  ;;  %v6399_v33 = vrot.slane %v16439_v40, %v11357_v54  ;;  %v6555_v8 = vcombine.high %v6503_v57, %v6535_v58  ;;  %v16445_v58 = vld [vmem:[#allocation67_spill] sm:$0xff]  ;;  %v6712_v27 = vcombine.low %v16455_v44, %v16454_v15 }
 0x791   : > { %16436 = vst [vmem:[#allocation128_spill] sm:$0xff] %v14324_v51  ;;  %7708 = vrot.lane.b32.xlu0 %v6553_v11, %s16250_s30  ;;  %v6728_v57 = vcombine.low %v16445_v58, %v16444_v18  ;;  %v16450_v51 = vld [vmem:[#allocation116_spill] sm:$0xff]  ;;  %v16453_v16 = vld [vmem:[#allocation99_spill] sm:$0xff]  ;;  %v6551_v20 = vrot.slane %v6537_v61, %v11357_v54 }
 0x792   : > { %v14331_v31 = vpop.permute.xlu0 %7484  ;;  %v6418_v11 = vcombine.low %v6367_v10, %v6399_v33  ;;  %v6512_v52 = vrot.slane %v6504_v3, %v11357_v54  ;;  %v6376_v3 = vrot.slane %v6368_v30, %v11357_v54  ;;  %v16459_v30 = vld [vmem:[#allocation163_spill] sm:$0xff]  ;;  %v16465_v61 = vld [vmem:[#allocation232_spill] sm:$0xff] }
 0x793   : > { %16437 = vst [vmem:[#allocation205_spill] sm:$0xff] %v14331_v31  ;;  %v6505_v31 = vcombine.high %v6439_v53, %v6455_v22  ;;  %v16460_v53 = vld [vmem:[#allocation160_spill] sm:$0xff]  ;;  %v16461_v22 = vld [vmem:[#allocation162_spill] sm:$0xff]  ;;  %v14389_v49 = vrot.slane %v6728_v57, %v10925_v14 }
 0x794   : > { %7698 = vrot.lane.b32.xlu1 %v6416_v48, %s16247_s19  ;;  %v14339_v26 = vpop.permute.xlu1 %7474  ;;  %v6608_v48 = vcombine.low %v16443_v19, %v16442_v25  ;;  %v16462_v43 = vcombine.low %v16460_v53, %v16461_v22  ;;  %v6557_v46 = vcombine.high %v6512_v52, %v6544_v39 }
 0x795   : > { %16438 = vst [vmem:[#allocation206_spill] sm:$0xff] %v14339_v26  ;;  %7716 = vrot.lane.b32.xlu0 %v6554_v55, %s16107_s25  ;;  %v16447_v55 = vld [vmem:[#allocation100_spill] sm:$0xff] }
 0x796   : > { %v14348_v36 = vpop.permute.xlu0 %7492  ;;  %v6408_v34 = vrot.slane %v16462_v43, %v11357_v54 }
 0x797   : > { %16440 = vst [vmem:[#allocation211_spill] sm:$0xff] %v14348_v36  ;;  %v6592_v36 = vcombine.low %v16451_v62, %v16450_v51 }
 0x798   : > { %7706 = vrot.lane.b32.xlu1 %v6417_v42, %s16250_s30  ;;  %v14353_v50 = vpop.permute.xlu1 %7482  ;;  %v6744_v42 = vcombine.low %v16447_v55, %v16446_v45  ;;  %v6420_v43 = vcombine.low %v6376_v3, %v6408_v34  ;;  %s16594_s30 = sld [smem:[#allocation33_spill]] }
 0x799   : > { %16441 = vst [vmem:[#allocation209_spill] sm:$0xff] %v14353_v50  ;;  %7724 = vrot.lane.b32.xlu0 %v6555_v8, %s16111_s13  ;;  %v6556_v50 = vcombine.low %v6512_v52, %v6544_v39  ;;  %v6419_v8 = vcombine.high %v6367_v10, %v6399_v33  ;;  %v16458_v33 = vld [vmem:[#allocation189_spill] sm:$0xff]  ;;  %v14404_v57 = vrot.slane %v6592_v36, %v10925_v14  ;;  %v16464_v36 = vld [vmem:[#allocation234_spill] sm:$0xff] }
 0x79a   : > { %v14364_v40 = vpop.permute.xlu0 %7500  ;;  %v6576_v12 = vcombine.low %v16459_v30, %v16458_v33  ;;  %v6519_v39 = vrot.slane %v6505_v31, %v11357_v54 }
 0x79b   : > { %16448 = vst [vmem:[#allocation41_spill] sm:$0xff] %v14364_v40  ;;  %v14377_v40 = vrot.slane %v6608_v48, %v10925_v14 }
 0x79c   : > { %7714 = vrot.lane.b32.xlu1 %v6418_v11, %s16107_s25  ;;  %v14366_v26 = vpop.permute.xlu1 %7490  ;;  %v16452_v11 = vld [vmem:[#allocation69_spill] sm:$0xff] }
 0x79d   : > { %16449 = vst [vmem:[#allocation83_spill] sm:$0xff] %v14366_v26  ;;  %v6696_v2 = vcombine.low %v16453_v16, %v16452_v11  ;;  %7732 = vrot.lane.b32.xlu0 %v6556_v50, %s16125_s11  ;;  %v16457_v26 = vld [vmem:[#allocation51_spill] sm:$0xff]  ;;  %v14392_v50 = vrot.slane %v6744_v42, %v10925_v14 }
 0x79e   : > { %v6560_v10 = vcombine.low %v16457_v26, %v16456_v37  ;;  %v14394_v48 = vpop.permute.xlu0 %7508  ;;  %p16601_p13 = scmp.ne.s32.totalorder %s16594_s30, 0 }
 0x79f   : > { %16463 = vst [vmem:[#allocation202_spill] sm:$0xff] %v14394_v48  ;;  %v14407_v42 = vrot.slane %v6696_v2, %v10925_v14  ;;  %v14410_v48 = vrot.slane %v6712_v27, %v10925_v14  ;;  %v16466_v2 = vcombine.low %v16464_v36, %v16465_v61  ;;  %v6792_v31 = vcombine.low %v14389_v49, %v14392_v50 }
 0x7a0   : > { %7722 = vrot.lane.b32.xlu1 %v6419_v8, %s16111_s13  ;;  %v6369_v8 = vcombine.high %v14334_v35, %v14337_v9  ;;  %v14401_v0 = vpop.permute.xlu1 %7498  ;;  %v14417_v35 = vrot.slane %v6560_v10, %v10925_v14  ;;  %v14420_v9 = vrot.slane %v6576_v12, %v10925_v14  ;;  %v6558_v12 = vcombine.low %v6519_v39, %v6551_v20 }
 0x7a1   : > { %7740 = vrot.lane.b32.xlu0 %v6557_v46, %s16130_s10  ;;  %v7980_v27 = vsel %vm16467_vm14, %v16466_v2, %v14063_v13  ;;  %v6656_v46 = vcombine.low %v14404_v57, %v14377_v40  ;;  %vm16477_vm14 = vcmask 228352  }
 0x7a2   : > { %v7982_v10 = vsel %vm7827_vm7, %v7980_v27, %v14079_v32  ;;  %v14434_v52 = vpop.permute.xlu0 %7516  ;;  %v6383_v61 = vrot.slane %v6369_v8, %v11357_v54  ;;  %v6760_v27 = vcombine.low %v14407_v42, %v14410_v48  ;;  %v16471_v8 = vcombine.high %v16460_v53, %v16461_v22 }
 0x7a3   : > { %v7984_v13 = vsel %vm7830_vm8, %v7982_v10, %v14096_v4  ;;  %v6624_v4 = vcombine.low %v14417_v35, %v14420_v9 }
 0x7a4   : > { %7730 = vrot.lane.b32.xlu1 %v6420_v43, %s16125_s11  ;;  %v14440_v36 = vpop.permute.xlu1 %7506  ;;  %v6421_v43 = vcombine.high %v6376_v3, %v6408_v34  ;;  %v7986_v28 = vsel %vm16469_vm5, %v7984_v13, %v14111_v47  ;;  %v6415_v10 = vrot.slane %v16471_v8, %v11357_v54  ;;  %v16472_v47 = vld [vmem:[#allocation170_spill] sm:$0xff]  ;;  %v16473_v13 = vld [vmem:[#allocation72_spill] sm:$0xff]  ;;  %vm16478_vm5 = vcmask 261120  }
 0x7a5   : > { %16468 = vst [vmem:[#allocation108_spill] sm:$0xff] %v14440_v36  ;;  %7748 = vrot.lane.b32.xlu0 %v6558_v12, %s16134_s9  ;;  %v7988_v3 = vsel %vm16470_vm10, %v7986_v28, %v14120_v56  ;;  %v16474_v12 = vcombine.low %v16472_v47, %v16473_v13  ;;  %v6559_v36 = vcombine.high %v6519_v39, %v6551_v20  ;;  %vm16479_vm10 = vcmask 130048   ;;  %v16497_v13 = vld [vmem:[#allocation149_spill] sm:$0xff] }
 0x7a6   : > { %v7990_v2 = vsel %vm16476_vm9, %v7988_v3, %v14135_v38  ;;  %v14470_v34 = vpop.permute.xlu0 %7524  ;;  %v6800_v56 = vrot.slane %v6792_v31, %v11357_v54  ;;  %v6697_v28 = vcombine.high %v16453_v16, %v16452_v11  ;;  %v6729_v38 = vcombine.high %v16445_v58, %v16444_v18  ;;  %v16487_v31 = vld [vmem:[#allocation187_spill] sm:$0xff] }
 0x7a7   : > { %v7979_v32 = vsel %vm16475_vm12, %v16474_v12, %v14081_v24  ;;  %v7992_v22 = vsel %vm16477_vm14, %v7990_v2, %v14150_v21  ;;  %v6422_v24 = vcombine.low %v6383_v61, %v6415_v10  ;;  %v6768_v11 = vrot.slane %v6760_v27, %v11357_v54  ;;  %v16491_v2 = vld [vmem:[#allocation124_spill] sm:$0xff] }
 0x7a8   : > { %7738 = vrot.lane.b32.xlu1 %v6421_v43, %s16130_s10  ;;  %v7981_v53 = vsel %vm7827_vm7, %v7979_v32, %v14101_v23  ;;  %v7994_v39 = vsel %vm16478_vm5, %v7992_v22, %v14163_v60  ;;  %v6713_v23 = vcombine.high %v16455_v44, %v16454_v15  ;;  %v6745_v21 = vcombine.high %v16447_v55, %v16446_v45  ;;  %v16493_v32 = vld [vmem:[#allocation193_spill] sm:$0xff] }
 0x7a9   : > { %v14479_v43 = vpop.permute.xlu1 %7514  ;;  %v7983_v20 = vsel %vm7830_vm8, %v7981_v53, %v14113_v6  ;;  %7756 = vrot.lane.b32.xlu0 %v6559_v36, %s16139_s29  ;;  %vm16480_vm12 = vcmask 293888   ;;  %v6793_v6 = vcombine.high %v14389_v49, %v14392_v50  ;;  %vm16481_vm9 = vcmask 162816  }
 0x7aa   : > { %v7985_v16 = vsel %vm16479_vm10, %v7983_v20, %v14123_v63  ;;  %v7996_v18 = vsel %vm16480_vm12, %v7994_v39, %v14172_v17  ;;  %vm16482_vm14 = vcmask 326656   ;;  %v14504_v15 = vpop.permute.xlu0 %7532  ;;  %v6824_v58 = vcombine.low %v6768_v11, %v6800_v56 }
 0x7ab   : > { %v7987_v60 = vsel %vm16481_vm9, %v7985_v16, %v14137_v41  ;;  %v7998_v44 = vsel %vm16482_vm14, %v7996_v18, %v14187_v29  ;;  %vm16483_vm5 = vcmask 195584   ;;  %vm16484_vm10 = vcmask 359424   ;;  %v16505_v16 = vld [vmem:[#allocation191_spill] sm:$0xff] }
 0x7ac   : > { %7746 = vrot.lane.b32.xlu1 %v6422_v24, %s16134_s9  ;;  %v7989_v63 = vsel %vm16483_vm5, %v7987_v60, %v14153_v5  ;;  %v8000_v17 = vsel %vm16484_vm10, %v7998_v44, %v14202_v7  ;;  %v6423_v55 = vcombine.high %v6383_v61, %v6415_v10  ;;  %v6632_v49 = vrot.slane %v6624_v4, %v11357_v54  ;;  %v16489_v61 = vld [vmem:[#allocation192_spill] sm:$0xff]  ;;  %v16499_v24 = vld [vmem:[#allocation190_spill] sm:$0xff] }
 0x7ad   : > { %v6761_v41 = vcombine.high %v14407_v42, %v14410_v48  ;;  %v14516_v50 = vrot.slane %v6729_v38, %v10925_v14  ;;  %vm16485_vm12 = vcmask 228352   ;;  %vm16486_vm9 = vcmask 392192   ;;  %7764 = vrot.lane.b32.xlu0 %v6824_v58, %s16143_s12  ;;  %v16495_v10 = vld [vmem:[#allocation188_spill] sm:$0xff]  ;;  %v16501_v38 = vld [vmem:[#allocation155_spill] sm:$0xff] }
 0x7ae   : > { %v14510_v45 = vpop.permute.xlu1 %7522  ;;  %v7991_v29 = vsel %vm16485_vm12, %v7989_v63, %v14165_v59  ;;  %v8002_v5 = vsel %vm16486_vm9, %v8000_v17, %v14215_v1  ;;  %v14524_v7 = vrot.slane %v6745_v21, %v10925_v14  ;;  %vm16488_vm14 = vcmask 261120   ;;  %v16511_v58 = vld [vmem:[#allocation200_spill] sm:$0xff]  ;;  %v16513_v17 = vld [vmem:[#allocation58_spill] sm:$0xff] }
 0x7af   : > { %v7993_v36 = vsel %vm16488_vm14, %v7991_v29, %v16487_v31  ;;  %vm16490_vm5 = vcmask 424960   ;;  %v6664_v42 = vrot.slane %v6656_v46, %v11357_v54  ;;  %vm16492_vm10 = vcmask 293888   ;;  %v14536_v27 = vpop.permute.xlu0 %7540 }
 0x7b0   : > { %v8004_v48 = vsel %vm16490_vm5, %v8002_v5, %v16489_v61  ;;  %7754 = vrot.lane.b32.xlu1 %v6423_v55, %s16139_s29  ;;  %v7995_v59 = vsel %vm16492_vm10, %v7993_v36, %v16491_v2  ;;  %vm16494_vm12 = vcmask 457728   ;;  %v6825_v4 = vcombine.high %v6768_v11, %v6800_v56 }
 0x7b1   : > { %v8006_v1 = vsel %vm16494_vm12, %v8004_v48, %v16493_v32  ;;  %v6807_v3 = vrot.slane %v6793_v6, %v11357_v54  ;;  %v14540_v8 = vrot.slane %v6697_v28, %v10925_v14  ;;  %vm16496_vm9 = vcmask 326656   ;;  %v16507_v6 = vld [vmem:[#allocation199_spill] sm:$0xff]  ;;  %v16519_v32 = vld [vmem:[#allocation82_spill] sm:$0xff] }
 0x7b2   : > { %v7997_v47 = vsel %vm16496_vm9, %v7995_v59, %v16495_v10  ;;  %vm16498_vm14 = vcmask 490496   ;;  %v14546_v12 = vpop.permute.xlu1 %7530  ;;  %v6688_v53 = vcombine.low %v6632_v49, %v6664_v42  ;;  %v14549_v22 = vrot.slane %v6713_v23, %v10925_v14  ;;  %7772 = vrot.lane.b32.xlu0 %v6825_v4, %s16145_s21  ;;  %v16521_v4 = vld [vmem:[#allocation205_spill] sm:$0xff] }
 0x7b3   : > { %v8008_v46 = vsel %vm16498_vm14, %v8006_v1, %v16497_v13  ;;  %vm16500_vm5 = vcmask 359424   ;;  %vm16502_vm10 = vcmask 523264   ;;  %v6775_v28 = vrot.slane %v6761_v41, %v11357_v54  ;;  %v16515_v41 = vld [vmem:[#allocation201_spill] sm:$0xff] }
 0x7b4   : > { %v7999_v56 = vsel %vm16500_vm5, %v7997_v47, %v16499_v24  ;;  %v8010_v20 = vsel %vm16502_vm10, %v8008_v46, %v16501_v38  ;;  %v16503_v39 = vcombine.high %v16457_v26, %v16456_v37  ;;  %v16504_v23 = vcombine.high %v16459_v30, %v16458_v33  ;;  %7762 = vrot.lane.b32.xlu1 %v6688_v53, %s16143_s12  ;;  %v16509_v37 = vld [vmem:[#allocation194_spill] sm:$0xff]  ;;  %v7549_v33 = vpop.permute.xlu0 %7548  ;;  %v16529_v46 = vld [vmem:[#allocation107_spill] sm:$0xff]  ;;  %v16531_v24 = vld [vmem:[#allocation41_spill] sm:$0xff] }
 0x7b5   : > { %vm16506_vm12 = vcmask 392192   ;;  %vm16508_vm9 = vcmask 556032   ;;  %v6808_v44 = vcombine.low %v14516_v50, %v14524_v7  ;;  %vm16510_vm14 = vcmask 424960  }
 0x7b6   : > { %v14561_v11 = vrot.slane %v16503_v39, %v10925_v14  ;;  %v14567_v21 = vrot.slane %v16504_v23, %v10925_v14  ;;  %v8001_v18 = vsel %vm16506_vm12, %v7999_v56, %v16505_v16  ;;  %v8012_v60 = vsel %vm16508_vm9, %v8010_v20, %v16507_v6  ;;  %v7539_v5 = vpop.permute.xlu1 %7538  ;;  %v16532_v20 = vld [vmem:[#allocation128_spill] sm:$0xff]  ;;  %v16534_v23 = vld [vmem:[#allocation202_spill] sm:$0xff] }
 0x7b7   : > { %v8003_v26 = vsel %vm16510_vm14, %v8001_v18, %v16509_v37  ;;  %vm16512_vm5 = vcmask 588800   ;;  %v6826_v30 = vcombine.low %v6775_v28, %v6807_v3  ;;  %vm16514_vm10 = vcmask 457728   ;;  %v16535_v18 = vld [vmem:[#allocation206_spill] sm:$0xff] }
 0x7b8   : > { %v8014_v63 = vsel %vm16512_vm5, %v8012_v60, %v16511_v58  ;;  %v8005_v55 = vsel %vm16514_vm10, %v8003_v26, %v16513_v17  ;;  %vm16516_vm12 = vcmask 621568   ;;  %v6689_v31 = vcombine.high %v6632_v49, %v6664_v42  ;;  %v16526_v42 = vld [vmem:[#allocation211_spill] sm:$0xff] }
 0x7b9   : > { %v8016_v29 = vsel %vm16516_vm12, %v8014_v63, %v16515_v41  ;;  %v16517_v36 = vcombine.high %v14417_v35, %v14420_v9  ;;  %v16518_v48 = vcombine.high %v16451_v62, %v16450_v51  ;;  %v6776_v59 = vcombine.low %v14540_v8, %v14549_v22  ;;  %7780 = vrot.lane.b32.xlu0 %v6826_v30, %s16150_s20  ;;  %v16524_v62 = vld [vmem:[#allocation81_spill] sm:$0xff]  ;;  %v16539_v63 = vld [vmem:[#allocation83_spill] sm:$0xff] }
 0x7ba   : > { %vm16520_vm9 = vcmask 490496   ;;  %vm16522_vm14 = vcmask 654336   ;;  %v16523_v35 = vcombine.high %v16443_v19, %v16442_v25  ;;  %vm16525_vm5 = vcmask 523264   ;;  %7770 = vrot.lane.b32.xlu1 %v6689_v31, %s16145_s21  ;;  %v7557_v25 = vpop.permute.xlu0 %7556  ;;  %s9154_s21 = smov [#allocation11]  }
 0x7bb   : > { %v6639_v61 = vrot.slane %v16517_v36, %v11357_v54  ;;  %v14592_v2 = vrot.slane %v16518_v48, %v10925_v14  ;;  %v8007_v1 = vsel %vm16520_vm9, %v8005_v55, %v16519_v32  ;;  %v8018_v49 = vsel %vm16522_vm14, %v8016_v29, %v16521_v4  ;;  %s8942_s12 = sshll.u32 %s9154_s21, 4  ;;  %s8943_s12 = int_to_ptr.vmem [resolvable:$false] %s8942_s12 }
 0x7bc   : > { %v14605_v9 = vrot.slane %v16523_v35, %v10925_v14  ;;  %v8009_v51 = vsel %vm16525_vm5, %v8007_v1, %v16524_v62  ;;  %vm16527_vm10 = vcmask 687104   ;;  %v16528_v47 = vcombine.high %v14404_v57, %v14377_v40  ;;  %v7547_v57 = vpop.permute.xlu1 %7546  ;;  %s8944_s29 = scalar_lea.vmem %s8943_s12, 2048  ;;  %p8945_p9 = scmp.lt.s32.totalorder %s14758_s27, %s8943_s12 }
 0x7bd   : > { %v8020_v10 = vsel %vm16527_vm10, %v8018_v49, %v16526_v42  ;;  %vm16530_vm12 = vcmask 556032   ;;  %v6827_v19 = vcombine.high %v6775_v28, %v6807_v3  ;;  %v6816_v56 = vrot.slane %v6808_v44, %v11357_v54  ;;  %v16537_v44 = vld [vmem:[#allocation209_spill] sm:$0xff] }
 0x7be   : > { %v6671_v13 = vrot.slane %v16528_v47, %v11357_v54  ;;  %v8011_v53 = vsel %vm16530_vm12, %v8009_v51, %v16529_v46  ;;  %v8022_v14 = vsel %vm7887_vm0, %v8020_v10, %v16531_v24  ;;  %v6640_v38 = vcombine.low %v14561_v11, %v14567_v21  ;;  %v7565_v17 = vpop.permute.xlu0 %7564  ;;  %v16543_v47 = vld [vmem:[#allocation177_spill] sm:$0xff] }
 0x7bf   : > { %vm16533_vm9 = vcmask 588800   ;;  %v8024_v40 = vsel %vm7890_vm1, %v8022_v14, %v16534_v23  ;;  %vm16536_vm14 = vcmask 621568   ;;  %7788 = vrot.lane.b32.xlu0 %v6827_v19, %s16158_s8  ;;  %v6784_v3 = vrot.slane %v6776_v59, %v11357_v54  ;;  %v16548_v23 = vld [vmem:[#allocation142_spill] sm:$0xff] }
 0x7c0   : > { %v8013_v39 = vsel %vm16533_vm9, %v8011_v53, %v16532_v20  ;;  %v6690_v16 = vcombine.low %v6639_v61, %v6671_v13  ;;  %v8026_v60 = vsel %vm7893_vm3, %v8024_v40, %v14434_v52  ;;  %v6672_v28 = vcombine.low %v14592_v2, %v14605_v9 }
 0x7c1   : > { %v8015_v6 = vsel %vm16536_vm14, %v8013_v39, %v16535_v18  ;;  %vm16538_vm5 = vcmask 654336   ;;  %v8028_v26 = vsel %vm7896_vm2, %v8026_v60, %v14470_v34  ;;  %v6809_v58 = vcombine.high %v14516_v50, %v14524_v7  ;;  %v7555_v34 = vpop.permute.xlu1 %7554  ;;  %v16540_v7 = vld [vmem:[#allocation108_spill] sm:$0xff]  ;;  %v16547_v39 = vld [vmem:[#allocation238_spill] sm:$0xff] }
 0x7c2   : > { %v8017_v37 = vsel %vm16538_vm5, %v8015_v6, %v16537_v44  ;;  %7778 = vrot.lane.b32.xlu1 %v6690_v16, %s16150_s20  ;;  %v8030_v30 = vsel %vm7899_vm4, %v8028_v26, %v14504_v15  ;;  %v6828_v55 = vcombine.low %v6784_v3, %v6816_v56  ;;  %v6691_v31 = vcombine.high %v6639_v61, %v6671_v13  ;;  %v7573_v59 = vpop.permute.xlu0 %7572  ;;  %s8938_s20 = scalar_lea.vmem %s14758_s27, 1024 }
 0x7c3   : > { %v8019_v52 = vsel %vm16527_vm10, %v8017_v37, %v16539_v63  ;;  %v8032_v29 = vsel %vm7902_vm11, %v8030_v30, %v14536_v27  ;;  %v6648_v36 = vrot.slane %v6640_v38, %v11357_v54  ;;  %v6777_v50 = vcombine.high %v14540_v8, %v14549_v22  ;;  %p8939_p11 = scmp.ne.s32.totalorder %s14758_s27, %s8938_s20  ;;  %p8946_p5 = scmp.lt.s32.totalorder %s8944_s29, %s8938_s20 }
 0x7c4   : > { %v8021_v41 = vsel %vm7887_vm0, %v8019_v52, %v14401_v0  ;;  %v8034_v15 = vsel %vm15416_vm13, %v8032_v29, %v7549_v33  ;;  %7796 = vrot.lane.b32.xlu0 %v6828_v55, %s16333_s17  ;;  %v6680_v61 = vrot.slane %v6672_v28, %v11357_v54  ;;  %v6829_v32 = vcombine.high %v6784_v3, %v6816_v56 }
 0x7c5   : > { %v8023_v48 = vsel %vm7890_vm1, %v8021_v41, %v16540_v7  ;;  %v8036_v27 = vsel %vm15415_vm6, %v8034_v15, %v7557_v25  ;;  %v6823_v33 = vrot.slane %v6809_v58, %v11357_v54  ;;  %v6641_v1 = vcombine.high %v14561_v11, %v14567_v21  ;;  %v7563_v49 = vpop.permute.xlu1 %7562  ;;  %p8940_p3 = pnand %p8939_p11, %p16601_p13  ;;  %p8947_p12 = por %p8946_p5, %p8945_p9 }
 0x7c6   : > { %v8025_v0 = vsel %vm7893_vm3, %v8023_v48, %v14479_v43  ;;  %7786 = vrot.lane.b32.xlu1 %v6691_v31, %s16158_s8  ;;  %v8038_v22 = vsel %vm15414_vm15, %v8036_v27, %v7565_v17  ;;  %vm16541_vm12 = vcmask 1014784   ;;  %v6692_v35 = vcombine.low %v6648_v36, %v6680_v61  ;;  %v7581_v21 = vpop.permute.xlu0 %7580 }
 0x7c7   : > { %v8027_v8 = vsel %vm7896_vm2, %v8025_v0, %v14510_v45  ;;  %v8040_v4 = vsel %vm16541_vm12, %v8038_v22, %v7573_v59  ;;  %v6791_v45 = vrot.slane %v6777_v50, %v11357_v54  ;;  %v6673_v51 = vcombine.high %v14592_v2, %v14605_v9  ;;  %vm16546_vm14 = vmmov %vm16541_vm12  ;;  %p8941_p10 = pneg %p8940_p3 }
 0x7c8   : > { %v8029_v43 = vsel %vm7899_vm4, %v8027_v8, %v14546_v12  ;;  %8109 = vst [vmem:[%s13523_s26 + $0x30] sm:$0xff] %v8040_v4  ;;  %7804 = vrot.lane.b32.xlu0 %v6829_v32, %s16165_s14  ;;  %vm16545_vm9 = vcmask 31744   ;;  %v6693_v24 = vcombine.high %v6648_v36, %v6680_v61  ;;  %v6655_v14 = vrot.slane %v6641_v1, %v11357_v54 }
 0x7c9   : > { %v8031_v62 = vsel %vm7902_vm11, %v8029_v43, %v7539_v5  ;;  %v6830_v42 = vcombine.low %v6791_v45, %v6823_v33  ;;  %v16542_v5 = vld [vmem:[#allocation195_spill] sm:$0xff]  ;;  %v7571_v53 = vpop.permute.xlu1 %7570  ;;  %v6687_v9 = vrot.slane %v6673_v51, %v11357_v54  ;;  %v6831_v19 = vcombine.high %v6791_v45, %v6823_v33  ;;  %vm16550_vm5 = vmmov %vm16545_vm9  ;;  %p8948_p8 = pnand %p8947_p12, %p8941_p10 }
 0x7ca   : > { %v8033_v11 = vsel %vm15416_vm13, %v8031_v62, %v7547_v57  ;;  %7794 = vrot.lane.b32.xlu1 %v6692_v35, %s16333_s17  ;;  %v16544_v13 = vcombine.low %v16542_v5, %v16543_v47  ;;  %v7589_v25 = vpop.permute.xlu0 %7588  ;;  %v16549_v40 = vcombine.low %v16547_v39, %v16548_v23  ;;  %vm16551_vm10 = vcmask 130048   ;;  %s8372_s17 = sshll.u32 %s16581_s2, 2 }
 0x7cb   : > { %v8035_v12 = vsel %vm15415_vm6, %v8033_v11, %v7555_v34  ;;  %v6694_v20 = vcombine.low %v6655_v14, %v6687_v9  ;;  %v6695_v54 = vcombine.high %v6655_v14, %v6687_v9  ;;  %vm16552_vm12 = vcmask 162816  }
 0x7cc   : > { %v8037_v10 = vsel %vm15414_vm15, %v8035_v12, %v7563_v49  ;;  %v8042_v46 = vsel %vm16545_vm9, %v16544_v13, %v7581_v21  ;;  %7812 = vrot.lane.b32.xlu0 %v6830_v42, %s16340_s16  ;;  %vm16553_vm9 = vmmov %vm16551_vm10  ;;  %vm16571_vm6 = vcmask 523264  }
 0x7cd   : > { %v8039_v2 = vsel %vm16546_vm14, %v8037_v10, %v7571_v53  ;;  %v8044_v56 = vsel %vm7827_vm7, %v8042_v46, %v7589_v25  ;;  %v7579_v38 = vpop.permute.xlu1 %7578  ;;  %vm16554_vm14 = vcmask 195584  }
 0x7ce   : > { %8105 = vst [vmem:[%s13523_s26 + $0x10] sm:$0xff] %v8039_v2  ;;  %7802 = vrot.lane.b32.xlu1 %v6693_v24, %s16165_s14  ;;  %v8041_v57 = vsel %vm16550_vm5, %v16549_v40, %v7579_v38  ;;  %v7597_v16 = vpop.permute.xlu0 %7596  ;;  %vm16555_vm5 = vmmov %vm16552_vm12 }
 0x7cf   : > { %v8046_v18 = vsel %vm7830_vm8, %v8044_v56, %v7597_v16 }
 0x7d0   : > { %7820 = vrot.lane.b32.xlu0 %v6831_v19, %s16354_s28 }
 0x7d1   : > { %v7587_v6 = vpop.permute.xlu1 %7586 }
 0x7d2   : > { %7810 = vrot.lane.b32.xlu1 %v6694_v20, %s16340_s16  ;;  %v8043_v60 = vsel %vm7827_vm7, %v8041_v57, %v7587_v6  ;;  %v7605_v3 = vpop.permute.xlu0 %7604  ;;  %vm16556_vm7 = vcmask 228352   ;;  %s16583_s16 = sld [smem:[#allocation25_spill]] }
 0x7d3   : > { %v8048_v28 = vsel %vm16551_vm10, %v8046_v18, %v7605_v3  ;;  %vm16557_vm10 = vmmov %vm16554_vm14 }
 0x7d5   : > { %v7595_v44 = vpop.permute.xlu1 %7594 }
 0x7d6   : > { %7818 = vrot.lane.b32.xlu1 %v6695_v54, %s16354_s28  ;;  %v8045_v37 = vsel %vm7830_vm8, %v8043_v60, %v7595_v44  ;;  %v7613_v26 = vpop.permute.xlu0 %7612  ;;  %vm16558_vm8 = vcmask 261120   ;;  %s16592_s28 = sld [smem:[#allocation36_spill]] }
 0x7d7   : > { %v8050_v58 = vsel %vm16552_vm12, %v8048_v28, %v7613_v26  ;;  %vm16559_vm12 = vmmov %vm16556_vm7 }
 0x7d8   : > { %s8373_s19 = sshll.u32 %s16583_s16, 4 }
 0x7d9   : > { %v7603_v63 = vpop.permute.xlu1 %7602  ;;  %s8124_s22 = sadd.s32 %s8373_s19, %s8372_s17 }
 0x7da   : > { %v8047_v52 = vsel %vm16553_vm9, %v8045_v37, %v7603_v63  ;;  %v7621_v30 = vpop.permute.xlu0 %7620  ;;  %vm16560_vm9 = vcmask 293888   ;;  %s8374_s0 = sshll.u32 %s8124_s22, 7 }
 0x7db   : > { %v8052_v17 = vsel %vm16554_vm14, %v8050_v58, %v7621_v30  ;;  %vm16561_vm14 = vmmov %vm16558_vm8  ;;  %s14766_s14 = scalar_lea.hbm %s16598_s23, %s8374_s0 }
 0x7dc   : > { %s8112_s8 = scalar_lea.sflag [#allocation5], %s16592_s28 }
 0x7dd   : > { %v7611_v55 = vpop.permute.xlu1 %7610 }
 0x7de   : > { %v8049_v41 = vsel %vm16555_vm5, %v8047_v52, %v7611_v55  ;;  %v7629_v29 = vpop.permute.xlu0 %7628  ;;  %vm16562_vm5 = vmmov %vm16560_vm9 }
 0x7df   : > { %v8054_v34 = vsel %vm16556_vm7, %v8052_v17, %v7629_v29  ;;  %vm16563_vm7 = vcmask 326656  }
 0x7e1   : > { %v7619_v31 = vpop.permute.xlu1 %7618 }
 0x7e2   : > { %v8051_v36 = vsel %vm16557_vm10, %v8049_v41, %v7619_v31  ;;  %v7637_v50 = vpop.permute.xlu0 %7636  ;;  %vm16564_vm10 = vcmask 359424  }
 0x7e3   : > { %v8056_v7 = vsel %vm16558_vm8, %v8054_v34, %v7637_v50  ;;  %vm16565_vm8 = vcmask 392192   ;;  %vm16570_vm15 = vmmov %vm16564_vm10 }
 0x7e5   : > { %v7627_v48 = vpop.permute.xlu1 %7626 }
 0x7e6   : > { %v8053_v15 = vsel %vm16559_vm12, %v8051_v36, %v7627_v48  ;;  %v7645_v0 = vpop.permute.xlu0 %7644  ;;  %vm16566_vm12 = vcmask 424960  }
 0x7e7   : > { %v8058_v27 = vsel %vm16560_vm9, %v8056_v7, %v7645_v0  ;;  %vm16567_vm9 = vcmask 457728   ;;  %vm16574_vm13 = vmmov %vm16566_vm12 }
 0x7e9   : > { %v7635_v61 = vpop.permute.xlu1 %7634 }
 0x7ea   : > { %v8055_v8 = vsel %vm16561_vm14, %v8053_v15, %v7635_v61  ;;  %v7653_v22 = vpop.permute.xlu0 %7652  ;;  %vm16568_vm14 = vmmov %vm16563_vm7 }
 0x7eb   : > { %v8060_v40 = vsel %vm16563_vm7, %v8058_v27, %v7653_v22  ;;  %vm16572_vm7 = vmmov %vm16565_vm8 }
 0x7ed   : > { %v7643_v59 = vpop.permute.xlu1 %7642 }
 0x7ee   : > { %v8057_v32 = vsel %vm16562_vm5, %v8055_v8, %v7643_v59  ;;  %v7661_v33 = vpop.permute.xlu0 %7660  ;;  %vm16569_vm5 = vcmask 490496  }
 0x7ef   : > { %v8062_v16 = vsel %vm16564_vm10, %v8060_v40, %v7661_v33  ;;  %vm16573_vm10 = vcmask 556032  }
 0x7f1   : > { %v7651_v1 = vpop.permute.xlu1 %7650 }
 0x7f2   : > { %v7669_v43 = vpop.permute.xlu0 %7668  ;;  %v8059_v28 = vsel %vm16568_vm14, %v8057_v32, %v7651_v1  ;;  %vm16578_vm14 = vmmov %vm16569_vm5 }
 0x7f3   : > { %v8064_v6 = vsel %vm16565_vm8, %v8062_v16, %v7669_v43  ;;  %vm16575_vm8 = vcmask 588800  }
 0x7f5   : > { %v7659_v4 = vpop.permute.xlu1 %7658 }
 0x7f6   : > { %v7677_v49 = vpop.permute.xlu0 %7676  ;;  %v8061_v26 = vsel %vm16570_vm15, %v8059_v28, %v7659_v4  ;;  %vm16580_vm15 = vmmov %vm16571_vm6 }
 0x7f7   : > { %v8066_v54 = vsel %vm16566_vm12, %v8064_v6, %v7677_v49  ;;  %vm16576_vm12 = vmmov %vm16567_vm9 }
 0x7f9   : > { %v7667_v35 = vpop.permute.xlu1 %7666 }
 0x7fa   : > { %v7685_v62 = vpop.permute.xlu0 %7684  ;;  %v8063_v63 = vsel %vm16572_vm7, %v8061_v26, %v7667_v35  ;;  %vm16584_vm7 = vmmov %vm16573_vm10 }
 0x7fb   : > { %v8068_v60 = vsel %vm16567_vm9, %v8066_v54, %v7685_v62  ;;  %vm16577_vm9 = vcmask 621568  }
 0x7fd   : > { %v7675_v45 = vpop.permute.xlu1 %7674 }
 0x7fe   : > { %v7693_v51 = vpop.permute.xlu0 %7692  ;;  %v8065_v30 = vsel %vm16574_vm13, %v8063_v63, %v7675_v45  ;;  %vm16585_vm13 = vmmov %vm16575_vm8 }
 0x7ff   : > { %v8070_v44 = vsel %vm16569_vm5, %v8068_v60, %v7693_v51  ;;  %vm16579_vm5 = vcmask 654336  }
 0x801   : > { %v7683_v11 = vpop.permute.xlu1 %7682 }
 0x802   : > { %v7701_v12 = vpop.permute.xlu0 %7700  ;;  %v8067_v41 = vsel %vm16576_vm12, %v8065_v30, %v7683_v11 }
 0x803   : > { %v8072_v58 = vsel %vm16571_vm6, %v8070_v44, %v7701_v12  ;;  %vm16582_vm6 = vcmask 687104  }
 0x804   : > { %vm16588_vm12 = vmmov %vm16582_vm6 }
 0x805   : > { %v7691_v21 = vpop.permute.xlu1 %7690 }
 0x806   : > { %v7709_v42 = vpop.permute.xlu0 %7708  ;;  %v8069_v31 = vsel %vm16578_vm14, %v8067_v41, %v7691_v21  ;;  %vm16590_vm14 = vcmask 949248  }
 0x807   : > { %v8074_v52 = vsel %vm16573_vm10, %v8072_v58, %v7709_v42  ;;  %vm16586_vm10 = vmmov %vm16577_vm9 }
 0x809   : > { %v7699_v10 = vpop.permute.xlu1 %7698 }
 0x80a   : > { %v7717_v5 = vpop.permute.xlu0 %7716  ;;  %v8071_v50 = vsel %vm16580_vm15, %v8069_v31, %v7699_v10 }
 0x80b   : > { %v8076_v17 = vsel %vm16575_vm8, %v8074_v52, %v7717_v5  ;;  %vm16587_vm8 = vmmov %vm16579_vm5 }
 0x80d   : > { %v7707_v47 = vpop.permute.xlu1 %7706 }
 0x80e   : > { %v7725_v13 = vpop.permute.xlu0 %7724  ;;  %v8073_v48 = vsel %vm16584_vm7, %v8071_v50, %v7707_v47 }
 0x80f   : > { %v8078_v29 = vsel %vm16577_vm9, %v8076_v17, %v7725_v13  ;;  %vm16589_vm9 = vcmask 916480  }
 0x811   : > { %v7715_v46 = vpop.permute.xlu1 %7714 }
 0x812   : > { %v7733_v53 = vpop.permute.xlu0 %7732  ;;  %v8075_v27 = vsel %vm16585_vm13, %v8073_v48, %v7715_v46 }
 0x813   : > { %v8080_v36 = vsel %vm16579_vm5, %v8078_v29, %v7733_v53  ;;  %vm16591_vm5 = vcmask 982016  }
 0x815   : > { %v7723_v24 = vpop.permute.xlu1 %7722 }
 0x816   : > { %v7741_v14 = vpop.permute.xlu0 %7740  ;;  %v8077_v22 = vsel %vm16586_vm10, %v8075_v27, %v7723_v24 }
 0x817   : > { %v8082_v7 = vsel %vm16582_vm6, %v8080_v36, %v7741_v14 }
 0x819   : > { %v7731_v2 = vpop.permute.xlu1 %7730 }
 0x81a   : > { %v7749_v9 = vpop.permute.xlu0 %7748  ;;  %v8079_v32 = vsel %vm16587_vm8, %v8077_v22, %v7731_v2 }
 0x81b   : > { %v8084_v15 = vsel %vm7887_vm0, %v8082_v7, %v7749_v9 }
 0x81d   : > { %v7739_v25 = vpop.permute.xlu1 %7738 }
 0x81e   : > { %v7757_v19 = vpop.permute.xlu0 %7756  ;;  %v8081_v1 = vsel %vm16588_vm12, %v8079_v32, %v7739_v25 }
 0x81f   : > { %v8086_v61 = vsel %vm7890_vm1, %v8084_v15, %v7757_v19 }
 0x821   : > { %v7747_v56 = vpop.permute.xlu1 %7746 }
 0x822   : > { %v7765_v38 = vpop.permute.xlu0 %7764  ;;  %v8083_v49 = vsel %vm7887_vm0, %v8081_v1, %v7747_v56  ;;  %vm16593_vm0 = vcmask 1014784  }
 0x823   : > { %v8088_v59 = vsel %vm7893_vm3, %v8086_v61, %v7765_v38 }
 0x825   : > { %v7755_v20 = vpop.permute.xlu1 %7754 }
 0x826   : > { %v7773_v39 = vpop.permute.xlu0 %7772  ;;  %v8085_v45 = vsel %vm7890_vm1, %v8083_v49, %v7755_v20  ;;  %vm16595_vm1 = vmmov %vm16589_vm9 }
 0x827   : > { %v8090_v33 = vsel %vm7896_vm2, %v8088_v59, %v7773_v39 }
 0x829   : > { %v7763_v23 = vpop.permute.xlu1 %7762 }
 0x82a   : > { %v8087_v11 = vsel %vm7893_vm3, %v8085_v45, %v7763_v23  ;;  %vm16596_vm3 = vmmov %vm16590_vm14 }
 0x82b   : > { %v7781_v57 = vpop.permute.xlu0 %7780 }
 0x82c   : > { %v8092_v43 = vsel %vm7899_vm4, %v8090_v33, %v7781_v57 }
 0x82d   : > { %v7771_v18 = vpop.permute.xlu1 %7770 }
 0x82e   : > { %v8089_v21 = vsel %vm7896_vm2, %v8087_v11, %v7771_v18  ;;  %vm16597_vm2 = vmmov %vm16591_vm5 }
 0x831   : > { %v7789_v3 = vpop.permute.xlu0 %7788 }
 0x832   : > { %v8094_v35 = vsel %vm7902_vm11, %v8092_v43, %v7789_v3 }
 0x834   : > { %v7779_v37 = vpop.permute.xlu1 %7778 }
 0x835   : > { %v8091_v5 = vsel %vm7899_vm4, %v8089_v21, %v7779_v37 }
 0x836   : > { %v7797_v55 = vpop.permute.xlu0 %7796 }
 0x837   : > { %v8096_v51 = vsel %vm16589_vm9, %v8094_v35, %v7797_v55 }
 0x838   : > { %v7787_v34 = vpop.permute.xlu1 %7786 }
 0x839   : > { %v8093_v46 = vsel %vm7902_vm11, %v8091_v5, %v7787_v34  ;;  %vm16600_vm11 = vmmov %vm16593_vm0 }
 0x83a   : > { %v7805_v0 = vpop.permute.xlu0 %7804 }
 0x83b   : > { %v8098_v12 = vsel %vm16590_vm14, %v8096_v51, %v7805_v0 }
 0x83c   : > { %v7795_v8 = vpop.permute.xlu1 %7794 }
 0x83d   : > { %v8095_v53 = vsel %vm16595_vm1, %v8093_v46, %v7795_v8 }
 0x83e   : > { %v7813_v4 = vpop.permute.xlu0 %7812 }
 0x83f   : > { %v8100_v42 = vsel %vm16591_vm5, %v8098_v12, %v7813_v4 }
 0x840   : > { %v7803_v62 = vpop.permute.xlu1 %7802 }
 0x841   : > { %v8097_v24 = vsel %vm16596_vm3, %v8095_v53, %v7803_v62 }
 0x842   : > { %v7821_v10 = vpop.permute.xlu0 %7820 }
 0x843   : > { %v8102_v47 = vsel %vm16593_vm0, %v8100_v42, %v7821_v10 }
 0x844   : > { %v7811_v13 = vpop.permute.xlu1 %7810  ;;  %8110 = vst [vmem:[%s13523_s26 + $0x38] sm:$0xff] %v8102_v47 }
 0x845   : > { %v8099_v14 = vsel %vm16597_vm2, %v8097_v24, %v7811_v13 }
 0x848   : > { %v7819_v2 = vpop.permute.xlu1 %7818 }
 0x849   : > { %v8101_v9 = vsel %vm16600_vm11, %v8099_v14, %v7819_v2 }
 0x84a   : > { %8106 = vst [vmem:[%s13523_s26 + $0x18] sm:$0xff] %v8101_v9 }
 0x84b   : > { %8951 = shalt.err (!%p8948_p8)
}
 0x84c   : > { %s8952_s26 = scalar_lea.hbm %s14766_s14, 1024  ;;  %s8956_s25 = scalar_lea.hbm %s16599_s1, 4096 }
 0x84d   : > { %p8953_p0 = scmp.ne.s32.totalorder %s14766_s14, %s8952_s26  ;;  %p8957_p1 = scmp.lt.u32.totalorder %s14766_s14, %s16599_s1 }
 0x84e   : > { %p8958_p4 = scmp.lt.u32.totalorder %s8956_s25, %s8952_s26  ;;  %p8960_p11 = scmp.lt.u32.totalorder %s8952_s26, %s14766_s14 }
 0x84f   : > { %p8954_p2 = pnand %p8953_p0, %p16601_p13 }
 0x850   : > { %p8959_p6 = por %p8958_p4, %p8957_p1 }
 0x851   : > { %p8955_p7 = pneg %p8954_p2 }
 0x852   : > { %p8961_p3 = por %p8960_p11, %p8959_p6 }
 0x854   : > { %p8962_p10 = pnand %p8961_p3, %p8955_p7 }
 0x856   : > { %8965 = shalt.err (!%p8962_p10)
}
 0x857   : > { %s9155_s5 = smov 512   ;;  %s9156_s6 = smov 1024  }
 0x858   : > { %8529 = dma.vmem_to_hbm [thread:$0]  (%p16601_p13), %s14758_s27, 1024, %s14766_s14, %s8112_s8, %s9155_s5, %s9156_s6, %s16213_s3  }
 0x859 PF: > { %s16602_s18 = sld [smem:[#allocation28_spill]]  ;;  %s16603_s7 = sld [smem:[#allocation21_spill]] }
 0x85a   : > { %s16604_s4 = sld [smem:[#allocation34_spill]] }
 0x85f   : > { %p8552_p9 = scmp.ge.s32.totalorder %s16602_s18, 2  ;;  %s8142_s2 = sand.u32 1, %s16603_s7  }
 0x860   : > { %p16605_p5 = scmp.ne.s32.totalorder %s16604_s4, 0  ;;  %s8143_s16 = scalar_lea.sflag [#allocation5], %s8142_s2 }
 0x862   : > { %p8546_p12 = pnand %p8552_p9, %p16605_p5 }
 0x864   : > { %9039 = dma.done.wait (!%p8546_p12), %s8143_s16, 1024  }
 0x865   : > { %9041 = vsyncadd (!%p8546_p12), %s8143_s16, 4294966272  ;;  %s24_s28 = sadd.s32 1, %s16602_s18   ;;  %s16607_s15 = sld [smem:[#allocation17_spill]] }
 0x866   : > { %p14800_p8 = scmp.ge.s32.totalorder %s24_s28, 6   ;;  %s16608_s16 = sld [smem:[#allocation18_spill]] }
 0x867   : > { %s16609_s3 = sld [smem:[#allocation35_spill]]  ;;  %s16610_s18 = sld [smem:[#allocation19_spill]] }
 0x868   : > { %s16611_s19 = sld [smem:[#allocation20_spill]]  ;;  %s16612_s20 = sld [smem:[#allocation31_spill]] }
 0x869   : > { %s16613_s21 = sld [smem:[#allocation22_spill]]  ;;  %s16614_s22 = sld [smem:[#allocation23_spill]] }
 0x86a   : > { %s16615_s23 = sld [smem:[#allocation32_spill]]  ;;  %s16616_s24 = sld [smem:[#allocation26_spill]] }
 0x86b   : > { %s16617_s25 = sld [smem:[#allocation27_spill]]  ;;  %s16618_s26 = sld [smem:[#allocation29_spill]] }
 0x86c   : > { %s16619_s27 = sld [smem:[#allocation30_spill]]  ;;  %23 = sbr.rel (!%p14800_p8) target bundleno = 19 (0x13), region = 109 }
 0x86d   : > { %s16621_s17 = smov %s16609_s3 }
 0x873   :  { %8148 = vsyncpa [#allocation4], 1 }
 0x874   :  { %8150 = vsyncpa [#allocation4 + $0x1], 1 }
 0x875   :  { %8151 = vsyncpa [#allocation7], 1 }
 0x876   :  { %8153 = vsyncpa [#allocation7 + $0x1], 1 }
 0x877   :  { %8154 = vsyncpa [#allocation10], 1 }
 0x878   :  { %8155 = vsyncpa [#allocation5], 1 }
 0x879   :  { %8157 = vsyncpa [#allocation5 + $0x1], 1 }

// kernel: _forward_impl.1
= control target key start
LH: loop header
LB: loop body
LE: loop exit
PB: predicated region body
PF: predicated region fallthrough
CT: control target
= control target key end

     0   :  { %s4486_s0 = inlined_call_operand.hbm [shape: f32[2,32,256], index: 0, kind: input, shape index: {}, may-alias: {0,1,2}]   ;;  %s4487_s1 = inlined_call_operand.hbm [shape: f32[2,32,256], index: 1, kind: input, shape index: {}, may-alias: {0,1,2}]   ;;  %s4488_s2 = inlined_call_operand.hbm [shape: f32[2,32,256], index: 2, kind: input, shape index: {}, may-alias: {0,1,2}]   ;;  %s4489_s3 = inlined_call_operand.hbm [shape: bf16[64,97], index: 3, kind: input, shape index: {}]   ;;  %s4490_s4 = inlined_call_operand.vmem [shape: f32[2,64,256], index: 4, kind: output, shape index: {}]  }
   0x1   :  { %4511 = sst [smem:[#allocation24_spill]] %s4486_s0 }
   0x2   :  { %4512 = sst [smem:[#allocation25_spill]] %s4487_s1 }
   0x3   :  { %4513 = sst [smem:[#allocation26_spill]] %s4489_s3 }
   0x4   :  { %4514 = sst [smem:[#allocation27_spill]] %s4490_s4 }
   0x5   :  { %9 = vsyncpa [#allocation4], 0 }
   0x6   :  { %11 = vsyncpa [#allocation4 + $0x1], 0 }
   0x7   :  { %12 = vsyncpa [#allocation6], 0 }
   0x8   :  { %14 = vsyncpa [#allocation6 + $0x1], 0 }
   0x9   :  { %15 = vsyncpa [#allocation9], 0  ;;  %s2949_s15 = smov 0   ;;  %s2951_s16 = smov 0  }
   0xa   :  { %s2953_s17 = smov 0   ;;  %s2955_s18 = smov 0  }
   0xb   :  { %s2957_s19 = smov 0   ;;  %s2959_s20 = smov 0  }
   0xc   :  { %s2961_s21 = smov 0   ;;  %s2963_s22 = smov 0  }
   0xd   :  { %s2965_s23 = smov 0   ;;  %s2967_s24 = smov 0  }
   0xe   :  { %s2969_s25 = smov 0   ;;  %s2971_s26 = smov 0  }
   0xf   :  { %s2973_s27 = smov 0   ;;  %s2975_s28 = smov 0  }
  0x10 LB: > { %4515 = sst [smem:[#allocation15_spill]] %s2871_s20  ;;  %s30_s29 = sadd.s32 1, %s2895_s26  ;;  %s2903_s28 = sphi %s2975_s28, %s21_s28   ;;  %s2899_s27 = sphi %s2973_s27, %s4602_s27   ;;  %s2895_s26 = sphi %s2971_s26, %s4592_s26   ;;  %s2891_s25 = sphi %s2969_s25, %s4601_s25   ;;  %s2887_s24 = sphi %s2967_s24, %s4591_s24   ;;  %s2883_s23 = sphi %s2965_s23, %s4590_s23   ;;  %s2879_s22 = sphi %s2963_s22, %s4600_s22   ;;  %s2875_s21 = sphi %s2961_s21, %s4599_s21   ;;  %s2871_s20 = sphi %s2959_s20, %s4588_s20   ;;  %s2867_s19 = sphi %s2957_s19, %s4598_s19   ;;  %s2863_s18 = sphi %s2955_s18, %s4597_s18   ;;  %s2859_s17 = sphi %s2953_s17, %s4596_s17   ;;  %s2855_s16 = sphi %s2951_s16, %s4595_s16   ;;  %s2851_s15 = sphi %s2949_s15, %s4594_s15  }
  0x11   : > { %4516 = sst [smem:[#allocation16_spill]] %s2883_s23  ;;  %s33_s30 = sadd.s32 1, %s2899_s27 }
  0x12   : > { %4517 = sst [smem:[#allocation17_spill]] %s2887_s24  ;;  %p31_p0 = scmp.ge.s32.totalorder %s30_s29, 2 }
  0x13   : > { %4518 = sst [smem:[#allocation18_spill]] %s2891_s25  ;;  %p4497_p1 = scmp.eq.s32.totalorder %s2903_s28, 0 }
  0x14   : > { %4519 = sst [smem:[#allocation19_spill]] %s2895_s26  ;;  %s76_s5 = sadd.s32 1, %s2871_s20 }
  0x15   : > { %s4604_s29 = smov (%p31_p0, %s30_s29), 0  ;;  %s4606_s30 = smov (!%p31_p0, %s33_s30), %s2899_s27 }
  0x16   : > { %4520 = sst [smem:[#allocation20_spill]] %s4604_s29  ;;  %s38_s6 = ssub.s32 %s2895_s26, %s4604_s29 }
  0x17   : > { %p35_p2 = scmp.ge.s32.totalorder %s4606_s30, 2  ;;  %p83_p3 = scmp.ne.s32.totalorder %s2871_s20, %s2867_s19 }
  0x18   : > { %p89_p4 = scmp.ne.s32.totalorder %s2867_s19, %s2863_s18  ;;  %p4496_p7 = scmp.lt.s32.totalorder %s2903_s28, 4 }
  0x19   : > { %s4608_s30 = smov (%p35_p2, %s4606_s30), 0  ;;  %p3043_p5 = por %p83_p3, %p4497_p1 }
  0x1a   : > { %4521 = sst [smem:[#allocation21_spill]] %s4608_s30  ;;  %s3034_s7 = ssub.s32 %s2899_s27, %s4608_s30 }
  0x1b   : > { %s3039_s8 = sor.u32 %s38_s6, %s3034_s7  ;;  %p4495_p8 = scmp.eq.s32.totalorder %s3034_s7, 0 }
  0x1c   : > { %s231_s11 = sand.u32 1, %s2903_s28   ;;  %s233_s12 = sand.u32 1, %s2871_s20  }
  0x1d   : > { %s3056_s13 = scalar_select %p4495_p8, %s2871_s20, %s76_s5  }
  0x1e   : > { %s2162_s14 = sshll.u32 %s233_s12, 5  ;;  %s4494_s30 = sshll.u32 %s2899_s27, 10 }
  0x1f   : > { %4523 = sst [smem:[#allocation22_spill]] %s3056_s13  ;;  %s235_s6 = scalar_lea.vmem [#allocation5], %s2162_s14 }
  0x20   : > { %s246_s29 = sshll.u32 %s235_s6, 4  ;;  %s4524_s1 = sld [smem:[#allocation25_spill]]  ;;  %s3066_s29 = int_to_ptr.vmem [resolvable:$true] %s246_s29 }
  0x21   : > { %p3072_p9 = pnand %p4496_p7, %p3043_p5  ;;  %s3076_s12 = scalar_lea.sflag [#allocation6], %s231_s11 }
  0x23   : > { %p2657_p11 = pneg %p3072_p9 }
  0x26   : > { %s3064_s24 = scalar_lea.hbm %s4524_s1, %s4494_s30  ;;  %s2660_s9 = scalar_lea.hbm %s4524_s1, 2048 }
  0x27   : > { %s2655_s14 = scalar_lea.hbm %s3064_s24, 512  ;;  %p2661_p0 = scmp.lt.u32.totalorder %s3064_s24, %s4524_s1 }
  0x28   : > { %p2656_p10 = scmp.ne.s32.totalorder %s3064_s24, %s2655_s14  ;;  %p2662_p2 = scmp.lt.u32.totalorder %s2660_s9, %s2655_s14 }
  0x29   : > { %p2664_p5 = scmp.lt.u32.totalorder %s2655_s14, %s3064_s24 }
  0x2a   : > { %p2658_p12 = pnand %p2657_p11, %p2656_p10  ;;  %p2663_p3 = por %p2662_p2, %p2661_p0 }
  0x2c   : > { %p2659_p13 = pneg %p2658_p12  ;;  %p2665_p8 = por %p2664_p5, %p2663_p3 }
  0x2e   : > { %p2666_p7 = pnand %p2665_p8, %p2659_p13 }
  0x30   : > { %2669 = shalt.err (!%p2666_p7)
}
  0x31   : > { %s2670_s11 = scalar_lea.vmem %s3066_s29, 512  ;;  %s2905_s4 = smov [#allocation5]  }
  0x32   : > { %p2671_p10 = scmp.ne.s32.totalorder %s3066_s29, %s2670_s11  ;;  %s2675_s25 = sshll.u32 %s2905_s4, 4  ;;  %s2676_s25 = int_to_ptr.vmem [resolvable:$false] %s2675_s25 }
  0x33   : > { %s2677_s30 = scalar_lea.vmem %s2676_s25, 1024  ;;  %p2678_p6 = scmp.lt.s32.totalorder %s3066_s29, %s2676_s25 }
  0x34   : > { %p2673_p12 = pnand %p2671_p10, %p2657_p11  ;;  %p2679_p0 = scmp.lt.s32.totalorder %s2677_s30, %s2670_s11 }
  0x36   : > { %p2674_p1 = pneg %p2673_p12  ;;  %p2680_p2 = por %p2679_p0, %p2678_p6 }
  0x38   : > { %p2681_p3 = pnand %p2680_p2, %p2674_p1 }
  0x3a   : > { %2684 = shalt.err (!%p2681_p3)
}
  0x3b   : > { %s4498_s14 = smov 256   ;;  %s4500_s9 = smov 128  }
  0x3c   : > { %s4502_s6 = smov 8   ;;  %s3108_s11 = sadd.s32 4294967295, %s2903_s28  }
  0x3d   : > { %2417 = dma.hbm_to_vmem [thread:$0]  (!%p3072_p9), %s3064_s24, 512, %s3066_s29, %s3076_s12, %s4498_s14, %s4500_s9, %s4502_s6  }
  0x3e   : > { %p123_p1 = scmp.ne.s32.totalorder %s2855_s16, %s2851_s15  ;;  %p4504_p6 = scmp.eq.s32.totalorder %s3108_s11, 0 }
  0x3f   : > { %p2156_p8 = scmp.ge.s32.totalorder %s2903_s28, 1  ;;  %p183_p11 = scmp.lt.s32.totalorder %s2903_s28, 5 }
  0x40   : > { %p3121_p13 = por %p89_p4, %p4504_p6  ;;  %p3127_p9 = por %p123_p1, %p4504_p6 }
  0x41   : > { %p3131_p5 = pnand %p2156_p8, %p183_p11  ;;  %s2909_s15 = smov [#allocation8]  }
  0x42   : > { %s4526_s5 = scalar_select %p3121_p13, 1, 0 }
  0x43   : > { %s4527_s24 = scalar_select %p3127_p9, 1, 0 }
  0x44   : > { %s4528_s29 = scalar_select %p3131_p5, 1, 0 }
  0x45   : > { %p2407_p10 = pneg %p3131_p5  ;;  %s195_s4 = sshll.u32 %s2909_s15, 4  ;;  %s196_s4 = int_to_ptr.vmem [resolvable:$true] %s195_s4 }
  0x46   : > { %s4530_s3 = sld [smem:[#allocation26_spill]] }
  0x47   : > { %p3139_p4 = pnand %p2407_p10, %p4504_p6 }
  0x49   : > { %p2687_p0 = pneg %p3139_p4 }
  0x4c   : > { %s2685_s14 = scalar_lea.hbm %s4530_s3, 512 }
  0x4d   : > { %p2686_p12 = scmp.ne.s32.totalorder %s4530_s3, %s2685_s14  ;;  %p2692_p1 = scmp.lt.u32.totalorder %s2685_s14, %s4530_s3 }
  0x4f   : > { %p2688_p2 = pnand %p2687_p0, %p2686_p12 }
  0x51   : > { %p2689_p3 = pneg %p2688_p2 }
  0x53   : > { %p2694_p8 = pnand %p2692_p1, %p2689_p3 }
  0x55   : > { %2697 = shalt.err (!%p2694_p8)
}
  0x56   : > { %s2698_s1 = scalar_lea.vmem %s196_s4, 512  ;;  %p2706_p7 = scmp.lt.s32.totalorder %s196_s4, %s196_s4 }
  0x57   : > { %p2699_p11 = scmp.ne.s32.totalorder %s196_s4, %s2698_s1  ;;  %p2707_p9 = scmp.lt.s32.totalorder %s2698_s1, %s2698_s1 }
  0x59   : > { %p2701_p10 = pnand %p2699_p11, %p2687_p0  ;;  %p2708_p13 = por %p2707_p9, %p2706_p7 }
  0x5b   : > { %p2702_p6 = pneg %p2701_p10 }
  0x5d   : > { %p2709_p5 = pnand %p2708_p13, %p2702_p6 }
  0x5f   : > { %2712 = shalt.err (!%p2709_p5)
}
  0x60   : > { %s2910_s9 = smov 64   ;;  %s2911_s10 = smov 4  }
  0x61   : > { %2410 = dma.hbm_to_vmem [thread:$0]  (!%p3139_p4), %s4530_s3, 512, %s196_s4, [#allocation9], %s2910_s9, %s2910_s9, %s2911_s10  }
  0x62   : > { %s42_s6 = sadd.s32 1, %s2883_s23  ;;  %p49_p6 = scmp.ne.s32.totalorder %s2883_s23, %s2879_s22 }
  0x63   : > { %p4531_p7 = scmp.eq.s32.totalorder %s3039_s8, 0  ;;  %p4533_p13 = scmp.eq.s32.totalorder %s2903_s28, 0 }
  0x64   : > { %p55_p5 = scmp.ne.s32.totalorder %s2879_s22, %s2875_s21  ;;  %p4534_p12 = scmp.eq.s32.totalorder %s3108_s11, 3 }
  0x65   : > { %s3165_s25 = scalar_select %p4531_p7, %s2883_s23, %s42_s6  }
  0x66   : > { %p51_p9 = por %p4533_p13, %p49_p6  ;;  %p3173_p0 = por %p4534_p12, %p49_p6 }
  0x67   : > { %4532 = sst [smem:[#allocation23_spill]] %s3165_s25  ;;  %s209_s15 = sand.u32 1, %s2883_s23  }
  0x68   : > { %s4535_s30 = scalar_select %p3173_p0, 1, 0 }
  0x69   : > { %p4536_p2 = scmp.eq.s32.totalorder %s3108_s11, 0  ;;  %s2159_s4 = sshll.u32 %s209_s15, 5 }
  0x6a   : > { %s4538_s9 = sshll.u32 %s2899_s27, 3  ;;  %s4539_s0 = sld [smem:[#allocation24_spill]] }
  0x6b   : > { %p3180_p3 = por %p4536_p2, %p55_p5  ;;  %s218_s10 = sadd.s32 %s2895_s26, %s4538_s9 }
  0x6c   : > { %s2161_s8 = sshll.u32 %s218_s10, 7  ;;  %s213_s21 = scalar_lea.vmem [#allocation3], %s2159_s4 }
  0x6d   : > { %s221_s3 = sshll.u32 %s213_s21, 4  ;;  %p4540_p4 = scmp.lt.s32.totalorder %s2903_s28, 4  ;;  %s3192_s3 = int_to_ptr.vmem [resolvable:$true] %s221_s3 }
  0x6e   : > { %s3200_s9 = scalar_lea.sflag [#allocation4], %s209_s15 }
  0x6f   : > { %p3196_p1 = pnand %p4540_p4, %p51_p9 }
  0x70   : > { %s3190_s6 = scalar_lea.hbm %s4539_s0, %s2161_s8  ;;  %s2718_s1 = scalar_lea.hbm %s4539_s0, 2048 }
  0x71   : > { %s2713_s10 = scalar_lea.hbm %s3190_s6, 512  ;;  %p2715_p11 = pneg %p3196_p1 }
  0x72   : > { %p2714_p8 = scmp.ne.s32.totalorder %s3190_s6, %s2713_s10  ;;  %p2719_p7 = scmp.lt.u32.totalorder %s3190_s6, %s4539_s0 }
  0x73   : > { %p2720_p13 = scmp.lt.u32.totalorder %s2718_s1, %s2713_s10  ;;  %p2722_p5 = scmp.lt.u32.totalorder %s2713_s10, %s3190_s6 }
  0x74   : > { %p2716_p10 = pnand %p2715_p11, %p2714_p8 }
  0x75   : > { %p2721_p9 = por %p2720_p13, %p2719_p7 }
  0x76   : > { %p2717_p6 = pneg %p2716_p10 }
  0x77   : > { %p2723_p12 = por %p2722_p5, %p2721_p9 }
  0x79   : > { %p2724_p2 = pnand %p2723_p12, %p2717_p6 }
  0x7b   : > { %2727 = shalt.err (!%p2724_p2)
}
  0x7c   : > { %s2728_s15 = scalar_lea.vmem %s3192_s3, 512  ;;  %s2912_s4 = smov [#allocation3]  }
  0x7d   : > { %p2729_p4 = scmp.ne.s32.totalorder %s3192_s3, %s2728_s15  ;;  %s2733_s8 = sshll.u32 %s2912_s4, 4  ;;  %s2734_s8 = int_to_ptr.vmem [resolvable:$false] %s2733_s8 }
  0x7e   : > { %s2735_s14 = scalar_lea.vmem %s2734_s8, 1024  ;;  %p2736_p0 = scmp.lt.s32.totalorder %s3192_s3, %s2734_s8 }
  0x7f   : > { %p2731_p8 = pnand %p2729_p4, %p2715_p11  ;;  %p2737_p7 = scmp.lt.s32.totalorder %s2735_s14, %s2728_s15 }
  0x81   : > { %p2732_p10 = pneg %p2731_p8  ;;  %p2738_p13 = por %p2737_p7, %p2736_p0 }
  0x83   : > { %p2739_p9 = pnand %p2738_p13, %p2732_p10 }
  0x85   : > { %2742 = shalt.err (!%p2739_p9)
}
  0x86   : > { %s4542_s10 = smov 8   ;;  %s4543_s1 = smov 128  }
  0x87   : > { %s4544_s21 = smov 256   ;;  %s110_s15 = sadd.s32 1, %s2859_s17 }
  0x88   : > { %2414 = dma.hbm_to_vmem [thread:$0]  (!%p3196_p1), %s3190_s6, 512, %s3192_s3, %s3200_s9, %s4544_s21, %s4543_s1, %s4542_s10  }
  0x89   : > { %p117_p0 = scmp.ne.s32.totalorder %s2859_s17, %s2855_s16  ;;  %s258_s4 = sand.u32 1, %s2859_s17  }
  0x8a   : > { %p4545_p11 = scmp.eq.s32.totalorder %s2903_s28, 0  ;;  %s2166_s25 = sshll.u32 %s258_s4, 5 }
  0x8b   : > { %s4546_s8 = sshll.u32 %s2899_s27, 10  ;;  %s260_s13 = scalar_lea.vmem [#allocation7], %s2166_s25 }
  0x8c   : > { %p119_p6 = por %p117_p0, %p4545_p11  ;;  %s2847_s14 = sadd.s32 128, %s4546_s8 }
  0x8d   : > { %s3242_s23 = scalar_lea.hbm %s4488_s2, %s2847_s14  ;;  %s271_s20 = sshll.u32 %s260_s13, 4  ;;  %s3255_s20 = int_to_ptr.vmem [resolvable:$true] %s271_s20 }
  0x8e   : > { %p4547_p1 = scmp.lt.s32.totalorder %s2903_s28, 4  ;;  %p4549_p12 = scmp.eq.s32.totalorder %s3034_s7, 0 }
  0x8f   : > { %s2743_s0 = scalar_lea.hbm %s3242_s23, 512  ;;  %s2748_s9 = scalar_lea.hbm %s4488_s2, 2048 }
  0x90   : > { %p3246_p5 = pnand %p4547_p1, %p119_p6  ;;  %p2744_p2 = scmp.ne.s32.totalorder %s3242_s23, %s2743_s0 }
  0x91   : > { %s3253_s6 = scalar_select %p4549_p12, %s2859_s17, %s110_s15  }
  0x92   : > { %p2745_p4 = pneg %p3246_p5  ;;  %p2749_p7 = scmp.lt.u32.totalorder %s3242_s23, %s4488_s2 }
  0x93   : > { %p2750_p13 = scmp.lt.u32.totalorder %s2748_s9, %s2743_s0  ;;  %p2752_p0 = scmp.lt.u32.totalorder %s2743_s0, %s3242_s23 }
  0x94   : > { %p2746_p8 = pnand %p2745_p4, %p2744_p2 }
  0x95   : > { %p2751_p9 = por %p2750_p13, %p2749_p7 }
  0x96   : > { %p2747_p10 = pneg %p2746_p8 }
  0x97   : > { %p2753_p11 = por %p2752_p0, %p2751_p9 }
  0x99   : > { %p2754_p6 = pnand %p2753_p11, %p2747_p10 }
  0x9b   : > { %2757 = shalt.err (!%p2754_p6)
}
  0x9c   : > { %s2758_s15 = scalar_lea.vmem %s3255_s20, 512  ;;  %s2913_s25 = smov [#allocation7]  }
  0x9d   : > { %p2759_p1 = scmp.ne.s32.totalorder %s3255_s20, %s2758_s15  ;;  %s2763_s8 = sshll.u32 %s2913_s25, 4  ;;  %s2764_s8 = int_to_ptr.vmem [resolvable:$false] %s2763_s8 }
  0x9e   : > { %s2765_s14 = scalar_lea.vmem %s2764_s8, 1024  ;;  %p2766_p8 = scmp.lt.s32.totalorder %s3255_s20, %s2764_s8 }
  0x9f   : > { %p2761_p12 = pnand %p2759_p1, %p2745_p4  ;;  %p2767_p7 = scmp.lt.s32.totalorder %s2765_s14, %s2758_s15 }
  0xa1   : > { %p2762_p2 = pneg %p2761_p12  ;;  %p2768_p13 = por %p2767_p7, %p2766_p8 }
  0xa3   : > { %p2769_p9 = pnand %p2768_p13, %p2762_p2 }
  0xa5   : > { %2772 = shalt.err (!%p2769_p9)
}
  0xa6   : > { %2420 = dma.hbm_to_vmem [thread:$0]  (!%p3246_p5), %s3242_s23, 512, %s3255_s20, %s3076_s12, %s4544_s21, %s4543_s1, %s4542_s10  }
  0xa7   : > { %p4550_p4 = scmp.ne.s32.totalorder %s4528_s29, 0 }
  0xa8   : > { %s3289_s0 = sand.u32 (!%p4550_p4), 1, %s2879_s22  }
  0xa9   : > { %283 = sbr.rel (%p4550_p4) target bundleno = 904 (0x388), region = 36  ;;  %s2170_s26 = sshll.u32 (!%p4550_p4), %s3289_s0, 5 }
  0xaa   : > { %s286_s13 = scalar_lea.sflag (!%p4550_p4), [#allocation4], %s3289_s0  ;;  %s3293_s9 = scalar_lea.vmem (!%p4550_p4), [#allocation3], %s2170_s26 }
  0xb0   : > { %2830 = dma.done.wait (%p3180_p3), %s286_s13, 512  }
  0xb1   : > { %2832 = vsyncadd (%p3180_p3), %s286_s13, 4294966784  ;;  %s294_s20 = sand.u32 1, %s3108_s11   ;;  %s296_s23 = sand.u32 1, %s2867_s19  }
  0xb2   : > { %s2171_s12 = sshll.u32 %s296_s23, 5  ;;  %s295_s29 = scalar_lea.sflag [#allocation6], %s294_s20 }
  0xb3   : > { %s3301_s10 = scalar_lea.vmem [#allocation5], %s2171_s12  ;;  %p4551_p5 = scmp.ne.s32.totalorder %s4526_s5, 0 }
  0xb5   : > { %2834 = dma.done.wait (%p4551_p5), %s295_s29, 512  }
  0xb6   : > { %2836 = vsyncadd (%p4551_p5), %s295_s29, 4294966784  ;;  %s305_s1 = sand.u32 1, %s2855_s16   ;;  %p4552_p3 = scmp.ne.s32.totalorder %s4527_s24, 0 }
  0xb7   : > { %s2172_s21 = sshll.u32 %s305_s1, 5 }
  0xb8   : > { %s3308_s18 = scalar_lea.vmem [#allocation7], %s2172_s21 }
  0xb9   : > { %2838 = dma.done.wait (%p4552_p3), %s295_s29, 512  }
  0xba   : > { %2840 = vsyncadd (%p4552_p3), %s295_s29, 4294966784  ;;  %p4553_p10 = scmp.eq.s32.totalorder %s3108_s11, 0 }
  0xbc   : > { %2842 = dma.done.wait (%p4553_p10), [#allocation9], 512   ;;  %p4554_p0 = pmov %p4553_p10 }
  0xbd   : > { %vm1769_vm0 = vcmask 1040384   ;;  %v2914_v0 = vmov 0   ;;  %vm1770_vm1 = vsmask.f32 256  ;;  %v1772_v2 = vld [vmem:[#allocation2 + $0x30] sm:$0x1] }
  0xbe   : > { %2844 = vsyncadd (%p4554_p0), [#allocation9], 4294966784  ;;  %2557 = vset.pattern.permute.xlu0 %v2914_v0  ;;  %v3318_v1 = vsel %vm1769_vm0, 65535, %v2914_v0  ;;  %v3321_v3 = vld [vmem:[%s3293_s9] sm:$0xff]  ;;  %v3324_v4 = vld [vmem:[%s3293_s9 + $0x8] sm:$0xff]  ;;  %s2922_s11 = smov 127  }
  0xbf   : > { %vm1771_vm2 = vmand %vm1769_vm0, %vm1770_vm1  ;;  %v357_v6 = vand.u32 2147483647, %v3321_v3  ;;  %v360_v7 = vand.u32 2139095040, %v3321_v3  ;;  %v461_v8 = vand.u32 2147483647, %v3324_v4  ;;  %v464_v9 = vand.u32 2139095040, %v3324_v4 }
  0xc0   : > { %v1773_v5 = vsel %vm1771_vm2, 1065369472, %v1772_v2  ;;  %v3331_v10 = vld [vmem:[%s3308_s18] sm:$0xff]  ;;  %v2915_v34 = vmov 683565275   ;;  %vm359_vm0 = vcmp.lt.s32.totalorder %v3321_v3, 0 }
  0xc1   : > { %1774 = vst [vmem:[#allocation2 + $0x30] sm:$0x1] %v1773_v5  ;;  %v361_v11 = vshrl.u32 %v360_v7, 23  ;;  %v364_v12 = vand.u32 8388607, %v357_v6  ;;  %v465_v13 = vshrl.u32 %v464_v9, 23 }
  0xc2   : > { %v468_v14 = vand.u32 8388607, %v461_v8  ;;  %v787_v16 = vand.u32 2139095040, %v3331_v10  ;;  %v784_v23 = vand.u32 2147483647, %v3331_v10  ;;  %s4561_s5 = sld [smem:[#allocation17_spill]] }
  0xc3   : > { %v2175_v15 = vadd.s32 4294967169, %v361_v11  ;;  %v2179_v17 = vadd.s32 4294967169, %v465_v13  ;;  %v365_v20 = vor.u32 8388608, %v364_v12  ;;  %v2916_v36 = vmov 2475754826   ;;  %s2923_s4 = smov 1  }
  0xc4   : > { %v788_v19 = vshrl.u32 %v787_v16, 23  ;;  %v469_v21 = vor.u32 8388608, %v468_v14  ;;  %v2917_v38 = vmov 2131351028   ;;  %v2918_v40 = vmov 2102212464  }
  0xc5   : > { %v367_v18 = vadd.s32 1, %v2175_v15  ;;  %v471_v22 = vadd.s32 1, %v2179_v17  ;;  %v3339_v29 = vshll.u32 %v365_v20, 8  ;;  %v2919_v42 = vmov 920167782   ;;  %s2174_s7 = sshll.u32 %s3289_s0, 6 }
  0xc6   : > { %v2191_v25 = vadd.s32 4294967169, %v788_v19  ;;  %v3343_v32 = vshll.u32 %v469_v21, 8  ;;  %v2920_v50 = vmov 1326507024   ;;  %vm3442_vm1 = vcmp.le.f32.partialorder %v357_v6, 0.7853982 }
  0xc7   : > { %vm368_vm3 = vcmp.gt.s32.totalorder %v367_v18, 0  ;;  %vm472_vm4 = vcmp.gt.s32.totalorder %v471_v22, 0  ;;  %s344_s15 = scalar_lea.vmem [#allocation10], %s2174_s7  ;;  %p4582_p1 = scmp.ne.s32.totalorder %s4535_s30, 0 }
  0xc8   : > { %v369_v24 = vsel %vm368_vm3, %v367_v18, 0  ;;  %v473_v28 = vsel %vm472_vm4, %v471_v22, 0  ;;  %v3350_v44 = vadd.s32 1, %v2191_v25  ;;  %p783_p11 = scmp.eq.s32.totalorder %s4561_s5, 1  ;;  %p1248_p6 = scmp.eq.s32.totalorder %s4561_s5, 0 }
  0xc9   : > { %v370_v26 = vshrl.u32 %v369_v24, 5  ;;  %v371_v27 = vand.u32 31, %v369_v24  ;;  %v3341_v30 = vshrl.u32 %v473_v28, 5  ;;  %v475_v31 = vand.u32 31, %v473_v28  ;;  %s4583_s25 = sld [smem:[#allocation18_spill]] (%p4582_p1)  ;;  %s4584_s8 = sld [smem:[#allocation17_spill]] (%p4582_p1) }
  0xca   : > { %vm795_vm14 = vcmp.gt.s32.totalorder %v3350_v44, 0  ;;  %s3719_s24 = scalar_select %p783_p11, 1, 0 }
  0xcb   : > { %v372_v33 = vsub.s32 32, %v371_v27  ;;  %v374_v35 = vshll.u32 %v2915_v34, %v371_v27  ;;  %v377_v37 = vshll.u32 %v2916_v36, %v371_v27  ;;  %v380_v39 = vshll.u32 %v2917_v38, %v371_v27  ;;  %s3884_s3 = scalar_select %p1248_p6, 1, 0 }
  0xcc   : > { %v383_v41 = vshll.u32 %v2918_v40, %v371_v27  ;;  %v386_v43 = vshll.u32 %v2919_v42, %v371_v27  ;;  %vm389_vm5 = vcmp.lt.s32.totalorder %v370_v26, 1  ;;  %vm390_vm6 = vcmp.lt.s32.totalorder %v370_v26, 2  ;;  %s4585_s20 = sld [smem:[#allocation27_spill]] (%p4582_p1) }
  0xcd   : > { %v373_v45 = vshrl.u32 %v2915_v34, %v372_v33  ;;  %v375_v46 = vshrl.u32 %v2916_v36, %v372_v33  ;;  %v378_v47 = vshrl.u32 %v2917_v38, %v372_v33  ;;  %v381_v48 = vshrl.u32 %v2918_v40, %v372_v33 }
  0xce   : > { %v384_v49 = vshrl.u32 %v2919_v42, %v372_v33  ;;  %v387_v51 = vshrl.u32 %v2920_v50, %v372_v33  ;;  %vm392_vm7 = vcmp.lt.s32.totalorder %v370_v26, 4  ;;  %v476_v55 = vsub.s32 32, %v475_v31 }
  0xcf   : > { %v376_v52 = vor.u32 %v375_v46, %v374_v35  ;;  %v379_v53 = vor.u32 %v378_v47, %v377_v37  ;;  %v382_v54 = vor.u32 %v381_v48, %v380_v39  ;;  %vm391_vm8 = vcmp.lt.s32.totalorder %v370_v26, 3  ;;  %s2251_s14 = sshll.u32 (%p4582_p1), %s4583_s25, 4 }
  0xd0   : > { %v385_v56 = vor.u32 %v384_v49, %v383_v41  ;;  %v388_v57 = vor.u32 %v387_v51, %v386_v43  ;;  %v478_v58 = vshll.u32 %v2915_v34, %v475_v31  ;;  %v481_v5 = vshll.u32 %v2916_v36, %v475_v31  ;;  %s1955_s0 = sadd.s32 (%p4582_p1), %s4584_s8, %s2251_s14 }
  0xd1   : > { %v393_v59 = vsel %vm389_vm5, %v373_v45, %v376_v52  ;;  %v394_v60 = vsel %vm392_vm7, %v382_v54, 2102212464  ;;  %v397_v61 = vsel %vm389_vm5, %v376_v52, %v379_v53  ;;  %v401_v62 = vsel %vm389_vm5, %v379_v53, %v382_v54  ;;  %s2252_s26 = sshll.u32 (%p4582_p1), %s1955_s0, 3 }
  0xd2   : > { %v395_v63 = vsel %vm391_vm8, %v379_v53, %v394_v60  ;;  %v398_v0 = vsel %vm392_vm7, %v385_v56, 920167782  ;;  %v402_v2 = vsel %vm392_vm7, %v388_v57, 1326507024  ;;  %v477_v11 = vshrl.u32 %v2915_v34, %v476_v55  ;;  %s1957_s23 = scalar_lea.vmem (%p4582_p1), %s4585_s20, %s2252_s26 }
  0xd3   : > { %v399_v7 = vsel %vm391_vm8, %v382_v54, %v398_v0  ;;  %v403_v9 = vsel %vm391_vm8, %v385_v56, %v402_v2  ;;  %v479_v12 = vshrl.u32 %v2916_v36, %v476_v55  ;;  %v396_v13 = vsel %vm390_vm6, %v393_v59, %v395_v63 }
  0xd4   : > { %v400_v14 = vsel %vm390_vm6, %v397_v61, %v399_v7  ;;  %v404_v15 = vsel %vm390_vm6, %v401_v62, %v403_v9  ;;  %v482_v16 = vshrl.u32 %v2917_v38, %v476_v55  ;;  %v484_v24 = vshll.u32 %v2917_v38, %v475_v31 }
  0xd5   : > { %v3370_v17 = vmul.u32.u64.low %v3339_v29, %v404_v15  ;;  %v3371_v18 = vmul.u32.u64.high %v3339_v29, %v404_v15, %v3370_v17  ;;  %v3374_v19 = vmul.u32.u64.low %v3339_v29, %v400_v14  ;;  %v3375_v20 = vmul.u32.u64.high %v3339_v29, %v400_v14, %v3374_v19 }
  0xd6   : > { %v480_v21 = vor.u32 %v479_v12, %v478_v58  ;;  %v483_v22 = vor.u32 %v482_v16, %v481_v5  ;;  %v485_v25 = vshrl.u32 %v2918_v40, %v476_v55  ;;  %v487_v26 = vshll.u32 %v2918_v40, %v475_v31 }
  0xd7   : > { %v488_v27 = vshrl.u32 %v2919_v42, %v476_v55  ;;  %v490_v28 = vshll.u32 %v2919_v42, %v475_v31  ;;  %v491_v33 = vshrl.u32 %v2920_v50, %v476_v55  ;;  %v412_v35 = vmul.u32 %v3339_v29, %v396_v13 }
  0xd8   : > { %v486_v37 = vor.u32 %v485_v25, %v484_v24  ;;  %vm493_vm9 = vcmp.lt.s32.totalorder %v3341_v30, 1  ;;  %vm494_vm10 = vcmp.lt.s32.totalorder %v3341_v30, 2  ;;  %vm414_vm11 = vc.u32 %v3371_v18, %v3374_v19 }
  0xd9   : > { %v415_v39 = vadd.s32 1, %v3375_v20  ;;  %v489_v41 = vor.u32 %v488_v27, %v487_v26  ;;  %vm495_vm12 = vcmp.lt.s32.totalorder %v3341_v30, 3  ;;  %v492_v43 = vor.u32 %v491_v33, %v490_v28 }
  0xda   : > { %vm496_vm13 = vcmp.lt.s32.totalorder %v3341_v30, 4  ;;  %v497_v31 = vsel %vm493_vm9, %v477_v11, %v480_v21  ;;  %v501_v45 = vsel %vm493_vm9, %v480_v21, %v483_v22  ;;  %v505_v48 = vsel %vm493_vm9, %v483_v22, %v486_v37 }
  0xdb   : > { %v416_v29 = vsel %vm414_vm11, %v415_v39, %v3375_v20  ;;  %v498_v46 = vsel %vm496_vm13, %v486_v37, 2102212464  ;;  %v502_v47 = vsel %vm496_vm13, %v489_v41, 920167782  ;;  %v506_v53 = vsel %vm496_vm13, %v492_v43, 1326507024 }
  0xdc   : > { %v417_v49 = vadd.s32 %v416_v29, %v412_v35  ;;  %v499_v51 = vsel %vm495_vm12, %v483_v22, %v498_v46  ;;  %v503_v52 = vsel %vm495_vm12, %v486_v37, %v502_v47  ;;  %v507_v56 = vsel %vm495_vm12, %v489_v41, %v506_v53  ;;  %v3436_v39 = vld [vmem:[%s3308_s18 + $0x8] sm:$0xff] }
  0xdd   : > { %v500_v54 = vsel %vm494_vm10, %v497_v31, %v499_v51  ;;  %v504_v55 = vsel %vm494_vm10, %v501_v45, %v503_v52  ;;  %v508_v58 = vsel %vm494_vm10, %v505_v48, %v507_v56  ;;  %v796_v63 = vsel %vm795_vm14, %v3350_v44, 0 }
  0xde   : > { %v418_v57 = vadd.s32 536870912, %v417_v49  ;;  %v3401_v59 = vmul.u32.u64.low %v3343_v32, %v504_v55  ;;  %v3402_v60 = vmul.u32.u64.high %v3343_v32, %v504_v55, %v3401_v59  ;;  %v798_v2 = vand.u32 31, %v796_v63 }
  0xdf   : > { %v3406_v61 = vmul.u32.u64.low %v3343_v32, %v508_v58  ;;  %v3407_v62 = vmul.u32.u64.high %v3343_v32, %v508_v58, %v3406_v61  ;;  %v516_v5 = vmul.u32 %v3343_v32, %v500_v54  ;;  %v791_v7 = vand.u32 8388607, %v784_v23 }
  0xe0   : > { %v419_v0 = vshrl.u32 %v418_v57, 30  ;;  %v519_v9 = vadd.s32 1, %v3402_v60  ;;  %v2921_v11 = vmov 127   ;;  %v799_v12 = vsub.s32 32, %v798_v2 }
  0xe1   : > { %2573 = vset.pattern.permute.xlu1 %v2921_v11  ;;  %vm518_vm15 = vc.u32 %v3407_v62, %v3401_v59  ;;  %v792_v14 = vor.u32 8388608, %v791_v7  ;;  %v3422_v16 = vshrl.u32 %v796_v63, 5  ;;  %v801_v17 = vshll.u32 %v2915_v34, %v798_v2 }
  0xe2   : > { %v420_v30 = vshll.u32 %v419_v0, 30  ;;  %v520_v44 = vsel %vm518_vm15, %v519_v9, %v3402_v60  ;;  %v804_v20 = vshll.u32 %v2916_v36, %v798_v2  ;;  %v802_v22 = vshrl.u32 %v2916_v36, %v799_v12 }
  0xe3   : > { %v521_v32 = vadd.s32 %v520_v44, %v516_v5  ;;  %v805_v24 = vshrl.u32 %v2917_v38, %v799_v12  ;;  %v807_v25 = vshll.u32 %v2917_v38, %v798_v2  ;;  %v808_v27 = vshrl.u32 %v2918_v40, %v799_v12 }
  0xe4   : > { %v3417_v13 = vsub.s32 %v417_v49, %v420_v30  ;;  %v810_v28 = vshll.u32 %v2918_v40, %v798_v2  ;;  %v811_v33 = vshrl.u32 %v2919_v42, %v799_v12  ;;  %v443_v35 = vsub.s32 4, %v419_v0 }
  0xe5   : > { %v522_v21 = vadd.s32 536870912, %v521_v32  ;;  %v813_v41 = vshll.u32 %v2919_v42, %v798_v2  ;;  %v814_v43 = vshrl.u32 %v2920_v50, %v799_v12  ;;  %v413_v45 = vadd.s32 %v3374_v19, %v3371_v18 }
  0xe6   : > { %v423_v15 = vsub.s32 0, %v3417_v13  ;;  %v3448_v46 = vshll.u32 %v792_v14, 8  ;;  %v888_v47 = vand.u32 2147483647, %v3436_v39  ;;  %v800_v49 = vshrl.u32 %v2915_v34, %v799_v12 }
  0xe7   : > { %v3433_v37 = vshrl.u32 %v522_v21, 30  ;;  %v803_v51 = vor.u32 %v802_v22, %v801_v17  ;;  %v806_v52 = vor.u32 %v805_v24, %v804_v20  ;;  %v809_v54 = vor.u32 %v808_v27, %v807_v25 }
  0xe8   : > { %v2176_v26 = vmin.u32 %v423_v15, %v3417_v13  ;;  %v812_v6 = vor.u32 %v811_v33, %v810_v28  ;;  %vm816_vm2 = vcmp.lt.s32.totalorder %v3422_v16, 1  ;;  %v444_v55 = vsel %vm359_vm0, %v443_v35, %v419_v0 }
  0xe9   : > { %v524_v48 = vshll.u32 %v3433_v37, 30  ;;  %v815_v19 = vor.u32 %v814_v43, %v813_v41  ;;  %vm819_vm3 = vcmp.lt.s32.totalorder %v3422_v16, 4  ;;  %vm817_vm5 = vcmp.lt.s32.totalorder %v3422_v16, 2 }
  0xea   : > { %v425_v29 = vclz %v2176_v26  ;;  %vm818_vm6 = vcmp.lt.s32.totalorder %v3422_v16, 3  ;;  %v821_v56 = vsel %vm819_vm3, %v809_v54, 2102212464  ;;  %vm463_vm7 = vcmp.lt.s32.totalorder %v3324_v4, 0 }
  0xeb   : > { %v3456_v18 = vsub.s32 %v521_v32, %v524_v48  ;;  %v820_v60 = vsel %vm816_vm2, %v800_v49, %v803_v51  ;;  %v824_v61 = vsel %vm816_vm2, %v803_v51, %v806_v52  ;;  %v825_v5 = vsel %vm819_vm3, %v812_v6, 920167782 }
  0xec   : > { %v2177_v53 = vadd.s32 4294967294, %v425_v29  ;;  %v822_v30 = vsel %vm818_vm6, %v806_v52, %v821_v56  ;;  %v826_v9 = vsel %vm818_vm6, %v809_v54, %v825_v5  ;;  %v828_v12 = vsel %vm816_vm2, %v806_v52, %v809_v54 }
  0xed   : > { %v527_v58 = vsub.s32 0, %v3456_v18  ;;  %v829_v14 = vsel %vm819_vm3, %v815_v19, 1326507024  ;;  %v446_v15 = vsel %vm3442_vm1, 0, %v444_v55  ;;  %v547_v20 = vsub.s32 4, %v3433_v37 }
  0xee   : > { %vm2178_vm4 = vcmp.lt.s32.totalorder %v2177_v53, 0  ;;  %v891_v21 = vand.u32 2139095040, %v3436_v39  ;;  %v823_v25 = vsel %vm817_vm5, %v820_v60, %v822_v30  ;;  %v830_v26 = vsel %vm818_vm6, %v812_v6, %v829_v14 }
  0xef   : > { %v428_v57 = vsel %vm2178_vm4, 0, %v2177_v53  ;;  %v2180_v7 = vmin.u32 %v527_v58, %v3456_v18  ;;  %v831_v28 = vsel %vm817_vm5, %v828_v12, %v830_v26  ;;  %v450_v48 = vadd.s32 3, %v446_v15 }
  0xf0   : > { %v429_v63 = vsub.s32 32, %v428_v57  ;;  %v430_v0 = vshll.u32 %v3417_v13, %v428_v57  ;;  %v433_v2 = vsub.s32 4294967266, %v428_v57  ;;  %v827_v13 = vsel %vm817_vm5, %v824_v61, %v826_v9 }
  0xf1   : > { %v529_v17 = vclz %v2180_v7  ;;  %v3494_v33 = vmul.u32.u64.low %v3448_v46, %v827_v13  ;;  %v3495_v35 = vmul.u32.u64.high %v3448_v46, %v827_v13, %v3494_v33  ;;  %v517_v49 = vadd.s32 %v3401_v59, %v3407_v62 }
  0xf2   : > { %v431_v44 = vshrl.u32 %v413_v45, %v429_v63  ;;  %v434_v32 = vadd.s32 127, %v433_v2  ;;  %v3499_v45 = vmul.u32.u64.low %v3448_v46, %v831_v28  ;;  %v3500_v29 = vmul.u32.u64.high %v3448_v46, %v831_v28, %v3499_v45 }
  0xf3   : > { %v2181_v27 = vadd.s32 4294967294, %v529_v17  ;;  %v892_v51 = vshrl.u32 %v891_v21, 23  ;;  %v548_v53 = vsel %vm463_vm7, %v547_v20, %v3433_v37  ;;  %v839_v54 = vmul.u32 %v3448_v46, %v823_v25 }
  0xf4   : > { %v432_v22 = vor.u32 %v431_v44, %v430_v0  ;;  %v435_v24 = vshll.u32 %v434_v32, 23  ;;  %v842_v56 = vadd.s32 1, %v3495_v35  ;;  %vm3512_vm9 = vcmp.le.f32.partialorder %v461_v8, 0.7853982 }
  0xf5   : > { %vm2182_vm8 = vcmp.lt.s32.totalorder %v2181_v27, 0  ;;  %vm841_vm10 = vc.u32 %v3500_v29, %v3494_v33  ;;  %v2195_v62 = vadd.s32 4294967169, %v892_v51  ;;  %v550_v46 = vsel %vm3512_vm9, 0, %v548_v53 }
  0xf6   : > { %v436_v41 = vor.u32 4788187, %v435_v24  ;;  %v439_v43 = vcvt.s32.f32 %v432_v22  ;;  %v532_v16 = vsel %vm2182_vm8, 0, %v2181_v27  ;;  %v3521_v0 = vand.u32 3, %v450_v48 }
  0xf7   : > { %v533_v6 = vsub.s32 32, %v532_v16  ;;  %v534_v55 = vshll.u32 %v3456_v18, %v532_v16  ;;  %v537_v19 = vsub.s32 4294967266, %v532_v16  ;;  %v843_v18 = vsel %vm841_vm10, %v842_v56, %v3495_v35  ;;  %v3546_v35 = vld [vmem:[%s3301_s10] sm:$0xff] }
  0xf8   : > { %v437_v52 = vand.u32 2147483647, %v436_v41  ;;  %v844_v61 = vadd.s32 %v843_v18, %v839_v54  ;;  %v898_v63 = vadd.s32 1, %v2195_v62  ;;  %v3525_v5 = vand.u32 8388607, %v888_v47 }
  0xf9   : > { %v535_v37 = vshrl.u32 %v517_v49, %v533_v6  ;;  %v538_v58 = vadd.s32 127, %v537_v19  ;;  %v554_v30 = vadd.s32 3, %v550_v46  ;;  %vm453_vm12 = vcmp.eq.s32.totalorder %v3521_v0, 0 }
  0xfa   : > { %v440_v57 = vmul.f32 %v439_v43, %v437_v52  ;;  %v845_v9 = vadd.s32 536870912, %v844_v61  ;;  %vm899_vm11 = vcmp.gt.s32.totalorder %v898_v63, 0  ;;  %vm456_vm13 = vcmp.eq.s32.totalorder %v3521_v0, 2 }
  0xfb   : > { %v536_v8 = vor.u32 %v535_v37, %v534_v55  ;;  %v539_v2 = vshll.u32 %v538_v58, 23  ;;  %v900_v13 = vsel %vm899_vm11, %v898_v63, 0  ;;  %v3537_v31 = vand.u32 3, %v554_v30 }
  0xfc   : > { %v441_v60 = vxor.u32 2147483648, %v440_v57  ;;  %v3532_v14 = vshrl.u32 %v845_v9, 30  ;;  %v902_v15 = vand.u32 31, %v900_v13  ;;  %v896_v24 = vor.u32 8388608, %v3525_v5 }
  0xfd   : > { %v540_v44 = vor.u32 4788187, %v539_v2  ;;  %v543_v32 = vcvt.s32.f32 %v536_v8  ;;  %v3548_v43 = vshrl.u32 %v900_v13, 5  ;;  %vm452_vm14 = vcmp.lt.s32.totalorder %v3521_v0, 2 }
  0xfe   : > { %v442_v7 = vsel %vm359_vm0, %v441_v60, %v440_v57  ;;  %v847_v20 = vshll.u32 %v3532_v14, 30  ;;  %v903_v21 = vsub.s32 32, %v902_v15  ;;  %v905_v26 = vshll.u32 %v2915_v34, %v902_v15 }
  0xff   : > { %v445_v12 = vsel %vm3442_vm1, %v3321_v3, %v442_v7  ;;  %v541_v17 = vand.u32 2147483647, %v540_v44  ;;  %v908_v28 = vshll.u32 %v2916_v36, %v902_v15  ;;  %v914_v48 = vshll.u32 %v2918_v40, %v902_v15 }
 0x100   : > { %2606 = vcosq.f32 %v445_v12  ;;  %v3540_v25 = vsub.s32 %v844_v61, %v847_v20  ;;  %v906_v27 = vshrl.u32 %v2916_v36, %v903_v21  ;;  %v909_v45 = vshrl.u32 %v2917_v38, %v903_v21 }
 0x101   : > { %2608 = vsinq.f32 %v445_v12  ;;  %v544_v22 = vmul.f32 %v543_v32, %v541_v17  ;;  %v911_v51 = vshll.u32 %v2917_v38, %v902_v15  ;;  %v912_v52 = vshrl.u32 %v2918_v40, %v903_v21 }
 0x102   : > { %v850_v49 = vsub.s32 0, %v3540_v25  ;;  %v915_v16 = vshrl.u32 %v2919_v42, %v903_v21  ;;  %v840_v54 = vadd.s32 %v3494_v33, %v3500_v29  ;;  %v1249_v6 = vand.u32 2147483647, %v3546_v35 }
 0x103   : > { %v545_v41 = vxor.u32 2147483648, %v544_v22  ;;  %v1252_v55 = vand.u32 2139095040, %v3546_v35  ;;  %v907_v57 = vor.u32 %v906_v27, %v905_v26  ;;  %v910_v62 = vor.u32 %v909_v45, %v908_v28 }
 0x104   : > { %v2192_v56 = vmin.u32 %v850_v49, %v3540_v25  ;;  %v916_v37 = vor.u32 %v915_v16, %v914_v48  ;;  %v917_v58 = vshll.u32 %v2919_v42, %v902_v15  ;;  %v918_v46 = vshrl.u32 %v2920_v50, %v903_v21 }
 0x105   : > { %v546_v53 = vsel %vm463_vm7, %v545_v41, %v544_v22  ;;  %vm449_vm15 = vweird.f32 %v3321_v3  ;;  %v913_v29 = vor.u32 %v912_v52, %v911_v51  ;;  %vm920_vm0 = vcmp.lt.s32.totalorder %v3548_v43, 1 }
 0x106   : > { %v549_v19 = vsel %vm3512_vm9, %v3324_v4, %v546_v53  ;;  %v852_v33 = vclz %v2192_v56  ;;  %vm560_vm1 = vcmp.eq.s32.totalorder %v3537_v31, 2  ;;  %v904_v61 = vshrl.u32 %v2915_v34, %v903_v21 }
 0x107   : > { %2610 = vcosq.f32 %v549_v19  ;;  %vm922_vm2 = vcmp.lt.s32.totalorder %v3548_v43, 3  ;;  %v1253_v63 = vshrl.u32 %v1252_v55, 23  ;;  %vm557_vm3 = vcmp.eq.s32.totalorder %v3537_v31, 0 }
 0x108   : > { %2612 = vsinq.f32 %v549_v19  ;;  %v2193_v2 = vadd.s32 4294967294, %v852_v33  ;;  %vm921_vm4 = vcmp.lt.s32.totalorder %v3548_v43, 2  ;;  %vm923_vm5 = vcmp.lt.s32.totalorder %v3548_v43, 4 }
 0x109   : > { %vm556_vm6 = vcmp.lt.s32.totalorder %v3537_v31, 2  ;;  %v919_v5 = vor.u32 %v918_v46, %v917_v58  ;;  %v925_v7 = vsel %vm923_vm5, %v913_v29, 2102212464  ;;  %v928_v30 = vsel %vm920_vm0, %v907_v57, %v910_v62 }
 0x10a   : > { %v2607_v18 = vpop.eup %2606  ;;  %v929_v9 = vsel %vm923_vm5, %v916_v37, 920167782  ;;  %vm553_vm7 = vweird.f32 %v3324_v4  ;;  %vm2194_vm8 = vcmp.lt.s32.totalorder %v2193_v2, 0  ;;  %v924_v15 = vsel %vm920_vm0, %v904_v61, %v907_v57 }
 0x10b   : > { %v2609_v59 = vpop.eup %2608  ;;  %v457_v60 = vxor.u32 2147483648, %v2607_v18  ;;  %v930_v32 = vsel %vm922_vm2, %v913_v29, %v929_v9  ;;  %v855_v13 = vsel %vm2194_vm8, 0, %v2193_v2  ;;  %v926_v17 = vsel %vm922_vm2, %v910_v62, %v925_v7 }
 0x10c   : > { %v454_v8 = vxor.u32 2147483648, %v2609_v59  ;;  %v936_v20 = vshll.u32 %v896_v24, 8  ;;  %vm786_vm9 = vcmp.lt.s32.totalorder %v3331_v10, 0  ;;  %v856_v21 = vsub.s32 32, %v855_v13 }
 0x10d   : > { %v458_v44 = vsel %vm456_vm13, %v457_v60, %v2609_v59  ;;  %v857_v22 = vshll.u32 %v3540_v25, %v855_v13  ;;  %v860_v26 = vsub.s32 4294967266, %v855_v13  ;;  %v931_v27 = vsel %vm921_vm4, %v928_v30, %v930_v32 }
 0x10e   : > { %v455_v12 = vsel %vm453_vm12, %v2607_v18, %v454_v8  ;;  %v870_v41 = vsub.s32 4, %v3532_v14  ;;  %v932_v45 = vsel %vm920_vm0, %v910_v62, %v913_v29  ;;  %v933_v24 = vsel %vm923_vm5, %v919_v5, 1326507024 }
 0x10f   : > { %v459_v28 = vsel %vm452_vm14, %v455_v12, %v458_v44  ;;  %v858_v48 = vshrl.u32 %v840_v54, %v856_v21  ;;  %v861_v49 = vadd.s32 127, %v860_v26  ;;  %v934_v25 = vsel %vm922_vm2, %v916_v37, %v933_v24 }
 0x110   : > { %v2207_v51 = vadd.s32 4294967169, %v1253_v63  ;;  %v927_v16 = vsel %vm921_vm4, %v924_v15, %v926_v17  ;;  %v935_v0 = vsel %vm921_vm4, %v932_v45, %v934_v25  ;;  %vm3618_vm10 = vcmp.le.f32.partialorder %v784_v23, 0.7853982 }
 0x111   : > { %v2611_v52 = vpop.eup %2610  ;;  %v3612_v53 = vmul.u32.u64.low %v936_v20, %v931_v27  ;;  %v3613_v55 = vmul.u32.u64.high %v936_v20, %v931_v27, %v3612_v53  ;;  %v859_v57 = vor.u32 %v858_v48, %v857_v22  ;;  %v862_v62 = vshll.u32 %v861_v49, 23 }
 0x112   : > { %v2613_v19 = vpop.eup %2612  ;;  %v561_v56 = vxor.u32 2147483648, %v2611_v52  ;;  %v1259_v37 = vadd.s32 1, %v2207_v51  ;;  %v460_v58 = vsel %vm449_vm15, nan, %v459_v28  ;;  %v943_v60 = vmul.u32 %v936_v20, %v927_v16 }
 0x113   : > { %v558_v43 = vxor.u32 2147483648, %v2613_v19  ;;  %v3624_v46 = vmul.u32.u64.low %v936_v20, %v935_v0  ;;  %v3625_v18 = vmul.u32.u64.high %v936_v20, %v935_v0, %v3624_v46  ;;  %v863_v29 = vor.u32 4788187, %v862_v62 }
 0x114   : > { %v562_v33 = vsel %vm560_vm1, %v561_v56, %v2613_v19  ;;  %v866_v59 = vcvt.s32.f32 %v859_v57  ;;  %vm1260_vm11 = vcmp.gt.s32.totalorder %v1259_v37, 0  ;;  %v946_v61 = vadd.s32 1, %v3613_v55 }
 0x115   : > { %v559_v23 = vsel %vm557_vm3, %v2611_v52, %v558_v43  ;;  %v1261_v63 = vsel %vm1260_vm11, %v1259_v37, 0  ;;  %v773_v2 = vadd.f32 %v460_v58, %v3321_v3  ;;  %v864_v5 = vand.u32 2147483647, %v863_v29 }
 0x116   : > { %v563_v8 = vsel %vm556_vm6, %v559_v23, %v562_v33  ;;  %v1263_v7 = vand.u32 31, %v1261_v63  ;;  %v871_v9 = vsel %vm786_vm9, %v870_v41, %v3532_v14  ;;  %vm945_vm12 = vc.u32 %v3625_v18, %v3612_v53  ;;  %v3671_v33 = vld [vmem:[%s3301_s10 + $0x8] sm:$0xff] }
 0x117   : > { %v564_v30 = vsel %vm553_vm7, nan, %v563_v8  ;;  %v1256_v12 = vand.u32 8388607, %v1249_v6  ;;  %v867_v44 = vmul.f32 %v866_v59, %v864_v5  ;;  %v947_v3 = vsel %vm945_vm12, %v946_v61, %v3613_v55 }
 0x118   : > { %v774_v31 = vadd.f32 %v564_v30, %v3324_v4  ;;  %v1264_v32 = vsub.s32 32, %v1263_v7  ;;  %v948_v13 = vadd.s32 %v947_v3, %v943_v60  ;;  %v1262_v15 = vshrl.u32 %v1261_v63, 5 }
 0x119   : > { %v1266_v17 = vshll.u32 %v2915_v34, %v1263_v7  ;;  %v1269_v20 = vshll.u32 %v2916_v36, %v1263_v7  ;;  %v868_v22 = vxor.u32 2147483648, %v867_v44  ;;  %v1272_v26 = vshll.u32 %v2917_v38, %v1263_v7 }
 0x11a   : > { %v3648_v21 = vpack.i.bf16 %v774_v31, %v773_v2  ;;  %v2270_v14 = vpack.c.bf16 %v774_v31, %v773_v2  ;;  %v949_v27 = vadd.s32 536870912, %v948_v13  ;;  %v1267_v28 = vshrl.u32 %v2916_v36, %v1264_v32 }
 0x11b   : > { %v1270_v4 = vshrl.u32 %v2917_v38, %v1264_v32  ;;  %v1273_v41 = vshrl.u32 %v2918_v40, %v1264_v32  ;;  %v869_v45 = vsel %vm786_vm9, %v868_v22, %v867_v44  ;;  %v1275_v24 = vshll.u32 %v2918_v40, %v1263_v7 }
 0x11c   : > { %2553 = vrot.lane.b32.xlu1 %v3648_v21, %s2922_s11  ;;  %2271 = vst [vmem:[#allocation2] sm:$0xff] %v2270_v14   ;;  %v1276_v48 = vshrl.u32 %v2919_v42, %v1264_v32  ;;  %v1278_v49 = vshll.u32 %v2919_v42, %v1263_v7  ;;  %v872_v25 = vsel %vm3618_vm10, %v3331_v10, %v869_v45  ;;  %v950_v51 = vshrl.u32 %v949_v27, 30 }
 0x11d   : > { %v1257_v52 = vor.u32 8388608, %v1256_v12  ;;  %v1268_v16 = vor.u32 %v1267_v28, %v1266_v17  ;;  %v1271_v0 = vor.u32 %v1270_v4, %v1269_v20  ;;  %v1279_v19 = vshrl.u32 %v2920_v50, %v1264_v32 }
 0x11e   : > { %v1277_v55 = vor.u32 %v1276_v48, %v1275_v24  ;;  %v873_v56 = vsel %vm3618_vm10, 0, %v871_v9  ;;  %v951_v57 = vshll.u32 %v950_v51, 30  ;;  %v1274_v62 = vor.u32 %v1273_v41, %v1272_v26 }
 0x11f   : > { %vm1281_vm13 = vcmp.lt.s32.totalorder %v1262_v15, 1  ;;  %v1265_v37 = vshrl.u32 %v2915_v34, %v1264_v32  ;;  %v1280_v58 = vor.u32 %v1279_v19, %v1278_v49  ;;  %vm1283_vm14 = vcmp.lt.s32.totalorder %v1262_v15, 3 }
 0x120   : > { %vm1284_vm15 = vcmp.lt.s32.totalorder %v1262_v15, 4  ;;  %2614 = vcosq.f32 %v872_v25  ;;  %v3668_v43 = vsub.s32 %v948_v13, %v951_v57  ;;  %vm1282_vm0 = vcmp.lt.s32.totalorder %v1262_v15, 2 }
 0x121   : > { %v1297_v46 = vshll.u32 %v1257_v52, 8  ;;  %2616 = vsinq.f32 %v872_v25  ;;  %v1286_v29 = vsel %vm1284_vm15, %v1274_v62, 2102212464  ;;  %v1289_v54 = vsel %vm1281_vm13, %v1268_v16, %v1271_v0 }
 0x122   : > { %v1290_v59 = vsel %vm1284_vm15, %v1277_v55, 920167782  ;;  %v877_v23 = vadd.s32 3, %v873_v56  ;;  %v954_v60 = vsub.s32 0, %v3668_v43  ;;  %v1285_v63 = vsel %vm1281_vm13, %v1265_v37, %v1268_v16 }
 0x123   : > { %v1291_v61 = vsel %vm1283_vm14, %v1274_v62, %v1290_v59  ;;  %v1293_v2 = vsel %vm1281_vm13, %v1271_v0, %v1274_v62  ;;  %v1294_v5 = vsel %vm1284_vm15, %v1280_v58, 1326507024  ;;  %v1287_v30 = vsel %vm1283_vm14, %v1271_v0, %v1286_v29 }
 0x124   : > { %v1292_v8 = vsel %vm1282_vm0, %v1289_v54, %v1291_v61  ;;  %v2196_v7 = vmin.u32 %v954_v60, %v3668_v43  ;;  %v1295_v9 = vsel %vm1283_vm14, %v1277_v55, %v1294_v5  ;;  %v1356_v12 = vand.u32 2139095040, %v3671_v33  ;;  %v3724_v60 = vld [vmem:[%s3308_s18 + $0x10] sm:$0xff] }
 0x125   : > { %v974_v31 = vsub.s32 4, %v950_v51  ;;  %v1296_v44 = vsel %vm1282_vm0, %v1293_v2, %v1295_v9  ;;  %v3687_v3 = vmul.u32.u64.low %v1297_v46, %v1292_v8  ;;  %v3688_v32 = vmul.u32.u64.high %v1297_v46, %v1292_v8, %v3687_v3 }
 0x126   : > { %v956_v13 = vclz %v2196_v7  ;;  %v1353_v17 = vand.u32 2147483647, %v3671_v33  ;;  %v1288_v20 = vsel %vm1282_vm0, %v1285_v63, %v1287_v30  ;;  %v1357_v26 = vshrl.u32 %v1356_v12, 23 }
 0x127   : > { %v3693_v14 = vmul.u32.u64.low %v1297_v46, %v1296_v44  ;;  %v3694_v22 = vmul.u32.u64.high %v1297_v46, %v1296_v44, %v3693_v14  ;;  %vm890_vm1 = vcmp.lt.s32.totalorder %v3436_v39, 0  ;;  %v878_v28 = vand.u32 3, %v877_v23 }
 0x128   : > { %v2197_v27 = vadd.s32 4294967294, %v956_v13  ;;  %v975_v4 = vsel %vm890_vm1, %v974_v31, %v950_v51  ;;  %v1307_v41 = vadd.s32 1, %v3688_v32  ;;  %v2211_v45 = vadd.s32 4294967169, %v1357_v26 }
 0x129   : > { %v944_v48 = vadd.s32 %v3612_v53, %v3625_v18  ;;  %v1304_v15 = vmul.u32 %v1297_v46, %v1288_v20  ;;  %vm3705_vm3 = vcmp.le.f32.partialorder %v888_v47, 0.7853982  ;;  %vm1306_vm4 = vc.u32 %v3694_v22, %v3687_v3 }
 0x12a   : > { %v2615_v24 = vpop.eup %2614  ;;  %vm2198_vm2 = vcmp.lt.s32.totalorder %v2197_v27, 0  ;;  %v1360_v51 = vand.u32 8388607, %v1353_v17  ;;  %v977_v0 = vsel %vm3705_vm3, 0, %v975_v4  ;;  %vm883_vm5 = vcmp.eq.s32.totalorder %v878_v28, 2 }
 0x12b   : > { %v2617_v49 = vpop.eup %2616  ;;  %v959_v52 = vsel %vm2198_vm2, 0, %v2197_v27  ;;  %v884_v47 = vxor.u32 2147483648, %v2615_v24  ;;  %v1308_v55 = vsel %vm1306_vm4, %v1307_v41, %v3688_v32  ;;  %v1363_v19 = vadd.s32 1, %v2211_v45 }
 0x12c   : > { %v960_v16 = vsub.s32 32, %v959_v52  ;;  %v961_v53 = vshll.u32 %v3668_v43, %v959_v52  ;;  %v964_v18 = vsub.s32 4294967266, %v959_v52  ;;  %v881_v56 = vxor.u32 2147483648, %v2617_v49 }
 0x12d   : > { %v1309_v37 = vadd.s32 %v1308_v55, %v1304_v15  ;;  %vm880_vm6 = vcmp.eq.s32.totalorder %v878_v28, 0  ;;  %v981_v58 = vadd.s32 3, %v977_v0  ;;  %v1361_v43 = vor.u32 8388608, %v1360_v51 }
 0x12e   : > { %v962_v57 = vshrl.u32 %v944_v48, %v960_v16  ;;  %v965_v62 = vadd.s32 127, %v964_v18  ;;  %vm1364_vm7 = vcmp.gt.s32.totalorder %v1363_v19, 0  ;;  %vm876_vm8 = vweird.f32 %v3331_v10 }
 0x12f   : > { %v1310_v54 = vadd.s32 536870912, %v1309_v37  ;;  %vm879_vm9 = vcmp.lt.s32.totalorder %v878_v28, 2  ;;  %v885_v59 = vsel %vm883_vm5, %v884_v47, %v2617_v49  ;;  %v1365_v23 = vsel %vm1364_vm7, %v1363_v19, 0 }
 0x130   : > { %v963_v46 = vor.u32 %v962_v57, %v961_v53  ;;  %v966_v29 = vshll.u32 %v965_v62, 23  ;;  %v882_v61 = vsel %vm880_vm6, %v2615_v24, %v881_v56  ;;  %v3728_v5 = vand.u32 3, %v981_v58 }
 0x131   : > { %v3726_v2 = vshrl.u32 %v1310_v54, 30  ;;  %v1205_v7 = vstv %s3719_s24  ;;  %v1367_v30 = vand.u32 31, %v1365_v23  ;;  %v3731_v9 = vshll.u32 %v1361_v43, 8 }
 0x132   : > { %v967_v63 = vor.u32 4788187, %v966_v29  ;;  %v970_v8 = vcvt.s32.f32 %v963_v46  ;;  %v992_v44 = vand.u32 2147483647, %v3724_v60  ;;  %v995_v32 = vand.u32 2139095040, %v3724_v60 }
 0x133   : > { %v1312_v31 = vshll.u32 %v3726_v2, 30  ;;  %v886_v13 = vsel %vm879_vm9, %v882_v61, %v885_v59  ;;  %v1305_v20 = vadd.s32 %v3687_v3, %v3694_v22  ;;  %v1366_v14 = vshrl.u32 %v1365_v23, 5 }
 0x134   : > { %v968_v12 = vand.u32 2147483647, %v967_v63  ;;  %v1368_v26 = vsub.s32 32, %v1367_v30  ;;  %v1370_v41 = vshll.u32 %v2915_v34, %v1367_v30  ;;  %v1373_v45 = vshll.u32 %v2916_v36, %v1367_v30 }
 0x135   : > { %v3739_v4 = vsub.s32 %v1309_v37, %v1312_v31  ;;  %v1376_v15 = vshll.u32 %v2917_v38, %v1367_v30  ;;  %v1379_v28 = vshll.u32 %v2918_v40, %v1367_v30  ;;  %v996_v52 = vshrl.u32 %v995_v32, 23 }
 0x136   : > { %v971_v27 = vmul.f32 %v970_v8, %v968_v12  ;;  %v1371_v24 = vshrl.u32 %v2916_v36, %v1368_v26  ;;  %v1374_v48 = vshrl.u32 %v2917_v38, %v1368_v26  ;;  %v1377_v22 = vshrl.u32 %v2918_v40, %v1368_v26 }
 0x137   : > { %v1315_v3 = vsub.s32 0, %v3739_v4  ;;  %v1369_v51 = vshrl.u32 %v2915_v34, %v1368_v26  ;;  %v1380_v16 = vshrl.u32 %v2919_v42, %v1368_v26  ;;  %v1382_v53 = vshll.u32 %v2919_v42, %v1367_v30 }
 0x138   : > { %v972_v49 = vxor.u32 2147483648, %v971_v27  ;;  %vm1385_vm10 = vcmp.lt.s32.totalorder %v1366_v14, 1  ;;  %v1372_v47 = vor.u32 %v1371_v24, %v1370_v41  ;;  %v1375_v55 = vor.u32 %v1374_v48, %v1373_v45 }
 0x139   : > { %v2208_v0 = vmin.u32 %v1315_v3, %v3739_v4  ;;  %v1378_v56 = vor.u32 %v1377_v22, %v1376_v15  ;;  %v1381_v57 = vor.u32 %v1380_v16, %v1379_v28  ;;  %v1383_v62 = vshrl.u32 %v2920_v50, %v1368_v26 }
 0x13a   : > { %v973_v18 = vsel %vm890_vm1, %v972_v49, %v971_v27  ;;  %v887_v37 = vsel %vm876_vm8, nan, %v886_v13  ;;  %v2199_v43 = vadd.s32 4294967169, %v996_v52  ;;  %vm1386_vm11 = vcmp.lt.s32.totalorder %v1366_v14, 2 }
 0x13b   : > { %v976_v19 = vsel %vm3705_vm3, %v3436_v39, %v973_v18  ;;  %v1317_v58 = vclz %v2208_v0  ;;  %v1384_v46 = vor.u32 %v1383_v62, %v1382_v53  ;;  %vm1387_vm12 = vcmp.lt.s32.totalorder %v1366_v14, 3 }
 0x13c   : > { %2618 = vcosq.f32 %v976_v19  ;;  %vm3761_vm13 = vcmp.eq.s32.totalorder %v1205_v7, 1  ;;  %vm1388_vm14 = vcmp.lt.s32.totalorder %v1366_v14, 4  ;;  %v1389_v54 = vsel %vm1385_vm10, %v1369_v51, %v1372_v47  ;;  %v2654_v14 = vld [vmem:[%s3308_s18] sm:$0xff] }
 0x13d   : > { %2620 = vsinq.f32 %v976_v19  ;;  %v2209_v25 = vadd.s32 4294967294, %v1317_v58  ;;  %v1393_v59 = vsel %vm1385_vm10, %v1372_v47, %v1375_v55  ;;  %v1390_v23 = vsel %vm1388_vm14, %v1378_v56, 2102212464 }
 0x13e   : > { %v1394_v10 = vsel %vm1388_vm14, %v1381_v57, 920167782  ;;  %v1397_v61 = vsel %vm1385_vm10, %v1375_v55, %v1378_v56  ;;  %v1398_v63 = vsel %vm1388_vm14, %v1384_v46, 1326507024  ;;  %v1391_v8 = vsel %vm1387_vm12, %v1375_v55, %v1390_v23 }
 0x13f   : > { %vm2210_vm15 = vcmp.lt.s32.totalorder %v2209_v25, 0  ;;  %v1395_v30 = vsel %vm1387_vm12, %v1378_v56, %v1394_v10  ;;  %v1399_v12 = vsel %vm1387_vm12, %v1381_v57, %v1398_v63  ;;  %vm980_vm0 = vweird.f32 %v3436_v39 }
 0x140   : > { %v1320_v7 = vsel %vm2210_vm15, 0, %v2209_v25  ;;  %v1396_v31 = vsel %vm1386_vm11, %v1393_v59, %v1395_v30  ;;  %v1400_v32 = vsel %vm1386_vm11, %v1397_v61, %v1399_v12  ;;  %v999_v13 = vand.u32 8388607, %v992_v44 }
 0x141   : > { %vm1251_vm1 = vcmp.lt.s32.totalorder %v3546_v35, 0  ;;  %v1321_v26 = vsub.s32 32, %v1320_v7  ;;  %v1322_v27 = vshll.u32 %v3739_v4, %v1320_v7  ;;  %v1325_v41 = vsub.s32 4294967266, %v1320_v7 }
 0x142   : > { %v1392_v45 = vsel %vm1386_vm11, %v1389_v54, %v1391_v8  ;;  %v3777_v24 = vmul.u32.u64.low %v3731_v9, %v1400_v32  ;;  %v3778_v48 = vmul.u32.u64.high %v3731_v9, %v1400_v32, %v3777_v24  ;;  %vm983_vm2 = vcmp.lt.s32.totalorder %v3728_v5, 2 }
 0x143   : > { %v3781_v15 = vmul.u32.u64.low %v3731_v9, %v1396_v31  ;;  %v3782_v28 = vmul.u32.u64.high %v3731_v9, %v1396_v31, %v3781_v15  ;;  %v1323_v49 = vshrl.u32 %v1305_v20, %v1321_v26  ;;  %v1326_v3 = vadd.s32 127, %v1325_v41 }
 0x144   : > { %v1002_v22 = vadd.s32 1, %v2199_v43  ;;  %vm984_vm3 = vcmp.eq.s32.totalorder %v3728_v5, 0  ;;  %vm987_vm4 = vcmp.eq.s32.totalorder %v3728_v5, 2  ;;  %v1200_v4 = vadd.f32 %v2654_v14, %v887_v37 }
 0x145   : > { %v1000_v52 = vor.u32 8388608, %v999_v13  ;;  %v1324_v16 = vor.u32 %v1323_v49, %v1322_v27  ;;  %v1327_v53 = vshll.u32 %v1326_v3, 23  ;;  %v1408_v18 = vmul.u32 %v3731_v9, %v1392_v45  ;;  %v3801_v9 = vld [vmem:[%s3308_s18 + $0x18] sm:$0xff] }
 0x146   : > { %v2619_v51 = vpop.eup %2618  ;;  %vm1003_vm5 = vcmp.gt.s32.totalorder %v1002_v22, 0  ;;  %vm3792_vm6 = vcmp.le.f32.partialorder %v1249_v6, 0.7853982  ;;  %v1335_v55 = vsub.s32 4, %v3726_v2  ;;  %vm1410_vm7 = vc.u32 %v3778_v48, %v3781_v15 }
 0x147   : > { %v2621_v0 = vpop.eup %2620  ;;  %v988_v47 = vxor.u32 2147483648, %v2619_v51  ;;  %v1411_v19 = vadd.s32 1, %v3782_v28  ;;  %v1328_v57 = vor.u32 4788187, %v1327_v53  ;;  %v1331_v62 = vcvt.s32.f32 %v1324_v16 }
 0x148   : > { %v985_v56 = vxor.u32 2147483648, %v2621_v0  ;;  %v1004_v37 = vsel %vm1003_vm5, %v1002_v22, 0  ;;  %v1207_v6 = vsel %vm3761_vm13, 0.0, %v1200_v4  ;;  %v3810_v23 = vshll.u32 %v1000_v52, 8 }
 0x149   : > { %v989_v58 = vsel %vm987_vm4, %v988_v47, %v2621_v0  ;;  %v1412_v43 = vsel %vm1410_vm7, %v1411_v19, %v3782_v28  ;;  %v1006_v46 = vand.u32 31, %v1004_v37  ;;  %v1329_v54 = vand.u32 2147483647, %v1328_v57 }
 0x14a   : > { %v986_v25 = vsel %vm984_vm3, %v2619_v51, %v985_v56  ;;  %v1413_v59 = vadd.s32 %v1412_v43, %v1408_v18  ;;  %v1336_v61 = vsel %vm1251_vm1, %v1335_v55, %v3726_v2  ;;  %v1099_v8 = vand.u32 2139095040, %v3801_v9 }
 0x14b   : > { %v990_v10 = vsel %vm983_vm2, %v986_v25, %v989_v58  ;;  %v1007_v63 = vsub.s32 32, %v1006_v46  ;;  %v1332_v12 = vmul.f32 %v1331_v62, %v1329_v54  ;;  %v1009_v31 = vshll.u32 %v2915_v34, %v1006_v46 }
 0x14c   : > { %v991_v30 = vsel %vm980_vm0, nan, %v990_v10  ;;  %v1414_v7 = vadd.s32 536870912, %v1413_v59  ;;  %v1012_v5 = vshll.u32 %v2916_v36, %v1006_v46  ;;  %v1005_v41 = vshrl.u32 %v1004_v37, 5 }
 0x14d   : > { %v1201_v32 = vadd.f32 %v991_v30, %v3436_v39  ;;  %v1010_v13 = vshrl.u32 %v2916_v36, %v1007_v63  ;;  %v1013_v26 = vshrl.u32 %v2917_v38, %v1007_v63  ;;  %v1333_v27 = vxor.u32 2147483648, %v1332_v12 }
 0x14e   : > { %v1415_v2 = vshrl.u32 %v1414_v7, 30  ;;  %v1018_v45 = vshll.u32 %v2918_v40, %v1006_v46  ;;  %v1015_v28 = vshll.u32 %v2917_v38, %v1006_v46  ;;  %v1016_v49 = vshrl.u32 %v2918_v40, %v1007_v63 }
 0x14f   : > { %v1208_v24 = vsel %vm3761_vm13, 0.0, %v1201_v32  ;;  %v1019_v39 = vshrl.u32 %v2919_v42, %v1007_v63  ;;  %v1334_v22 = vsel %vm1251_vm1, %v1333_v27, %v1332_v12  ;;  %v1338_v14 = vsel %vm3792_vm6, 0, %v1336_v61 }
 0x150   : > { %v2558_v3 = vpack.i.bf16 %v1208_v24, %v1207_v6  ;;  %vm1355_vm8 = vcmp.lt.s32.totalorder %v3671_v33, 0  ;;  %v1416_v4 = vshll.u32 %v1415_v2, 30  ;;  %v1011_v52 = vor.u32 %v1010_v13, %v1009_v31 }
 0x151   : > { %v1014_v51 = vor.u32 %v1013_v26, %v1012_v5  ;;  %v1021_v16 = vshll.u32 %v2919_v42, %v1006_v46  ;;  %v1096_v53 = vand.u32 2147483647, %v3801_v9  ;;  %v1337_v18 = vsel %vm3792_vm6, %v3546_v35, %v1334_v22 }
 0x152   : > { %2559 = vperm.xlu0 %2557, %v2558_v3   ;;  %v3841_v0 = vsub.s32 %v1413_v59, %v1416_v4  ;;  %v1020_v47 = vor.u32 %v1019_v39, %v1018_v45  ;;  %v1022_v55 = vshrl.u32 %v2920_v50, %v1007_v63  ;;  %v1342_v19 = vadd.s32 3, %v1338_v14 }
 0x153   : > { %vm3846_vm9 = vcmp.le.f32.partialorder %v1353_v17, 0.7853982  ;;  %v1017_v57 = vor.u32 %v1016_v49, %v1015_v28  ;;  %vm1024_vm10 = vcmp.lt.s32.totalorder %v1005_v41, 1  ;;  %v1100_v62 = vshrl.u32 %v1099_v8, 23 }
 0x154   : > { %v1419_v37 = vsub.s32 0, %v3841_v0  ;;  %v1008_v20 = vshrl.u32 %v2915_v34, %v1007_v63  ;;  %v1023_v58 = vor.u32 %v1022_v55, %v1021_v16  ;;  %vm1026_vm11 = vcmp.lt.s32.totalorder %v1005_v41, 3 }
 0x155   : > { %2622 = vcosq.f32 %v1337_v18  ;;  %v1439_v6 = vsub.s32 4, %v1415_v2  ;;  %vm1025_vm12 = vcmp.lt.s32.totalorder %v1005_v41, 2  ;;  %vm1027_vm14 = vcmp.lt.s32.totalorder %v1005_v41, 4 }
 0x156   : > { %v2212_v43 = vmin.u32 %v1419_v37, %v3841_v0  ;;  %v1029_v17 = vsel %vm1027_vm14, %v1017_v57, 2102212464  ;;  %v1032_v46 = vsel %vm1024_vm10, %v1011_v52, %v1014_v51  ;;  %v1033_v25 = vsel %vm1027_vm14, %v1020_v47, 920167782 }
 0x157   : > { %v1034_v54 = vsel %vm1026_vm11, %v1017_v57, %v1033_v25  ;;  %v1036_v59 = vsel %vm1024_vm10, %v1014_v51, %v1017_v57  ;;  %v1037_v10 = vsel %vm1027_vm14, %v1023_v58, 1326507024  ;;  %v2203_v61 = vadd.s32 4294967169, %v1100_v62 }
 0x158   : > { %v1421_v63 = vclz %v2212_v43  ;;  %v1028_v8 = vsel %vm1024_vm10, %v1008_v20, %v1011_v52  ;;  %v1030_v30 = vsel %vm1026_vm11, %v1014_v51, %v1029_v17  ;;  %v1103_v12 = vand.u32 8388607, %v1096_v53 }
 0x159   : > { %2624 = vsinq.f32 %v1337_v18  ;;  %v1440_v7 = vsel %vm1355_vm8, %v1439_v6, %v1415_v2  ;;  %v1035_v31 = vsel %vm1025_vm12, %v1032_v46, %v1034_v54  ;;  %v1038_v32 = vsel %vm1026_vm11, %v1020_v47, %v1037_v10 }
 0x15a   : > { %v2213_v13 = vadd.s32 4294967294, %v1421_v63  ;;  %v1039_v5 = vsel %vm1025_vm12, %v1036_v59, %v1038_v32  ;;  %v3867_v26 = vmul.u32.u64.low %v3810_v23, %v1035_v31  ;;  %v3868_v27 = vmul.u32.u64.high %v3810_v23, %v1035_v31, %v3867_v26 }
 0x15b   : > { %v1031_v45 = vsel %vm1025_vm12, %v1028_v8, %v1030_v30  ;;  %v3873_v24 = vmul.u32.u64.low %v3810_v23, %v1039_v5  ;;  %v3874_v28 = vmul.u32.u64.high %v3810_v23, %v1039_v5, %v3873_v24  ;;  %v1106_v49 = vadd.s32 1, %v2203_v61  ;;  %v3906_v30 = vld [vmem:[%s3301_s10 + $0x10] sm:$0xff] }
 0x15c   : > { %v1409_v2 = vadd.s32 %v3781_v15, %v3778_v48  ;;  %vm2214_vm15 = vcmp.lt.s32.totalorder %v2213_v13, 0  ;;  %v1442_v39 = vsel %vm3846_vm9, 0, %v1440_v7  ;;  %v3880_v3 = vand.u32 3, %v1342_v19 }
 0x15d   : > { %v1424_v22 = vsel %vm2214_vm15, 0, %v2213_v13  ;;  %vm1107_vm0 = vcmp.gt.s32.totalorder %v1106_v49, 0  ;;  %v1047_v52 = vmul.u32 %v3810_v23, %v1031_v45  ;;  %v1446_v48 = vadd.s32 3, %v1442_v39 }
 0x15e   : > { %v1425_v41 = vsub.s32 32, %v1424_v22  ;;  %v1426_v14 = vshll.u32 %v3841_v0, %v1424_v22  ;;  %v1429_v4 = vsub.s32 4294967266, %v1424_v22  ;;  %vm1049_vm1 = vc.u32 %v3874_v28, %v3867_v26 }
 0x15f   : > { %v2623_v51 = vpop.eup %2622  ;;  %v1050_v15 = vadd.s32 1, %v3868_v27  ;;  %v1104_v16 = vor.u32 8388608, %v1103_v12  ;;  %v1108_v55 = vsel %vm1107_vm0, %v1106_v49, 0  ;;  %vm1345_vm2 = vcmp.eq.s32.totalorder %v3880_v3, 0 }
 0x160   : > { %v1427_v18 = vshrl.u32 %v1409_v2, %v1425_v41  ;;  %v1430_v47 = vadd.s32 127, %v1429_v4  ;;  %v1670_v19 = vstv %s3884_s3  ;;  %v1110_v0 = vand.u32 31, %v1108_v55 }
 0x161   : > { %v1051_v57 = vsel %vm1049_vm1, %v1050_v15, %v3868_v27  ;;  %vm1348_vm3 = vcmp.eq.s32.totalorder %v3880_v3, 2  ;;  %v1349_v58 = vxor.u32 2147483648, %v2623_v51  ;;  %v3895_v6 = vand.u32 3, %v1446_v48 }
 0x162   : > { %v1428_v23 = vor.u32 %v1427_v18, %v1426_v14  ;;  %v1431_v62 = vshll.u32 %v1430_v47, 23  ;;  %v1052_v37 = vadd.s32 %v1051_v57, %v1047_v52  ;;  %v1111_v43 = vsub.s32 32, %v1110_v0 }
 0x163   : > { %v2625_v20 = vpop.eup %2624  ;;  %v3897_v17 = vshll.u32 %v1104_v16, 8  ;;  %v1113_v59 = vshll.u32 %v2915_v34, %v1110_v0  ;;  %vm1344_vm4 = vcmp.lt.s32.totalorder %v3880_v3, 2  ;;  %v1116_v61 = vshll.u32 %v2916_v36, %v1110_v0 }
 0x164   : > { %v1432_v46 = vor.u32 4788187, %v1431_v62  ;;  %v1435_v25 = vcvt.s32.f32 %v1428_v23  ;;  %v1053_v54 = vadd.s32 536870912, %v1052_v37  ;;  %v1114_v10 = vshrl.u32 %v2916_v36, %v1111_v43 }
 0x165   : > { %v1117_v63 = vshrl.u32 %v2917_v38, %v1111_v43  ;;  %v1119_v8 = vshll.u32 %v2917_v38, %v1110_v0  ;;  %v1120_v31 = vshrl.u32 %v2918_v40, %v1111_v43  ;;  %v1122_v32 = vshll.u32 %v2918_v40, %v1110_v0 }
 0x166   : > { %v1433_v12 = vand.u32 2147483647, %v1432_v46  ;;  %v1054_v7 = vshrl.u32 %v1053_v54, 30  ;;  %v1346_v13 = vxor.u32 2147483648, %v2625_v20  ;;  %v1109_v5 = vshrl.u32 %v1108_v55, 5 }
 0x167   : > { %v1123_v27 = vshrl.u32 %v2919_v42, %v1111_v43  ;;  %v1125_v45 = vshll.u32 %v2919_v42, %v1110_v0  ;;  %v1350_v24 = vsel %vm1348_vm3, %v1349_v58, %v2625_v20  ;;  %v1460_v39 = vand.u32 2139095040, %v3906_v30 }
 0x168   : > { %v1436_v49 = vmul.f32 %v1435_v25, %v1433_v12  ;;  %v1055_v2 = vshll.u32 %v1054_v7, 30  ;;  %vm1341_vm5 = vweird.f32 %v3546_v35  ;;  %v1112_v22 = vshrl.u32 %v2915_v34, %v1111_v43 }
 0x169   : > { %v1115_v41 = vor.u32 %v1114_v10, %v1113_v59  ;;  %v1124_v14 = vor.u32 %v1123_v27, %v1122_v32  ;;  %v1126_v4 = vshrl.u32 %v2920_v50, %v1111_v43  ;;  %v1118_v15 = vor.u32 %v1117_v63, %v1116_v61 }
 0x16a   : > { %v1437_v52 = vxor.u32 2147483648, %v1436_v49  ;;  %v3918_v48 = vsub.s32 %v1052_v37, %v1055_v2  ;;  %v1121_v16 = vor.u32 %v1120_v31, %v1119_v8  ;;  %v1347_v18 = vsel %vm1345_vm2, %v2623_v51, %v1346_v13 }
 0x16b   : > { %vm994_vm6 = vcmp.lt.s32.totalorder %v3724_v60, 0  ;;  %v1127_v47 = vor.u32 %v1126_v4, %v1125_v45  ;;  %vm1128_vm7 = vcmp.lt.s32.totalorder %v1109_v5, 1  ;;  %vm1131_vm10 = vcmp.lt.s32.totalorder %v1109_v5, 4 }
 0x16c   : > { %v1438_v55 = vsel %vm1355_vm8, %v1437_v52, %v1436_v49  ;;  %v1058_v57 = vsub.s32 0, %v3918_v48  ;;  %vm1130_vm11 = vcmp.lt.s32.totalorder %v1109_v5, 3  ;;  %v1133_v0 = vsel %vm1131_vm10, %v1121_v16, 2102212464 }
 0x16d   : > { %v1441_v23 = vsel %vm3846_vm9, %v3671_v33, %v1438_v55  ;;  %vm1129_vm12 = vcmp.lt.s32.totalorder %v1109_v5, 2  ;;  %v1132_v51 = vsel %vm1128_vm7, %v1112_v22, %v1115_v41  ;;  %v1137_v62 = vsel %vm1131_vm10, %v1124_v14, 920167782 }
 0x16e   : > { %2626 = vcosq.f32 %v1441_v23  ;;  %vm3934_vm14 = vcmp.le.f32.partialorder %v992_v44, 0.7853982  ;;  %v2200_v20 = vmin.u32 %v1058_v57, %v3918_v48  ;;  %v1134_v58 = vsel %vm1130_vm11, %v1118_v15, %v1133_v0 }
 0x16f   : > { %v1136_v43 = vsel %vm1128_vm7, %v1115_v41, %v1118_v15  ;;  %2628 = vsinq.f32 %v1441_v23  ;;  %v1138_v56 = vsel %vm1130_vm11, %v1121_v16, %v1137_v62  ;;  %v1140_v46 = vsel %vm1128_vm7, %v1118_v15, %v1121_v16 }
 0x170   : > { %v1141_v25 = vsel %vm1131_vm10, %v1127_v47, 1326507024  ;;  %v1351_v54 = vsel %vm1344_vm4, %v1347_v18, %v1350_v24  ;;  %vm3948_vm8 = vcmp.eq.s32.totalorder %v1670_v19, 1  ;;  %v1060_v59 = vclz %v2200_v20  ;;  %v3988_v20 = vld [vmem:[%s3301_s10 + $0x18] sm:$0xff] }
 0x171   : > { %v1078_v10 = vsub.s32 4, %v1054_v7  ;;  %v1457_v61 = vand.u32 2147483647, %v3906_v30  ;;  %v1135_v63 = vsel %vm1129_vm12, %v1132_v51, %v1134_v58  ;;  %v1139_v8 = vsel %vm1129_vm12, %v1136_v43, %v1138_v56 }
 0x172   : > { %v1142_v12 = vsel %vm1130_vm11, %v1124_v14, %v1141_v25  ;;  %v1461_v31 = vshrl.u32 %v1460_v39, 23  ;;  %v2201_v32 = vadd.s32 4294967294, %v1060_v59  ;;  %vm1445_vm9 = vweird.f32 %v3671_v33 }
 0x173   : > { %v1143_v3 = vsel %vm1129_vm12, %v1140_v46, %v1142_v12  ;;  %v3958_v13 = vmul.u32.u64.low %v3897_v17, %v1139_v8  ;;  %v3959_v19 = vmul.u32.u64.high %v3897_v17, %v1139_v8, %v3958_v13  ;;  %vm1449_vm15 = vcmp.eq.s32.totalorder %v3895_v6, 0 }
 0x174   : > { %v3965_v27 = vmul.u32.u64.low %v3897_v17, %v1143_v3  ;;  %v3966_v45 = vmul.u32.u64.high %v3897_v17, %v1143_v3, %v3965_v27  ;;  %v2215_v24 = vadd.s32 4294967169, %v1461_v31  ;;  %v1352_v49 = vsel %vm1341_vm5, nan, %v1351_v54 }
 0x175   : > { %v1048_v5 = vadd.s32 %v3867_v26, %v3874_v28  ;;  %vm2202_vm0 = vcmp.lt.s32.totalorder %v2201_v32, 0  ;;  %v1079_v2 = vsel %vm994_vm6, %v1078_v10, %v1054_v7  ;;  %vm1452_vm1 = vcmp.eq.s32.totalorder %v3895_v6, 2 }
 0x176   : > { %v1063_v39 = vsel %vm2202_vm0, 0, %v2201_v32  ;;  %v1151_v22 = vmul.u32 %v3897_v17, %v1135_v63  ;;  %v1467_v41 = vadd.s32 1, %v2215_v24  ;;  %v1154_v15 = vadd.s32 1, %v3959_v19 }
 0x177   : > { %v1064_v14 = vsub.s32 32, %v1063_v39  ;;  %v1065_v4 = vshll.u32 %v3918_v48, %v1063_v39  ;;  %v1068_v52 = vsub.s32 4294967266, %v1063_v39  ;;  %v1665_v16 = vadd.f32 %v1352_v49, %v3546_v35 }
 0x178   : > { %v1081_v26 = vsel %vm3934_vm14, 0, %v1079_v2  ;;  %vm1153_vm2 = vc.u32 %v3966_v45, %v3958_v13  ;;  %vm1468_vm3 = vcmp.gt.s32.totalorder %v1467_v41, 0  ;;  %v2627_v28 = vpop.eup %2626  ;;  %v1464_v35 = vand.u32 8388607, %v1457_v61 }
 0x179   : > { %v1066_v7 = vshrl.u32 %v1048_v5, %v1064_v14  ;;  %v1069_v17 = vadd.s32 127, %v1068_v52  ;;  %v1155_v18 = vsel %vm1153_vm2, %v1154_v15, %v3959_v19  ;;  %v1469_v47 = vsel %vm1468_vm3, %v1467_v41, 0  ;;  %v2629_v48 = vpop.eup %2628 }
 0x17a   : > { %v1453_v55 = vxor.u32 2147483648, %v2627_v28  ;;  %v1156_v57 = vadd.s32 %v1155_v18, %v1151_v22  ;;  %v1471_v0 = vand.u32 31, %v1469_v47  ;;  %vm1448_vm4 = vcmp.lt.s32.totalorder %v3895_v6, 2 }
 0x17b   : > { %v1450_v23 = vxor.u32 2147483648, %v2629_v48  ;;  %v1067_v51 = vor.u32 %v1066_v7, %v1065_v4  ;;  %v1070_v62 = vshll.u32 %v1069_v17, 23  ;;  %v1672_v43 = vsel %vm3948_vm8, 0.0, %v1665_v16 }
 0x17c   : > { %v1454_v58 = vsel %vm1452_vm1, %v1453_v55, %v2629_v48  ;;  %v1157_v56 = vadd.s32 536870912, %v1156_v57  ;;  %v1472_v46 = vsub.s32 32, %v1471_v0  ;;  %v3996_v10 = vadd.s32 3, %v1081_v26 }
 0x17d   : > { %v1451_v25 = vsel %vm1449_vm15, %v2627_v28, %v1450_v23  ;;  %v1071_v54 = vor.u32 4788187, %v1070_v62  ;;  %v1074_v59 = vcvt.s32.f32 %v1067_v51  ;;  %v1465_v12 = vor.u32 8388608, %v1464_v35 }
 0x17e   : > { %v1455_v63 = vsel %vm1448_vm4, %v1451_v25, %v1454_v58  ;;  %v1158_v8 = vshrl.u32 %v1157_v56, 30  ;;  %v1564_v31 = vand.u32 2139095040, %v3988_v20  ;;  %vm1098_vm5 = vcmp.lt.s32.totalorder %v3801_v9, 0 }
 0x17f   : > { %v1456_v32 = vsel %vm1445_vm9, nan, %v1455_v63  ;;  %v1072_v3 = vand.u32 2147483647, %v1071_v54  ;;  %v4002_v19 = vshrl.u32 %v1469_v47, 5  ;;  %v1474_v6 = vshll.u32 %v2915_v34, %v1471_v0 }
 0x180   : > { %v1666_v27 = vadd.f32 %v1456_v32, %v3671_v33  ;;  %v1159_v24 = vshll.u32 %v1158_v8, 30  ;;  %v1475_v49 = vshrl.u32 %v2916_v36, %v1472_v46  ;;  %v1477_v5 = vshll.u32 %v2916_v36, %v1471_v0 }
 0x181   : > { %v1075_v2 = vmul.f32 %v1074_v59, %v1072_v3  ;;  %v1478_v39 = vshrl.u32 %v2917_v38, %v1472_v46  ;;  %v1480_v22 = vshll.u32 %v2917_v38, %v1471_v0  ;;  %v1483_v41 = vshll.u32 %v2918_v40, %v1471_v0 }
 0x182   : > { %v1673_v14 = vsel %vm3948_vm8, 0.0, %v1666_v27  ;;  %v4013_v4 = vsub.s32 %v1156_v57, %v1159_v24  ;;  %v1481_v52 = vshrl.u32 %v2918_v40, %v1472_v46  ;;  %v1484_v33 = vshrl.u32 %v2919_v42, %v1472_v46 }
 0x183   : > { %v2574_v15 = vpack.i.bf16 %v1673_v14, %v1672_v43  ;;  %v1076_v16 = vxor.u32 2147483648, %v1075_v2  ;;  %v1152_v26 = vadd.s32 %v3958_v13, %v3966_v45  ;;  %v1473_v28 = vshrl.u32 %v2915_v34, %v1472_v46 }
 0x184   : > { %v1162_v7 = vsub.s32 0, %v4013_v4  ;;  %v1182_v17 = vsub.s32 4, %v1158_v8  ;;  %v1476_v18 = vor.u32 %v1475_v49, %v1474_v6  ;;  %v1486_v47 = vshll.u32 %v2919_v42, %v1471_v0 }
 0x185   : > { %2575 = vperm.xlu1 %2573, %v2574_v15   ;;  %v1077_v48 = vsel %vm994_vm6, %v1076_v16, %v1075_v2  ;;  %v1479_v55 = vor.u32 %v1478_v39, %v1477_v5  ;;  %v1485_v57 = vor.u32 %v1484_v33, %v1483_v41  ;;  %v1487_v35 = vshrl.u32 %v2920_v50, %v1472_v46 }
 0x186   : > { %v1080_v13 = vsel %vm3934_vm14, %v3724_v60, %v1077_v48  ;;  %vm4030_vm7 = vcmp.le.f32.partialorder %v1096_v53, 0.7853982  ;;  %v2204_v0 = vmin.u32 %v1162_v7, %v4013_v4  ;;  %v1482_v23 = vor.u32 %v1481_v52, %v1480_v22 }
 0x187   : > { %vm1489_vm10 = vcmp.lt.s32.totalorder %v4002_v19, 1  ;;  %2630 = vcosq.f32 %v1080_v13  ;;  %v1488_v51 = vor.u32 %v1487_v35, %v1486_v47  ;;  %vm1491_vm6 = vcmp.lt.s32.totalorder %v4002_v19, 3 }
 0x188   : > { %vm1492_vm11 = vcmp.lt.s32.totalorder %v4002_v19, 4  ;;  %v1164_v62 = vclz %v2204_v0  ;;  %v1183_v37 = vsel %vm1098_vm5, %v1182_v17, %v1158_v8  ;;  %vm1490_vm12 = vcmp.lt.s32.totalorder %v4002_v19, 2 }
 0x189   : > { %v1505_v53 = vshll.u32 %v1465_v12, 8  ;;  %2632 = vsinq.f32 %v1080_v13  ;;  %v1494_v58 = vsel %vm1492_vm11, %v1482_v23, 2102212464  ;;  %v1497_v43 = vsel %vm1489_vm10, %v1476_v18, %v1479_v55 }
 0x18a   : > { %v1498_v56 = vsel %vm1492_vm11, %v1485_v57, 920167782  ;;  %v2205_v46 = vadd.s32 4294967294, %v1164_v62  ;;  %v1493_v25 = vsel %vm1489_vm10, %v1473_v28, %v1476_v18  ;;  %v1501_v59 = vsel %vm1489_vm10, %v1479_v55, %v1482_v23 }
 0x18b   : > { %v1499_v54 = vsel %vm1491_vm6, %v1482_v23, %v1498_v56  ;;  %v1495_v63 = vsel %vm1491_vm6, %v1479_v55, %v1494_v58  ;;  %v1502_v12 = vsel %vm1492_vm11, %v1488_v51, 1326507024  ;;  %v1565_v32 = vshrl.u32 %v1564_v31, 23 }
 0x18c   : > { %v1500_v8 = vsel %vm1490_vm12, %v1497_v43, %v1499_v54  ;;  %vm2206_vm14 = vcmp.lt.s32.totalorder %v2205_v46, 0  ;;  %v1503_v3 = vsel %vm1491_vm6, %v1485_v57, %v1502_v12  ;;  %v1561_v5 = vand.u32 2147483647, %v3988_v20 }
 0x18d   : > { %v4055_v6 = vmul.u32.u64.low %v1505_v53, %v1500_v8  ;;  %v4056_v27 = vmul.u32.u64.high %v1505_v53, %v1500_v8, %v4055_v6  ;;  %v1167_v24 = vsel %vm2206_vm14, 0, %v2205_v46  ;;  %v1504_v49 = vsel %vm1490_vm12, %v1501_v59, %v1503_v3 }
 0x18e   : > { %v2219_v2 = vadd.s32 4294967169, %v1565_v32  ;;  %v1168_v39 = vsub.s32 32, %v1167_v24  ;;  %v1169_v22 = vshll.u32 %v4013_v4, %v1167_v24  ;;  %v1172_v41 = vsub.s32 4294967266, %v1167_v24 }
 0x18f   : > { %v1496_v31 = vsel %vm1490_vm12, %v1493_v25, %v1495_v63  ;;  %v1185_v14 = vsel %vm4030_vm7, 0, %v1183_v37  ;;  %v4067_v52 = vmul.u32.u64.low %v1505_v53, %v1504_v49  ;;  %v4068_v33 = vmul.u32.u64.high %v1505_v53, %v1504_v49, %v4067_v52 }
 0x190   : > { %v1571_v15 = vadd.s32 1, %v2219_v2  ;;  %v1170_v16 = vshrl.u32 %v1152_v26, %v1168_v39  ;;  %v1173_v28 = vadd.s32 127, %v1172_v41  ;;  %v1515_v7 = vadd.s32 1, %v4056_v27 }
 0x191   : > { %v2631_v17 = vpop.eup %2630  ;;  %v4072_v18 = vand.u32 3, %v3996_v10  ;;  %v1512_v4 = vmul.u32 %v1505_v53, %v1496_v31  ;;  %v1189_v48 = vadd.s32 3, %v1185_v14  ;;  %vm1514_vm15 = vc.u32 %v4068_v33, %v4055_v6 }
 0x192   : > { %vm1572_vm9 = vcmp.gt.s32.totalorder %v1571_v15, 0  ;;  %v1171_v47 = vor.u32 %v1170_v16, %v1169_v22  ;;  %v1174_v19 = vshll.u32 %v1173_v28, 23  ;;  %v4078_v26 = vand.u32 8388607, %v1561_v5 }
 0x193   : > { %v1573_v55 = vsel %vm1572_vm9, %v1571_v15, 0  ;;  %v2633_v57 = vpop.eup %2632  ;;  %v1092_v35 = vxor.u32 2147483648, %v2631_v17  ;;  %v1516_v10 = vsel %vm1514_vm15, %v1515_v7, %v4056_v27  ;;  %vm1091_vm0 = vcmp.eq.s32.totalorder %v4072_v18, 2  ;;  %v4109_v15 = vld [vmem:[%s3293_s9 + $0x10] sm:$0xff] }
 0x194   : > { %v1175_v13 = vor.u32 4788187, %v1174_v19  ;;  %v1178_v0 = vcvt.s32.f32 %v1171_v47  ;;  %v1517_v23 = vadd.s32 %v1516_v10, %v1512_v4  ;;  %v1575_v51 = vand.u32 31, %v1573_v55 }
 0x195   : > { %vm1087_vm1 = vcmp.lt.s32.totalorder %v4072_v18, 2  ;;  %vm1088_vm2 = vcmp.eq.s32.totalorder %v4072_v18, 0  ;;  %v1089_v62 = vxor.u32 2147483648, %v2633_v57  ;;  %v4084_v53 = vand.u32 3, %v1189_v48 }
 0x196   : > { %v1176_v37 = vand.u32 2147483647, %v1175_v13  ;;  %v1518_v58 = vadd.s32 536870912, %v1517_v23  ;;  %v4086_v43 = vshrl.u32 %v1573_v55, 5  ;;  %v1576_v56 = vsub.s32 32, %v1575_v51 }
 0x197   : > { %v1578_v46 = vshll.u32 %v2915_v34, %v1575_v51  ;;  %v1093_v25 = vsel %vm1091_vm0, %v1092_v35, %v2633_v57  ;;  %v1569_v59 = vor.u32 8388608, %v4078_v26  ;;  %v1581_v63 = vshll.u32 %v2916_v36, %v1575_v51 }
 0x198   : > { %v1179_v54 = vmul.f32 %v1178_v0, %v1176_v37  ;;  %vm1084_vm3 = vweird.f32 %v3724_v60  ;;  %v4092_v8 = vshrl.u32 %v1518_v58, 30  ;;  %v1579_v12 = vshrl.u32 %v2916_v36, %v1576_v56 }
 0x199   : > { %v1582_v32 = vshrl.u32 %v2917_v38, %v1576_v56  ;;  %v1584_v3 = vshll.u32 %v2917_v38, %v1575_v51  ;;  %v1090_v27 = vsel %vm1088_vm2, %v2631_v17, %v1089_v62  ;;  %v1585_v49 = vshrl.u32 %v2918_v40, %v1576_v56 }
 0x19a   : > { %v1180_v24 = vxor.u32 2147483648, %v1179_v54  ;;  %v1587_v2 = vshll.u32 %v2918_v40, %v1575_v51  ;;  %v1520_v39 = vshll.u32 %v4092_v8, 30  ;;  %v1580_v22 = vor.u32 %v1579_v12, %v1578_v46 }
 0x19b   : > { %vm1593_vm4 = vcmp.lt.s32.totalorder %v4086_v43, 1  ;;  %vm1595_vm10 = vcmp.lt.s32.totalorder %v4086_v43, 3  ;;  %v1583_v31 = vor.u32 %v1582_v32, %v1581_v63  ;;  %v1588_v14 = vshrl.u32 %v2919_v42, %v1576_v56 }
 0x19c   : > { %v1181_v41 = vsel %vm1098_vm5, %v1180_v24, %v1179_v54  ;;  %v1590_v52 = vshll.u32 %v2919_v42, %v1575_v51  ;;  %v4114_v28 = vsub.s32 %v1517_v23, %v1520_v39  ;;  %v1586_v7 = vor.u32 %v1585_v49, %v1584_v3 }
 0x19d   : > { %v1184_v16 = vsel %vm4030_vm7, %v3801_v9, %v1181_v41  ;;  %v1591_v17 = vshrl.u32 %v2920_v50, %v1576_v56  ;;  %v1577_v4 = vshrl.u32 %v2915_v34, %v1576_v56  ;;  %v1589_v47 = vor.u32 %v1588_v14, %v1587_v2 }
 0x19e   : > { %2634 = vcosq.f32 %v1184_v16  ;;  %vm1596_vm5 = vcmp.lt.s32.totalorder %v4086_v43, 4  ;;  %v1523_v19 = vsub.s32 0, %v4114_v28  ;;  %v568_v55 = vand.u32 2139095040, %v4109_v15 }
 0x19f   : > { %2636 = vsinq.f32 %v1184_v16  ;;  %v1592_v48 = vor.u32 %v1591_v17, %v1590_v52  ;;  %vm1594_vm6 = vcmp.lt.s32.totalorder %v4086_v43, 2  ;;  %v1598_v45 = vsel %vm1596_vm5, %v1586_v7, 2102212464 }
 0x1a0   : > { %v1601_v57 = vsel %vm1593_vm4, %v1580_v22, %v1583_v31  ;;  %v1602_v26 = vsel %vm1596_vm5, %v1589_v47, 920167782  ;;  %v1094_v35 = vsel %vm1087_vm1, %v1090_v27, %v1093_v25  ;;  %vm1459_vm7 = vcmp.lt.s32.totalorder %v3906_v30, 0 }
 0x1a1   : > { %v2216_v13 = vmin.u32 %v1523_v19, %v4114_v28  ;;  %v1603_v0 = vsel %vm1595_vm10, %v1586_v7, %v1602_v26  ;;  %v1597_v10 = vsel %vm1593_vm4, %v1577_v4, %v1580_v22  ;;  %v1599_v23 = vsel %vm1595_vm10, %v1583_v31, %v1598_v45 }
 0x1a2   : > { %v1605_v51 = vsel %vm1593_vm4, %v1583_v31, %v1586_v7  ;;  %v1606_v18 = vsel %vm1596_vm5, %v1592_v48, 1326507024  ;;  %vm1188_vm11 = vweird.f32 %v3801_v9  ;;  %vm1191_vm12 = vcmp.lt.s32.totalorder %v4084_v53, 2  ;;  %v4182_v48 = vld [vmem:[%s3293_s9 + $0x18] sm:$0xff] }
 0x1a3   : > { %vm1192_vm14 = vcmp.eq.s32.totalorder %v4084_v53, 0  ;;  %v1525_v62 = vclz %v2216_v13  ;;  %v1604_v37 = vsel %vm1594_vm6, %v1601_v57, %v1603_v0  ;;  %v1095_v58 = vsel %vm1084_vm3, nan, %v1094_v35 }
 0x1a4   : > { %v1607_v56 = vsel %vm1595_vm10, %v1589_v47, %v1606_v18  ;;  %v1609_v46 = vshll.u32 %v1569_v59, 8  ;;  %v569_v25 = vshrl.u32 %v568_v55, 23  ;;  %vm4153_vm9 = vcmp.le.f32.partialorder %v1457_v61, 0.7853982 }
 0x1a5   : > { %v2217_v63 = vadd.s32 4294967294, %v1525_v62  ;;  %v1543_v12 = vsub.s32 4, %v4092_v8  ;;  %v1600_v32 = vsel %vm1594_vm6, %v1597_v10, %v1599_v23  ;;  %v1608_v3 = vsel %vm1594_vm6, %v1605_v51, %v1607_v56 }
 0x1a6   : > { %v4162_v27 = vmul.u32.u64.low %v1609_v46, %v1608_v3  ;;  %v4163_v24 = vmul.u32.u64.high %v1609_v46, %v1608_v3, %v4162_v27  ;;  %v4165_v59 = vmul.u32.u64.low %v1609_v46, %v1604_v37  ;;  %v4166_v49 = vmul.u32.u64.high %v1609_v46, %v1604_v37, %v4165_v59 }
 0x1a7   : > { %vm1195_vm15 = vcmp.eq.s32.totalorder %v4084_v53, 2  ;;  %v1513_v61 = vadd.s32 %v4055_v6, %v4068_v33  ;;  %vm2218_vm0 = vcmp.lt.s32.totalorder %v2217_v63, 0  ;;  %v2183_v2 = vadd.s32 4294967169, %v569_v25 }
 0x1a8   : > { %v2635_v39 = vpop.eup %2634  ;;  %v1202_v22 = vadd.f32 %v1095_v58, %v3724_v60  ;;  %v1528_v41 = vsel %vm2218_vm0, 0, %v2217_v63  ;;  %v1616_v43 = vmul.u32 %v1609_v46, %v1600_v32  ;;  %v565_v31 = vand.u32 2147483647, %v4109_v15 }
 0x1a9   : > { %v2637_v14 = vpop.eup %2636  ;;  %v1196_v52 = vxor.u32 2147483648, %v2635_v39  ;;  %v1529_v16 = vsub.s32 32, %v1528_v41  ;;  %v1530_v7 = vshll.u32 %v4114_v28, %v1528_v41  ;;  %v1533_v17 = vsub.s32 4294967266, %v1528_v41 }
 0x1aa   : > { %v1193_v4 = vxor.u32 2147483648, %v2637_v14  ;;  %v1544_v6 = vsel %vm1459_vm7, %v1543_v12, %v4092_v8  ;;  %vm1618_vm1 = vc.u32 %v4163_v24, %v4165_v59  ;;  %v1619_v60 = vadd.s32 1, %v4166_v49 }
 0x1ab   : > { %v1197_v33 = vsel %vm1195_vm15, %v1196_v52, %v2637_v14  ;;  %v1531_v47 = vshrl.u32 %v1513_v61, %v1529_v16  ;;  %v1534_v19 = vadd.s32 127, %v1533_v17  ;;  %v575_v55 = vadd.s32 1, %v2183_v2 }
 0x1ac   : > { %v1194_v28 = vsel %vm1192_vm14, %v2635_v39, %v1193_v4  ;;  %v1209_v45 = vsel %vm3761_vm13, 0.0, %v1202_v22  ;;  %v1620_v8 = vsel %vm1618_vm1, %v1619_v60, %v4166_v49  ;;  %v572_v57 = vand.u32 8388607, %v565_v31 }
 0x1ad   : > { %v1198_v26 = vsel %vm1191_vm12, %v1194_v28, %v1197_v33  ;;  %v1532_v35 = vor.u32 %v1531_v47, %v1530_v7  ;;  %v1535_v13 = vshll.u32 %v1534_v19, 23  ;;  %v1621_v0 = vadd.s32 %v1620_v8, %v1616_v43 }
 0x1ae   : > { %v1199_v10 = vsel %vm1188_vm11, nan, %v1198_v26  ;;  %v1546_v23 = vsel %vm4153_vm9, 0, %v1544_v6  ;;  %vm576_vm2 = vcmp.gt.s32.totalorder %v575_v55, 0  ;;  %v672_v51 = vand.u32 2139095040, %v4182_v48 }
 0x1af   : > { %v1203_v18 = vadd.f32 %v1199_v10, %v3801_v9  ;;  %v1536_v62 = vor.u32 4788187, %v1535_v13  ;;  %v1539_v37 = vcvt.s32.f32 %v1532_v35  ;;  %v1622_v58 = vadd.s32 536870912, %v1621_v0 }
 0x1b0   : > { %v573_v56 = vor.u32 8388608, %v572_v57  ;;  %v577_v53 = vsel %vm576_vm2, %v575_v55, 0  ;;  %v4203_v32 = vadd.s32 3, %v1546_v23  ;;  %v669_v9 = vand.u32 2147483647, %v4182_v48 }
 0x1b1   : > { %v1210_v46 = vsel %vm3761_vm13, 0.0, %v1203_v18  ;;  %v1537_v25 = vand.u32 2147483647, %v1536_v62  ;;  %v4201_v63 = vshrl.u32 %v1622_v58, 30  ;;  %v579_v3 = vand.u32 31, %v577_v53 }
 0x1b2   : > { %v2563_v12 = vpack.i.bf16 %v1210_v46, %v1209_v45  ;;  %v673_v61 = vshrl.u32 %v672_v51, 23  ;;  %v1617_v2 = vadd.s32 %v4165_v59, %v4163_v24  ;;  %v578_v39 = vshrl.u32 %v577_v53, 5 }
 0x1b3   : > { %v1540_v27 = vmul.f32 %v1539_v37, %v1537_v25  ;;  %v1624_v49 = vshll.u32 %v4201_v63, 30  ;;  %v580_v22 = vsub.s32 32, %v579_v3  ;;  %v4208_v29 = vshll.u32 %v573_v56, 8 }
 0x1b4   : > { %2564 = vperm.xlu0 %2557, %v2563_v12   ;;  %v582_v14 = vshll.u32 %v2915_v34, %v579_v3  ;;  %v585_v52 = vshll.u32 %v2916_v36, %v579_v3  ;;  %v588_v17 = vshll.u32 %v2917_v38, %v579_v3  ;;  %v591_v4 = vshll.u32 %v2918_v40, %v579_v3 }
 0x1b5   : > { %v1541_v41 = vxor.u32 2147483648, %v1540_v27  ;;  %v4210_v43 = vsub.s32 %v1621_v0, %v1624_v49  ;;  %v583_v16 = vshrl.u32 %v2916_v36, %v580_v22  ;;  %v586_v7 = vshrl.u32 %v2917_v38, %v580_v22 }
 0x1b6   : > { %v589_v6 = vshrl.u32 %v2918_v40, %v580_v22  ;;  %v2187_v60 = vadd.s32 4294967169, %v673_v61  ;;  %v592_v47 = vshrl.u32 %v2919_v42, %v580_v22  ;;  %vm597_vm13 = vcmp.lt.s32.totalorder %v578_v39, 1 }
 0x1b7   : > { %v1542_v24 = vsel %vm1459_vm7, %v1541_v41, %v1540_v27  ;;  %v1627_v59 = vsub.s32 0, %v4210_v43  ;;  %v4228_v19 = vand.u32 8388607, %v669_v9  ;;  %v581_v28 = vshrl.u32 %v2915_v34, %v580_v22 }
 0x1b8   : > { %v1545_v33 = vsel %vm4153_vm9, %v3906_v30, %v1542_v24  ;;  %2594 = vset.pattern.permute.xlu0 %v2921_v11  ;;  %v584_v45 = vor.u32 %v583_v16, %v582_v14  ;;  %v587_v8 = vor.u32 %v586_v7, %v585_v52  ;;  %v590_v57 = vor.u32 %v589_v6, %v588_v17 }
 0x1b9   : > { %v2220_v55 = vmin.u32 %v1627_v59, %v4210_v43  ;;  %v593_v26 = vor.u32 %v592_v47, %v591_v4  ;;  %v594_v54 = vshll.u32 %v2919_v42, %v579_v3  ;;  %v595_v35 = vshrl.u32 %v2920_v50, %v580_v22 }
 0x1ba   : > { %2638 = vcosq.f32 %v1545_v33  ;;  %v1647_v0 = vsub.s32 4, %v4201_v63  ;;  %v679_v10 = vadd.s32 1, %v2187_v60  ;;  %vm598_vm3 = vcmp.lt.s32.totalorder %v578_v39, 2 }
 0x1bb   : > { %v1629_v13 = vclz %v2220_v55  ;;  %v596_v23 = vor.u32 %v595_v35, %v594_v54  ;;  %vm599_vm4 = vcmp.lt.s32.totalorder %v578_v39, 3  ;;  %vm600_vm10 = vcmp.lt.s32.totalorder %v578_v39, 4 }
 0x1bc   : > { %v601_v51 = vsel %vm597_vm13, %v581_v28, %v584_v45  ;;  %v602_v18 = vsel %vm600_vm10, %v590_v57, 2102212464  ;;  %v605_v62 = vsel %vm597_vm13, %v584_v45, %v587_v8  ;;  %v606_v58 = vsel %vm600_vm10, %v593_v26, 920167782 }
 0x1bd   : > { %v2221_v11 = vadd.s32 4294967294, %v1629_v13  ;;  %v603_v37 = vsel %vm599_vm4, %v587_v8, %v602_v18  ;;  %v609_v56 = vsel %vm597_vm13, %v587_v8, %v590_v57  ;;  %v610_v53 = vsel %vm600_vm10, %v596_v23, 1326507024 }
 0x1be   : > { %2640 = vsinq.f32 %v1545_v33  ;;  %v607_v46 = vsel %vm599_vm4, %v590_v57, %v606_v58  ;;  %v611_v25 = vsel %vm599_vm4, %v593_v26, %v610_v53  ;;  %v604_v3 = vsel %vm598_vm3, %v601_v51, %v603_v37 }
 0x1bf   : > { %vm2222_vm5 = vcmp.lt.s32.totalorder %v2221_v11, 0  ;;  %v608_v27 = vsel %vm598_vm3, %v605_v62, %v607_v46  ;;  %v612_v49 = vsel %vm598_vm3, %v609_v56, %v611_v25  ;;  %vm680_vm6 = vcmp.gt.s32.totalorder %v679_v10, 0 }
 0x1c0   : > { %v1632_v12 = vsel %vm2222_vm5, 0, %v2221_v11  ;;  %v4244_v14 = vmul.u32.u64.low %v4208_v29, %v612_v49  ;;  %v4245_v52 = vmul.u32.u64.high %v4208_v29, %v612_v49, %v4244_v14  ;;  %v681_v24 = vsel %vm680_vm6, %v679_v10, 0 }
 0x1c1   : > { %v1633_v61 = vsub.s32 32, %v1632_v12  ;;  %v1634_v22 = vshll.u32 %v4210_v43, %v1632_v12  ;;  %v1637_v41 = vsub.s32 4294967266, %v1632_v12  ;;  %v4253_v39 = vand.u32 3, %v4203_v32 }
 0x1c2   : > { %v4248_v16 = vmul.u32.u64.low %v4208_v29, %v608_v27  ;;  %v4249_v7 = vmul.u32.u64.high %v4208_v29, %v608_v27, %v4248_v16  ;;  %vm1563_vm7 = vcmp.lt.s32.totalorder %v3988_v20, 0  ;;  %v677_v43 = vor.u32 8388608, %v4228_v19 }
 0x1c3   : > { %v1635_v17 = vshrl.u32 %v1617_v2, %v1633_v61  ;;  %v1638_v4 = vadd.s32 127, %v1637_v41  ;;  %v683_v59 = vand.u32 31, %v681_v24  ;;  %v1648_v47 = vsel %vm1563_vm7, %v1647_v0, %v4201_v63 }
 0x1c4   : > { %v2639_v6 = vpop.eup %2638  ;;  %v620_v55 = vmul.u32 %v4208_v29, %v604_v3  ;;  %vm622_vm11 = vc.u32 %v4245_v52, %v4248_v16  ;;  %v623_v32 = vadd.s32 1, %v4249_v7  ;;  %vm4266_vm12 = vcmp.le.f32.partialorder %v1561_v5, 0.7853982 }
 0x1c5   : > { %v1636_v60 = vor.u32 %v1635_v17, %v1634_v22  ;;  %v1639_v33 = vshll.u32 %v1638_v4, 23  ;;  %v684_v45 = vsub.s32 32, %v683_v59  ;;  %vm1553_vm14 = vcmp.eq.s32.totalorder %v4253_v39, 0 }
 0x1c6   : > { %vm1556_vm9 = vcmp.eq.s32.totalorder %v4253_v39, 2  ;;  %v1650_v63 = vsel %vm4266_vm12, 0, %v1648_v47  ;;  %v624_v29 = vsel %vm622_vm11, %v623_v32, %v4249_v7  ;;  %v4275_v8 = vshll.u32 %v677_v43, 8 }
 0x1c7   : > { %v1640_v19 = vor.u32 4788187, %v1639_v33  ;;  %v1643_v28 = vcvt.s32.f32 %v1636_v60  ;;  %v625_v5 = vadd.s32 %v624_v29, %v620_v55  ;;  %v4277_v54 = vshrl.u32 %v681_v24, 5  ;;  %v2554_v29 = vpop.permute.xlu1 %2553 }
 0x1c8   : > { %v2641_v57 = vpop.eup %2640  ;;  %v686_v35 = vshll.u32 %v2915_v34, %v683_v59  ;;  %v687_v13 = vshrl.u32 %v2916_v36, %v684_v45  ;;  %v689_v0 = vshll.u32 %v2916_v36, %v683_v59  ;;  %v690_v10 = vshrl.u32 %v2917_v38, %v684_v45 }
 0x1c9   : > { %v1641_v26 = vand.u32 2147483647, %v1640_v19  ;;  %v692_v23 = vshll.u32 %v2917_v38, %v683_v59  ;;  %v626_v51 = vadd.s32 536870912, %v625_v5  ;;  %v693_v18 = vshrl.u32 %v2918_v40, %v684_v45 }
 0x1ca   : > { %v695_v62 = vshll.u32 %v2918_v40, %v683_v59  ;;  %vm1552_vm15 = vcmp.lt.s32.totalorder %v4253_v39, 2  ;;  %v1554_v37 = vxor.u32 2147483648, %v2641_v57  ;;  %v1557_v58 = vxor.u32 2147483648, %v2639_v6 }
 0x1cb   : > { %v1644_v11 = vmul.f32 %v1643_v28, %v1641_v26  ;;  %v1654_v56 = vadd.s32 3, %v1650_v63  ;;  %v696_v53 = vshrl.u32 %v2919_v42, %v684_v45  ;;  %v4288_v25 = vshrl.u32 %v626_v51, 30 }
 0x1cc   : > { %v685_v36 = vshrl.u32 %v2915_v34, %v684_v45  ;;  %v698_v38 = vshll.u32 %v2919_v42, %v683_v59  ;;  %v688_v12 = vor.u32 %v687_v13, %v686_v35  ;;  %v691_v3 = vor.u32 %v690_v10, %v689_v0 }
 0x1cd   : > { %v1645_v46 = vxor.u32 2147483648, %v1644_v11  ;;  %v694_v27 = vor.u32 %v693_v18, %v692_v23  ;;  %v699_v49 = vshrl.u32 %v2920_v50, %v684_v45  ;;  %vm1549_vm0 = vweird.f32 %v3906_v30 }
 0x1ce   : > { %v628_v61 = vshll.u32 %v4288_v25, 30  ;;  %v697_v22 = vor.u32 %v696_v53, %v695_v62  ;;  %vm701_vm1 = vcmp.lt.s32.totalorder %v4277_v54, 1  ;;  %v4301_v42 = vand.u32 3, %v1654_v56 }
 0x1cf   : > { %v1646_v40 = vsel %vm1563_vm7, %v1645_v46, %v1644_v11  ;;  %v700_v41 = vor.u32 %v699_v49, %v698_v38  ;;  %vm704_vm2 = vcmp.lt.s32.totalorder %v4277_v54, 4  ;;  %vm703_vm13 = vcmp.lt.s32.totalorder %v4277_v54, 3 }
 0x1d0   : > { %v1649_v34 = vsel %vm4266_vm12, %v3988_v20, %v1646_v40  ;;  %v4304_v50 = vsub.s32 %v625_v5, %v628_v61  ;;  %v706_v14 = vsel %vm704_vm2, %v694_v27, 2102212464  ;;  %v1558_v7 = vsel %vm1556_vm9, %v1557_v58, %v2641_v57 }
 0x1d1   : > { %2642 = vcosq.f32 %v1649_v34  ;;  %vm702_vm3 = vcmp.lt.s32.totalorder %v4277_v54, 2  ;;  %v709_v17 = vsel %vm701_vm1, %v688_v12, %v691_v3  ;;  %v1555_v4 = vsel %vm1553_vm14, %v2639_v6, %v1554_v37  ;;  %v2560_v19 = vpop.permute.xlu0 %2559 }
 0x1d2   : > { %2644 = vsinq.f32 %v1649_v34  ;;  %v631_v24 = vsub.s32 0, %v4304_v50  ;;  %v705_v43 = vsel %vm701_vm1, %v685_v36, %v688_v12  ;;  %v710_v59 = vsel %vm704_vm2, %v697_v22, 920167782 }
 0x1d3   : > { %v707_v60 = vsel %vm703_vm13, %v691_v3, %v706_v14  ;;  %v711_v33 = vsel %vm703_vm13, %v694_v27, %v710_v59  ;;  %v713_v47 = vsel %vm701_vm1, %v691_v3, %v694_v27  ;;  %v714_v6 = vsel %vm704_vm2, %v700_v41, 1326507024 }
 0x1d4   : > { %vm1656_vm4 = vcmp.lt.s32.totalorder %v4301_v42, 2  ;;  %v2184_v55 = vmin.u32 %v631_v24, %v4304_v50  ;;  %v712_v32 = vsel %vm702_vm3, %v709_v17, %v711_v33  ;;  %v715_v2 = vsel %vm703_vm13, %v697_v22, %v714_v6 }
 0x1d5   : > { %vm1653_vm10 = vweird.f32 %v3988_v20  ;;  %v716_v28 = vsel %vm702_vm3, %v713_v47, %v715_v2  ;;  %v4339_v45 = vmul.u32.u64.low %v4275_v8, %v712_v32  ;;  %v4340_v63 = vmul.u32.u64.high %v4275_v8, %v712_v32, %v4339_v45 }
 0x1d6   : > { %v777_v57 = vlaneseq  ;;  %v1559_v26 = vsel %vm1552_vm15, %v1555_v4, %v1558_v7  ;;  %vm1660_vm5 = vcmp.eq.s32.totalorder %v4301_v42, 2  ;;  %v633_v5 = vclz %v2184_v55 }
 0x1d7   : > { %v708_v35 = vsel %vm702_vm3, %v705_v43, %v707_v60  ;;  %v4349_v13 = vmul.u32.u64.low %v4275_v8, %v716_v28  ;;  %v4350_v0 = vmul.u32.u64.high %v4275_v8, %v716_v28, %v4349_v13  ;;  %v2562_v23 = vunpack.i.h.bf16 %v2560_v19 }
 0x1d8   : > { %v4352_v10 = vand.u32 127, %v777_v57  ;;  %v2185_v11 = vadd.s32 4294967294, %v633_v5  ;;  %v2556_v51 = vunpack.i.h.bf16 %v2554_v29  ;;  %v2555_v18 = vunpack.i.l.bf16 %v2554_v29 }
 0x1d9   : > { %v2561_v62 = vunpack.i.l.bf16 %v2560_v19  ;;  %v1560_v39 = vsel %vm1549_vm0, nan, %v1559_v26  ;;  %v621_v37 = vadd.s32 %v4248_v16, %v4245_v52  ;;  %v727_v54 = vadd.s32 1, %v4340_v63 }
 0x1da   : > { %vm1211_vm6 = vcmp.eq.s32.totalorder %v4352_v10, 127  ;;  %vm2186_vm7 = vcmp.lt.s32.totalorder %v2185_v11, 0  ;;  %v724_v56 = vmul.u32 %v4275_v8, %v708_v35  ;;  %vm1657_vm11 = vcmp.eq.s32.totalorder %v4301_v42, 0 }
 0x1db   : > { %v2643_v58 = vpop.eup %2642  ;;  %v1240_v53 = vsel %vm1211_vm6, %v2561_v62, %v2555_v18  ;;  %v1241_v46 = vsel %vm1211_vm6, %v2562_v23, %v2556_v51  ;;  %v636_v12 = vsel %vm2186_vm7, 0, %v2185_v11  ;;  %vm726_vm12 = vc.u32 %v4350_v0, %v4339_v45 }
 0x1dc   : > { %v2645_v36 = vpop.eup %2644  ;;  %v1661_v38 = vxor.u32 2147483648, %v2643_v58  ;;  %v637_v16 = vsub.s32 32, %v636_v12  ;;  %v638_v3 = vshll.u32 %v4304_v50, %v636_v12  ;;  %v641_v27 = vsub.s32 4294967266, %v636_v12 }
 0x1dd   : > { %v1658_v52 = vxor.u32 2147483648, %v2645_v36  ;;  %v1667_v49 = vadd.f32 %v1560_v39, %v3906_v30  ;;  %v728_v40 = vsel %vm726_vm12, %v727_v54, %v4340_v63  ;;  %v2280_v61 = vpack.c.bf16 %v1241_v46, %v1240_v53 }
 0x1de   : > { %v1662_v8 = vsel %vm1660_vm5, %v1661_v38, %v2645_v36  ;;  %v639_v34 = vshrl.u32 %v621_v37, %v637_v16  ;;  %v642_v41 = vadd.s32 127, %v641_v27  ;;  %v729_v14 = vadd.s32 %v728_v40, %v724_v56 }
 0x1df   : > { %v1659_v22 = vsel %vm1657_vm11, %v2643_v58, %v1658_v52  ;;  %2298 = vst [vmem:[#allocation2 + $0x10] sm:$0xff] %v2280_v61   ;;  %v1674_v30 = vsel %vm3948_vm8, 0.0, %v1667_v49  ;;  %vm567_vm14 = vcmp.lt.s32.totalorder %v4109_v15, 0  ;;  %vm4385_vm9 = vcmp.le.f32.partialorder %v565_v31, 0.7853982  ;;  %v2596_v61 = vld [vmem:[#allocation2] sm:$0xff]  }
 0x1e0   : > { %v1663_v7 = vsel %vm1656_vm4, %v1659_v22, %v1662_v8  ;;  %v640_v17 = vor.u32 %v639_v34, %v638_v3  ;;  %v643_v4 = vshll.u32 %v642_v41, 23  ;;  %v730_v24 = vadd.s32 536870912, %v729_v14  ;;  %2313 = vmatprep.subr.bf16.mxu0 %v2596_v61  ;;  %2335 = vmatprep.subr.bf16.mxu1 %v2596_v61 }
 0x1e1   : > { %v1664_v50 = vsel %vm1653_vm10, nan, %v1663_v7  ;;  %v725_v26 = vadd.s32 %v4339_v45, %v4350_v0  ;;  %v651_v11 = vsub.s32 4, %v4288_v25  ;;  %vm671_vm15 = vcmp.lt.s32.totalorder %v4182_v48, 0  ;;  %2314 = vmatpush3.bf16.msra.mxu0 %v2596_v61  ;;  %2342 = vmatpush3.bf16.msra.mxu1 %v2596_v61 }
 0x1e2   : > { %v1668_v43 = vadd.f32 %v1664_v50, %v3988_v20  ;;  %v644_v59 = vor.u32 4788187, %v643_v4  ;;  %v731_v60 = vshrl.u32 %v730_v24, 30  ;;  %v647_v6 = vcvt.s32.f32 %v640_v17 }
 0x1e3   : > { %v652_v45 = vsel %vm567_vm14, %v651_v11, %v4288_v25  ;;  %vm670_vm0 = vcmp.le.f32.partialorder %v669_v9, 0.7853982  ;;  %vm657_vm3 = vweird.f32 %v4109_v15  ;;  %vm761_vm7 = vweird.f32 %v4182_v48 }
 0x1e4   : > { %v1675_v33 = vsel %vm3948_vm8, 0.0, %v1668_v43  ;;  %v645_v42 = vand.u32 2147483647, %v644_v59  ;;  %v732_v55 = vshll.u32 %v731_v60, 30  ;;  %v654_v54 = vsel %vm4385_vm9, 0, %v652_v45 }
 0x1e5   : > { %v2579_v47 = vpack.i.bf16 %v1675_v33, %v1674_v30  ;;  %v755_v56 = vsub.s32 4, %v731_v60  ;;  %v658_v46 = vadd.s32 3, %v654_v54  ;;  %vm1855_vm11 = vcmask 793600  }
 0x1e6   : > { %v733_v32 = vsub.s32 %v729_v14, %v732_v55  ;;  %v648_v2 = vmul.f32 %v647_v6, %v645_v42  ;;  %v2598_v6 = vld [vmem:[#allocation2 + $0x10] sm:$0xff]   ;;  %vm1676_vm12 = vcmp.eq.s32.totalorder %v4352_v10, 0  ;;  %v2604_v10 = vld [vmem:[#allocation8 + $0x8] sm:$0xff]  }
 0x1e7   : > { %2580 = vperm.xlu1 %2573, %v2579_v47   ;;  %v756_v38 = vsel %vm671_vm15, %v755_v56, %v731_v60  ;;  %v659_v16 = vand.u32 3, %v658_v46  ;;  %v2595_v46 = vld [vmem:[#allocation2 + $0x30] ss:$0 sps:$4 sm:$0x11]  }
 0x1e8   : > { %v735_v19 = vsub.s32 0, %v733_v32  ;;  %v649_v63 = vxor.u32 2147483648, %v648_v2  ;;  %v758_v27 = vsel %vm670_vm0, 0, %v756_v38 }
 0x1e9   : > { %v762_v40 = vadd.s32 3, %v758_v27  ;;  %vm661_vm1 = vcmp.eq.s32.totalorder %v659_v16, 0  ;;  %vm664_vm2 = vcmp.eq.s32.totalorder %v659_v16, 2  ;;  %vm660_vm13 = vcmp.lt.s32.totalorder %v659_v16, 2 }
 0x1ea   : > { %v2188_v28 = vmin.u32 %v735_v19, %v733_v32  ;;  %v650_v44 = vsel %vm567_vm14, %v649_v63, %v648_v2 }
 0x1eb   : > { %v653_v31 = vsel %vm4385_vm9, %v4109_v15, %v650_v44  ;;  %v763_v34 = vand.u32 3, %v762_v40 }
 0x1ec   : > { %v737_v29 = vclz %v2188_v28  ;;  %2646 = vcosq.f32 %v653_v31 }
 0x1ed   : > { %2648 = vsinq.f32 %v653_v31  ;;  %vm768_vm4 = vcmp.eq.s32.totalorder %v763_v34, 2  ;;  %vm765_vm10 = vcmp.eq.s32.totalorder %v763_v34, 0  ;;  %vm764_vm5 = vcmp.lt.s32.totalorder %v763_v34, 2 }
 0x1ee   : > { %v2189_v20 = vadd.s32 4294967294, %v737_v29 }
 0x1f0   : > { %vm2190_vm8 = vcmp.lt.s32.totalorder %v2189_v20, 0 }
 0x1f1   : > { %v740_v5 = vsel %vm2190_vm8, 0, %v2189_v20 }
 0x1f2   : > { %v741_v35 = vsub.s32 32, %v740_v5  ;;  %v742_v13 = vshll.u32 %v733_v32, %v740_v5  ;;  %v745_v23 = vsub.s32 4294967266, %v740_v5 }
 0x1f4   : > { %v743_v51 = vshrl.u32 %v725_v26, %v741_v35  ;;  %v746_v18 = vadd.s32 127, %v745_v23 }
 0x1f6   : > { %v744_v62 = vor.u32 %v743_v51, %v742_v13  ;;  %v747_v39 = vshll.u32 %v746_v18, 23  ;;  %v2647_v12 = vpop.eup %2646 }
 0x1f7   : > { %v2649_v25 = vpop.eup %2648  ;;  %v665_v49 = vxor.u32 2147483648, %v2647_v12 }
 0x1f8   : > { %v748_v0 = vor.u32 4788187, %v747_v39  ;;  %v751_v37 = vcvt.s32.f32 %v744_v62  ;;  %v662_v8 = vxor.u32 2147483648, %v2649_v25 }
 0x1f9   : > { %v666_v9 = vsel %vm664_vm2, %v665_v49, %v2649_v25 }
 0x1fa   : > { %v749_v58 = vand.u32 2147483647, %v748_v0  ;;  %v663_v22 = vsel %vm661_vm1, %v2647_v12, %v662_v8  ;;  %v1872_v12 = vand.u32 %v2595_v46, %v3318_v1 }
 0x1fb   : > { %v667_v41 = vsel %vm660_vm13, %v663_v22, %v666_v9 }
 0x1fc   : > { %v752_v53 = vmul.f32 %v751_v37, %v749_v58  ;;  %v668_v17 = vsel %vm657_vm3, nan, %v667_v41 }
 0x1fd   : > { %v775_v59 = vadd.f32 %v668_v17, %v4109_v15  ;;  %v2602_v15 = vld [vmem:[#allocation8] sm:$0xff]  }
 0x1fe   : > { %v753_v36 = vxor.u32 2147483648, %v752_v53  ;;  %2327 = vmatprep.mubr.msk.bf16.mxu0 %vm1855_vm11, %v2602_v15 }
 0x200   : > { %v754_v52 = vsel %vm671_vm15, %v753_v36, %v752_v53 }
 0x201   : > { %v757_v3 = vsel %vm670_vm0, %v4182_v48, %v754_v52  ;;  %v2605_v52 = vld [vmem:[#allocation8 + $0x18] sm:$0xff]  }
 0x202   : > { %2650 = vcosq.f32 %v757_v3 }
 0x203   : > { %2652 = vsinq.f32 %v757_v3 }
 0x204   : > { %v2576_v32 = vpop.permute.xlu1 %2575 }
 0x205   : > { %v2578_v39 = vunpack.i.h.bf16 %v2576_v32  ;;  %v2577_v45 = vunpack.i.l.bf16 %v2576_v32 }
 0x20c   : > { %v2651_v14 = vpop.eup %2650 }
 0x20d   : > { %v2653_v7 = vpop.eup %2652  ;;  %v769_v50 = vxor.u32 2147483648, %v2651_v14 }
 0x20e   : > { %v766_v4 = vxor.u32 2147483648, %v2653_v7 }
 0x20f   : > { %v770_v24 = vsel %vm768_vm4, %v769_v50, %v2653_v7 }
 0x210   : > { %v767_v43 = vsel %vm765_vm10, %v2651_v14, %v766_v4 }
 0x211   : > { %v771_v30 = vsel %vm764_vm5, %v767_v43, %v770_v24 }
 0x212   : > { %v772_v60 = vsel %vm761_vm7, nan, %v771_v30 }
 0x213   : > { %v776_v33 = vadd.f32 %v772_v60, %v4182_v48  ;;  %v2603_v48 = vld [vmem:[#allocation8 + $0x10] sm:$0xff]  }
 0x214   : > { %2331 = vmatprep.mubr.msk.bf16.mxu1 %vm1855_vm11, %v2603_v48 }
 0x215   : > { %v2568_v47 = vpack.i.bf16 %v776_v33, %v775_v59  ;;  %v2275_v42 = vpack.c.bf16 %v776_v33, %v775_v59 }
 0x217   : > { %2569 = vrot.lane.b32.xlu0 %v2568_v47, %s2922_s11  ;;  %2297 = vst [vmem:[#allocation2 + $0x8] sm:$0xff] %v2275_v42   ;;  %2590 = vrot.lane.b32.xlu1 %v2568_v47, %s2923_s4 }
 0x21b   : > { %2585 = vrot.lane.b32.xlu0 %v3648_v21, %s2923_s4 }
 0x21e   : > { %v2597_v55 = vld [vmem:[#allocation2 + $0x8] sm:$0xff]  }
 0x21f   : > { %2315 = vmatprep.subr.bf16.mxu0 %v2597_v55  ;;  %2336 = vmatprep.subr.bf16.mxu1 %v2597_v55 }
 0x220   : > { %2316 = vmatpush3.bf16.msra.mxu0 %v2597_v55  ;;  %2343 = vmatpush3.bf16.msra.mxu1 %v2597_v55 }
 0x221   : > { %2317 = vmatprep.subr.bf16.mxu0 %v2598_v6  ;;  %2337 = vmatprep.subr.bf16.mxu1 %v2598_v6 }
 0x224   : > { %2318 = vmatpush3.bf16.msra.mxu0 %v2598_v6  ;;  %2344 = vmatpush3.bf16.msra.mxu1 %v2598_v6 }
 0x233   : > { %v2565_v2 = vpop.permute.xlu0 %2564 }
 0x234   : > { %v2567_v19 = vunpack.i.h.bf16 %v2565_v2  ;;  %v2566_v28 = vunpack.i.l.bf16 %v2565_v2 }
 0x266   : > { %v2581_v21 = vpop.permute.xlu1 %2580 }
 0x267   : > { %v2583_v63 = vunpack.i.h.bf16 %v2581_v21  ;;  %v2582_v29 = vunpack.i.l.bf16 %v2581_v21 }
 0x289   : > { %v2570_v20 = vpop.permute.xlu0 %2569  ;;  %v2591_v57 = vpop.permute.xlu1 %2590 }
 0x28a   : > { %v2572_v44 = vunpack.i.h.bf16 %v2570_v20  ;;  %v2571_v26 = vunpack.i.l.bf16 %v2570_v20  ;;  %v2593_v5 = vunpack.i.h.bf16 %v2591_v57  ;;  %v2592_v35 = vunpack.i.l.bf16 %v2591_v57 }
 0x28c   : > { %v1243_v13 = vsel %vm1211_vm6, %v2567_v19, %v2572_v44  ;;  %v1242_v23 = vsel %vm1211_vm6, %v2566_v28, %v2571_v26  ;;  %v1707_v11 = vsel %vm1676_vm12, %v2582_v29, %v2592_v35  ;;  %v1708_v31 = vsel %vm1676_vm12, %v2583_v63, %v2593_v5 }
 0x28d   : > { %v2285_v51 = vpack.c.bf16 %v1243_v13, %v1242_v23  ;;  %v2295_v18 = vpack.c.bf16 %v1708_v31, %v1707_v11  ;;  %v2586_v62 = vpop.permute.xlu0 %2585 }
 0x28e   : > { %v2588_v0 = vunpack.i.h.bf16 %v2586_v62  ;;  %v2587_v37 = vunpack.i.l.bf16 %v2586_v62 }
 0x28f   : > { %2299 = vst [vmem:[#allocation2 + $0x18] sm:$0xff] %v2285_v51   ;;  %2301 = vst [vmem:[#allocation2 + $0x28] sm:$0xff] %v2295_v18  }
 0x290   : > { %v1705_v54 = vsel %vm1676_vm12, %v2577_v45, %v2587_v37  ;;  %v1706_v58 = vsel %vm1676_vm12, %v2578_v39, %v2588_v0 }
 0x291   : > { %v2290_v56 = vpack.c.bf16 %v1706_v58, %v1705_v54 }
 0x293   : > { %2300 = vst [vmem:[#allocation2 + $0x20] sm:$0xff] %v2290_v56  }
 0x296   : > { %v2599_v53 = vld [vmem:[#allocation2 + $0x18] sm:$0xff]   ;;  %v2601_v38 = vld [vmem:[#allocation2 + $0x28] sm:$0xff]  }
 0x297   : > { %2319 = vmatprep.subr.bf16.mxu0 %v2599_v53  ;;  %2338 = vmatprep.subr.bf16.mxu1 %v2599_v53 }
 0x298   : > { %2320 = vmatpush3.bf16.msra.mxu0 %v2599_v53  ;;  %2345 = vmatpush3.bf16.msra.mxu1 %v2599_v53 }
 0x29a   : > { %v2600_v36 = vld [vmem:[#allocation2 + $0x20] sm:$0xff]  }
 0x29b   : > { %2321 = vmatprep.subr.bf16.mxu0 %v2600_v36  ;;  %2339 = vmatprep.subr.bf16.mxu1 %v2600_v36 }
 0x29c   : > { %2322 = vmatpush3.bf16.msra.mxu0 %v2600_v36  ;;  %2346 = vmatpush3.bf16.msra.mxu1 %v2600_v36 }
 0x29d   : > { %2323 = vmatprep.subr.bf16.mxu0 %v2601_v38  ;;  %2340 = vmatprep.subr.bf16.mxu1 %v2601_v38 }
 0x2a0   : > { %2324 = vmatpush3.bf16.msra.mxu0 %v2601_v38  ;;  %2347 = vmatpush3.bf16.msra.mxu1 %v2601_v38 }
 0x2a1   : > { %2325 = vmatprep.subr.bf16.mxu0 %v1872_v12  ;;  %2341 = vmatprep.subr.bf16.mxu1 %v1872_v12 }
 0x2a4   : > { %2326 = vmatpush3.bf16.msra.mxu0 %v1872_v12  ;;  %2348 = vmatpush3.bf16.msra.mxu1 %v1872_v12 }
 0x2a7   : > { %2328 = vmatmul.mubr.msk.bf16.vlgmr.msra.gmra.mrb[0].mxu0 %vm1855_vm11, %v2604_v10  ;;  %2332 = vmatmul.mubr.msk.bf16.vlgmr.msra.gmra.mrb[0].mxu1 %vm1855_vm11, %v2605_v52 }
 0x378   : > { %1953 = sbr.rel (!%p4582_p1) target bundleno = 904 (0x388), region = 56 }
 0x37a   : > { %v2329_v25 = vpop.f32.mrb[0].mxu0  ;;  %v2333_v16 = vpop.f32.mrb[0].mxu1 }
 0x37b   : > { %1941 = vst [vmem:[%s344_s15 + $0x10] sm:$0xff] %v2329_v25  ;;  %1945 = vst [vmem:[%s344_s15 + $0x30] sm:$0xff] %v2333_v16  ;;  %v1908_v1 = vpop.f32.mrb[1].mxu0  ;;  %v1924_v3 = vpop.f32.mrb[1].mxu1 }
 0x37c   : > { %1939 = vst [vmem:[%s344_s15] sm:$0xff] %v1908_v1  ;;  %1943 = vst [vmem:[%s344_s15 + $0x20] sm:$0xff] %v1924_v3  ;;  %v2330_v27 = vpop.f32.mrb[2].mxu0  ;;  %v2334_v8 = vpop.f32.mrb[2].mxu1 }
 0x37d   : > { %1942 = vst [vmem:[%s344_s15 + $0x18] sm:$0xff] %v2330_v27  ;;  %1946 = vst [vmem:[%s344_s15 + $0x38] sm:$0xff] %v2334_v8  ;;  %v1911_v49 = vpop.f32.mrb[3].mxu0  ;;  %v1927_v40 = vpop.f32.mrb[3].mxu1 }
 0x37e   : > { %1940 = vst [vmem:[%s344_s15 + $0x8] sm:$0xff] %v1911_v49  ;;  %1944 = vst [vmem:[%s344_s15 + $0x28] sm:$0xff] %v1927_v40 }
 0x382   : > { %v2003_v9 = vld [vmem:[%s344_s15 + $0x10] sm:$0xff] }
 0x383   : > { %v1999_v61 = vld [vmem:[%s344_s15] sm:$0xff]  ;;  %v2011_v7 = vld [vmem:[%s344_s15 + $0x30] sm:$0xff]  ;;  %2004 = vst [vmem:[%s1957_s23 + $0x20] sm:$0xff] %v2003_v9 }
 0x384   : > { %v2005_v34 = vld [vmem:[%s344_s15 + $0x18] sm:$0xff]  ;;  %v2007_v41 = vld [vmem:[%s344_s15 + $0x20] sm:$0xff]  ;;  %2000 = vst [vmem:[%s1957_s23] sm:$0xff] %v1999_v61  ;;  %2012 = vst [vmem:[%s1957_s23 + $0x60] sm:$0xff] %v2011_v7 }
 0x385   : > { %v2001_v22 = vld [vmem:[%s344_s15 + $0x8] sm:$0xff]  ;;  %v2013_v50 = vld [vmem:[%s344_s15 + $0x38] sm:$0xff]  ;;  %2006 = vst [vmem:[%s1957_s23 + $0x30] sm:$0xff] %v2005_v34  ;;  %2008 = vst [vmem:[%s1957_s23 + $0x40] sm:$0xff] %v2007_v41 }
 0x386   : > { %v2009_v14 = vld [vmem:[%s344_s15 + $0x28] sm:$0xff]  ;;  %2002 = vst [vmem:[%s1957_s23 + $0x10] sm:$0xff] %v2001_v22  ;;  %2014 = vst [vmem:[%s1957_s23 + $0x70] sm:$0xff] %v2013_v50 }
 0x387   : > { %2010 = vst [vmem:[%s1957_s23 + $0x50] sm:$0xff] %v2009_v14 }
 0x388 PF: > { %s21_s28 = sadd.s32 1, %s2903_s28   ;;  %s4587_s12 = sld [smem:[#allocation15_spill]] }
 0x389   : > { %p4439_p12 = scmp.ge.s32.totalorder %s21_s28, 6   ;;  %s4588_s20 = sld [smem:[#allocation22_spill]] }
 0x38a   : > { %s4589_s29 = sld [smem:[#allocation16_spill]]  ;;  %s4590_s23 = sld [smem:[#allocation23_spill]] }
 0x38b   : > { %s4591_s24 = sld [smem:[#allocation19_spill]]  ;;  %s4592_s26 = sld [smem:[#allocation20_spill]] }
 0x38c   : > { %s4593_s10 = sld [smem:[#allocation21_spill]]  ;;  %s4594_s15 = smov %s2855_s16 }
 0x38d   : > { %s4595_s16 = smov %s2859_s17  ;;  %s4596_s17 = smov %s3253_s6 }
 0x38e   : > { %s4597_s18 = smov %s2867_s19  ;;  %s4598_s19 = smov %s4587_s12 }
 0x38f   : > { %s4599_s21 = smov %s2879_s22  ;;  %s4601_s25 = smov %s2899_s27 }
 0x390   : > { %s4600_s22 = smov %s4589_s29  ;;  %20 = sbr.rel (!%p4439_p12) target bundleno = 16 (0x10), region = 142 }
 0x392   : > { %s4602_s27 = smov %s4593_s10 }
 0x397   :  { %2030 = vsyncpa [#allocation4], 1 }
 0x398   :  { %2032 = vsyncpa [#allocation4 + $0x1], 1 }
 0x399   :  { %2033 = vsyncpa [#allocation6], 1 }
 0x39a   :  { %2035 = vsyncpa [#allocation6 + $0x1], 1 }
 0x39b   :  { %2036 = vsyncpa [#allocation9], 1 }

</bundles_post_ra>
